<compile_context>
chip_gen: v5e
topology: v5e:2x2
jax: 0.10.0
libtpu: 0.0.40
codegen_flags: <defaults>
</compile_context>

<pallas_src>
import functools

import jax
import jax.numpy as jnp
from jax.experimental import pallas as pl
from jax.experimental.pallas import tpu as pltpu


# ----------------------------------------------------------------------------
# Tiling / VMEM helpers
# ----------------------------------------------------------------------------
def _round_up(x, m):
    return ((x + m - 1) // m) * m


def _choose_tile_n(N, target=8192, min_tile=2048):
    """Lane-dense pointwise tile (multiple of 128, or full extent).

    HBM-bound kernels want the biggest tile that fits; additionally prefer an
    EVEN number of grid blocks (v7x: both TensorCores busy) whenever the tile
    stays >= min_tile.  Single-TC v5e/v6e just get the large tile."""
    if N <= 128:
        return N                               # full-extent block (tiny N)
    if N <= target:
        if N >= 2 * min_tile and N % 256 == 0:
            return N // 2                      # exactly 2 blocks, 128-aligned
        return N                               # one full-extent block
    tile = (target // 128) * 128
    nblocks = -(-N // tile)
    if nblocks % 2 == 1:                       # nudge block count to be even
        cand = _round_up(-(-N // (nblocks + 1)), 128)
        if cand >= min_tile:
            tile = cand
    return tile


def _choose_tile_m(m_total, cin, cout, batch, budget=8 << 20):
    """Modes-per-step for the spectral mix, sized so the (double-buffered)
    x/w/out blocks stay within ~budget bytes of VMEM."""
    if m_total <= 128:
        return m_total                         # full-extent block
    per_mode = 4 * (2 * cin * batch + 2 * cin * cout + 2 * cout * batch)
    mt = budget // (2 * per_mode)
    mt = (min(int(mt), m_total) // 128) * 128
    return max(mt, 128)


def _vmem_limit_bytes(per_step_bytes):
    """Scoped-VMEM request: double-buffered blocks + headroom, clamped to a
    range that is safe on every generation (v5e default is only 16 MiB)."""
    need = 2 * int(per_step_bytes) + (4 << 20)
    return int(min(max(need, 32 << 20), 64 << 20))


# ----------------------------------------------------------------------------
# Pallas kernels: lane-dense pointwise linear  (Cout,Cin)@(Cin,tile_n)+b,
# optionally fused with a residual add (spectral branch) and a ReLU.
# Dots run on narrow (bf16) operands; accumulation / epilogue in f32.
# ----------------------------------------------------------------------------
def _lin_kernel(w_ref, x_ref, b_ref, o_ref):
    y = jnp.dot(w_ref[...], x_ref[...],
                preferred_element_type=jnp.float32) + b_ref[...]
    o_ref[...] = y.astype(o_ref.dtype)


def _lin_relu_kernel(w_ref, x_ref, b_ref, o_ref):
    y = jnp.dot(w_ref[...], x_ref[...],
                preferred_element_type=jnp.float32) + b_ref[...]
    o_ref[...] = jnp.maximum(y, 0.0).astype(o_ref.dtype)


def _lin_add_kernel(w_ref, x_ref, b_ref, a_ref, o_ref):
    y = (jnp.dot(w_ref[...], x_ref[...],
                 preferred_element_type=jnp.float32)
         + b_ref[...] + a_ref[...].astype(jnp.float32))
    o_ref[...] = y.astype(o_ref.dtype)


def _lin_add_relu_kernel(w_ref, x_ref, b_ref, a_ref, o_ref):
    y = (jnp.dot(w_ref[...], x_ref[...],
                 preferred_element_type=jnp.float32)
         + b_ref[...] + a_ref[...].astype(jnp.float32))
    o_ref[...] = jnp.maximum(y, 0.0).astype(o_ref.dtype)


_LIN_KERNELS = {
    (False, False): _lin_kernel,
    (False, True): _lin_relu_kernel,
    (True, False): _lin_add_kernel,
    (True, True): _lin_add_relu_kernel,
}


def pointwise_linear_cn(x_cn, w_oc, b, add_cn=None, relu=False,
                        out_dtype=None, tile_n=None):
    """x_cn: (Cin, N); w_oc: (Cout, Cin); b: (Cout,) f32; add_cn: (Cout, N)
    or None.  Returns (Cout, N) in out_dtype (default: x_cn.dtype)."""
    Cin, N = x_cn.shape
    Cout = w_oc.shape[0]
    if out_dtype is None:
        out_dtype = x_cn.dtype
    if tile_n is None:
        tile_n = _choose_tile_n(N)
    grid = (pl.cdiv(N, tile_n),)

    in_specs = [
        pl.BlockSpec((Cout, Cin), lambda i: (0, 0)),
        pl.BlockSpec((Cin, tile_n), lambda i: (0, i)),
        pl.BlockSpec((Cout, 1), lambda i: (0, 0)),
    ]
    args = [w_oc, x_cn, b.reshape(Cout, 1).astype(jnp.float32)]
    if add_cn is not None:
        in_specs.append(pl.BlockSpec((Cout, tile_n), lambda i: (0, i)))
        args.append(add_cn)

    xb = jnp.dtype(x_cn.dtype).itemsize
    ob = jnp.dtype(out_dtype).itemsize
    ab = jnp.dtype(add_cn.dtype).itemsize if add_cn is not None else 0
    per_step = (tile_n * (Cin * xb + Cout * ob + Cout * ab)
                + Cout * Cin * xb + Cout * 4)
    flops = 2 * N * Cin * Cout
    bytes_acc = int(N * Cin * xb + Cout * Cin * xb + Cout * 4
                    + N * Cout * ob + N * Cout * ab)

    kernel = _LIN_KERNELS[(add_cn is not None, relu)]
    return pl.pallas_call(
        kernel,
        out_shape=jax.ShapeDtypeStruct((Cout, N), out_dtype),
        grid=grid,
        in_specs=in_specs,
        out_specs=pl.BlockSpec((Cout, tile_n), lambda i: (0, i)),
        compiler_params=pltpu.CompilerParams(
            dimension_semantics=("parallel",),
            vmem_limit_bytes=_vmem_limit_bytes(per_step)),
        cost_estimate=pl.CostEstimate(flops=flops, transcendentals=0,
                                      bytes_accessed=bytes_acc),
    )(*args)


# ----------------------------------------------------------------------------
# Pallas kernel: fused projection head  fc2(relu(fc1(x)))
# keeps the (128, tile_n) intermediate in VMEM (no HBM round trip).
# ----------------------------------------------------------------------------
def _head_kernel(x_ref, w1_ref, b1_ref, w2_ref, b2_ref, o_ref):
    z = jnp.dot(w1_ref[...], x_ref[...],
                preferred_element_type=jnp.float32) + b1_ref[...]
    z = jnp.maximum(z, 0.0).astype(w2_ref.dtype)      # narrow operand for dot 2
    y = jnp.dot(w2_ref[...], z,
                preferred_element_type=jnp.float32) + b2_ref[...]
    o_ref[...] = y.astype(o_ref.dtype)


def projection_head(x_cn, w1_oc, b1, w2_oc, b2, tile_n=None):
    """x_cn: (width, N); w1_oc: (128, width); w2_oc: (2, 128) -> (2, N) f32."""
    Cin, N = x_cn.shape
    H = w1_oc.shape[0]
    Cout = w2_oc.shape[0]
    if tile_n is None:
        # Smaller target than the elementwise layers: the (H, tile_n) f32
        # intermediate lives in VMEM and gets vld/vst-bound if pushed too far.
        tile_n = _choose_tile_n(N, target=1024, min_tile=512)
    grid = (pl.cdiv(N, tile_n),)

    xb = jnp.dtype(x_cn.dtype).itemsize
    per_step = (tile_n * (Cin * xb + H * 4 + Cout * 4)
                + (H * Cin + Cout * H) * xb + (H + Cout) * 4)
    flops = 2 * N * Cin * H + 2 * N * H * Cout
    bytes_acc = int(N * Cin * xb + (H * Cin + Cout * H) * xb
                    + (H + Cout) * 4 + N * Cout * 4)

    return pl.pallas_call(
        _head_kernel,
        out_shape=jax.ShapeDtypeStruct((Cout, N), jnp.float32),
        grid=grid,
        in_specs=[pl.BlockSpec((Cin, tile_n), lambda i: (0, i)),
                  pl.BlockSpec((H, Cin), lambda i: (0, 0)),
                  pl.BlockSpec((H, 1), lambda i: (0, 0)),
                  pl.BlockSpec((Cout, H), lambda i: (0, 0)),
                  pl.BlockSpec((Cout, 1), lambda i: (0, 0))],
        out_specs=pl.BlockSpec((Cout, tile_n), lambda i: (0, i)),
        compiler_params=pltpu.CompilerParams(
            dimension_semantics=("parallel",),
            vmem_limit_bytes=_vmem_limit_bytes(per_step)),
        cost_estimate=pl.CostEstimate(flops=flops, transcendentals=0,
                                      bytes_accessed=bytes_acc),
    )(x_cn, w1_oc, b1.reshape(H, 1).astype(jnp.float32),
      w2_oc, b2.reshape(Cout, 1).astype(jnp.float32))


# ----------------------------------------------------------------------------
# Pallas kernel: spectral channel mixing (lane-dense, VPU MAC over Cin).
# Layout: modes (both bands concatenated, length 2*m1*m2) on LANES, batch on
# sublanes, channels as the leading / looped axis.  Per mode m:
#   out[o,b,m] = sum_i W[i,o,m] * x[i,b,m]   (complex, done on split re/im)
# Weights are per-mode, so this is inherently not one big matmul; the flops
# are negligible (~M*B*4*width^2), so a VPU broadcast-MAC beats M tiny MXU ops.
# ----------------------------------------------------------------------------
def _spectral_mix_kernel(xr_ref, xi_ref, wr_ref, wi_ref, or_ref, oi_ref):
    # xr/xi: (Cin, B, Mt)  wr/wi: (Cin, Cout, Mt)  or/oi: (Cout, B, Mt)  (f32)
    cin = xr_ref.shape[0]
    xr = xr_ref[0][None, :, :]
    xi = xi_ref[0][None, :, :]
    wr = wr_ref[0][:, None, :]
    wi = wi_ref[0][:, None, :]
    acc_r = wr * xr - wi * xi
    acc_i = wi * xr + wr * xi
    for i in range(1, cin):
        xr = xr_ref[i][None, :, :]
        xi = xi_ref[i][None, :, :]
        wr = wr_ref[i][:, None, :]
        wi = wi_ref[i][:, None, :]
        acc_r = acc_r + (wr * xr - wi * xi)
        acc_i = acc_i + (wi * xr + wr * xi)
    or_ref[...] = acc_r
    oi_ref[...] = acc_i


def spectral_conv2d(h_cn, wr, wi, B, S1, S2, modes1, modes2,
                    out_dtype=jnp.float32):
    """h_cn: (Cin, N) activation with N == B*S1*S2; wr/wi: (Cin, Cout, 2*M)
    f32 precomputed real/imag of [weights1 | weights2] (modes flattened).
    Returns (Cout, N) in out_dtype."""
    Cin = h_cn.shape[0]
    Cout = wr.shape[1]
    M2 = 2 * modes1 * modes2            # both bands, merged on one mode axis

    x = h_cn.astype(jnp.float32).reshape(Cin, B, S1, S2)
    x_ft = jnp.fft.rfft2(x, axes=(2, 3))                 # (Cin,B,S1,S2//2+1)
    sel = jnp.concatenate([x_ft[:, :, :modes1, :modes2],
                           x_ft[:, :, S1 - modes1:, :modes2]],
                          axis=2)                        # (Cin,B,2*m1,m2)
    sel = sel.reshape(Cin, B, M2)                        # modes last (lanes)
    xr = jnp.real(sel).astype(jnp.float32)
    xi = jnp.imag(sel).astype(jnp.float32)

    tile_m = _choose_tile_m(M2, Cin, Cout, B)
    grid = (pl.cdiv(M2, tile_m),)
    per_step = 4 * tile_m * (2 * Cin * B + 2 * Cin * Cout + 2 * Cout * B)
    flops = 8 * M2 * B * Cin * Cout
    bytes_acc = int(4 * M2 * (2 * Cin * B + 2 * Cin * Cout + 2 * Cout * B))

    o_r, o_i = pl.pallas_call(
        _spectral_mix_kernel,
        out_shape=(jax.ShapeDtypeStruct((Cout, B, M2), jnp.float32),
                   jax.ShapeDtypeStruct((Cout, B, M2), jnp.float32)),
        grid=grid,
        in_specs=[pl.BlockSpec((Cin, B, tile_m), lambda i: (0, 0, i)),
                  pl.BlockSpec((Cin, B, tile_m), lambda i: (0, 0, i)),
                  pl.BlockSpec((Cin, Cout, tile_m), lambda i: (0, 0, i)),
                  pl.BlockSpec((Cin, Cout, tile_m), lambda i: (0, 0, i))],
        out_specs=(pl.BlockSpec((Cout, B, tile_m), lambda i: (0, 0, i)),
                   pl.BlockSpec((Cout, B, tile_m), lambda i: (0, 0, i))),
        compiler_params=pltpu.CompilerParams(
            dimension_semantics=("parallel",),
            vmem_limit_bytes=_vmem_limit_bytes(per_step)),
        cost_estimate=pl.CostEstimate(flops=flops, transcendentals=0,
                                      bytes_accessed=bytes_acc),
    )(xr, xi, wr, wi)

    # Reassemble the truncated spectrum and inverse-transform.
    o_c = (o_r + 1j * o_i).astype(jnp.complex64)         # (Cout, B, 2M)
    o_c = o_c.reshape(Cout, B, 2 * modes1, modes2)
    top = o_c[:, :, :modes1]
    bot = o_c[:, :, modes1:]
    half = S2 // 2 + 1
    if S1 >= 2 * modes1:
        mid = jnp.zeros((Cout, B, S1 - 2 * modes1, modes2), jnp.complex64)
        band = jnp.concatenate([top, mid, bot], axis=2)  # (Cout,B,S1,m2)
    else:  # overlapping bands (rare): PyTorch "second write wins" semantics
        band = jnp.zeros((Cout, B, S1, modes2), jnp.complex64)
        band = band.at[:, :, :modes1].set(top)
        band = band.at[:, :, S1 - modes1:].set(bot)
    out_ft = jnp.pad(band, ((0, 0), (0, 0), (0, 0), (0, half - modes2)))
    y = jnp.fft.irfft2(out_ft, s=(S1, S2), axes=(2, 3))  # (Cout,B,S1,S2) f32
    return y.reshape(Cout, B * S1 * S2).astype(out_dtype)


# ----------------------------------------------------------------------------
# Parameter preparation (done ONCE, outside the jitted forward pass):
# transpose to (Cout, Cin), cast matmul weights to the compute dtype, keep
# biases f32, pre-extract real/imag of the spectral weights in the
# (Cin, Cout, 2*M) band-concatenated layout the spectral kernel consumes.
# ----------------------------------------------------------------------------
def prepare_params(params, modes1, modes2, compute_dtype=jnp.bfloat16):
    M = modes1 * modes2
    p = {}
    p['fc0_w'] = params['fc0_w'].T.astype(compute_dtype)
    p['fc0_b'] = params['fc0_b'].astype(jnp.float32)
    for l in range(4):
        p[f'w{l}_w'] = params[f'w{l}_w'].T.astype(compute_dtype)
        p[f'w{l}_b'] = params[f'w{l}_b'].astype(jnp.float32)
        w1 = params[f'conv{l}_w1']
        w2 = params[f'conv{l}_w2']
        cin, cout = w1.shape[0], w1.shape[1]
        w = jnp.concatenate([w1.reshape(cin, cout, M),
                             w2.reshape(cin, cout, M)], axis=-1)  # (Cin,Cout,2M)
        p[f'conv{l}_wr'] = jnp.real(w).astype(jnp.float32)
        p[f'conv{l}_wi'] = jnp.imag(w).astype(jnp.float32)
    p['fc1_w'] = params['fc1_w'].T.astype(compute_dtype)
    p['fc1_b'] = params['fc1_b'].astype(jnp.float32)
    p['fc2_w'] = params['fc2_w'].T.astype(compute_dtype)
    p['fc2_b'] = params['fc2_b'].astype(jnp.float32)
    return p


# ----------------------------------------------------------------------------
# FNO2d forward
# ----------------------------------------------------------------------------
def fno2d_forward(x, prep, modes1, modes2, width):
    """x: (B, S, S, 2) float32 -> (B, S, S, 2) float32."""
    B, S1, S2, Cin0 = x.shape
    N = B * S1 * S2
    act_dtype = prep['fc0_w'].dtype       # bf16 storage between layers

    # channels-first flattened layout (C, N): pixels on lanes.
    x_cn = x.reshape(N, Cin0).T.astype(act_dtype)                  # (2, N)

    # fc0: lift 2 -> width
    h = pointwise_linear_cn(x_cn, prep['fc0_w'], prep['fc0_b'],
                            out_dtype=act_dtype)                   # (width, N)

    # 4 Fourier layers: x = act(SpectralConv(x) + 1x1Conv(x))
    for l in range(4):
        spec = spectral_conv2d(h, prep[f'conv{l}_wr'], prep[f'conv{l}_wi'],
                               B, S1, S2, modes1, modes2,
                               out_dtype=act_dtype)                # (width, N)
        h = pointwise_linear_cn(h, prep[f'w{l}_w'], prep[f'w{l}_b'],
                                add_cn=spec, relu=(l < 3),
                                out_dtype=act_dtype)   # last layer: no ReLU

    # fused projection head: fc2(relu(fc1(h)))
    out_cn = projection_head(h, prep['fc1_w'], prep['fc1_b'],
                             prep['fc2_w'], prep['fc2_b'])         # (2, N) f32
    return out_cn.T.reshape(B, S1, S2, 2).astype(jnp.float32)


# ----------------------------------------------------------------------------
# Deterministic parameter init (mirrors shapes in FNO2d.__init__)
# ----------------------------------------------------------------------------
def init_params(key, width, modes1, modes2):
    ks = jax.random.split(key, 16)
    p = {}

    def lin(k, fan_in, fan_out):
        kw, kb = jax.random.split(k)
        bound = 1.0 / (fan_in ** 0.5)
        w = jax.random.uniform(kw, (fan_in, fan_out), jnp.float32, -bound, bound)
        b = jax.random.uniform(kb, (fan_out,), jnp.float32, -bound, bound)
        return w, b

    def cplx(k, cin, cout, m1, m2):
        kr, ki = jax.random.split(k)
        scale = 1.0 / (cin * cout)
        re = jax.random.uniform(kr, (cin, cout, m1, m2), jnp.float32)
        im = jax.random.uniform(ki, (cin, cout, m1, m2), jnp.float32)
        return (scale * (re + 1j * im)).astype(jnp.complex64)

    p['fc0_w'], p['fc0_b'] = lin(ks[0], 2, width)
    for l in range(4):
        p[f'w{l}_w'], p[f'w{l}_b'] = lin(ks[1 + l], width, width)  # Conv1d k=1
        k1, k2 = jax.random.split(ks[5 + l])
        p[f'conv{l}_w1'] = cplx(k1, width, width, modes1, modes2)
        p[f'conv{l}_w2'] = cplx(k2, width, width, modes1, modes2)
    p['fc1_w'], p['fc1_b'] = lin(ks[9], width, 128)
    p['fc2_w'], p['fc2_b'] = lin(ks[10], 128, 2)
    return p


if __name__ == "__main__":
    B, S = 2, 16
    MODES1, MODES2, WIDTH = 4, 4, 16

    key = jax.random.PRNGKey(0)
    kx, kp = jax.random.split(key)
    x = jax.random.normal(kx, (B, S, S, 2), jnp.float32)
    params = init_params(kp, WIDTH, MODES1, MODES2)
    prep = prepare_params(params, MODES1, MODES2, compute_dtype=jnp.bfloat16)

    fwd = jax.jit(functools.partial(fno2d_forward, modes1=MODES1,
                                    modes2=MODES2, width=WIDTH))
    out = fwd(x, prep)
    out = jax.block_until_ready(out)
    assert out.shape == (B, S, S, 2) and out.dtype == jnp.float32
    assert bool(jnp.all(jnp.isfinite(out)))
    print("KERNEL_OK")
</pallas_src>

<mosaic_0001>
module attributes {stable_mosaic.version = 11 : i64} {
  func.func @_lin_kernel(%arg0: i32, %arg1: memref<16x2xbf16, #tpu.memory_space<vmem>>, %arg2: memref<2x512xbf16, #tpu.memory_space<vmem>>, %arg3: memref<16x1xf32, #tpu.memory_space<vmem>>, %arg4: memref<16x512xbf16, #tpu.memory_space<vmem>>) attributes {dimension_semantics = [#tpu.dimension_semantics<parallel>], iteration_bounds = array<i64: 1>, scalar_prefetch = 0 : i64, scratch_operands = 0 : i64, tpu.core_type = #tpu.core_type<tc>, window_params = [{pipeline_mode = #tpu.pipeline_mode<synchronous>, transform_indices = @transform_0, window_bounds = array<i64: 16, 2>}, {transform_indices = @transform_1, window_bounds = array<i64: 2, 512>}, {pipeline_mode = #tpu.pipeline_mode<synchronous>, transform_indices = @transform_2, window_bounds = array<i64: 16, 1>}, {transform_indices = @transform_3, window_bounds = array<i64: 16, 512>}]} {
    %c0 = arith.constant 0 : index
    %c0_0 = arith.constant 0 : index
    %0 = vector.load %arg1[%c0, %c0_0] : memref<16x2xbf16, #tpu.memory_space<vmem>>, vector<16x2xbf16>
    %c0_1 = arith.constant 0 : index
    %c0_2 = arith.constant 0 : index
    %1 = vector.load %arg2[%c0_1, %c0_2] : memref<2x512xbf16, #tpu.memory_space<vmem>>, vector<2x512xbf16>
    %cst = arith.constant dense<0.000000e+00> : vector<16x512xf32>
    %2 = tpu.matmul %0, %1, %cst {dimension_numbers = #tpu.dot_dimension_numbers<[1], [0], [0], [1], [0, 0, 1, 1], [], []>} : vector<16x2xbf16>, vector<2x512xbf16>, vector<16x512xf32> -> vector<16x512xf32>
    %c0_3 = arith.constant 0 : index
    %c0_4 = arith.constant 0 : index
    %3 = vector.load %arg3[%c0_3, %c0_4] : memref<16x1xf32, #tpu.memory_space<vmem>>, vector<16x1xf32>
    %4 = vector.broadcast %3 : vector<16x1xf32> to vector<16x512xf32>
    %5 = arith.addf %2, %4 : vector<16x512xf32>
    %6 = arith.truncf %5 : vector<16x512xf32> to vector<16x512xbf16>
    %c0_5 = arith.constant 0 : index
    %c0_6 = arith.constant 0 : index
    %7 = vector.load %arg4[%c0_5, %c0_6] : memref<16x512xbf16, #tpu.memory_space<vmem>>, vector<16x512xbf16>
    tpu.vector_store %arg4[%c0_5, %c0_6], %6 {strides = array<i32>} : memref<16x512xbf16, #tpu.memory_space<vmem>>, vector<16x512xbf16>,
    return
  }
  func.func @transform_0(%arg0: i32) -> (i32, i32) {
    %c0_i32 = arith.constant 0 : i32
    %c0_i32_0 = arith.constant 0 : i32
    %c0_i32_1 = arith.constant 0 : i32
    return %c0_i32, %c0_i32_0 : i32, i32
  }
  func.func @transform_1(%arg0: i32) -> (i32, i32) {
    %c0_i32 = arith.constant 0 : i32
    %c0_i32_0 = arith.constant 0 : i32
    return %c0_i32, %arg0 : i32, i32
  }
  func.func @transform_2(%arg0: i32) -> (i32, i32) {
    %c0_i32 = arith.constant 0 : i32
    %c0_i32_0 = arith.constant 0 : i32
    %c0_i32_1 = arith.constant 0 : i32
    return %c0_i32, %c0_i32_0 : i32, i32
  }
  func.func @transform_3(%arg0: i32) -> (i32, i32) {
    %c0_i32 = arith.constant 0 : i32
    %c0_i32_0 = arith.constant 0 : i32
    return %c0_i32, %arg0 : i32, i32
  }
}

module attributes {stable_mosaic.version = 11 : i64} {
  func.func @_spectral_mix_kernel(%arg0: i32, %arg1: memref<16x2x32xf32, #tpu.memory_space<vmem>>, %arg2: memref<16x2x32xf32, #tpu.memory_space<vmem>>, %arg3: memref<16x16x32xf32, #tpu.memory_space<vmem>>, %arg4: memref<16x16x32xf32, #tpu.memory_space<vmem>>, %arg5: memref<16x2x32xf32, #tpu.memory_space<vmem>>, %arg6: memref<16x2x32xf32, #tpu.memory_space<vmem>>) attributes {dimension_semantics = [#tpu.dimension_semantics<parallel>], iteration_bounds = array<i64: 1>, scalar_prefetch = 0 : i64, scratch_operands = 0 : i64, tpu.core_type = #tpu.core_type<tc>, window_params = [{transform_indices = @transform_0, window_bounds = array<i64: 16, 2, 32>}, {transform_indices = @transform_1, window_bounds = array<i64: 16, 2, 32>}, {transform_indices = @transform_2, window_bounds = array<i64: 16, 16, 32>}, {transform_indices = @transform_3, window_bounds = array<i64: 16, 16, 32>}, {transform_indices = @transform_4, window_bounds = array<i64: 16, 2, 32>}, {transform_indices = @transform_5, window_bounds = array<i64: 16, 2, 32>}]} {
    %c0 = arith.constant 0 : index
    %c0_0 = arith.constant 0 : index
    %c0_1 = arith.constant 0 : index
    %0 = vector.load %arg1[%c0, %c0_0, %c0_1] : memref<16x2x32xf32, #tpu.memory_space<vmem>>, vector<1x2x32xf32>
    %1 = vector.shape_cast %0 : vector<1x2x32xf32> to vector<2x32xf32>
    %2 = vector.shape_cast %1 : vector<2x32xf32> to vector<1x2x32xf32>
    %c0_2 = arith.constant 0 : index
    %c0_3 = arith.constant 0 : index
    %c0_4 = arith.constant 0 : index
    %3 = vector.load %arg2[%c0_2, %c0_3, %c0_4] : memref<16x2x32xf32, #tpu.memory_space<vmem>>, vector<1x2x32xf32>
    %4 = vector.shape_cast %3 : vector<1x2x32xf32> to vector<2x32xf32>
    %5 = vector.shape_cast %4 : vector<2x32xf32> to vector<1x2x32xf32>
    %c0_5 = arith.constant 0 : index
    %c0_6 = arith.constant 0 : index
    %c0_7 = arith.constant 0 : index
    %6 = vector.load %arg3[%c0_5, %c0_6, %c0_7] : memref<16x16x32xf32, #tpu.memory_space<vmem>>, vector<1x16x32xf32>
    %7 = vector.shape_cast %6 : vector<1x16x32xf32> to vector<16x32xf32>
    %8 = vector.shape_cast %7 : vector<16x32xf32> to vector<16x1x32xf32>
    %c0_8 = arith.constant 0 : index
    %c0_9 = arith.constant 0 : index
    %c0_10 = arith.constant 0 : index
    %9 = vector.load %arg4[%c0_8, %c0_9, %c0_10] : memref<16x16x32xf32, #tpu.memory_space<vmem>>, vector<1x16x32xf32>
    %10 = vector.shape_cast %9 : vector<1x16x32xf32> to vector<16x32xf32>
    %11 = vector.shape_cast %10 : vector<16x32xf32> to vector<16x1x32xf32>
    %12 = vector.broadcast %8 : vector<16x1x32xf32> to vector<16x2x32xf32>
    %13 = vector.broadcast %2 : vector<1x2x32xf32> to vector<16x2x32xf32>
    %14 = arith.mulf %12, %13 : vector<16x2x32xf32>
    %15 = vector.broadcast %11 : vector<16x1x32xf32> to vector<16x2x32xf32>
    %16 = vector.broadcast %5 : vector<1x2x32xf32> to vector<16x2x32xf32>
    %17 = arith.mulf %15, %16 : vector<16x2x32xf32>
    %18 = arith.subf %14, %17 : vector<16x2x32xf32>
    %19 = vector.broadcast %11 : vector<16x1x32xf32> to vector<16x2x32xf32>
    %20 = vector.broadcast %2 : vector<1x2x32xf32> to vector<16x2x32xf32>
    %21 = arith.mulf %19, %20 : vector<16x2x32xf32>
    %22 = vector.broadcast %8 : vector<16x1x32xf32> to vector<16x2x32xf32>
    %23 = vector.broadcast %5 : vector<1x2x32xf32> to vector<16x2x32xf32>
    %24 = arith.mulf %22, %23 : vector<16x2x32xf32>
    %25 = arith.addf %21, %24 : vector<16x2x32xf32>
    %c1 = arith.constant 1 : index
    %c0_11 = arith.constant 0 : index
    %c0_12 = arith.constant 0 : index
    %26 = vector.load %arg1[%c1, %c0_11, %c0_12] : memref<16x2x32xf32, #tpu.memory_space<vmem>>, vector<1x2x32xf32>
    %27 = vector.shape_cast %26 : vector<1x2x32xf32> to vector<2x32xf32>
    %28 = vector.shape_cast %27 : vector<2x32xf32> to vector<1x2x32xf32>
    %c1_13 = arith.constant 1 : index
    %c0_14 = arith.constant 0 : index
    %c0_15 = arith.constant 0 : index
    %29 = vector.load %arg2[%c1_13, %c0_14, %c0_15] : memref<16x2x32xf32, #tpu.memory_space<vmem>>, vector<1x2x32xf32>
    %30 = vector.shape_cast %29 : vector<1x2x32xf32> to vector<2x32xf32>
    %31 = vector.shape_cast %30 : vector<2x32xf32> to vector<1x2x32xf32>
    %c1_16 = arith.constant 1 : index
    %c0_17 = arith.constant 0 : index
    %c0_18 = arith.constant 0 : index
    %32 = vector.load %arg3[%c1_16, %c0_17, %c0_18] : memref<16x16x32xf32, #tpu.memory_space<vmem>>, vector<1x16x32xf32>
    %33 = vector.shape_cast %32 : vector<1x16x32xf32> to vector<16x32xf32>
    %34 = vector.shape_cast %33 : vector<16x32xf32> to vector<16x1x32xf32>
    %c1_19 = arith.constant 1 : index
    %c0_20 = arith.constant 0 : index
    %c0_21 = arith.constant 0 : index
    %35 = vector.load %arg4[%c1_19, %c0_20, %c0_21] : memref<16x16x32xf32, #tpu.memory_space<vmem>>, vector<1x16x32xf32>
    %36 = vector.shape_cast %35 : vector<1x16x32xf32> to vector<16x32xf32>
    %37 = vector.shape_cast %36 : vector<16x32xf32> to vector<16x1x32xf32>
    %38 = vector.broadcast %34 : vector<16x1x32xf32> to vector<16x2x32xf32>
    %39 = vector.broadcast %28 : vector<1x2x32xf32> to vector<16x2x32xf32>
    %40 = arith.mulf %38, %39 : vector<16x2x32xf32>
    %41 = vector.broadcast %37 : vector<16x1x32xf32> to vector<16x2x32xf32>
    %42 = vector.broadcast %31 : vector<1x2x32xf32> to vector<16x2x32xf32>
    %43 = arith.mulf %41, %42 : vector<16x2x32xf32>
    %44 = arith.subf %40, %43 : vector<16x2x32xf32>
    %45 = arith.addf %18, %44 : vector<16x2x32xf32>
    %46 = vector.broadcast %37 : vector<16x1x32xf32> to vector<16x2x32xf32>
    %47 = vector.broadcast %28 : vector<1x2x32xf32> to vector<16x2x32xf32>
    %48 = arith.mulf %46, %47 : vector<16x2x32xf32>
    %49 = vector.broadcast %34 : vector<16x1x32xf32> to vector<16x2x32xf32>
    %50 = vector.broadcast %31 : vector<1x2x32xf32> to vector<16x2x32xf32>
    %51 = arith.mulf %49, %50 : vector<16x2x32xf32>
    %52 = arith.addf %48, %51 : vector<16x2x32xf32>
    %53 = arith.addf %25, %52 : vector<16x2x32xf32>
    %c2 = arith.constant 2 : index
    %c0_22 = arith.constant 0 : index
    %c0_23 = arith.constant 0 : index
    %54 = vector.load %arg1[%c2, %c0_22, %c0_23] : memref<16x2x32xf32, #tpu.memory_space<vmem>>, vector<1x2x32xf32>
    %55 = vector.shape_cast %54 : vector<1x2x32xf32> to vector<2x32xf32>
    %56 = vector.shape_cast %55 : vector<2x32xf32> to vector<1x2x32xf32>
    %c2_24 = arith.constant 2 : index
    %c0_25 = arith.constant 0 : index
    %c0_26 = arith.constant 0 : index
    %57 = vector.load %arg2[%c2_24, %c0_25, %c0_26] : memref<16x2x32xf32, #tpu.memory_space<vmem>>, vector<1x2x32xf32>
    %58 = vector.shape_cast %57 : vector<1x2x32xf32> to vector<2x32xf32>
    %59 = vector.shape_cast %58 : vector<2x32xf32> to vector<1x2x32xf32>
    %c2_27 = arith.constant 2 : index
    %c0_28 = arith.constant 0 : index
    %c0_29 = arith.constant 0 : index
    %60 = vector.load %arg3[%c2_27, %c0_28, %c0_29] : memref<16x16x32xf32, #tpu.memory_space<vmem>>, vector<1x16x32xf32>
    %61 = vector.shape_cast %60 : vector<1x16x32xf32> to vector<16x32xf32>
    %62 = vector.shape_cast %61 : vector<16x32xf32> to vector<16x1x32xf32>
    %c2_30 = arith.constant 2 : index
    %c0_31 = arith.constant 0 : index
    %c0_32 = arith.constant 0 : index
    %63 = vector.load %arg4[%c2_30, %c0_31, %c0_32] : memref<16x16x32xf32, #tpu.memory_space<vmem>>, vector<1x16x32xf32>
    %64 = vector.shape_cast %63 : vector<1x16x32xf32> to vector<16x32xf32>
    %65 = vector.shape_cast %64 : vector<16x32xf32> to vector<16x1x32xf32>
    %66 = vector.broadcast %62 : vector<16x1x32xf32> to vector<16x2x32xf32>
    %67 = vector.broadcast %56 : vector<1x2x32xf32> to vector<16x2x32xf32>
    %68 = arith.mulf %66, %67 : vector<16x2x32xf32>
    %69 = vector.broadcast %65 : vector<16x1x32xf32> to vector<16x2x32xf32>
    %70 = vector.broadcast %59 : vector<1x2x32xf32> to vector<16x2x32xf32>
    %71 = arith.mulf %69, %70 : vector<16x2x32xf32>
    %72 = arith.subf %68, %71 : vector<16x2x32xf32>
    %73 = arith.addf %45, %72 : vector<16x2x32xf32>
    %74 = vector.broadcast %65 : vector<16x1x32xf32> to vector<16x2x32xf32>
    %75 = vector.broadcast %56 : vector<1x2x32xf32> to vector<16x2x32xf32>
    %76 = arith.mulf %74, %75 : vector<16x2x32xf32>
    %77 = vector.broadcast %62 : vector<16x1x32xf32> to vector<16x2x32xf32>
    %78 = vector.broadcast %59 : vector<1x2x32xf32> to vector<16x2x32xf32>
    %79 = arith.mulf %77, %78 : vector<16x2x32xf32>
    %80 = arith.addf %76, %79 : vector<16x2x32xf32>
    %81 = arith.addf %53, %80 : vector<16x2x32xf32>
    %c3 = arith.constant 3 : index
    %c0_33 = arith.constant 0 : index
    %c0_34 = arith.constant 0 : index
    %82 = vector.load %arg1[%c3, %c0_33, %c0_34] : memref<16x2x32xf32, #tpu.memory_space<vmem>>, vector<1x2x32xf32>
    %83 = vector.shape_cast %82 : vector<1x2x32xf32> to vector<2x32xf32>
    %84 = vector.shape_cast %83 : vector<2x32xf32> to vector<1x2x32xf32>
    %c3_35 = arith.constant 3 : index
    %c0_36 = arith.constant 0 : index
    %c0_37 = arith.constant 0 : index
    %85 = vector.load %arg2[%c3_35, %c0_36, %c0_37] : memref<16x2x32xf32, #tpu.memory_space<vmem>>, vector<1x2x32xf32>
    %86 = vector.shape_cast %85 : vector<1x2x32xf32> to vector<2x32xf32>
    %87 = vector.shape_cast %86 : vector<2x32xf32> to vector<1x2x32xf32>
    %c3_38 = arith.constant 3 : index
    %c0_39 = arith.constant 0 : index
    %c0_40 = arith.constant 0 : index
    %88 = vector.load %arg3[%c3_38, %c0_39, %c0_40] : memref<16x16x32xf32, #tpu.memory_space<vmem>>, vector<1x16x32xf32>
    %89 = vector.shape_cast %88 : vector<1x16x32xf32> to vector<16x32xf32>
    %90 = vector.shape_cast %89 : vector<16x32xf32> to vector<16x1x32xf32>
    %c3_41 = arith.constant 3 : index
    %c0_42 = arith.constant 0 : index
    %c0_43 = arith.constant 0 : index
    %91 = vector.load %arg4[%c3_41, %c0_42, %c0_43] : memref<16x16x32xf32, #tpu.memory_space<vmem>>, vector<1x16x32xf32>
    %92 = vector.shape_cast %91 : vector<1x16x32xf32> to vector<16x32xf32>
    %93 = vector.shape_cast %92 : vector<16x32xf32> to vector<16x1x32xf32>
    %94 = vector.broadcast %90 : vector<16x1x32xf32> to vector<16x2x32xf32>
    %95 = vector.broadcast %84 : vector<1x2x32xf32> to vector<16x2x32xf32>
    %96 = arith.mulf %94, %95 : vector<16x2x32xf32>
    %97 = vector.broadcast %93 : vector<16x1x32xf32> to vector<16x2x32xf32>
    %98 = vector.broadcast %87 : vector<1x2x32xf32> to vector<16x2x32xf32>
    %99 = arith.mulf %97, %98 : vector<16x2x32xf32>
    %100 = arith.subf %96, %99 : vector<16x2x32xf32>
    %101 = arith.addf %73, %100 : vector<16x2x32xf32>
    %102 = vector.broadcast %93 : vector<16x1x32xf32> to vector<16x2x32xf32>
    %103 = vector.broadcast %84 : vector<1x2x32xf32> to vector<16x2x32xf32>
    %104 = arith.mulf %102, %103 : vector<16x2x32xf32>
    %105 = vector.broadcast %90 : vector<16x1x32xf32> to vector<16x2x32xf32>
    %106 = vector.broadcast %87 : vector<1x2x32xf32> to vector<16x2x32xf32>
    %107 = arith.mulf %105, %106 : vector<16x2x32xf32>
    %108 = arith.addf %104, %107 : vector<16x2x32xf32>
    %109 = arith.addf %81, %108 : vector<16x2x32xf32>
    %c4 = arith.constant 4 : index
    %c0_44 = arith.constant 0 : index
    %c0_45 = arith.constant 0 : index
    %110 = vector.load %arg1[%c4, %c0_44, %c0_45] : memref<16x2x32xf32, #tpu.memory_space<vmem>>, vector<1x2x32xf32>
    %111 = vector.shape_cast %110 : vector<1x2x32xf32> to vector<2x32xf32>
    %112 = vector.shape_cast %111 : vector<2x32xf32> to vector<1x2x32xf32>
    %c4_46 = arith.constant 4 : index
    %c0_47 = arith.constant 0 : index
    %c0_48 = arith.constant 0 : index
    %113 = vector.load %arg2[%c4_46, %c0_47, %c0_48] : memref<16x2x32xf32, #tpu.memory_space<vmem>>, vector<1x2x32xf32>
    %114 = vector.shape_cast %113 : vector<1x2x32xf32> to vector<2x32xf32>
    %115 = vector.shape_cast %114 : vector<2x32xf32> to vector<1x2x32xf32>
    %c4_49 = arith.constant 4 : index
    %c0_50 = arith.constant 0 : index
    %c0_51 = arith.constant 0 : index
    %116 = vector.load %arg3[%c4_49, %c0_50, %c0_51] : memref<16x16x32xf32, #tpu.memory_space<vmem>>, vector<1x16x32xf32>
    %117 = vector.shape_cast %116 : vector<1x16x32xf32> to vector<16x32xf32>
    %118 = vector.shape_cast %117 : vector<16x32xf32> to vector<16x1x32xf32>
    %c4_52 = arith.constant 4 : index
    %c0_53 = arith.constant 0 : index
    %c0_54 = arith.constant 0 : index
    %119 = vector.load %arg4[%c4_52, %c0_53, %c0_54] : memref<16x16x32xf32, #tpu.memory_space<vmem>>, vector<1x16x32xf32>
    %120 = vector.shape_cast %119 : vector<1x16x32xf32> to vector<16x32xf32>
    %121 = vector.shape_cast %120 : vector<16x32xf32> to vector<16x1x32xf32>
    %122 = vector.broadcast %118 : vector<16x1x32xf32> to vector<16x2x32xf32>
    %123 = vector.broadcast %112 : vector<1x2x32xf32> to vector<16x2x32xf32>
    %124 = arith.mulf %122, %123 : vector<16x2x32xf32>
    %125 = vector.broadcast %121 : vector<16x1x32xf32> to vector<16x2x32xf32>
    %126 = vector.broadcast %115 : vector<1x2x32xf32> to vector<16x2x32xf32>
    %127 = arith.mulf %125, %126 : vector<16x2x32xf32>
    %128 = arith.subf %124, %127 : vector<16x2x32xf32>
    %129 = arith.addf %101, %128 : vector<16x2x32xf32>
    %130 = vector.broadcast %121 : vector<16x1x32xf32> to vector<16x2x32xf32>
    %131 = vector.broadcast %112 : vector<1x2x32xf32> to vector<16x2x32xf32>
    %132 = arith.mulf %130, %131 : vector<16x2x32xf32>
    %133 = vector.broadcast %118 : vector<16x1x32xf32> to vector<16x2x32xf32>
    %134 = vector.broadcast %115 : vector<1x2x32xf32> to vector<16x2x32xf32>
    %135 = arith.mulf %133, %134 : vector<16x2x32xf32>
    %136 = arith.addf %132, %135 : vector<16x2x32xf32>
    %137 = arith.addf %109, %136 : vector<16x2x32xf32>
    %c5 = arith.constant 5 : index
    %c0_55 = arith.constant 0 : index
    %c0_56 = arith.constant 0 : index
    %138 = vector.load %arg1[%c5, %c0_55, %c0_56] : memref<16x2x32xf32, #tpu.memory_space<vmem>>, vector<1x2x32xf32>
    %139 = vector.shape_cast %138 : vector<1x2x32xf32> to vector<2x32xf32>
    %140 = vector.shape_cast %139 : vector<2x32xf32> to vector<1x2x32xf32>
    %c5_57 = arith.constant 5 : index
    %c0_58 = arith.constant 0 : index
    %c0_59 = arith.constant 0 : index
    %141 = vector.load %arg2[%c5_57, %c0_58, %c0_59] : memref<16x2x32xf32, #tpu.memory_space<vmem>>, vector<1x2x32xf32>
    %142 = vector.shape_cast %141 : vector<1x2x32xf32> to vector<2x32xf32>
    %143 = vector.shape_cast %142 : vector<2x32xf32> to vector<1x2x32xf32>
    %c5_60 = arith.constant 5 : index
    %c0_61 = arith.constant 0 : index
    %c0_62 = arith.constant 0 : index
    %144 = vector.load %arg3[%c5_60, %c0_61, %c0_62] : memref<16x16x32xf32, #tpu.memory_space<vmem>>, vector<1x16x32xf32>
    %145 = vector.shape_cast %144 : vector<1x16x32xf32> to vector<16x32xf32>
    %146 = vector.shape_cast %145 : vector<16x32xf32> to vector<16x1x32xf32>
    %c5_63 = arith.constant 5 : index
    %c0_64 = arith.constant 0 : index
    %c0_65 = arith.constant 0 : index
    %147 = vector.load %arg4[%c5_63, %c0_64, %c0_65] : memref<16x16x32xf32, #tpu.memory_space<vmem>>, vector<1x16x32xf32>
    %148 = vector.shape_cast %147 : vector<1x16x32xf32> to vector<16x32xf32>
    %149 = vector.shape_cast %148 : vector<16x32xf32> to vector<16x1x32xf32>
    %150 = vector.broadcast %146 : vector<16x1x32xf32> to vector<16x2x32xf32>
    %151 = vector.broadcast %140 : vector<1x2x32xf32> to vector<16x2x32xf32>
    %152 = arith.mulf %150, %151 : vector<16x2x32xf32>
    %153 = vector.broadcast %149 : vector<16x1x32xf32> to vector<16x2x32xf32>
    %154 = vector.broadcast %143 : vector<1x2x32xf32> to vector<16x2x32xf32>
    %155 = arith.mulf %153, %154 : vector<16x2x32xf32>
    %156 = arith.subf %152, %155 : vector<16x2x32xf32>
    %157 = arith.addf %129, %156 : vector<16x2x32xf32>
    %158 = vector.broadcast %149 : vector<16x1x32xf32> to vector<16x2x32xf32>
    %159 = vector.broadcast %140 : vector<1x2x32xf32> to vector<16x2x32xf32>
    %160 = arith.mulf %158, %159 : vector<16x2x32xf32>
    %161 = vector.broadcast %146 : vector<16x1x32xf32> to vector<16x2x32xf32>
    %162 = vector.broadcast %143 : vector<1x2x32xf32> to vector<16x2x32xf32>
    %163 = arith.mulf %161, %162 : vector<16x2x32xf32>
    %164 = arith.addf %160, %163 : vector<16x2x32xf32>
    %165 = arith.addf %137, %164 : vector<16x2x32xf32>
    %c6 = arith.constant 6 : index
    %c0_66 = arith.constant 0 : index
    %c0_67 = arith.constant 0 : index
    %166 = vector.load %arg1[%c6, %c0_66, %c0_67] : memref<16x2x32xf32, #tpu.memory_space<vmem>>, vector<1x2x32xf32>
    %167 = vector.shape_cast %166 : vector<1x2x32xf32> to vector<2x32xf32>
    %168 = vector.shape_cast %167 : vector<2x32xf32> to vector<1x2x32xf32>
    %c6_68 = arith.constant 6 : index
    %c0_69 = arith.constant 0 : index
    %c0_70 = arith.constant 0 : index
    %169 = vector.load %arg2[%c6_68, %c0_69, %c0_70] : memref<16x2x32xf32, #tpu.memory_space<vmem>>, vector<1x2x32xf32>
    %170 = vector.shape_cast %169 : vector<1x2x32xf32> to vector<2x32xf32>
    %171 = vector.shape_cast %170 : vector<2x32xf32> to vector<1x2x32xf32>
    %c6_71 = arith.constant 6 : index
    %c0_72 = arith.constant 0 : index
    %c0_73 = arith.constant 0 : index
    %172 = vector.load %arg3[%c6_71, %c0_72, %c0_73] : memref<16x16x32xf32, #tpu.memory_space<vmem>>, vector<1x16x32xf32>
    %173 = vector.shape_cast %172 : vector<1x16x32xf32> to vector<16x32xf32>
    %174 = vector.shape_cast %173 : vector<16x32xf32> to vector<16x1x32xf32>
    %c6_74 = arith.constant 6 : index
    %c0_75 = arith.constant 0 : index
    %c0_76 = arith.constant 0 : index
    %175 = vector.load %arg4[%c6_74, %c0_75, %c0_76] : memref<16x16x32xf32, #tpu.memory_space<vmem>>, vector<1x16x32xf32>
    %176 = vector.shape_cast %175 : vector<1x16x32xf32> to vector<16x32xf32>
    %177 = vector.shape_cast %176 : vector<16x32xf32> to vector<16x1x32xf32>
    %178 = vector.broadcast %174 : vector<16x1x32xf32> to vector<16x2x32xf32>
    %179 = vector.broadcast %168 : vector<1x2x32xf32> to vector<16x2x32xf32>
    %180 = arith.mulf %178, %179 : vector<16x2x32xf32>
    %181 = vector.broadcast %177 : vector<16x1x32xf32> to vector<16x2x32xf32>
    %182 = vector.broadcast %171 : vector<1x2x32xf32> to vector<16x2x32xf32>
    %183 = arith.mulf %181, %182 : vector<16x2x32xf32>
    %184 = arith.subf %180, %183 : vector<16x2x32xf32>
    %185 = arith.addf %157, %184 : vector<16x2x32xf32>
    %186 = vector.broadcast %177 : vector<16x1x32xf32> to vector<16x2x32xf32>
    %187 = vector.broadcast %168 : vector<1x2x32xf32> to vector<16x2x32xf32>
    %188 = arith.mulf %186, %187 : vector<16x2x32xf32>
    %189 = vector.broadcast %174 : vector<16x1x32xf32> to vector<16x2x32xf32>
    %190 = vector.broadcast %171 : vector<1x2x32xf32> to vector<16x2x32xf32>
    %191 = arith.mulf %189, %190 : vector<16x2x32xf32>
    %192 = arith.addf %188, %191 : vector<16x2x32xf32>
    %193 = arith.addf %165, %192 : vector<16x2x32xf32>
    %c7 = arith.constant 7 : index
    %c0_77 = arith.constant 0 : index
    %c0_78 = arith.constant 0 : index
    %194 = vector.load %arg1[%c7, %c0_77, %c0_78] : memref<16x2x32xf32, #tpu.memory_space<vmem>>, vector<1x2x32xf32>
    %195 = vector.shape_cast %194 : vector<1x2x32xf32> to vector<2x32xf32>
    %196 = vector.shape_cast %195 : vector<2x32xf32> to vector<1x2x32xf32>
    %c7_79 = arith.constant 7 : index
    %c0_80 = arith.constant 0 : index
    %c0_81 = arith.constant 0 : index
    %197 = vector.load %arg2[%c7_79, %c0_80, %c0_81] : memref<16x2x32xf32, #tpu.memory_space<vmem>>, vector<1x2x32xf32>
    %198 = vector.shape_cast %197 : vector<1x2x32xf32> to vector<2x32xf32>
    %199 = vector.shape_cast %198 : vector<2x32xf32> to vector<1x2x32xf32>
    %c7_82 = arith.constant 7 : index
    %c0_83 = arith.constant 0 : index
    %c0_84 = arith.constant 0 : index
    %200 = vector.load %arg3[%c7_82, %c0_83, %c0_84] : memref<16x16x32xf32, #tpu.memory_space<vmem>>, vector<1x16x32xf32>
    %201 = vector.shape_cast %200 : vector<1x16x32xf32> to vector<16x32xf32>
    %202 = vector.shape_cast %201 : vector<16x32xf32> to vector<16x1x32xf32>
    %c7_85 = arith.constant 7 : index
    %c0_86 = arith.constant 0 : index
    %c0_87 = arith.constant 0 : index
    %203 = vector.load %arg4[%c7_85, %c0_86, %c0_87] : memref<16x16x32xf32, #tpu.memory_space<vmem>>, vector<1x16x32xf32>
    %204 = vector.shape_cast %203 : vector<1x16x32xf32> to vector<16x32xf32>
    %205 = vector.shape_cast %204 : vector<16x32xf32> to vector<16x1x32xf32>
    %206 = vector.broadcast %202 : vector<16x1x32xf32> to vector<16x2x32xf32>
    %207 = vector.broadcast %196 : vector<1x2x32xf32> to vector<16x2x32xf32>
    %208 = arith.mulf %206, %207 : vector<16x2x32xf32>
    %209 = vector.broadcast %205 : vector<16x1x32xf32> to vector<16x2x32xf32>
    %210 = vector.broadcast %199 : vector<1x2x32xf32> to vector<16x2x32xf32>
    %211 = arith.mulf %209, %210 : vector<16x2x32xf32>
    %212 = arith.subf %208, %211 : vector<16x2x32xf32>
    %213 = arith.addf %185, %212 : vector<16x2x32xf32>
    %214 = vector.broadcast %205 : vector<16x1x32xf32> to vector<16x2x32xf32>
    %215 = vector.broadcast %196 : vector<1x2x32xf32> to vector<16x2x32xf32>
    %216 = arith.mulf %214, %215 : vector<16x2x32xf32>
    %217 = vector.broadcast %202 : vector<16x1x32xf32> to vector<16x2x32xf32>
    %218 = vector.broadcast %199 : vector<1x2x32xf32> to vector<16x2x32xf32>
    %219 = arith.mulf %217, %218 : vector<16x2x32xf32>
    %220 = arith.addf %216, %219 : vector<16x2x32xf32>
    %221 = arith.addf %193, %220 : vector<16x2x32xf32>
    %c8 = arith.constant 8 : index
    %c0_88 = arith.constant 0 : index
    %c0_89 = arith.constant 0 : index
    %222 = vector.load %arg1[%c8, %c0_88, %c0_89] : memref<16x2x32xf32, #tpu.memory_space<vmem>>, vector<1x2x32xf32>
    %223 = vector.shape_cast %222 : vector<1x2x32xf32> to vector<2x32xf32>
    %224 = vector.shape_cast %223 : vector<2x32xf32> to vector<1x2x32xf32>
    %c8_90 = arith.constant 8 : index
    %c0_91 = arith.constant 0 : index
    %c0_92 = arith.constant 0 : index
    %225 = vector.load %arg2[%c8_90, %c0_91, %c0_92] : memref<16x2x32xf32, #tpu.memory_space<vmem>>, vector<1x2x32xf32>
    %226 = vector.shape_cast %225 : vector<1x2x32xf32> to vector<2x32xf32>
    %227 = vector.shape_cast %226 : vector<2x32xf32> to vector<1x2x32xf32>
    %c8_93 = arith.constant 8 : index
    %c0_94 = arith.constant 0 : index
    %c0_95 = arith.constant 0 : index
    %228 = vector.load %arg3[%c8_93, %c0_94, %c0_95] : memref<16x16x32xf32, #tpu.memory_space<vmem>>, vector<1x16x32xf32>
    %229 = vector.shape_cast %228 : vector<1x16x32xf32> to vector<16x32xf32>
    %230 = vector.shape_cast %229 : vector<16x32xf32> to vector<16x1x32xf32>
    %c8_96 = arith.constant 8 : index
    %c0_97 = arith.constant 0 : index
    %c0_98 = arith.constant 0 : index
    %231 = vector.load %arg4[%c8_96, %c0_97, %c0_98] : memref<16x16x32xf32, #tpu.memory_space<vmem>>, vector<1x16x32xf32>
    %232 = vector.shape_cast %231 : vector<1x16x32xf32> to vector<16x32xf32>
    %233 = vector.shape_cast %232 : vector<16x32xf32> to vector<16x1x32xf32>
    %234 = vector.broadcast %230 : vector<16x1x32xf32> to vector<16x2x32xf32>
    %235 = vector.broadcast %224 : vector<1x2x32xf32> to vector<16x2x32xf32>
    %236 = arith.mulf %234, %235 : vector<16x2x32xf32>
    %237 = vector.broadcast %233 : vector<16x1x32xf32> to vector<16x2x32xf32>
    %238 = vector.broadcast %227 : vector<1x2x32xf32> to vector<16x2x32xf32>
    %239 = arith.mulf %237, %238 : vector<16x2x32xf32>
    %240 = arith.subf %236, %239 : vector<16x2x32xf32>
    %241 = arith.addf %213, %240 : vector<16x2x32xf32>
    %242 = vector.broadcast %233 : vector<16x1x32xf32> to vector<16x2x32xf32>
    %243 = vector.broadcast %224 : vector<1x2x32xf32> to vector<16x2x32xf32>
    %244 = arith.mulf %242, %243 : vector<16x2x32xf32>
    %245 = vector.broadcast %230 : vector<16x1x32xf32> to vector<16x2x32xf32>
    %246 = vector.broadcast %227 : vector<1x2x32xf32> to vector<16x2x32xf32>
    %247 = arith.mulf %245, %246 : vector<16x2x32xf32>
    %248 = arith.addf %244, %247 : vector<16x2x32xf32>
    %249 = arith.addf %221, %248 : vector<16x2x32xf32>
    %c9 = arith.constant 9 : index
    %c0_99 = arith.constant 0 : index
    %c0_100 = arith.constant 0 : index
    %250 = vector.load %arg1[%c9, %c0_99, %c0_100] : memref<16x2x32xf32, #tpu.memory_space<vmem>>, vector<1x2x32xf32>
    %251 = vector.shape_cast %250 : vector<1x2x32xf32> to vector<2x32xf32>
    %252 = vector.shape_cast %251 : vector<2x32xf32> to vector<1x2x32xf32>
    %c9_101 = arith.constant 9 : index
    %c0_102 = arith.constant 0 : index
    %c0_103 = arith.constant 0 : index
    %253 = vector.load %arg2[%c9_101, %c0_102, %c0_103] : memref<16x2x32xf32, #tpu.memory_space<vmem>>, vector<1x2x32xf32>
    %254 = vector.shape_cast %253 : vector<1x2x32xf32> to vector<2x32xf32>
    %255 = vector.shape_cast %254 : vector<2x32xf32> to vector<1x2x32xf32>
    %c9_104 = arith.constant 9 : index
    %c0_105 = arith.constant 0 : index
    %c0_106 = arith.constant 0 : index
    %256 = vector.load %arg3[%c9_104, %c0_105, %c0_106] : memref<16x16x32xf32, #tpu.memory_space<vmem>>, vector<1x16x32xf32>
    %257 = vector.shape_cast %256 : vector<1x16x32xf32> to vector<16x32xf32>
    %258 = vector.shape_cast %257 : vector<16x32xf32> to vector<16x1x32xf32>
    %c9_107 = arith.constant 9 : index
    %c0_108 = arith.constant 0 : index
    %c0_109 = arith.constant 0 : index
    %259 = vector.load %arg4[%c9_107, %c0_108, %c0_109] : memref<16x16x32xf32, #tpu.memory_space<vmem>>, vector<1x16x32xf32>
    %260 = vector.shape_cast %259 : vector<1x16x32xf32> to vector<16x32xf32>
    %261 = vector.shape_cast %260 : vector<16x32xf32> to vector<16x1x32xf32>
    %262 = vector.broadcast %258 : vector<16x1x32xf32> to vector<16x2x32xf32>
    %263 = vector.broadcast %252 : vector<1x2x32xf32> to vector<16x2x32xf32>
    %264 = arith.mulf %262, %263 : vector<16x2x32xf32>
    %265 = vector.broadcast %261 : vector<16x1x32xf32> to vector<16x2x32xf32>
    %266 = vector.broadcast %255 : vector<1x2x32xf32> to vector<16x2x32xf32>
    %267 = arith.mulf %265, %266 : vector<16x2x32xf32>
    %268 = arith.subf %264, %267 : vector<16x2x32xf32>
    %269 = arith.addf %241, %268 : vector<16x2x32xf32>
    %270 = vector.broadcast %261 : vector<16x1x32xf32> to vector<16x2x32xf32>
    %271 = vector.broadcast %252 : vector<1x2x32xf32> to vector<16x2x32xf32>
    %272 = arith.mulf %270, %271 : vector<16x2x32xf32>
    %273 = vector.broadcast %258 : vector<16x1x32xf32> to vector<16x2x32xf32>
    %274 = vector.broadcast %255 : vector<1x2x32xf32> to vector<16x2x32xf32>
    %275 = arith.mulf %273, %274 : vector<16x2x32xf32>
    %276 = arith.addf %272, %275 : vector<16x2x32xf32>
    %277 = arith.addf %249, %276 : vector<16x2x32xf32>
    %c10 = arith.constant 10 : index
    %c0_110 = arith.constant 0 : index
    %c0_111 = arith.constant 0 : index
    %278 = vector.load %arg1[%c10, %c0_110, %c0_111] : memref<16x2x32xf32, #tpu.memory_space<vmem>>, vector<1x2x32xf32>
    %279 = vector.shape_cast %278 : vector<1x2x32xf32> to vector<2x32xf32>
    %280 = vector.shape_cast %279 : vector<2x32xf32> to vector<1x2x32xf32>
    %c10_112 = arith.constant 10 : index
    %c0_113 = arith.constant 0 : index
    %c0_114 = arith.constant 0 : index
    %281 = vector.load %arg2[%c10_112, %c0_113, %c0_114] : memref<16x2x32xf32, #tpu.memory_space<vmem>>, vector<1x2x32xf32>
    %282 = vector.shape_cast %281 : vector<1x2x32xf32> to vector<2x32xf32>
    %283 = vector.shape_cast %282 : vector<2x32xf32> to vector<1x2x32xf32>
    %c10_115 = arith.constant 10 : index
    %c0_116 = arith.constant 0 : index
    %c0_117 = arith.constant 0 : index
    %284 = vector.load %arg3[%c10_115, %c0_116, %c0_117] : memref<16x16x32xf32, #tpu.memory_space<vmem>>, vector<1x16x32xf32>
    %285 = vector.shape_cast %284 : vector<1x16x32xf32> to vector<16x32xf32>
    %286 = vector.shape_cast %285 : vector<16x32xf32> to vector<16x1x32xf32>
    %c10_118 = arith.constant 10 : index
    %c0_119 = arith.constant 0 : index
    %c0_120 = arith.constant 0 : index
    %287 = vector.load %arg4[%c10_118, %c0_119, %c0_120] : memref<16x16x32xf32, #tpu.memory_space<vmem>>, vector<1x16x32xf32>
    %288 = vector.shape_cast %287 : vector<1x16x32xf32> to vector<16x32xf32>
    %289 = vector.shape_cast %288 : vector<16x32xf32> to vector<16x1x32xf32>
    %290 = vector.broadcast %286 : vector<16x1x32xf32> to vector<16x2x32xf32>
    %291 = vector.broadcast %280 : vector<1x2x32xf32> to vector<16x2x32xf32>
    %292 = arith.mulf %290, %291 : vector<16x2x32xf32>
    %293 = vector.broadcast %289 : vector<16x1x32xf32> to vector<16x2x32xf32>
    %294 = vector.broadcast %283 : vector<1x2x32xf32> to vector<16x2x32xf32>
    %295 = arith.mulf %293, %294 : vector<16x2x32xf32>
    %296 = arith.subf %292, %295 : vector<16x2x32xf32>
    %297 = arith.addf %269, %296 : vector<16x2x32xf32>
    %298 = vector.broadcast %289 : vector<16x1x32xf32> to vector<16x2x32xf32>
    %299 = vector.broadcast %280 : vector<1x2x32xf32> to vector<16x2x32xf32>
    %300 = arith.mulf %298, %299 : vector<16x2x32xf32>
    %301 = vector.broadcast %286 : vector<16x1x32xf32> to vector<16x2x32xf32>
    %302 = vector.broadcast %283 : vector<1x2x32xf32> to vector<16x2x32xf32>
    %303 = arith.mulf %301, %302 : vector<16x2x32xf32>
    %304 = arith.addf %300, %303 : vector<16x2x32xf32>
    %305 = arith.addf %277, %304 : vector<16x2x32xf32>
    %c11 = arith.constant 11 : index
    %c0_121 = arith.constant 0 : index
    %c0_122 = arith.constant 0 : index
    %306 = vector.load %arg1[%c11, %c0_121, %c0_122] : memref<16x2x32xf32, #tpu.memory_space<vmem>>, vector<1x2x32xf32>
    %307 = vector.shape_cast %306 : vector<1x2x32xf32> to vector<2x32xf32>
    %308 = vector.shape_cast %307 : vector<2x32xf32> to vector<1x2x32xf32>
    %c11_123 = arith.constant 11 : index
    %c0_124 = arith.constant 0 : index
    %c0_125 = arith.constant 0 : index
    %309 = vector.load %arg2[%c11_123, %c0_124, %c0_125] : memref<16x2x32xf32, #tpu.memory_space<vmem>>, vector<1x2x32xf32>
    %310 = vector.shape_cast %309 : vector<1x2x32xf32> to vector<2x32xf32>
    %311 = vector.shape_cast %310 : vector<2x32xf32> to vector<1x2x32xf32>
    %c11_126 = arith.constant 11 : index
    %c0_127 = arith.constant 0 : index
    %c0_128 = arith.constant 0 : index
    %312 = vector.load %arg3[%c11_126, %c0_127, %c0_128] : memref<16x16x32xf32, #tpu.memory_space<vmem>>, vector<1x16x32xf32>
    %313 = vector.shape_cast %312 : vector<1x16x32xf32> to vector<16x32xf32>
    %314 = vector.shape_cast %313 : vector<16x32xf32> to vector<16x1x32xf32>
    %c11_129 = arith.constant 11 : index
    %c0_130 = arith.constant 0 : index
    %c0_131 = arith.constant 0 : index
    %315 = vector.load %arg4[%c11_129, %c0_130, %c0_131] : memref<16x16x32xf32, #tpu.memory_space<vmem>>, vector<1x16x32xf32>
    %316 = vector.shape_cast %315 : vector<1x16x32xf32> to vector<16x32xf32>
    %317 = vector.shape_cast %316 : vector<16x32xf32> to vector<16x1x32xf32>
    %318 = vector.broadcast %314 : vector<16x1x32xf32> to vector<16x2x32xf32>
    %319 = vector.broadcast %308 : vector<1x2x32xf32> to vector<16x2x32xf32>
    %320 = arith.mulf %318, %319 : vector<16x2x32xf32>
    %321 = vector.broadcast %317 : vector<16x1x32xf32> to vector<16x2x32xf32>
    %322 = vector.broadcast %311 : vector<1x2x32xf32> to vector<16x2x32xf32>
    %323 = arith.mulf %321, %322 : vector<16x2x32xf32>
    %324 = arith.subf %320, %323 : vector<16x2x32xf32>
    %325 = arith.addf %297, %324 : vector<16x2x32xf32>
    %326 = vector.broadcast %317 : vector<16x1x32xf32> to vector<16x2x32xf32>
    %327 = vector.broadcast %308 : vector<1x2x32xf32> to vector<16x2x32xf32>
    %328 = arith.mulf %326, %327 : vector<16x2x32xf32>
    %329 = vector.broadcast %314 : vector<16x1x32xf32> to vector<16x2x32xf32>
    %330 = vector.broadcast %311 : vector<1x2x32xf32> to vector<16x2x32xf32>
    %331 = arith.mulf %329, %330 : vector<16x2x32xf32>
    %332 = arith.addf %328, %331 : vector<16x2x32xf32>
    %333 = arith.addf %305, %332 : vector<16x2x32xf32>
    %c12 = arith.constant 12 : index
    %c0_132 = arith.constant 0 : index
    %c0_133 = arith.constant 0 : index
    %334 = vector.load %arg1[%c12, %c0_132, %c0_133] : memref<16x2x32xf32, #tpu.memory_space<vmem>>, vector<1x2x32xf32>
    %335 = vector.shape_cast %334 : vector<1x2x32xf32> to vector<2x32xf32>
    %336 = vector.shape_cast %335 : vector<2x32xf32> to vector<1x2x32xf32>
    %c12_134 = arith.constant 12 : index
    %c0_135 = arith.constant 0 : index
    %c0_136 = arith.constant 0 : index
    %337 = vector.load %arg2[%c12_134, %c0_135, %c0_136] : memref<16x2x32xf32, #tpu.memory_space<vmem>>, vector<1x2x32xf32>
    %338 = vector.shape_cast %337 : vector<1x2x32xf32> to vector<2x32xf32>
    %339 = vector.shape_cast %338 : vector<2x32xf32> to vector<1x2x32xf32>
    %c12_137 = arith.constant 12 : index
    %c0_138 = arith.constant 0 : index
    %c0_139 = arith.constant 0 : index
    %340 = vector.load %arg3[%c12_137, %c0_138, %c0_139] : memref<16x16x32xf32, #tpu.memory_space<vmem>>, vector<1x16x32xf32>
    %341 = vector.shape_cast %340 : vector<1x16x32xf32> to vector<16x32xf32>
    %342 = vector.shape_cast %341 : vector<16x32xf32> to vector<16x1x32xf32>
    %c12_140 = arith.constant 12 : index
    %c0_141 = arith.constant 0 : index
    %c0_142 = arith.constant 0 : index
    %343 = vector.load %arg4[%c12_140, %c0_141, %c0_142] : memref<16x16x32xf32, #tpu.memory_space<vmem>>, vector<1x16x32xf32>
    %344 = vector.shape_cast %343 : vector<1x16x32xf32> to vector<16x32xf32>
    %345 = vector.shape_cast %344 : vector<16x32xf32> to vector<16x1x32xf32>
    %346 = vector.broadcast %342 : vector<16x1x32xf32> to vector<16x2x32xf32>
    %347 = vector.broadcast %336 : vector<1x2x32xf32> to vector<16x2x32xf32>
    %348 = arith.mulf %346, %347 : vector<16x2x32xf32>
    %349 = vector.broadcast %345 : vector<16x1x32xf32> to vector<16x2x32xf32>
    %350 = vector.broadcast %339 : vector<1x2x32xf32> to vector<16x2x32xf32>
    %351 = arith.mulf %349, %350 : vector<16x2x32xf32>
    %352 = arith.subf %348, %351 : vector<16x2x32xf32>
    %353 = arith.addf %325, %352 : vector<16x2x32xf32>
    %354 = vector.broadcast %345 : vector<16x1x32xf32> to vector<16x2x32xf32>
    %355 = vector.broadcast %336 : vector<1x2x32xf32> to vector<16x2x32xf32>
    %356 = arith.mulf %354, %355 : vector<16x2x32xf32>
    %357 = vector.broadcast %342 : vector<16x1x32xf32> to vector<16x2x32xf32>
    %358 = vector.broadcast %339 : vector<1x2x32xf32> to vector<16x2x32xf32>
    %359 = arith.mulf %357, %358 : vector<16x2x32xf32>
    %360 = arith.addf %356, %359 : vector<16x2x32xf32>
    %361 = arith.addf %333, %360 : vector<16x2x32xf32>
    %c13 = arith.constant 13 : index
    %c0_143 = arith.constant 0 : index
    %c0_144 = arith.constant 0 : index
    %362 = vector.load %arg1[%c13, %c0_143, %c0_144] : memref<16x2x32xf32, #tpu.memory_space<vmem>>, vector<1x2x32xf32>
    %363 = vector.shape_cast %362 : vector<1x2x32xf32> to vector<2x32xf32>
    %364 = vector.shape_cast %363 : vector<2x32xf32> to vector<1x2x32xf32>
    %c13_145 = arith.constant 13 : index
    %c0_146 = arith.constant 0 : index
    %c0_147 = arith.constant 0 : index
    %365 = vector.load %arg2[%c13_145, %c0_146, %c0_147] : memref<16x2x32xf32, #tpu.memory_space<vmem>>, vector<1x2x32xf32>
    %366 = vector.shape_cast %365 : vector<1x2x32xf32> to vector<2x32xf32>
    %367 = vector.shape_cast %366 : vector<2x32xf32> to vector<1x2x32xf32>
    %c13_148 = arith.constant 13 : index
    %c0_149 = arith.constant 0 : index
    %c0_150 = arith.constant 0 : index
    %368 = vector.load %arg3[%c13_148, %c0_149, %c0_150] : memref<16x16x32xf32, #tpu.memory_space<vmem>>, vector<1x16x32xf32>
    %369 = vector.shape_cast %368 : vector<1x16x32xf32> to vector<16x32xf32>
    %370 = vector.shape_cast %369 : vector<16x32xf32> to vector<16x1x32xf32>
    %c13_151 = arith.constant 13 : index
    %c0_152 = arith.constant 0 : index
    %c0_153 = arith.constant 0 : index
    %371 = vector.load %arg4[%c13_151, %c0_152, %c0_153] : memref<16x16x32xf32, #tpu.memory_space<vmem>>, vector<1x16x32xf32>
    %372 = vector.shape_cast %371 : vector<1x16x32xf32> to vector<16x32xf32>
    %373 = vector.shape_cast %372 : vector<16x32xf32> to vector<16x1x32xf32>
    %374 = vector.broadcast %370 : vector<16x1x32xf32> to vector<16x2x32xf32>
    %375 = vector.broadcast %364 : vector<1x2x32xf32> to vector<16x2x32xf32>
    %376 = arith.mulf %374, %375 : vector<16x2x32xf32>
    %377 = vector.broadcast %373 : vector<16x1x32xf32> to vector<16x2x32xf32>
    %378 = vector.broadcast %367 : vector<1x2x32xf32> to vector<16x2x32xf32>
    %379 = arith.mulf %377, %378 : vector<16x2x32xf32>
    %380 = arith.subf %376, %379 : vector<16x2x32xf32>
    %381 = arith.addf %353, %380 : vector<16x2x32xf32>
    %382 = vector.broadcast %373 : vector<16x1x32xf32> to vector<16x2x32xf32>
    %383 = vector.broadcast %364 : vector<1x2x32xf32> to vector<16x2x32xf32>
    %384 = arith.mulf %382, %383 : vector<16x2x32xf32>
    %385 = vector.broadcast %370 : vector<16x1x32xf32> to vector<16x2x32xf32>
    %386 = vector.broadcast %367 : vector<1x2x32xf32> to vector<16x2x32xf32>
    %387 = arith.mulf %385, %386 : vector<16x2x32xf32>
    %388 = arith.addf %384, %387 : vector<16x2x32xf32>
    %389 = arith.addf %361, %388 : vector<16x2x32xf32>
    %c14 = arith.constant 14 : index
    %c0_154 = arith.constant 0 : index
    %c0_155 = arith.constant 0 : index
    %390 = vector.load %arg1[%c14, %c0_154, %c0_155] : memref<16x2x32xf32, #tpu.memory_space<vmem>>, vector<1x2x32xf32>
    %391 = vector.shape_cast %390 : vector<1x2x32xf32> to vector<2x32xf32>
    %392 = vector.shape_cast %391 : vector<2x32xf32> to vector<1x2x32xf32>
    %c14_156 = arith.constant 14 : index
    %c0_157 = arith.constant 0 : index
    %c0_158 = arith.constant 0 : index
    %393 = vector.load %arg2[%c14_156, %c0_157, %c0_158] : memref<16x2x32xf32, #tpu.memory_space<vmem>>, vector<1x2x32xf32>
    %394 = vector.shape_cast %393 : vector<1x2x32xf32> to vector<2x32xf32>
    %395 = vector.shape_cast %394 : vector<2x32xf32> to vector<1x2x32xf32>
    %c14_159 = arith.constant 14 : index
    %c0_160 = arith.constant 0 : index
    %c0_161 = arith.constant 0 : index
    %396 = vector.load %arg3[%c14_159, %c0_160, %c0_161] : memref<16x16x32xf32, #tpu.memory_space<vmem>>, vector<1x16x32xf32>
    %397 = vector.shape_cast %396 : vector<1x16x32xf32> to vector<16x32xf32>
    %398 = vector.shape_cast %397 : vector<16x32xf32> to vector<16x1x32xf32>
    %c14_162 = arith.constant 14 : index
    %c0_163 = arith.constant 0 : index
    %c0_164 = arith.constant 0 : index
    %399 = vector.load %arg4[%c14_162, %c0_163, %c0_164] : memref<16x16x32xf32, #tpu.memory_space<vmem>>, vector<1x16x32xf32>
    %400 = vector.shape_cast %399 : vector<1x16x32xf32> to vector<16x32xf32>
    %401 = vector.shape_cast %400 : vector<16x32xf32> to vector<16x1x32xf32>
    %402 = vector.broadcast %398 : vector<16x1x32xf32> to vector<16x2x32xf32>
    %403 = vector.broadcast %392 : vector<1x2x32xf32> to vector<16x2x32xf32>
    %404 = arith.mulf %402, %403 : vector<16x2x32xf32>
    %405 = vector.broadcast %401 : vector<16x1x32xf32> to vector<16x2x32xf32>
    %406 = vector.broadcast %395 : vector<1x2x32xf32> to vector<16x2x32xf32>
    %407 = arith.mulf %405, %406 : vector<16x2x32xf32>
    %408 = arith.subf %404, %407 : vector<16x2x32xf32>
    %409 = arith.addf %381, %408 : vector<16x2x32xf32>
    %410 = vector.broadcast %401 : vector<16x1x32xf32> to vector<16x2x32xf32>
    %411 = vector.broadcast %392 : vector<1x2x32xf32> to vector<16x2x32xf32>
    %412 = arith.mulf %410, %411 : vector<16x2x32xf32>
    %413 = vector.broadcast %398 : vector<16x1x32xf32> to vector<16x2x32xf32>
    %414 = vector.broadcast %395 : vector<1x2x32xf32> to vector<16x2x32xf32>
    %415 = arith.mulf %413, %414 : vector<16x2x32xf32>
    %416 = arith.addf %412, %415 : vector<16x2x32xf32>
    %417 = arith.addf %389, %416 : vector<16x2x32xf32>
    %c15 = arith.constant 15 : index
    %c0_165 = arith.constant 0 : index
    %c0_166 = arith.constant 0 : index
    %418 = vector.load %arg1[%c15, %c0_165, %c0_166] : memref<16x2x32xf32, #tpu.memory_space<vmem>>, vector<1x2x32xf32>
    %419 = vector.shape_cast %418 : vector<1x2x32xf32> to vector<2x32xf32>
    %420 = vector.shape_cast %419 : vector<2x32xf32> to vector<1x2x32xf32>
    %c15_167 = arith.constant 15 : index
    %c0_168 = arith.constant 0 : index
    %c0_169 = arith.constant 0 : index
    %421 = vector.load %arg2[%c15_167, %c0_168, %c0_169] : memref<16x2x32xf32, #tpu.memory_space<vmem>>, vector<1x2x32xf32>
    %422 = vector.shape_cast %421 : vector<1x2x32xf32> to vector<2x32xf32>
    %423 = vector.shape_cast %422 : vector<2x32xf32> to vector<1x2x32xf32>
    %c15_170 = arith.constant 15 : index
    %c0_171 = arith.constant 0 : index
    %c0_172 = arith.constant 0 : index
    %424 = vector.load %arg3[%c15_170, %c0_171, %c0_172] : memref<16x16x32xf32, #tpu.memory_space<vmem>>, vector<1x16x32xf32>
    %425 = vector.shape_cast %424 : vector<1x16x32xf32> to vector<16x32xf32>
    %426 = vector.shape_cast %425 : vector<16x32xf32> to vector<16x1x32xf32>
    %c15_173 = arith.constant 15 : index
    %c0_174 = arith.constant 0 : index
    %c0_175 = arith.constant 0 : index
    %427 = vector.load %arg4[%c15_173, %c0_174, %c0_175] : memref<16x16x32xf32, #tpu.memory_space<vmem>>, vector<1x16x32xf32>
    %428 = vector.shape_cast %427 : vector<1x16x32xf32> to vector<16x32xf32>
    %429 = vector.shape_cast %428 : vector<16x32xf32> to vector<16x1x32xf32>
    %430 = vector.broadcast %426 : vector<16x1x32xf32> to vector<16x2x32xf32>
    %431 = vector.broadcast %420 : vector<1x2x32xf32> to vector<16x2x32xf32>
    %432 = arith.mulf %430, %431 : vector<16x2x32xf32>
    %433 = vector.broadcast %429 : vector<16x1x32xf32> to vector<16x2x32xf32>
    %434 = vector.broadcast %423 : vector<1x2x32xf32> to vector<16x2x32xf32>
    %435 = arith.mulf %433, %434 : vector<16x2x32xf32>
    %436 = arith.subf %432, %435 : vector<16x2x32xf32>
    %437 = arith.addf %409, %436 : vector<16x2x32xf32>
    %438 = vector.broadcast %429 : vector<16x1x32xf32> to vector<16x2x32xf32>
    %439 = vector.broadcast %420 : vector<1x2x32xf32> to vector<16x2x32xf32>
    %440 = arith.mulf %438, %439 : vector<16x2x32xf32>
    %441 = vector.broadcast %426 : vector<16x1x32xf32> to vector<16x2x32xf32>
    %442 = vector.broadcast %423 : vector<1x2x32xf32> to vector<16x2x32xf32>
    %443 = arith.mulf %441, %442 : vector<16x2x32xf32>
    %444 = arith.addf %440, %443 : vector<16x2x32xf32>
    %445 = arith.addf %417, %444 : vector<16x2x32xf32>
    %c0_176 = arith.constant 0 : index
    %c0_177 = arith.constant 0 : index
    %c0_178 = arith.constant 0 : index
    %446 = vector.load %arg5[%c0_176, %c0_177, %c0_178] : memref<16x2x32xf32, #tpu.memory_space<vmem>>, vector<16x2x32xf32>
    tpu.vector_store %arg5[%c0_176, %c0_177, %c0_178], %437 {strides = array<i32>} : memref<16x2x32xf32, #tpu.memory_space<vmem>>, vector<16x2x32xf32>,
    %c0_179 = arith.constant 0 : index
    %c0_180 = arith.constant 0 : index
    %c0_181 = arith.constant 0 : index
    %447 = vector.load %arg6[%c0_179, %c0_180, %c0_181] : memref<16x2x32xf32, #tpu.memory_space<vmem>>, vector<16x2x32xf32>
    tpu.vector_store %arg6[%c0_179, %c0_180, %c0_181], %445 {strides = array<i32>} : memref<16x2x32xf32, #tpu.memory_space<vmem>>, vector<16x2x32xf32>,
    return
  }
  func.func @transform_0(%arg0: i32) -> (i32, i32, i32) {
    %c0_i32 = arith.constant 0 : i32
    %c0_i32_0 = arith.constant 0 : i32
    %c0_i32_1 = arith.constant 0 : i32
    return %c0_i32, %c0_i32_0, %arg0 : i32, i32, i32
  }
  func.func @transform_1(%arg0: i32) -> (i32, i32, i32) {
    %c0_i32 = arith.constant 0 : i32
    %c0_i32_0 = arith.constant 0 : i32
    %c0_i32_1 = arith.constant 0 : i32
    return %c0_i32, %c0_i32_0, %arg0 : i32, i32, i32
  }
  func.func @transform_2(%arg0: i32) -> (i32, i32, i32) {
    %c0_i32 = arith.constant 0 : i32
    %c0_i32_0 = arith.constant 0 : i32
    %c0_i32_1 = arith.constant 0 : i32
    return %c0_i32, %c0_i32_0, %arg0 : i32, i32, i32
  }
  func.func @transform_3(%arg0: i32) -> (i32, i32, i32) {
    %c0_i32 = arith.constant 0 : i32
    %c0_i32_0 = arith.constant 0 : i32
    %c0_i32_1 = arith.constant 0 : i32
    return %c0_i32, %c0_i32_0, %arg0 : i32, i32, i32
  }
  func.func @transform_4(%arg0: i32) -> (i32, i32, i32) {
    %c0_i32 = arith.constant 0 : i32
    %c0_i32_0 = arith.constant 0 : i32
    %c0_i32_1 = arith.constant 0 : i32
    return %c0_i32, %c0_i32_0, %arg0 : i32, i32, i32
  }
  func.func @transform_5(%arg0: i32) -> (i32, i32, i32) {
    %c0_i32 = arith.constant 0 : i32
    %c0_i32_0 = arith.constant 0 : i32
    %c0_i32_1 = arith.constant 0 : i32
    return %c0_i32, %c0_i32_0, %arg0 : i32, i32, i32
  }
}

module attributes {stable_mosaic.version = 11 : i64} {
  func.func @_lin_add_relu_kernel(%arg0: i32, %arg1: memref<16x16xbf16, #tpu.memory_space<vmem>>, %arg2: memref<16x512xbf16, #tpu.memory_space<vmem>>, %arg3: memref<16x1xf32, #tpu.memory_space<vmem>>, %arg4: memref<16x512xbf16, #tpu.memory_space<vmem>>, %arg5: memref<16x512xbf16, #tpu.memory_space<vmem>>) attributes {dimension_semantics = [#tpu.dimension_semantics<parallel>], iteration_bounds = array<i64: 1>, scalar_prefetch = 0 : i64, scratch_operands = 0 : i64, tpu.core_type = #tpu.core_type<tc>, window_params = [{pipeline_mode = #tpu.pipeline_mode<synchronous>, transform_indices = @transform_0, window_bounds = array<i64: 16, 16>}, {transform_indices = @transform_1, window_bounds = array<i64: 16, 512>}, {pipeline_mode = #tpu.pipeline_mode<synchronous>, transform_indices = @transform_2, window_bounds = array<i64: 16, 1>}, {transform_indices = @transform_3, window_bounds = array<i64: 16, 512>}, {transform_indices = @transform_4, window_bounds = array<i64: 16, 512>}]} {
    %c0 = arith.constant 0 : index
    %c0_0 = arith.constant 0 : index
    %0 = vector.load %arg1[%c0, %c0_0] : memref<16x16xbf16, #tpu.memory_space<vmem>>, vector<16x16xbf16>
    %c0_1 = arith.constant 0 : index
    %c0_2 = arith.constant 0 : index
    %1 = vector.load %arg2[%c0_1, %c0_2] : memref<16x512xbf16, #tpu.memory_space<vmem>>, vector<16x512xbf16>
    %cst = arith.constant dense<0.000000e+00> : vector<16x512xf32>
    %2 = tpu.matmul %0, %1, %cst {dimension_numbers = #tpu.dot_dimension_numbers<[1], [0], [0], [1], [0, 0, 1, 1], [], []>} : vector<16x16xbf16>, vector<16x512xbf16>, vector<16x512xf32> -> vector<16x512xf32>
    %c0_3 = arith.constant 0 : index
    %c0_4 = arith.constant 0 : index
    %3 = vector.load %arg3[%c0_3, %c0_4] : memref<16x1xf32, #tpu.memory_space<vmem>>, vector<16x1xf32>
    %4 = vector.broadcast %3 : vector<16x1xf32> to vector<16x512xf32>
    %5 = arith.addf %2, %4 : vector<16x512xf32>
    %c0_5 = arith.constant 0 : index
    %c0_6 = arith.constant 0 : index
    %6 = vector.load %arg4[%c0_5, %c0_6] : memref<16x512xbf16, #tpu.memory_space<vmem>>, vector<16x512xbf16>
    %7 = arith.extf %6 : vector<16x512xbf16> to vector<16x512xf32>
    %8 = arith.addf %5, %7 : vector<16x512xf32>
    %cst_7 = arith.constant 0.000000e+00 : f32
    %9 = vector.broadcast %cst_7 : f32 to vector<16x512xf32>
    %10 = arith.maximumf %8, %9 : vector<16x512xf32>
    %11 = arith.truncf %10 : vector<16x512xf32> to vector<16x512xbf16>
    %c0_8 = arith.constant 0 : index
    %c0_9 = arith.constant 0 : index
    %12 = vector.load %arg5[%c0_8, %c0_9] : memref<16x512xbf16, #tpu.memory_space<vmem>>, vector<16x512xbf16>
    tpu.vector_store %arg5[%c0_8, %c0_9], %11 {strides = array<i32>} : memref<16x512xbf16, #tpu.memory_space<vmem>>, vector<16x512xbf16>,
    return
  }
  func.func @transform_0(%arg0: i32) -> (i32, i32) {
    %c0_i32 = arith.constant 0 : i32
    %c0_i32_0 = arith.constant 0 : i32
    %c0_i32_1 = arith.constant 0 : i32
    return %c0_i32, %c0_i32_0 : i32, i32
  }
  func.func @transform_1(%arg0: i32) -> (i32, i32) {
    %c0_i32 = arith.constant 0 : i32
    %c0_i32_0 = arith.constant 0 : i32
    return %c0_i32, %arg0 : i32, i32
  }
  func.func @transform_2(%arg0: i32) -> (i32, i32) {
    %c0_i32 = arith.constant 0 : i32
    %c0_i32_0 = arith.constant 0 : i32
    %c0_i32_1 = arith.constant 0 : i32
    return %c0_i32, %c0_i32_0 : i32, i32
  }
  func.func @transform_3(%arg0: i32) -> (i32, i32) {
    %c0_i32 = arith.constant 0 : i32
    %c0_i32_0 = arith.constant 0 : i32
    return %c0_i32, %arg0 : i32, i32
  }
  func.func @transform_4(%arg0: i32) -> (i32, i32) {
    %c0_i32 = arith.constant 0 : i32
    %c0_i32_0 = arith.constant 0 : i32
    return %c0_i32, %arg0 : i32, i32
  }
}

module attributes {stable_mosaic.version = 11 : i64} {
  func.func @_lin_add_kernel(%arg0: i32, %arg1: memref<16x16xbf16, #tpu.memory_space<vmem>>, %arg2: memref<16x512xbf16, #tpu.memory_space<vmem>>, %arg3: memref<16x1xf32, #tpu.memory_space<vmem>>, %arg4: memref<16x512xbf16, #tpu.memory_space<vmem>>, %arg5: memref<16x512xbf16, #tpu.memory_space<vmem>>) attributes {dimension_semantics = [#tpu.dimension_semantics<parallel>], iteration_bounds = array<i64: 1>, scalar_prefetch = 0 : i64, scratch_operands = 0 : i64, tpu.core_type = #tpu.core_type<tc>, window_params = [{pipeline_mode = #tpu.pipeline_mode<synchronous>, transform_indices = @transform_0, window_bounds = array<i64: 16, 16>}, {transform_indices = @transform_1, window_bounds = array<i64: 16, 512>}, {pipeline_mode = #tpu.pipeline_mode<synchronous>, transform_indices = @transform_2, window_bounds = array<i64: 16, 1>}, {transform_indices = @transform_3, window_bounds = array<i64: 16, 512>}, {transform_indices = @transform_4, window_bounds = array<i64: 16, 512>}]} {
    %c0 = arith.constant 0 : index
    %c0_0 = arith.constant 0 : index
    %0 = vector.load %arg1[%c0, %c0_0] : memref<16x16xbf16, #tpu.memory_space<vmem>>, vector<16x16xbf16>
    %c0_1 = arith.constant 0 : index
    %c0_2 = arith.constant 0 : index
    %1 = vector.load %arg2[%c0_1, %c0_2] : memref<16x512xbf16, #tpu.memory_space<vmem>>, vector<16x512xbf16>
    %cst = arith.constant dense<0.000000e+00> : vector<16x512xf32>
    %2 = tpu.matmul %0, %1, %cst {dimension_numbers = #tpu.dot_dimension_numbers<[1], [0], [0], [1], [0, 0, 1, 1], [], []>} : vector<16x16xbf16>, vector<16x512xbf16>, vector<16x512xf32> -> vector<16x512xf32>
    %c0_3 = arith.constant 0 : index
    %c0_4 = arith.constant 0 : index
    %3 = vector.load %arg3[%c0_3, %c0_4] : memref<16x1xf32, #tpu.memory_space<vmem>>, vector<16x1xf32>
    %4 = vector.broadcast %3 : vector<16x1xf32> to vector<16x512xf32>
    %5 = arith.addf %2, %4 : vector<16x512xf32>
    %c0_5 = arith.constant 0 : index
    %c0_6 = arith.constant 0 : index
    %6 = vector.load %arg4[%c0_5, %c0_6] : memref<16x512xbf16, #tpu.memory_space<vmem>>, vector<16x512xbf16>
    %7 = arith.extf %6 : vector<16x512xbf16> to vector<16x512xf32>
    %8 = arith.addf %5, %7 : vector<16x512xf32>
    %9 = arith.truncf %8 : vector<16x512xf32> to vector<16x512xbf16>
    %c0_7 = arith.constant 0 : index
    %c0_8 = arith.constant 0 : index
    %10 = vector.load %arg5[%c0_7, %c0_8] : memref<16x512xbf16, #tpu.memory_space<vmem>>, vector<16x512xbf16>
    tpu.vector_store %arg5[%c0_7, %c0_8], %9 {strides = array<i32>} : memref<16x512xbf16, #tpu.memory_space<vmem>>, vector<16x512xbf16>,
    return
  }
  func.func @transform_0(%arg0: i32) -> (i32, i32) {
    %c0_i32 = arith.constant 0 : i32
    %c0_i32_0 = arith.constant 0 : i32
    %c0_i32_1 = arith.constant 0 : i32
    return %c0_i32, %c0_i32_0 : i32, i32
  }
  func.func @transform_1(%arg0: i32) -> (i32, i32) {
    %c0_i32 = arith.constant 0 : i32
    %c0_i32_0 = arith.constant 0 : i32
    return %c0_i32, %arg0 : i32, i32
  }
  func.func @transform_2(%arg0: i32) -> (i32, i32) {
    %c0_i32 = arith.constant 0 : i32
    %c0_i32_0 = arith.constant 0 : i32
    %c0_i32_1 = arith.constant 0 : i32
    return %c0_i32, %c0_i32_0 : i32, i32
  }
  func.func @transform_3(%arg0: i32) -> (i32, i32) {
    %c0_i32 = arith.constant 0 : i32
    %c0_i32_0 = arith.constant 0 : i32
    return %c0_i32, %arg0 : i32, i32
  }
  func.func @transform_4(%arg0: i32) -> (i32, i32) {
    %c0_i32 = arith.constant 0 : i32
    %c0_i32_0 = arith.constant 0 : i32
    return %c0_i32, %arg0 : i32, i32
  }
}

module attributes {stable_mosaic.version = 11 : i64} {
  func.func @_head_kernel(%arg0: i32, %arg1: memref<16x512xbf16, #tpu.memory_space<vmem>>, %arg2: memref<128x16xbf16, #tpu.memory_space<vmem>>, %arg3: memref<128x1xf32, #tpu.memory_space<vmem>>, %arg4: memref<2x128xbf16, #tpu.memory_space<vmem>>, %arg5: memref<2x1xf32, #tpu.memory_space<vmem>>, %arg6: memref<2x512xf32, #tpu.memory_space<vmem>>) attributes {dimension_semantics = [#tpu.dimension_semantics<parallel>], iteration_bounds = array<i64: 1>, scalar_prefetch = 0 : i64, scratch_operands = 0 : i64, tpu.core_type = #tpu.core_type<tc>, window_params = [{transform_indices = @transform_0, window_bounds = array<i64: 16, 512>}, {pipeline_mode = #tpu.pipeline_mode<synchronous>, transform_indices = @transform_1, window_bounds = array<i64: 128, 16>}, {pipeline_mode = #tpu.pipeline_mode<synchronous>, transform_indices = @transform_2, window_bounds = array<i64: 128, 1>}, {pipeline_mode = #tpu.pipeline_mode<synchronous>, transform_indices = @transform_3, window_bounds = array<i64: 2, 128>}, {pipeline_mode = #tpu.pipeline_mode<synchronous>, transform_indices = @transform_4, window_bounds = array<i64: 2, 1>}, {transform_indices = @transform_5, window_bounds = array<i64: 2, 512>}]} {
    %c0 = arith.constant 0 : index
    %c0_0 = arith.constant 0 : index
    %0 = vector.load %arg2[%c0, %c0_0] : memref<128x16xbf16, #tpu.memory_space<vmem>>, vector<128x16xbf16>
    %c0_1 = arith.constant 0 : index
    %c0_2 = arith.constant 0 : index
    %1 = vector.load %arg1[%c0_1, %c0_2] : memref<16x512xbf16, #tpu.memory_space<vmem>>, vector<16x512xbf16>
    %cst = arith.constant dense<0.000000e+00> : vector<128x512xf32>
    %2 = tpu.matmul %0, %1, %cst {dimension_numbers = #tpu.dot_dimension_numbers<[1], [0], [0], [1], [0, 0, 1, 1], [], []>} : vector<128x16xbf16>, vector<16x512xbf16>, vector<128x512xf32> -> vector<128x512xf32>
    %c0_3 = arith.constant 0 : index
    %c0_4 = arith.constant 0 : index
    %3 = vector.load %arg3[%c0_3, %c0_4] : memref<128x1xf32, #tpu.memory_space<vmem>>, vector<128x1xf32>
    %4 = vector.broadcast %3 : vector<128x1xf32> to vector<128x512xf32>
    %5 = arith.addf %2, %4 : vector<128x512xf32>
    %cst_5 = arith.constant 0.000000e+00 : f32
    %6 = vector.broadcast %cst_5 : f32 to vector<128x512xf32>
    %7 = arith.maximumf %5, %6 : vector<128x512xf32>
    %8 = arith.truncf %7 : vector<128x512xf32> to vector<128x512xbf16>
    %c0_6 = arith.constant 0 : index
    %c0_7 = arith.constant 0 : index
    %9 = vector.load %arg4[%c0_6, %c0_7] : memref<2x128xbf16, #tpu.memory_space<vmem>>, vector<2x128xbf16>
    %cst_8 = arith.constant dense<0.000000e+00> : vector<2x512xf32>
    %10 = tpu.matmul %9, %8, %cst_8 {dimension_numbers = #tpu.dot_dimension_numbers<[1], [0], [0], [1], [0, 0, 1, 1], [], []>} : vector<2x128xbf16>, vector<128x512xbf16>, vector<2x512xf32> -> vector<2x512xf32>
    %c0_9 = arith.constant 0 : index
    %c0_10 = arith.constant 0 : index
    %11 = vector.load %arg5[%c0_9, %c0_10] : memref<2x1xf32, #tpu.memory_space<vmem>>, vector<2x1xf32>
    %12 = vector.broadcast %11 : vector<2x1xf32> to vector<2x512xf32>
    %13 = arith.addf %10, %12 : vector<2x512xf32>
    %c0_11 = arith.constant 0 : index
    %c0_12 = arith.constant 0 : index
    %14 = vector.load %arg6[%c0_11, %c0_12] : memref<2x512xf32, #tpu.memory_space<vmem>>, vector<2x512xf32>
    tpu.vector_store %arg6[%c0_11, %c0_12], %13 {strides = array<i32>} : memref<2x512xf32, #tpu.memory_space<vmem>>, vector<2x512xf32>,
    return
  }
  func.func @transform_0(%arg0: i32) -> (i32, i32) {
    %c0_i32 = arith.constant 0 : i32
    %c0_i32_0 = arith.constant 0 : i32
    return %c0_i32, %arg0 : i32, i32
  }
  func.func @transform_1(%arg0: i32) -> (i32, i32) {
    %c0_i32 = arith.constant 0 : i32
    %c0_i32_0 = arith.constant 0 : i32
    %c0_i32_1 = arith.constant 0 : i32
    return %c0_i32, %c0_i32_0 : i32, i32
  }
  func.func @transform_2(%arg0: i32) -> (i32, i32) {
    %c0_i32 = arith.constant 0 : i32
    %c0_i32_0 = arith.constant 0 : i32
    %c0_i32_1 = arith.constant 0 : i32
    return %c0_i32, %c0_i32_0 : i32, i32
  }
  func.func @transform_3(%arg0: i32) -> (i32, i32) {
    %c0_i32 = arith.constant 0 : i32
    %c0_i32_0 = arith.constant 0 : i32
    %c0_i32_1 = arith.constant 0 : i32
    return %c0_i32, %c0_i32_0 : i32, i32
  }
  func.func @transform_4(%arg0: i32) -> (i32, i32) {
    %c0_i32 = arith.constant 0 : i32
    %c0_i32_0 = arith.constant 0 : i32
    %c0_i32_1 = arith.constant 0 : i32
    return %c0_i32, %c0_i32_0 : i32, i32
  }
  func.func @transform_5(%arg0: i32) -> (i32, i32) {
    %c0_i32 = arith.constant 0 : i32
    %c0_i32_0 = arith.constant 0 : i32
    return %c0_i32, %arg0 : i32, i32
  }
}

</mosaic_0001>

<bundles_post_ra>
// kernel: fno2d_forward.10
= control target key start
LH: loop header
LB: loop body
LE: loop exit
PB: predicated region body
PF: predicated region fallthrough
CT: control target
= control target key end

     0   :  { %v133_v1 = vmov 0   ;;  %vm45_vm0 = vcmask 1040384   ;;  %vm41_vm1 = vcmask 15360   ;;  %s178_s1 = inlined_call_operand.vmem [shape: bf16[2,512], index: 1, kind: input, shape index: {}]   ;;  %s179_s2 = inlined_call_operand.vmem [shape: f32[16,1], index: 2, kind: input, shape index: {}]   ;;  %s180_s0 = inlined_call_operand.vmem [shape: bf16[16,2], index: 0, kind: input, shape index: {}]   ;;  %s181_s3 = inlined_call_operand.vmem [shape: bf16[16,512], index: 3, kind: output, shape index: {}]  }
   0x1   :  { %v17_v0 = vld [vmem:[%s178_s1] sm:$0xf]  ;;  %132 = vset.pattern.permute.xlu0 %v133_v1  ;;  %v19_v3 = vld [vmem:[%s179_s2 + $0x8] sm:$0xff] }
   0x2   :  { %v18_v2 = vld [vmem:[%s179_s2] sm:$0xff]  ;;  %36 = vst [vmem:[#allocation1] ss:$9 sm:$0xff] %v17_v0 }
   0x3   :  { %22 = vperm.xlu0 %132, %v18_v2   ;;  %v130_v11 = vld [vmem:[%s180_s0] sm:$0xff] }
   0x9   :  { %v37_v4 = vld [vmem:[#allocation1] sm:$0xff]  ;;  %v38_v5 = vld [vmem:[#allocation1 + $0x9] sm:$0xff]  ;;  %v39_v6 = vld [vmem:[#allocation1 + $0x12] sm:$0xff] }
   0xa   :  { %v46_v7 = vsel %vm45_vm0, %v37_v4, 0  ;;  %v48_v8 = vsel %vm45_vm0, %v38_v5, 0  ;;  %v50_v9 = vsel %vm45_vm0, %v39_v6, 0  ;;  %v40_v10 = vld [vmem:[#allocation1 + $0x1b] sm:$0xff] }
   0xb   :  { %27 = vperm.xlu0 %132, %v19_v3   ;;  %61 = vmatpush.bf16.msra.mxu0 %v46_v7  ;;  %v52_v12 = vsel %vm45_vm0, %v40_v10, 0 }
   0xc   :  { %75 = vmatpush.bf16.msra.mxu1 %v48_v8  ;;  %89 = vmatpush.bf16.msra.mxu2 %v50_v9 }
   0xd   :  { %103 = vmatpush.bf16.msra.mxu3 %v52_v12 }
   0xe   :  { %126 = vmatmul.msk.bf16.vlgmr.msra.gmra.mxu0 %vm41_vm1, %v130_v11 }
   0xf   :  { %127 = vmatmul.msk.bf16.vlgmr.msra.gmra.mxu1 %vm41_vm1, %v130_v11  ;;  %128 = vmatmul.msk.bf16.vlgmr.msra.gmra.mxu2 %vm41_vm1, %v130_v11 }
  0x10   :  { %129 = vmatmul.msk.bf16.vlgmr.msra.gmra.mxu3 %vm41_vm1, %v130_v11 }
  0x75   :  { %v23_v13 = vpop.permute.xlu0 %22 }
  0x7d   :  { %v28_v19 = vpop.permute.xlu0 %27 }
  0x8b   :  { %v63_v14 = vpop.f32.mrf.mxu0 }
  0x8c   :  { %v77_v15 = vpop.f32.mrf.mxu1  ;;  %v64_v16 = vadd.f32 %v63_v14, %v23_v13 }
  0x8d   :  { %v78_v17 = vadd.f32 %v77_v15, %v23_v13 }
  0x8f   :  { %v110_v18 = vpack.c.bf16 %v78_v17, %v64_v16 }
  0x91   :  { %114 = vst [vmem:[%s181_s3] sm:$0xff] %v110_v18 }
  0x92   :  { %v91_v20 = vpop.f32.mrf.mxu2 }
  0x93   :  { %v105_v21 = vpop.f32.mrf.mxu3  ;;  %v92_v22 = vadd.f32 %v91_v20, %v23_v13  ;;  %v65_v24 = vpop.f32.mrf.mxu0 }
  0x94   :  { %v106_v23 = vadd.f32 %v105_v21, %v23_v13  ;;  %v79_v25 = vpop.f32.mrf.mxu1  ;;  %v66_v26 = vadd.f32 %v65_v24, %v28_v19 }
  0x95   :  { %v80_v27 = vadd.f32 %v79_v25, %v28_v19 }
  0x96   :  { %v111_v28 = vpack.c.bf16 %v106_v23, %v92_v22 }
  0x97   :  { %v112_v29 = vpack.c.bf16 %v80_v27, %v66_v26 }
  0x98   :  { %115 = vst [vmem:[%s181_s3 + $0x8] sm:$0xff] %v111_v28 }
  0x99   :  { %116 = vst [vmem:[%s181_s3 + $0x10] sm:$0xff] %v112_v29 }
  0x9a   :  { %v93_v30 = vpop.f32.mrf.mxu2 }
  0x9b   :  { %v107_v31 = vpop.f32.mrf.mxu3  ;;  %v94_v32 = vadd.f32 %v93_v30, %v28_v19 }
  0x9c   :  { %v108_v33 = vadd.f32 %v107_v31, %v28_v19 }
  0x9e   :  { %v113_v34 = vpack.c.bf16 %v108_v33, %v94_v32 }
  0xa0   :  { %117 = vst [vmem:[%s181_s3 + $0x18] sm:$0xff] %v113_v34 }

// kernel: reverse.8
= control target key start
LH: loop header
LB: loop body
LE: loop exit
PB: predicated region body
PF: predicated region fallthrough
CT: control target
= control target key end

     0   :  { %s344_s0 = inlined_call_operand.vmem [shape: f32[16,2,16,7], index: 0, kind: input, shape index: {}]   ;;  %s345_s1 = inlined_call_operand.vmem [shape: f32[16,2,16,7], index: 1, kind: output, shape index: {}]  }
   0x1   :  { %v112_v0 = vld [vmem:[%s344_s0 + $0x60] sm:$0xff]  ;;  %v113_v1 = vld [vmem:[%s344_s0 + $0xd0] sm:$0xff]  ;;  %v138_v14 = vld [vmem:[%s344_s0 + $0x68] sm:$0xff] }
   0x2   :  { %v115_v2 = vld [vmem:[%s344_s0 + $0x50] sm:$0xff]  ;;  %4 = vst [vmem:[%s345_s1] sm:$0xff] %v112_v0  ;;  %v117_v3 = vld [vmem:[%s344_s0 + $0xc0] sm:$0xff]  ;;  %v140_v15 = vld [vmem:[%s344_s0 + $0xd8] sm:$0xff] }
   0x3   :  { %114 = vst [vmem:[%s345_s1 + $0x70] sm:$0xff] %v113_v1  ;;  %v119_v4 = vld [vmem:[%s344_s0 + $0x40] sm:$0xff]  ;;  %v121_v5 = vld [vmem:[%s344_s0 + $0xb0] sm:$0xff]  ;;  %v142_v16 = vld [vmem:[%s344_s0 + $0x58] sm:$0xff] }
   0x4   :  { %116 = vst [vmem:[%s345_s1 + $0x10] sm:$0xff] %v115_v2  ;;  %v123_v6 = vld [vmem:[%s344_s0 + $0x30] sm:$0xff]  ;;  %v125_v7 = vld [vmem:[%s344_s0 + $0xa0] sm:$0xff]  ;;  %v144_v17 = vld [vmem:[%s344_s0 + $0xc8] sm:$0xff] }
   0x5   :  { %118 = vst [vmem:[%s345_s1 + $0x80] sm:$0xff] %v117_v3  ;;  %v127_v8 = vld [vmem:[%s344_s0 + $0x20] sm:$0xff]  ;;  %v129_v9 = vld [vmem:[%s344_s0 + $0x90] sm:$0xff]  ;;  %v146_v18 = vld [vmem:[%s344_s0 + $0x48] sm:$0xff] }
   0x6   :  { %120 = vst [vmem:[%s345_s1 + $0x20] sm:$0xff] %v119_v4  ;;  %v131_v10 = vld [vmem:[%s344_s0 + $0x10] sm:$0xff]  ;;  %v133_v11 = vld [vmem:[%s344_s0 + $0x80] sm:$0xff]  ;;  %v148_v19 = vld [vmem:[%s344_s0 + $0xb8] sm:$0xff] }
   0x7   :  { %122 = vst [vmem:[%s345_s1 + $0x90] sm:$0xff] %v121_v5  ;;  %v49_v12 = vld [vmem:[%s344_s0] sm:$0xff]  ;;  %v136_v13 = vld [vmem:[%s344_s0 + $0x70] sm:$0xff]  ;;  %v150_v20 = vld [vmem:[%s344_s0 + $0x38] sm:$0xff] }
   0x8   :  { %124 = vst [vmem:[%s345_s1 + $0x30] sm:$0xff] %v123_v6  ;;  %v152_v21 = vld [vmem:[%s344_s0 + $0xa8] sm:$0xff]  ;;  %v156_v23 = vld [vmem:[%s344_s0 + $0x98] sm:$0xff] }
   0x9   :  { %126 = vst [vmem:[%s345_s1 + $0xa0] sm:$0xff] %v125_v7  ;;  %v154_v22 = vld [vmem:[%s344_s0 + $0x28] sm:$0xff]  ;;  %v158_v24 = vld [vmem:[%s344_s0 + $0x18] sm:$0xff] }
   0xa   :  { %128 = vst [vmem:[%s345_s1 + $0x40] sm:$0xff] %v127_v8  ;;  %v160_v25 = vld [vmem:[%s344_s0 + $0x88] sm:$0xff]  ;;  %v164_v27 = vld [vmem:[%s344_s0 + $0x78] sm:$0xff] }
   0xb   :  { %130 = vst [vmem:[%s345_s1 + $0xb0] sm:$0xff] %v129_v9  ;;  %v162_v26 = vld [vmem:[%s344_s0 + $0x8] sm:$0xff] }
   0xc   :  { %132 = vst [vmem:[%s345_s1 + $0x50] sm:$0xff] %v131_v10 }
   0xd   :  { %134 = vst [vmem:[%s345_s1 + $0xc0] sm:$0xff] %v133_v11 }
   0xe   :  { %135 = vst [vmem:[%s345_s1 + $0x60] sm:$0xff] %v49_v12 }
   0xf   :  { %137 = vst [vmem:[%s345_s1 + $0xd0] sm:$0xff] %v136_v13 }
  0x10   :  { %139 = vst [vmem:[%s345_s1 + $0x8] sm:$0xff] %v138_v14 }
  0x11   :  { %141 = vst [vmem:[%s345_s1 + $0x78] sm:$0xff] %v140_v15 }
  0x12   :  { %143 = vst [vmem:[%s345_s1 + $0x18] sm:$0xff] %v142_v16 }
  0x13   :  { %145 = vst [vmem:[%s345_s1 + $0x88] sm:$0xff] %v144_v17 }
  0x14   :  { %147 = vst [vmem:[%s345_s1 + $0x28] sm:$0xff] %v146_v18 }
  0x15   :  { %149 = vst [vmem:[%s345_s1 + $0x98] sm:$0xff] %v148_v19 }
  0x16   :  { %151 = vst [vmem:[%s345_s1 + $0x38] sm:$0xff] %v150_v20 }
  0x17   :  { %153 = vst [vmem:[%s345_s1 + $0xa8] sm:$0xff] %v152_v21 }
  0x18   :  { %155 = vst [vmem:[%s345_s1 + $0x48] sm:$0xff] %v154_v22 }
  0x19   :  { %157 = vst [vmem:[%s345_s1 + $0xb8] sm:$0xff] %v156_v23 }
  0x1a   :  { %159 = vst [vmem:[%s345_s1 + $0x58] sm:$0xff] %v158_v24 }
  0x1b   :  { %161 = vst [vmem:[%s345_s1 + $0xc8] sm:$0xff] %v160_v25 }
  0x1c   :  { %163 = vst [vmem:[%s345_s1 + $0x68] sm:$0xff] %v162_v26 }
  0x1d   :  { %165 = vst [vmem:[%s345_s1 + $0xd8] sm:$0xff] %v164_v27 }

// kernel: fno2d_forward.11
= control target key start
LH: loop header
LB: loop body
LE: loop exit
PB: predicated region body
PF: predicated region fallthrough
CT: control target
= control target key end

     0   :  { %vm3727_vm0 = vcmask 254976   ;;  %s10226_s2 = inlined_call_operand.vmem [shape: f32[16,16,32], index: 2, kind: input, shape index: {}]   ;;  %s10227_s3 = inlined_call_operand.vmem [shape: f32[16,16,32], index: 3, kind: input, shape index: {}]   ;;  %s10228_s0 = inlined_call_operand.vmem [shape: f32[16,2,32], index: 0, kind: input, shape index: {}]   ;;  %s10229_s1 = inlined_call_operand.vmem [shape: f32[16,2,32], index: 1, kind: input, shape index: {}]   ;;  %s10230_s4 = inlined_call_operand.vmem [shape: f32[16,2,32], index: 4, kind: output, shape index: {0}]   ;;  %s10231_s5 = inlined_call_operand.vmem [shape: f32[16,2,32], index: 5, kind: output, shape index: {1}]  }
   0x1   :  { %v3891_v0 = vld [vmem:[%s10226_s2] sm:$0xff]  ;;  %v3896_v1 = vld [vmem:[%s10226_s2 + $0x8] sm:$0xff] }
   0x2   :  { %10652 = vst [vmem:[#allocation2_spill] sm:$0xff] %v3896_v1  ;;  %v25_v2 = vrot.slane %v3891_v0, 1  ;;  %v26_v3 = vrot.slane %v3891_v0, 2  ;;  %v27_v4 = vrot.slane %v3891_v0, 3  ;;  %v28_v5 = vrot.slane %v3891_v0, 4  ;;  %v3906_v7 = vld [vmem:[%s10227_s3] sm:$0xff] }
   0x3   :  { %v29_v6 = vrot.slane %v3891_v0, 5  ;;  %v30_v8 = vrot.slane %v3891_v0, 6  ;;  %v31_v9 = vrot.slane %v3891_v0, 7  ;;  %v32_v10 = vrot.slane %v3896_v1, 1  ;;  %v3919_v16 = vld [vmem:[%s10227_s3 + $0x8] sm:$0xff] }
   0x4   :  { %v33_v11 = vrot.slane %v3896_v1, 2  ;;  %v34_v12 = vrot.slane %v3896_v1, 3  ;;  %v35_v13 = vrot.slane %v3896_v1, 4  ;;  %v36_v14 = vrot.slane %v3896_v1, 5  ;;  %v3940_v33 = vld [vmem:[%s10228_s0] sm:$0x3] }
   0x5   :  { %v37_v15 = vrot.slane %v3896_v1, 6  ;;  %v38_v17 = vrot.slane %v3896_v1, 7  ;;  %v43_v18 = vrot.slane %v3906_v7, 1  ;;  %v44_v19 = vrot.slane %v3906_v7, 2 }
   0x6   :  { %v45_v20 = vrot.slane %v3906_v7, 3  ;;  %v46_v21 = vrot.slane %v3906_v7, 4  ;;  %v47_v22 = vrot.slane %v3906_v7, 5  ;;  %v48_v23 = vrot.slane %v3906_v7, 6 }
   0x7   :  { %v49_v24 = vrot.slane %v3906_v7, 7  ;;  %v50_v25 = vrot.slane %v3919_v16, 1  ;;  %v51_v26 = vrot.slane %v3919_v16, 2  ;;  %v52_v27 = vrot.slane %v3919_v16, 3 }
   0x8   :  { %v53_v28 = vrot.slane %v3919_v16, 4  ;;  %v54_v29 = vrot.slane %v3919_v16, 5  ;;  %v55_v30 = vrot.slane %v3919_v16, 6  ;;  %v56_v31 = vrot.slane %v3919_v16, 7 }
   0x9   :  { %v10233_v32 = vperm.slane %v3891_v0, 0  ;;  %v3942_v34 = vperm.slane %v25_v2, 0  ;;  %v3944_v35 = vperm.slane %v26_v3, 0  ;;  %v3946_v36 = vperm.slane %v27_v4, 0  ;;  %v4041_v4 = vld [vmem:[%s10229_s1] sm:$0x3] }
   0xa   :  { %v3948_v37 = vperm.slane %v28_v5, 0  ;;  %v3950_v38 = vperm.slane %v29_v6, 0  ;;  %v3952_v39 = vperm.slane %v30_v8, 0  ;;  %v3954_v40 = vperm.slane %v31_v9, 0 }
   0xb   :  { %v10232_v41 = vperm.slane %v3896_v1, 0  ;;  %v3957_v42 = vperm.slane %v32_v10, 0  ;;  %v3959_v43 = vperm.slane %v33_v11, 0  ;;  %v3961_v44 = vperm.slane %v34_v12, 0 }
   0xc   :  { %10653 = vst [vmem:[#allocation3_spill] sm:$0xff] %v3954_v40  ;;  %v3963_v45 = vperm.slane %v35_v13, 0  ;;  %v3965_v46 = vperm.slane %v36_v14, 0  ;;  %v3967_v47 = vperm.slane %v37_v15, 0  ;;  %v3969_v48 = vperm.slane %v38_v17, 0 }
   0xd   :  { %10654 = vst [vmem:[#allocation4_spill] sm:$0xff] %v3957_v42  ;;  %v3974_v49 = vmul.f32 %v10233_v32, %v3940_v33  ;;  %v3978_v50 = vmul.f32 %v3942_v34, %v3940_v33  ;;  %v3982_v51 = vmul.f32 %v3944_v35, %v3940_v33  ;;  %v3986_v52 = vmul.f32 %v3946_v36, %v3940_v33 }
   0xe   :  { %10655 = vst [vmem:[#allocation5_spill] sm:$0xff] %v3959_v43  ;;  %v3990_v53 = vmul.f32 %v3948_v37, %v3940_v33  ;;  %v3994_v54 = vmul.f32 %v3950_v38, %v3940_v33  ;;  %v3998_v55 = vmul.f32 %v3952_v39, %v3940_v33  ;;  %v4002_v56 = vmul.f32 %v3954_v40, %v3940_v33 }
   0xf   :  { %10656 = vst [vmem:[#allocation6_spill] sm:$0xff] %v3961_v44  ;;  %v4007_v57 = vmul.f32 %v10232_v41, %v3940_v33  ;;  %v4011_v58 = vmul.f32 %v3957_v42, %v3940_v33  ;;  %v4015_v59 = vmul.f32 %v3959_v43, %v3940_v33  ;;  %v4019_v60 = vmul.f32 %v3961_v44, %v3940_v33 }
  0x10   :  { %10657 = vst [vmem:[#allocation7_spill] sm:$0xff] %v3963_v45  ;;  %v4023_v61 = vmul.f32 %v3963_v45, %v3940_v33  ;;  %v4027_v62 = vmul.f32 %v3965_v46, %v3940_v33  ;;  %v4031_v63 = vmul.f32 %v3967_v47, %v3940_v33  ;;  %v4035_v2 = vmul.f32 %v3969_v48, %v3940_v33 }
  0x11   :  { %10658 = vst [vmem:[#allocation8_spill] sm:$0xff] %v3965_v46  ;;  %v105_v3 = vperm.slane %v3906_v7, 0  ;;  %v106_v5 = vperm.slane %v43_v18, 0  ;;  %v107_v6 = vperm.slane %v44_v19, 0  ;;  %v108_v8 = vperm.slane %v45_v20, 0 }
  0x12   :  { %10659 = vst [vmem:[#allocation9_spill] sm:$0xff] %v3967_v47  ;;  %v109_v9 = vperm.slane %v46_v21, 0  ;;  %v110_v10 = vperm.slane %v47_v22, 0  ;;  %v111_v11 = vperm.slane %v48_v23, 0  ;;  %v112_v12 = vperm.slane %v49_v24, 0 }
  0x13   :  { %10660 = vst [vmem:[#allocation10_spill] sm:$0xff] %v3969_v48  ;;  %v113_v13 = vperm.slane %v3919_v16, 0  ;;  %v114_v14 = vperm.slane %v50_v25, 0  ;;  %v115_v15 = vperm.slane %v51_v26, 0  ;;  %v116_v17 = vperm.slane %v52_v27, 0 }
  0x14   :  { %10661 = vst [vmem:[#allocation11_spill] sm:$0xff] %v4019_v60  ;;  %v117_v41 = vperm.slane %v53_v28, 0  ;;  %v118_v32 = vperm.slane %v54_v29, 0  ;;  %v119_v7 = vperm.slane %v55_v30, 0  ;;  %v120_v48 = vperm.slane %v56_v31, 0 }
  0x15   :  { %10662 = vst [vmem:[#allocation12_spill] sm:$0xff] %v4023_v61  ;;  %v4045_v47 = vmul.f32 %v105_v3, %v4041_v4  ;;  %v4048_v18 = vmul.f32 %v106_v5, %v4041_v4  ;;  %v4051_v19 = vmul.f32 %v107_v6, %v4041_v4  ;;  %v4054_v20 = vmul.f32 %v108_v8, %v4041_v4 }
  0x16   :  { %10663 = vst [vmem:[#allocation13_spill] sm:$0xff] %v4027_v62  ;;  %v4057_v16 = vmul.f32 %v109_v9, %v4041_v4  ;;  %v4060_v21 = vmul.f32 %v110_v10, %v4041_v4  ;;  %v4063_v22 = vmul.f32 %v111_v11, %v4041_v4  ;;  %v4066_v23 = vmul.f32 %v112_v12, %v4041_v4 }
  0x17   :  { %10664 = vst [vmem:[#allocation14_spill] sm:$0xff] %v4031_v63  ;;  %v4069_v24 = vmul.f32 %v113_v13, %v4041_v4  ;;  %v4072_v25 = vmul.f32 %v114_v14, %v4041_v4  ;;  %v4075_v26 = vmul.f32 %v115_v15, %v4041_v4  ;;  %v4078_v27 = vmul.f32 %v116_v17, %v4041_v4 }
  0x18   :  { %10665 = vst [vmem:[#allocation15_spill] sm:$0xff] %v4035_v2  ;;  %v4081_v28 = vmul.f32 %v117_v41, %v4041_v4  ;;  %v4084_v29 = vmul.f32 %v118_v32, %v4041_v4  ;;  %v4087_v30 = vmul.f32 %v119_v7, %v4041_v4  ;;  %v4090_v31 = vmul.f32 %v120_v48, %v4041_v4 }
  0x19   :  { %10666 = vst [vmem:[#allocation16_spill] sm:$0xff] %v4072_v25  ;;  %v169_v44 = vmul.f32 %v105_v3, %v3940_v33  ;;  %v170_v25 = vmul.f32 %v106_v5, %v3940_v33  ;;  %v171_v43 = vmul.f32 %v107_v6, %v3940_v33  ;;  %v172_v42 = vmul.f32 %v108_v8, %v3940_v33 }
  0x1a   :  { %10667 = vst [vmem:[#allocation17_spill] sm:$0xff] %v4078_v27  ;;  %v173_v27 = vmul.f32 %v109_v9, %v3940_v33  ;;  %v174_v1 = vmul.f32 %v110_v10, %v3940_v33  ;;  %v175_v40 = vmul.f32 %v111_v11, %v3940_v33  ;;  %v177_v46 = vmul.f32 %v113_v13, %v3940_v33 }
  0x1b   :  { %10668 = vst [vmem:[#allocation18_spill] sm:$0xff] %v4081_v28  ;;  %v178_v45 = vmul.f32 %v114_v14, %v3940_v33  ;;  %v179_v3 = vmul.f32 %v115_v15, %v3940_v33  ;;  %v180_v5 = vmul.f32 %v116_v17, %v3940_v33  ;;  %v181_v6 = vmul.f32 %v117_v41, %v3940_v33 }
  0x1c   :  { %10669 = vst [vmem:[#allocation19_spill] sm:$0xff] %v4084_v29  ;;  %v176_v29 = vmul.f32 %v112_v12, %v3940_v33  ;;  %v182_v8 = vmul.f32 %v118_v32, %v3940_v33  ;;  %v183_v9 = vmul.f32 %v119_v7, %v3940_v33  ;;  %v184_v10 = vmul.f32 %v120_v48, %v3940_v33 }
  0x1d   :  { %10670 = vst [vmem:[#allocation20_spill] sm:$0xff] %v4087_v30  ;;  %v10672_v11 = vperm.slane %v3891_v0, 0  ;;  %v186_v13 = vmul.f32 %v3942_v34, %v4041_v4  ;;  %v187_v14 = vmul.f32 %v3944_v35, %v4041_v4  ;;  %v188_v15 = vmul.f32 %v3946_v36, %v4041_v4  ;;  %v10673_v0 = vld [vmem:[#allocation3_spill] sm:$0xff]  ;;  %v10674_v34 = vld [vmem:[#allocation2_spill] sm:$0xff]  ;;  %v10676_v35 = vld [vmem:[#allocation4_spill] sm:$0xff] }
  0x1e   :  { %10671 = vst [vmem:[#allocation21_spill] sm:$0xff] %v4090_v31  ;;  %v189_v32 = vmul.f32 %v3948_v37, %v4041_v4  ;;  %v190_v41 = vmul.f32 %v3950_v38, %v4041_v4  ;;  %v191_v33 = vmul.f32 %v3952_v39, %v4041_v4  ;;  %v192_v48 = vmul.f32 %v10673_v0, %v4041_v4  ;;  %v10677_v36 = vld [vmem:[#allocation5_spill] sm:$0xff]  ;;  %v10678_v37 = vld [vmem:[#allocation6_spill] sm:$0xff]  ;;  %v10679_v38 = vld [vmem:[#allocation7_spill] sm:$0xff] }
  0x1f   :  { %v185_v12 = vmul.f32 %v10672_v11, %v4041_v4  ;;  %v10675_v17 = vperm.slane %v10674_v34, 0  ;;  %v194_v11 = vmul.f32 %v10676_v35, %v4041_v4  ;;  %v195_v31 = vmul.f32 %v10677_v36, %v4041_v4  ;;  %v10680_v39 = vld [vmem:[#allocation8_spill] sm:$0xff]  ;;  %v10681_v0 = vld [vmem:[#allocation9_spill] sm:$0xff]  ;;  %v10682_v34 = vld [vmem:[#allocation10_spill] sm:$0xff] }
  0x20   :  { %v196_v2 = vmul.f32 %v10678_v37, %v4041_v4  ;;  %v197_v30 = vmul.f32 %v10679_v38, %v4041_v4  ;;  %v198_v63 = vmul.f32 %v10680_v39, %v4041_v4  ;;  %v199_v62 = vmul.f32 %v10681_v0, %v4041_v4  ;;  %v4187_v38 = vld [vmem:[%s10226_s2 + $0x10] sm:$0xff] }
  0x21   :  { %v193_v7 = vmul.f32 %v10675_v17, %v4041_v4  ;;  %v200_v17 = vmul.f32 %v10682_v34, %v4041_v4  ;;  %v4174_v28 = vadd.f32 %v185_v12, %v169_v44  ;;  %v4176_v35 = vadd.f32 %v186_v13, %v170_v25  ;;  %10688 = vst [vmem:[#allocation7_spill] sm:$0xff] %v4187_v38  ;;  %v4208_v12 = vld [vmem:[%s10226_s2 + $0x18] sm:$0xff] }
  0x22   :  { %v4178_v36 = vadd.f32 %v187_v14, %v171_v43  ;;  %v4180_v61 = vadd.f32 %v188_v15, %v172_v42  ;;  %v4182_v37 = vadd.f32 %v189_v32, %v173_v27  ;;  %v4189_v39 = vadd.f32 %v190_v41, %v174_v1  ;;  %10697 = vst [vmem:[#allocation27_spill] sm:$0xff] %v4208_v12  ;;  %v4237_v14 = vld [vmem:[%s10227_s3 + $0x18] sm:$0xff] }
  0x23   :  { %10683 = vst [vmem:[#allocation3_spill] sm:$0xff] %v4174_v28  ;;  %v4191_v0 = vadd.f32 %v191_v33, %v175_v40  ;;  %v4193_v4 = vadd.f32 %v192_v48, %v176_v29  ;;  %v4195_v44 = vadd.f32 %v193_v7, %v177_v46  ;;  %v4197_v25 = vadd.f32 %v194_v11, %v178_v45 }
  0x24   :  { %10684 = vst [vmem:[#allocation2_spill] sm:$0xff] %v4176_v35  ;;  %v4199_v43 = vadd.f32 %v195_v31, %v179_v3  ;;  %v4201_v42 = vadd.f32 %v196_v2, %v180_v5  ;;  %v4203_v27 = vadd.f32 %v197_v30, %v181_v6  ;;  %v4210_v1 = vadd.f32 %v198_v63, %v182_v8  ;;  %v4224_v3 = vld [vmem:[%s10227_s3 + $0x10] sm:$0xff] }
  0x25   :  { %10685 = vst [vmem:[#allocation4_spill] sm:$0xff] %v4178_v36  ;;  %v4212_v40 = vadd.f32 %v199_v62, %v183_v9  ;;  %v4214_v29 = vadd.f32 %v200_v17, %v184_v10  ;;  %v226_v45 = vrot.slane %v4187_v38, 1  ;;  %v227_v46 = vrot.slane %v4187_v38, 2 }
  0x26   :  { %10686 = vst [vmem:[#allocation5_spill] sm:$0xff] %v4180_v61  ;;  %v228_v2 = vrot.slane %v4187_v38, 3  ;;  %v229_v30 = vrot.slane %v4187_v38, 4  ;;  %v230_v31 = vrot.slane %v4187_v38, 5  ;;  %v231_v62 = vrot.slane %v4187_v38, 6 }
  0x27   :  { %10687 = vst [vmem:[#allocation6_spill] sm:$0xff] %v4182_v37  ;;  %v232_v63 = vrot.slane %v4187_v38, 7  ;;  %v233_v5 = vrot.slane %v4208_v12, 1  ;;  %v234_v6 = vrot.slane %v4208_v12, 2  ;;  %v235_v8 = vrot.slane %v4208_v12, 3 }
  0x28   :  { %10689 = vst [vmem:[#allocation8_spill] sm:$0xff] %v4189_v39  ;;  %v236_v9 = vrot.slane %v4208_v12, 4  ;;  %v237_v10 = vrot.slane %v4208_v12, 5  ;;  %v238_v13 = vrot.slane %v4208_v12, 6  ;;  %v239_v15 = vrot.slane %v4208_v12, 7 }
  0x29   :  { %10690 = vst [vmem:[#allocation9_spill] sm:$0xff] %v4191_v0  ;;  %v245_v32 = vrot.slane %v4224_v3, 1  ;;  %v246_v41 = vrot.slane %v4224_v3, 2  ;;  %v247_v33 = vrot.slane %v4224_v3, 3  ;;  %v248_v48 = vrot.slane %v4224_v3, 4 }
  0x2a   :  { %10691 = vst [vmem:[#allocation10_spill] sm:$0xff] %v4193_v4  ;;  %v249_v7 = vrot.slane %v4224_v3, 5  ;;  %v250_v11 = vrot.slane %v4224_v3, 6  ;;  %v251_v34 = vrot.slane %v4224_v3, 7  ;;  %v252_v17 = vrot.slane %v4237_v14, 1 }
  0x2b   :  { %10692 = vst [vmem:[#allocation22_spill] sm:$0xff] %v4195_v44  ;;  %v4258_v44 = vld [vmem:[%s10228_s0 + $0x2] sm:$0x3]  ;;  %v4260_v4 = vperm.slane %v226_v45, 0  ;;  %v4262_v0 = vperm.slane %v227_v46, 0  ;;  %v4264_v39 = vperm.slane %v228_v2, 0 }
  0x2c   :  { %10693 = vst [vmem:[#allocation23_spill] sm:$0xff] %v4197_v25  ;;  %v4266_v37 = vperm.slane %v229_v30, 0  ;;  %v4268_v61 = vperm.slane %v230_v31, 0  ;;  %v4270_v36 = vperm.slane %v231_v62, 0  ;;  %v4272_v35 = vperm.slane %v232_v63, 0 }
  0x2d   :  { %10694 = vst [vmem:[#allocation24_spill] sm:$0xff] %v4199_v43  ;;  %v258_v43 = vrot.slane %v4237_v14, 7  ;;  %v10258_v25 = vperm.slane %v4208_v12, 0  ;;  %v4275_v28 = vperm.slane %v233_v5, 0  ;;  %v4277_v60 = vperm.slane %v234_v6, 0 }
  0x2e   :  { %10695 = vst [vmem:[#allocation25_spill] sm:$0xff] %v4201_v42  ;;  %v257_v42 = vrot.slane %v4237_v14, 6  ;;  %v4279_v45 = vperm.slane %v235_v8, 0  ;;  %v4281_v46 = vperm.slane %v236_v9, 0  ;;  %v4283_v2 = vperm.slane %v237_v10, 0 }
  0x2f   :  { %10696 = vst [vmem:[#allocation26_spill] sm:$0xff] %v4203_v27  ;;  %v256_v27 = vrot.slane %v4237_v14, 5  ;;  %v4285_v30 = vperm.slane %v238_v13, 0  ;;  %v4287_v31 = vperm.slane %v239_v15, 0  ;;  %v10718_v62 = vperm.slane %v4187_v38, 0 }
  0x30   :  { %10698 = vst [vmem:[#allocation28_spill] sm:$0xff] %v4210_v1  ;;  %v255_v1 = vrot.slane %v4237_v14, 4  ;;  %v4296_v5 = vmul.f32 %v4258_v44, %v4260_v4  ;;  %v4300_v6 = vmul.f32 %v4258_v44, %v4262_v0  ;;  %v4304_v8 = vmul.f32 %v4258_v44, %v4264_v39 }
  0x31   :  { %10699 = vst [vmem:[#allocation29_spill] sm:$0xff] %v4212_v40  ;;  %v254_v40 = vrot.slane %v4237_v14, 3  ;;  %v4292_v63 = vmul.f32 %v4258_v44, %v10718_v62  ;;  %v4308_v9 = vmul.f32 %v4258_v44, %v4266_v37  ;;  %v4312_v10 = vmul.f32 %v4258_v44, %v4268_v61 }
  0x32   :  { %10700 = vst [vmem:[#allocation30_spill] sm:$0xff] %v4214_v29  ;;  %v253_v29 = vrot.slane %v4237_v14, 2  ;;  %v4316_v13 = vmul.f32 %v4258_v44, %v4270_v36  ;;  %v4320_v15 = vmul.f32 %v4258_v44, %v4272_v35  ;;  %v4325_v62 = vmul.f32 %v4258_v44, %v10258_v25 }
  0x33   :  { %10701 = vst [vmem:[#allocation31_spill] sm:$0xff] %v4224_v3  ;;  %v4345_v25 = vmul.f32 %v4258_v44, %v4283_v2  ;;  %v10279_v12 = vperm.slane %v4237_v14, 0  ;;  %v4376_v38 = vperm.slane %v252_v17, 0 }
  0x34   :  { %10702 = vst [vmem:[#allocation32_spill] sm:$0xff] %v4237_v14 }
  0x35   :  { %10703 = vst [vmem:[#allocation33_spill] sm:$0xff] %v4258_v44 }
  0x36   :  { %10704 = vst [vmem:[#allocation34_spill] sm:$0xff] %v4260_v4  ;;  %v4371_v4 = vperm.slane %v250_v11, 0  ;;  %v10733_v11 = vperm.slane %v4224_v3, 0 }
  0x37   :  { %10705 = vst [vmem:[#allocation35_spill] sm:$0xff] %v4262_v0  ;;  %v4367_v0 = vperm.slane %v248_v48, 0  ;;  %v4386_v48 = vperm.slane %v257_v42, 0 }
  0x38   :  { %10706 = vst [vmem:[#allocation36_spill] sm:$0xff] %v4264_v39  ;;  %v4363_v39 = vperm.slane %v246_v41, 0  ;;  %v4382_v41 = vperm.slane %v255_v1, 0 }
  0x39   :  { %10707 = vst [vmem:[#allocation37_spill] sm:$0xff] %v4266_v37  ;;  %v4329_v37 = vmul.f32 %v4258_v44, %v4275_v28 }
  0x3a   :  { %10708 = vst [vmem:[#allocation38_spill] sm:$0xff] %v4268_v61  ;;  %v4333_v61 = vmul.f32 %v4258_v44, %v4277_v60 }
  0x3b   :  { %10709 = vst [vmem:[#allocation39_spill] sm:$0xff] %v4270_v36  ;;  %v4337_v36 = vmul.f32 %v4258_v44, %v4279_v45 }
  0x3c   :  { %10710 = vst [vmem:[#allocation40_spill] sm:$0xff] %v4272_v35  ;;  %v4341_v35 = vmul.f32 %v4258_v44, %v4281_v46 }
  0x3d   :  { %10711 = vst [vmem:[#allocation41_spill] sm:$0xff] %v4275_v28  ;;  %v4349_v28 = vmul.f32 %v4258_v44, %v4285_v30 }
  0x3e   :  { %10712 = vst [vmem:[#allocation42_spill] sm:$0xff] %v4277_v60  ;;  %v4353_v60 = vmul.f32 %v4258_v44, %v4287_v31  ;;  %v4378_v44 = vperm.slane %v253_v29, 0 }
  0x3f   :  { %10713 = vst [vmem:[#allocation43_spill] sm:$0xff] %v4279_v45  ;;  %v4359_v45 = vld [vmem:[%s10229_s1 + $0x2] sm:$0x3] }
  0x40   :  { %10714 = vst [vmem:[#allocation44_spill] sm:$0xff] %v4281_v46  ;;  %v4361_v46 = vperm.slane %v245_v32, 0  ;;  %v4380_v32 = vperm.slane %v254_v40, 0  ;;  %v341_v29 = vmul.f32 %v4359_v45, %v4363_v39  ;;  %v345_v42 = vmul.f32 %v4359_v45, %v4371_v4 }
  0x41   :  { %10715 = vst [vmem:[#allocation45_spill] sm:$0xff] %v4283_v2  ;;  %v4365_v2 = vperm.slane %v247_v33, 0  ;;  %v4384_v33 = vperm.slane %v256_v27, 0  ;;  %v343_v27 = vmul.f32 %v4359_v45, %v4367_v0  ;;  %v353_v14 = vmul.f32 %v4359_v45, %v4386_v48 }
  0x42   :  { %10716 = vst [vmem:[#allocation46_spill] sm:$0xff] %v4285_v30  ;;  %v4369_v30 = vperm.slane %v249_v7, 0  ;;  %v4388_v7 = vperm.slane %v258_v43, 0  ;;  %v340_v17 = vmul.f32 %v4359_v45, %v4361_v46 }
  0x43   :  { %10717 = vst [vmem:[#allocation47_spill] sm:$0xff] %v4287_v31  ;;  %v4373_v31 = vperm.slane %v251_v34, 0  ;;  %v339_v34 = vmul.f32 %v4359_v45, %v10733_v11  ;;  %v342_v1 = vmul.f32 %v4359_v45, %v4365_v2  ;;  %v347_v11 = vmul.f32 %v4359_v45, %v10279_v12 }
  0x44   :  { %10719 = vst [vmem:[#allocation48_spill] sm:$0xff] %v4359_v45  ;;  %v344_v43 = vmul.f32 %v4359_v45, %v4369_v30  ;;  %v354_v12 = vmul.f32 %v4359_v45, %v4388_v7 }
  0x45   :  { %10720 = vst [vmem:[#allocation49_spill] sm:$0xff] %v4361_v46  ;;  %v346_v40 = vmul.f32 %v4359_v45, %v4373_v31  ;;  %v359_v46 = vsub.f32 %v4308_v9, %v343_v27  ;;  %v369_v9 = vsub.f32 %v4349_v28, %v353_v14  ;;  %v10737_v28 = vsub.f32 %v3986_v52, %v4054_v20  ;;  %v10757_v14 = vld [vmem:[#allocation14_spill] sm:$0xff] }
  0x46   :  { %10721 = vst [vmem:[#allocation50_spill] sm:$0xff] %v4363_v39  ;;  %v348_v39 = vmul.f32 %v4359_v45, %v4376_v38  ;;  %v10741_v52 = vsub.f32 %v4002_v56, %v4066_v23 }
  0x47   :  { %10722 = vst [vmem:[#allocation51_spill] sm:$0xff] %v4365_v2  ;;  %v349_v2 = vmul.f32 %v4359_v45, %v4378_v44  ;;  %v362_v3 = vsub.f32 %v4320_v15, %v346_v40 }
  0x48   :  { %10723 = vst [vmem:[#allocation52_spill] sm:$0xff] %v4367_v0  ;;  %v350_v0 = vmul.f32 %v4359_v45, %v4380_v32 }
  0x49   :  { %10724 = vst [vmem:[#allocation53_spill] sm:$0xff] %v4369_v30  ;;  %v351_v30 = vmul.f32 %v4359_v45, %v4382_v41 }
  0x4a   :  { %10725 = vst [vmem:[#allocation54_spill] sm:$0xff] %v4371_v4  ;;  %v352_v4 = vmul.f32 %v4359_v45, %v4384_v33  ;;  %v364_v45 = vsub.f32 %v4329_v37, %v348_v39  ;;  %v10735_v37 = vsub.f32 %v3978_v50, %v4048_v18  ;;  %v10739_v50 = vsub.f32 %v3994_v54, %v4060_v21 }
  0x4b   :  { %10726 = vst [vmem:[#allocation55_spill] sm:$0xff] %v4373_v31  ;;  %v356_v31 = vsub.f32 %v4296_v5, %v340_v17  ;;  %v366_v5 = vsub.f32 %v4337_v36, %v350_v0  ;;  %v10747_v0 = vld [vmem:[#allocation17_spill] sm:$0xff] }
  0x4c   :  { %10727 = vst [vmem:[#allocation56_spill] sm:$0xff] %v4376_v38  ;;  %v355_v38 = vsub.f32 %v4292_v63, %v339_v34  ;;  %v365_v63 = vsub.f32 %v4333_v61, %v349_v2  ;;  %v10736_v61 = vsub.f32 %v3982_v51, %v4051_v19  ;;  %v10740_v51 = vsub.f32 %v3998_v55, %v4063_v22  ;;  %v10762_v2 = vld [vmem:[#allocation21_spill] sm:$0xff] }
  0x4d   :  { %10728 = vst [vmem:[#allocation57_spill] sm:$0xff] %v4378_v44  ;;  %v357_v44 = vsub.f32 %v4300_v6, %v341_v29  ;;  %v367_v6 = vsub.f32 %v4341_v35, %v351_v30  ;;  %v4448_v39 = vadd.f32 %v356_v31, %v10735_v37  ;;  %v4478_v19 = vadd.f32 %v362_v3, %v10741_v52  ;;  %v10769_v17 = vld [vmem:[#allocation50_spill] sm:$0xff] }
  0x4e   :  { %10729 = vst [vmem:[#allocation58_spill] sm:$0xff] %v4380_v32  ;;  %v358_v32 = vsub.f32 %v4304_v8, %v342_v1  ;;  %v368_v8 = vsub.f32 %v4345_v25, %v352_v4  ;;  %v10745_v55 = vsub.f32 %v4015_v59, %v4075_v26  ;;  %v10749_v4 = vld [vmem:[#allocation12_spill] sm:$0xff]  ;;  %v10753_v25 = vld [vmem:[#allocation13_spill] sm:$0xff]  ;;  %v10770_v1 = vld [vmem:[#allocation51_spill] sm:$0xff] }
  0x4f   :  { %10730 = vst [vmem:[#allocation59_spill] sm:$0xff] %v4382_v41  ;;  %v360_v41 = vsub.f32 %v4312_v10, %v344_v43  ;;  %v370_v10 = vsub.f32 %v4353_v60, %v354_v12  ;;  %v4453_v35 = vadd.f32 %v357_v44, %v10736_v61  ;;  %v10750_v44 = vld [vmem:[#allocation18_spill] sm:$0xff]  ;;  %v10754_v12 = vld [vmem:[#allocation19_spill] sm:$0xff]  ;;  %v10771_v43 = vld [vmem:[#allocation52_spill] sm:$0xff] }
  0x50   :  { %10731 = vst [vmem:[#allocation60_spill] sm:$0xff] %v4384_v33  ;;  %v361_v33 = vsub.f32 %v4316_v13, %v345_v42  ;;  %v10734_v13 = vsub.f32 %v3974_v49, %v4045_v47  ;;  %v4458_v36 = vadd.f32 %v358_v32, %v10737_v28  ;;  %v10738_v47 = vsub.f32 %v3990_v53, %v4057_v16  ;;  %v10743_v16 = vld [vmem:[#allocation16_spill] sm:$0xff]  ;;  %v10772_v40 = vld [vmem:[#allocation53_spill] sm:$0xff] }
  0x51   :  { %10732 = vst [vmem:[#allocation61_spill] sm:$0xff] %v4386_v48  ;;  %v363_v48 = vsub.f32 %v4325_v62, %v347_v11  ;;  %v4468_v60 = vadd.f32 %v360_v41, %v10739_v50  ;;  %v10742_v53 = vsub.f32 %v4007_v57, %v4069_v24  ;;  %v10744_v54 = vsub.f32 %v4011_v58, %v10743_v16  ;;  %v10765_v62 = vld [vmem:[#allocation31_spill] sm:$0xff]  ;;  %v10767_v41 = vld [vmem:[#allocation33_spill] sm:$0xff] }
  0x52   :  { %v4443_v15 = vadd.f32 %v355_v38, %v10734_v13  ;;  %v4463_v49 = vadd.f32 %v359_v46, %v10738_v47  ;;  %v4473_v18 = vadd.f32 %v361_v33, %v10740_v51  ;;  %v4493_v22 = vadd.f32 %v365_v63, %v10745_v55  ;;  %v10746_v38 = vld [vmem:[#allocation11_spill] sm:$0xff]  ;;  %v10773_v63 = vld [vmem:[#allocation54_spill] sm:$0xff] }
  0x53   :  { %v4483_v20 = vadd.f32 %v363_v48, %v10742_v53  ;;  %v4488_v21 = vadd.f32 %v364_v45, %v10744_v54  ;;  %v10748_v56 = vsub.f32 %v10746_v38, %v10747_v0  ;;  %v10751_v57 = vsub.f32 %v10749_v4, %v10750_v44  ;;  %v10758_v45 = vld [vmem:[#allocation20_spill] sm:$0xff]  ;;  %v10761_v46 = vld [vmem:[#allocation15_spill] sm:$0xff]  ;;  %v10768_v48 = vld [vmem:[#allocation49_spill] sm:$0xff] }
  0x54   :  { %v10755_v58 = vsub.f32 %v10753_v25, %v10754_v12  ;;  %v10759_v59 = vsub.f32 %v10757_v14, %v10758_v45  ;;  %v10763_v30 = vsub.f32 %v10761_v46, %v10762_v2  ;;  %v10766_v32 = vperm.slane %v10765_v62, 0  ;;  %v10777_v37 = vld [vmem:[#allocation56_spill] sm:$0xff]  ;;  %v10778_v28 = vld [vmem:[#allocation57_spill] sm:$0xff]  ;;  %v10786_v25 = vld [vmem:[#allocation34_spill] sm:$0xff] }
  0x55   :  { %v4498_v23 = vadd.f32 %v366_v5, %v10748_v56  ;;  %v4503_v24 = vadd.f32 %v367_v6, %v10751_v57  ;;  %v388_v34 = vmul.f32 %v10767_v41, %v10768_v48  ;;  %v389_v29 = vmul.f32 %v10767_v41, %v10769_v17  ;;  %v10774_v6 = vld [vmem:[#allocation55_spill] sm:$0xff]  ;;  %v10779_v50 = vld [vmem:[#allocation58_spill] sm:$0xff]  ;;  %v10785_v44 = vld [vmem:[#allocation48_spill] sm:$0xff] }
  0x56   :  { %v4508_v3 = vadd.f32 %v368_v8, %v10755_v58  ;;  %v4513_v26 = vadd.f32 %v369_v9, %v10759_v59  ;;  %v4518_v31 = vadd.f32 %v370_v10, %v10763_v30  ;;  %v387_v33 = vmul.f32 %v10767_v41, %v10766_v32  ;;  %v10775_v9 = vld [vmem:[#allocation32_spill] sm:$0xff]  ;;  %v10780_v52 = vld [vmem:[#allocation59_spill] sm:$0xff]  ;;  %v10789_v46 = vld [vmem:[#allocation37_spill] sm:$0xff] }
  0x57   :  { %10752 = vst [vmem:[#allocation16_spill] sm:$0xff] %v4503_v24  ;;  %v390_v27 = vmul.f32 %v10767_v41, %v10770_v1  ;;  %v391_v42 = vmul.f32 %v10767_v41, %v10771_v43  ;;  %v392_v11 = vmul.f32 %v10767_v41, %v10772_v40  ;;  %v393_v5 = vmul.f32 %v10767_v41, %v10773_v63  ;;  %v10781_v16 = vld [vmem:[#allocation60_spill] sm:$0xff]  ;;  %v10783_v56 = vld [vmem:[#allocation7_spill] sm:$0xff]  ;;  %v10790_v30 = vld [vmem:[#allocation38_spill] sm:$0xff] }
  0x58   :  { %10756 = vst [vmem:[#allocation11_spill] sm:$0xff] %v4508_v3  ;;  %v394_v8 = vmul.f32 %v10767_v41, %v10774_v6  ;;  %v10776_v10 = vperm.slane %v10775_v9, 0  ;;  %v396_v61 = vmul.f32 %v10767_v41, %v10777_v37  ;;  %v397_v47 = vmul.f32 %v10767_v41, %v10778_v28  ;;  %v10782_v55 = vld [vmem:[#allocation61_spill] sm:$0xff]  ;;  %v10787_v58 = vld [vmem:[#allocation35_spill] sm:$0xff]  ;;  %v10788_v45 = vld [vmem:[#allocation36_spill] sm:$0xff] }
  0x59   :  { %10760 = vst [vmem:[#allocation17_spill] sm:$0xff] %v4513_v26  ;;  %v398_v51 = vmul.f32 %v10767_v41, %v10779_v50  ;;  %v399_v53 = vmul.f32 %v10767_v41, %v10780_v52  ;;  %v400_v54 = vmul.f32 %v10767_v41, %v10781_v16  ;;  %v401_v38 = vmul.f32 %v10767_v41, %v10782_v55  ;;  %v10793_v17 = vld [vmem:[#allocation27_spill] sm:$0xff]  ;;  %v10795_v40 = vld [vmem:[#allocation41_spill] sm:$0xff]  ;;  %v10796_v6 = vld [vmem:[#allocation42_spill] sm:$0xff] }
  0x5a   :  { %10764 = vst [vmem:[#allocation12_spill] sm:$0xff] %v4518_v31  ;;  %v395_v13 = vmul.f32 %v10767_v41, %v10776_v10  ;;  %v402_v0 = vmul.f32 %v10767_v41, %v4388_v7  ;;  %v10784_v4 = vperm.slane %v10783_v56, 0  ;;  %v404_v12 = vmul.f32 %v10785_v44, %v10786_v25  ;;  %v10791_v7 = vld [vmem:[#allocation39_spill] sm:$0xff]  ;;  %v10792_v41 = vld [vmem:[#allocation40_spill] sm:$0xff]  ;;  %v10799_v52 = vld [vmem:[#allocation45_spill] sm:$0xff] }
  0x5b   :  { %v405_v14 = vmul.f32 %v10785_v44, %v10787_v58  ;;  %v406_v59 = vmul.f32 %v10785_v44, %v10788_v45  ;;  %v407_v2 = vmul.f32 %v10785_v44, %v10789_v46  ;;  %v408_v62 = vmul.f32 %v10785_v44, %v10790_v30  ;;  %v10797_v10 = vld [vmem:[#allocation43_spill] sm:$0xff]  ;;  %v10798_v28 = vld [vmem:[#allocation44_spill] sm:$0xff]  ;;  %v10800_v55 = vld [vmem:[#allocation46_spill] sm:$0xff] }
  0x5c   :  { %v403_v57 = vmul.f32 %v10785_v44, %v10784_v4  ;;  %v409_v32 = vmul.f32 %v10785_v44, %v10791_v7  ;;  %v410_v48 = vmul.f32 %v10785_v44, %v10792_v41  ;;  %v10794_v1 = vperm.slane %v10793_v17, 0  ;;  %v10801_v4 = vld [vmem:[#allocation47_spill] sm:$0xff] }
  0x5d   :  { %v412_v63 = vmul.f32 %v10785_v44, %v10795_v40  ;;  %v413_v9 = vmul.f32 %v10785_v44, %v10796_v6  ;;  %v414_v37 = vmul.f32 %v10785_v44, %v10797_v10  ;;  %v415_v50 = vmul.f32 %v10785_v44, %v10798_v28 }
  0x5e   :  { %v411_v43 = vmul.f32 %v10785_v44, %v10794_v1  ;;  %v416_v16 = vmul.f32 %v10785_v44, %v10799_v52  ;;  %v417_v56 = vmul.f32 %v10785_v44, %v10800_v55  ;;  %v418_v25 = vmul.f32 %v10785_v44, %v10801_v4  ;;  %v10802_v55 = vld [vmem:[#allocation3_spill] sm:$0xff]  ;;  %v10804_v44 = vld [vmem:[#allocation2_spill] sm:$0xff] }
  0x5f   :  { %v419_v58 = vadd.f32 %v403_v57, %v387_v33  ;;  %v420_v45 = vadd.f32 %v404_v12, %v388_v34  ;;  %v421_v46 = vadd.f32 %v405_v14, %v389_v29  ;;  %v422_v30 = vadd.f32 %v406_v59, %v390_v27  ;;  %v10806_v34 = vld [vmem:[#allocation4_spill] sm:$0xff]  ;;  %v10808_v27 = vld [vmem:[#allocation5_spill] sm:$0xff]  ;;  %v10821_v57 = vld [vmem:[#allocation23_spill] sm:$0xff] }
  0x60   :  { %v423_v7 = vadd.f32 %v407_v2, %v391_v42  ;;  %v424_v41 = vadd.f32 %v408_v62, %v392_v11  ;;  %v425_v17 = vadd.f32 %v409_v32, %v393_v5  ;;  %v426_v1 = vadd.f32 %v410_v48, %v394_v8  ;;  %v10810_v11 = vld [vmem:[#allocation6_spill] sm:$0xff]  ;;  %v10823_v14 = vld [vmem:[#allocation24_spill] sm:$0xff]  ;;  %v10825_v2 = vld [vmem:[#allocation25_spill] sm:$0xff] }
  0x61   :  { %v427_v40 = vadd.f32 %v411_v43, %v395_v13  ;;  %v428_v6 = vadd.f32 %v412_v63, %v396_v61  ;;  %v429_v10 = vadd.f32 %v413_v9, %v397_v47  ;;  %v430_v28 = vadd.f32 %v414_v37, %v398_v51  ;;  %v4606_v8 = vld [vmem:[%s10226_s2 + $0x20] sm:$0xff]  ;;  %v10813_v13 = vld [vmem:[#allocation8_spill] sm:$0xff]  ;;  %v10815_v47 = vld [vmem:[#allocation9_spill] sm:$0xff] }
  0x62   :  { %v431_v31 = vadd.f32 %v415_v50, %v399_v53  ;;  %v432_v52 = vadd.f32 %v416_v16, %v400_v54  ;;  %v433_v26 = vadd.f32 %v417_v56, %v401_v38  ;;  %v434_v3 = vadd.f32 %v418_v25, %v402_v0  ;;  %10812 = vst [vmem:[#allocation15_spill] sm:$0xff] %v4606_v8  ;;  %v10817_v53 = vld [vmem:[#allocation10_spill] sm:$0xff]  ;;  %v4635_v43 = vld [vmem:[%s10226_s2 + $0x28] sm:$0xff]  ;;  %v10830_v63 = vld [vmem:[#allocation28_spill] sm:$0xff] }
  0x63   :  { %v4589_v24 = vadd.f32 %v419_v58, %v10802_v55  ;;  %v4592_v33 = vadd.f32 %v420_v45, %v10804_v44  ;;  %v4595_v29 = vadd.f32 %v421_v46, %v10806_v34  ;;  %v4598_v42 = vadd.f32 %v422_v30, %v10808_v27  ;;  %v10819_v38 = vld [vmem:[#allocation22_spill] sm:$0xff]  ;;  %10829 = vst [vmem:[#allocation54_spill] sm:$0xff] %v4635_v43  ;;  %v10832_v37 = vld [vmem:[#allocation29_spill] sm:$0xff] }
  0x64   :  { %v4601_v5 = vadd.f32 %v423_v7, %v10810_v11  ;;  %v4609_v61 = vadd.f32 %v424_v41, %v10813_v13  ;;  %v4612_v51 = vadd.f32 %v425_v17, %v10815_v47  ;;  %v4615_v54 = vadd.f32 %v426_v1, %v10817_v53  ;;  %v10827_v32 = vld [vmem:[#allocation26_spill] sm:$0xff] }
  0x65   :  { %10803 = vst [vmem:[#allocation18_spill] sm:$0xff] %v4589_v24  ;;  %v4618_v0 = vadd.f32 %v427_v40, %v10819_v38  ;;  %v4621_v12 = vadd.f32 %v428_v6, %v10821_v57  ;;  %v4624_v59 = vadd.f32 %v429_v10, %v10823_v14  ;;  %v4627_v62 = vadd.f32 %v430_v28, %v10825_v2  ;;  %v10834_v16 = vld [vmem:[#allocation30_spill] sm:$0xff]  ;;  %v4667_v6 = vld [vmem:[%s10227_s3 + $0x28] sm:$0xff] }
  0x66   :  { %10805 = vst [vmem:[#allocation13_spill] sm:$0xff] %v4592_v33  ;;  %v4630_v48 = vadd.f32 %v431_v31, %v10827_v32  ;;  %v4638_v9 = vadd.f32 %v432_v52, %v10830_v63  ;;  %v4641_v50 = vadd.f32 %v433_v26, %v10832_v37  ;;  %v4644_v56 = vadd.f32 %v434_v3, %v10834_v16  ;;  %v4654_v46 = vld [vmem:[%s10227_s3 + $0x20] sm:$0xff] }
  0x67   :  { %10807 = vst [vmem:[#allocation19_spill] sm:$0xff] %v4595_v29  ;;  %v460_v4 = vrot.slane %v4606_v8, 1  ;;  %v461_v25 = vrot.slane %v4606_v8, 2  ;;  %v462_v31 = vrot.slane %v4606_v8, 3  ;;  %v463_v58 = vrot.slane %v4606_v8, 4 }
  0x68   :  { %10809 = vst [vmem:[#allocation14_spill] sm:$0xff] %v4598_v42  ;;  %v464_v45 = vrot.slane %v4606_v8, 5  ;;  %v465_v26 = vrot.slane %v4606_v8, 6  ;;  %v466_v3 = vrot.slane %v4606_v8, 7  ;;  %v467_v30 = vrot.slane %v4635_v43, 1 }
  0x69   :  { %10811 = vst [vmem:[#allocation20_spill] sm:$0xff] %v4601_v5  ;;  %v468_v7 = vrot.slane %v4635_v43, 2  ;;  %v469_v41 = vrot.slane %v4635_v43, 3  ;;  %v470_v17 = vrot.slane %v4635_v43, 4  ;;  %v471_v1 = vrot.slane %v4635_v43, 5 }
  0x6a   :  { %10814 = vst [vmem:[#allocation21_spill] sm:$0xff] %v4609_v61  ;;  %v472_v40 = vrot.slane %v4635_v43, 6  ;;  %v473_v10 = vrot.slane %v4635_v43, 7  ;;  %v479_v28 = vrot.slane %v4654_v46, 1  ;;  %v480_v52 = vrot.slane %v4654_v46, 2 }
  0x6b   :  { %10816 = vst [vmem:[#allocation31_spill] sm:$0xff] %v4612_v51  ;;  %v481_v55 = vrot.slane %v4654_v46, 3  ;;  %v482_v44 = vrot.slane %v4654_v46, 4  ;;  %v483_v34 = vrot.slane %v4654_v46, 5  ;;  %v484_v27 = vrot.slane %v4654_v46, 6 }
  0x6c   :  { %10818 = vst [vmem:[#allocation33_spill] sm:$0xff] %v4615_v54  ;;  %v485_v11 = vrot.slane %v4654_v46, 7  ;;  %v486_v13 = vrot.slane %v4667_v6, 1  ;;  %v487_v47 = vrot.slane %v4667_v6, 2  ;;  %v488_v53 = vrot.slane %v4667_v6, 3 }
  0x6d   :  { %10820 = vst [vmem:[#allocation49_spill] sm:$0xff] %v4618_v0  ;;  %v489_v38 = vrot.slane %v4667_v6, 4  ;;  %v490_v57 = vrot.slane %v4667_v6, 5  ;;  %v491_v14 = vrot.slane %v4667_v6, 6  ;;  %v492_v2 = vrot.slane %v4667_v6, 7 }
  0x6e   :  { %10822 = vst [vmem:[#allocation50_spill] sm:$0xff] %v4621_v12  ;;  %v4688_v63 = vld [vmem:[%s10228_s0 + $0x4] sm:$0x3]  ;;  %v4690_v37 = vperm.slane %v460_v4, 0  ;;  %v4692_v16 = vperm.slane %v461_v25, 0  ;;  %v10291_v32 = vperm.slane %v4635_v43, 0 }
  0x6f   :  { %10824 = vst [vmem:[#allocation51_spill] sm:$0xff] %v4624_v59  ;;  %v4705_v59 = vperm.slane %v467_v30, 0  ;;  %v4707_v12 = vperm.slane %v468_v7, 0  ;;  %v4709_v4 = vperm.slane %v469_v41, 0  ;;  %v4711_v25 = vperm.slane %v470_v17, 0 }
  0x70   :  { %10826 = vst [vmem:[#allocation52_spill] sm:$0xff] %v4627_v62  ;;  %v4702_v62 = vperm.slane %v466_v3, 0  ;;  %v4726_v30 = vmul.f32 %v4688_v63, %v4690_v37  ;;  %v4730_v7 = vmul.f32 %v4688_v63, %v4692_v16  ;;  %v4789_v33 = vld [vmem:[%s10229_s1 + $0x4] sm:$0x3]  ;;  %v4791_v24 = vperm.slane %v479_v28, 0 }
  0x71   :  { %10828 = vst [vmem:[#allocation53_spill] sm:$0xff] %v4630_v48  ;;  %v4700_v48 = vperm.slane %v465_v26, 0  ;;  %v10851_v26 = vperm.slane %v4606_v8, 0  ;;  %v4759_v0 = vmul.f32 %v4688_v63, %v4705_v59  ;;  %v4763_v54 = vmul.f32 %v4688_v63, %v4707_v12 }
  0x72   :  { %10831 = vst [vmem:[#allocation55_spill] sm:$0xff] %v4638_v9  ;;  %v4698_v9 = vperm.slane %v464_v45, 0  ;;  %v4717_v45 = vperm.slane %v473_v10, 0  ;;  %v4750_v10 = vmul.f32 %v4688_v63, %v4702_v62  ;;  %v4767_v51 = vmul.f32 %v4688_v63, %v4709_v4 }
  0x73   :  { %10833 = vst [vmem:[#allocation32_spill] sm:$0xff] %v4641_v50  ;;  %v4696_v50 = vperm.slane %v463_v58, 0  ;;  %v4715_v58 = vperm.slane %v472_v40, 0  ;;  %v4722_v3 = vmul.f32 %v4688_v63, %v10851_v26  ;;  %v4746_v40 = vmul.f32 %v4688_v63, %v4700_v48 }
  0x74   :  { %10835 = vst [vmem:[#allocation56_spill] sm:$0xff] %v4644_v56  ;;  %v4694_v56 = vperm.slane %v462_v31, 0  ;;  %v4713_v31 = vperm.slane %v471_v1, 0  ;;  %v4742_v1 = vmul.f32 %v4688_v63, %v4698_v9  ;;  %v4755_v26 = vmul.f32 %v4688_v63, %v10291_v32 }
  0x75   :  { %10836 = vst [vmem:[#allocation57_spill] sm:$0xff] %v4667_v6  ;;  %v4738_v17 = vmul.f32 %v4688_v63, %v4696_v50  ;;  %v4771_v61 = vmul.f32 %v4688_v63, %v4711_v25  ;;  %v4779_v5 = vmul.f32 %v4688_v63, %v4715_v58  ;;  %v4783_v42 = vmul.f32 %v4688_v63, %v4717_v45 }
  0x76   :  { %10837 = vst [vmem:[#allocation58_spill] sm:$0xff] %v4690_v37  ;;  %v4734_v41 = vmul.f32 %v4688_v63, %v4694_v56  ;;  %v4775_v32 = vmul.f32 %v4688_v63, %v4713_v31  ;;  %v10306_v29 = vperm.slane %v4667_v6, 0  ;;  %v4808_v43 = vperm.slane %v487_v47, 0 }
  0x77   :  { %10838 = vst [vmem:[#allocation59_spill] sm:$0xff] %v4692_v16  ;;  %v4810_v28 = vperm.slane %v488_v53, 0 }
  0x78   :  { %10839 = vst [vmem:[#allocation60_spill] sm:$0xff] %v4694_v56 }
  0x79   :  { %10840 = vst [vmem:[#allocation61_spill] sm:$0xff] %v4696_v50 }
  0x7a   :  { %10841 = vst [vmem:[#allocation7_spill] sm:$0xff] %v4698_v9  ;;  %v584_v9 = vmul.f32 %v4789_v33, %v4810_v28 }
  0x7b   :  { %10842 = vst [vmem:[#allocation48_spill] sm:$0xff] %v4700_v48  ;;  %v583_v48 = vmul.f32 %v4789_v33, %v4808_v43 }
  0x7c   :  { %10843 = vst [vmem:[#allocation34_spill] sm:$0xff] %v4702_v62 }
  0x7d   :  { %10844 = vst [vmem:[#allocation35_spill] sm:$0xff] %v4705_v59  ;;  %v4806_v59 = vperm.slane %v486_v13, 0  ;;  %v574_v13 = vmul.f32 %v4789_v33, %v4791_v24 }
  0x7e   :  { %10845 = vst [vmem:[#allocation36_spill] sm:$0xff] %v4707_v12  ;;  %v4801_v12 = vperm.slane %v484_v27, 0  ;;  %v10859_v27 = vperm.slane %v4654_v46, 0 }
  0x7f   :  { %10846 = vst [vmem:[#allocation37_spill] sm:$0xff] %v4709_v4  ;;  %v4797_v4 = vperm.slane %v482_v44, 0  ;;  %v4816_v44 = vperm.slane %v491_v14, 0  ;;  %v582_v62 = vmul.f32 %v4789_v33, %v4806_v59  ;;  %v590_v8 = vsub.f32 %v4726_v30, %v574_v13 }
  0x80   :  { %10847 = vst [vmem:[#allocation38_spill] sm:$0xff] %v4711_v25  ;;  %v4793_v25 = vperm.slane %v480_v52, 0  ;;  %v4812_v52 = vperm.slane %v489_v38, 0  ;;  %v579_v14 = vmul.f32 %v4789_v33, %v4801_v12  ;;  %v600_v30 = vsub.f32 %v4767_v51, %v584_v9 }
  0x81   :  { %10848 = vst [vmem:[#allocation39_spill] sm:$0xff] %v4713_v31  ;;  %v4795_v31 = vperm.slane %v481_v55, 0  ;;  %v4814_v55 = vperm.slane %v490_v57, 0  ;;  %v577_v38 = vmul.f32 %v4789_v33, %v4797_v4  ;;  %v587_v16 = vmul.f32 %v4789_v33, %v4816_v44 }
  0x82   :  { %10849 = vst [vmem:[#allocation40_spill] sm:$0xff] %v4715_v58  ;;  %v4799_v58 = vperm.slane %v483_v34, 0  ;;  %v4818_v34 = vperm.slane %v492_v2, 0  ;;  %v575_v47 = vmul.f32 %v4789_v33, %v4793_v25  ;;  %v585_v50 = vmul.f32 %v4789_v33, %v4812_v52 }
  0x83   :  { %10850 = vst [vmem:[#allocation27_spill] sm:$0xff] %v4717_v45  ;;  %v4803_v45 = vperm.slane %v485_v11, 0  ;;  %v573_v11 = vmul.f32 %v4789_v33, %v10859_v27  ;;  %v576_v53 = vmul.f32 %v4789_v33, %v4795_v31  ;;  %v581_v27 = vmul.f32 %v4789_v33, %v10306_v29 }
  0x84   :  { %10852 = vst [vmem:[#allocation41_spill] sm:$0xff] %v4789_v33  ;;  %v578_v57 = vmul.f32 %v4789_v33, %v4799_v58  ;;  %v586_v56 = vmul.f32 %v4789_v33, %v4814_v55  ;;  %v588_v29 = vmul.f32 %v4789_v33, %v4818_v34  ;;  %v627_v9 = vmul.f32 %v4688_v63, %v4801_v12 }
  0x85   :  { %10853 = vst [vmem:[#allocation42_spill] sm:$0xff] %v4806_v59  ;;  %v580_v2 = vmul.f32 %v4789_v33, %v4803_v45  ;;  %v589_v37 = vsub.f32 %v4722_v3, %v573_v11  ;;  %v593_v59 = vsub.f32 %v4738_v17, %v577_v38  ;;  %v598_v33 = vsub.f32 %v4759_v0, %v582_v62  ;;  %v10881_v38 = vld [vmem:[#allocation59_spill] sm:$0xff] }
  0x86   :  { %10854 = vst [vmem:[#allocation43_spill] sm:$0xff] %v4808_v43  ;;  %v591_v43 = vsub.f32 %v4730_v7, %v575_v47  ;;  %v599_v3 = vsub.f32 %v4763_v54, %v583_v48  ;;  %v601_v7 = vsub.f32 %v4771_v61, %v585_v50  ;;  %v603_v17 = vsub.f32 %v4779_v5, %v587_v16  ;;  %v10880_v47 = vld [vmem:[#allocation58_spill] sm:$0xff] }
  0x87   :  { %10855 = vst [vmem:[#allocation44_spill] sm:$0xff] %v4810_v28  ;;  %v592_v28 = vsub.f32 %v4734_v41, %v576_v53  ;;  %v596_v6 = vsub.f32 %v4750_v10, %v580_v2  ;;  %v602_v41 = vsub.f32 %v4775_v32, %v586_v56  ;;  %v4874_v10 = vadd.f32 %v590_v8, %v4448_v39  ;;  %v10869_v56 = vld [vmem:[#allocation57_spill] sm:$0xff] }
  0x88   :  { %10856 = vst [vmem:[#allocation45_spill] sm:$0xff] %v4812_v52  ;;  %v594_v52 = vsub.f32 %v4742_v1, %v578_v57  ;;  %v604_v1 = vsub.f32 %v4783_v42, %v588_v29  ;;  %v4877_v0 = vadd.f32 %v591_v43, %v4453_v35  ;;  %v4883_v61 = vadd.f32 %v593_v59, %v4463_v49 }
  0x89   :  { %10857 = vst [vmem:[#allocation46_spill] sm:$0xff] %v4814_v55  ;;  %v595_v55 = vsub.f32 %v4746_v40, %v579_v14  ;;  %v4871_v40 = vadd.f32 %v589_v37, %v4443_v15  ;;  %v4880_v54 = vadd.f32 %v592_v28, %v4458_v36  ;;  %v4892_v15 = vadd.f32 %v596_v6, %v4478_v19  ;;  %v10864_v19 = vld [vmem:[#allocation17_spill] sm:$0xff]  ;;  %v10882_v14 = vld [vmem:[#allocation60_spill] sm:$0xff] }
  0x8a   :  { %10858 = vst [vmem:[#allocation47_spill] sm:$0xff] %v4816_v44  ;;  %v597_v44 = vsub.f32 %v4755_v26, %v581_v27  ;;  %v4886_v51 = vadd.f32 %v594_v52, %v4468_v60  ;;  %v4898_v35 = vadd.f32 %v598_v33, %v4488_v21  ;;  %v4901_v36 = vadd.f32 %v599_v3, %v4493_v22  ;;  %v10860_v60 = vld [vmem:[#allocation16_spill] sm:$0xff]  ;;  %v10883_v27 = vld [vmem:[#allocation61_spill] sm:$0xff] }
  0x8b   :  { %v4889_v29 = vadd.f32 %v595_v55, %v4473_v18  ;;  %v4904_v49 = vadd.f32 %v600_v30, %v4498_v23  ;;  %v4907_v42 = vadd.f32 %v601_v7, %v10860_v60  ;;  %v10862_v18 = vld [vmem:[#allocation11_spill] sm:$0xff]  ;;  %v4913_v8 = vadd.f32 %v603_v17, %v10864_v19  ;;  %v10879_v11 = vld [vmem:[#allocation41_spill] sm:$0xff] }
  0x8c   :  { %v4895_v39 = vadd.f32 %v597_v44, %v4483_v20  ;;  %v4910_v5 = vadd.f32 %v602_v41, %v10862_v18  ;;  %v10866_v20 = vld [vmem:[#allocation12_spill] sm:$0xff]  ;;  %v10868_v21 = vperm.slane %v4654_v46, 0  ;;  %v622_v23 = vmul.f32 %v4688_v63, %v4791_v24  ;;  %v10871_v6 = vld [vmem:[#allocation42_spill] sm:$0xff]  ;;  %v10877_v55 = vld [vmem:[#allocation15_spill] sm:$0xff] }
  0x8d   :  { %10861 = vst [vmem:[#allocation3_spill] sm:$0xff] %v4907_v42  ;;  %v4916_v59 = vadd.f32 %v604_v1, %v10866_v20  ;;  %v623_v33 = vmul.f32 %v4688_v63, %v4793_v25  ;;  %v624_v62 = vmul.f32 %v4688_v63, %v4795_v31  ;;  %v625_v48 = vmul.f32 %v4688_v63, %v4797_v4  ;;  %v10872_v37 = vld [vmem:[#allocation43_spill] sm:$0xff]  ;;  %v10886_v41 = vld [vmem:[#allocation34_spill] sm:$0xff] }
  0x8e   :  { %10863 = vst [vmem:[#allocation2_spill] sm:$0xff] %v4910_v5  ;;  %v621_v22 = vmul.f32 %v4688_v63, %v10868_v21  ;;  %v626_v43 = vmul.f32 %v4688_v63, %v4799_v58  ;;  %v628_v50 = vmul.f32 %v4688_v63, %v4803_v45  ;;  %v10870_v24 = vperm.slane %v10869_v56, 0  ;;  %v10873_v4 = vld [vmem:[#allocation44_spill] sm:$0xff]  ;;  %v10884_v30 = vld [vmem:[#allocation7_spill] sm:$0xff]  ;;  %v10887_v1 = vld [vmem:[#allocation54_spill] sm:$0xff] }
  0x8f   :  { %10865 = vst [vmem:[#allocation4_spill] sm:$0xff] %v4913_v8  ;;  %v630_v32 = vmul.f32 %v4688_v63, %v10871_v6  ;;  %v631_v16 = vmul.f32 %v4688_v63, %v10872_v37  ;;  %v632_v25 = vmul.f32 %v4688_v63, %v10873_v4  ;;  %v10874_v31 = vld [vmem:[#allocation45_spill] sm:$0xff]  ;;  %v636_v52 = vmul.f32 %v4688_v63, %v4818_v34  ;;  %v10889_v19 = vld [vmem:[#allocation35_spill] sm:$0xff]  ;;  %v10890_v21 = vld [vmem:[#allocation36_spill] sm:$0xff] }
  0x90   :  { %10867 = vst [vmem:[#allocation5_spill] sm:$0xff] %v4916_v59  ;;  %v629_v46 = vmul.f32 %v4688_v63, %v10870_v24  ;;  %v633_v58 = vmul.f32 %v4688_v63, %v10874_v31  ;;  %v10875_v12 = vld [vmem:[#allocation46_spill] sm:$0xff]  ;;  %v10878_v44 = vperm.slane %v10877_v55, 0  ;;  %v638_v53 = vmul.f32 %v10879_v11, %v10880_v47  ;;  %v10891_v24 = vld [vmem:[#allocation37_spill] sm:$0xff]  ;;  %v10893_v31 = vld [vmem:[#allocation39_spill] sm:$0xff] }
  0x91   :  { %v634_v26 = vmul.f32 %v4688_v63, %v10875_v12  ;;  %v10876_v45 = vld [vmem:[#allocation47_spill] sm:$0xff]  ;;  %v639_v57 = vmul.f32 %v10879_v11, %v10881_v38  ;;  %v640_v2 = vmul.f32 %v10879_v11, %v10882_v14  ;;  %v641_v3 = vmul.f32 %v10879_v11, %v10883_v27  ;;  %v10892_v37 = vld [vmem:[#allocation38_spill] sm:$0xff] }
  0x92   :  { %v635_v28 = vmul.f32 %v4688_v63, %v10876_v45  ;;  %v637_v13 = vmul.f32 %v10879_v11, %v10878_v44  ;;  %v642_v7 = vmul.f32 %v10879_v11, %v10884_v30  ;;  %v10885_v63 = vld [vmem:[#allocation48_spill] sm:$0xff]  ;;  %v644_v17 = vmul.f32 %v10879_v11, %v10886_v41  ;;  %v10895_v44 = vld [vmem:[#allocation27_spill] sm:$0xff] }
  0x93   :  { %v643_v34 = vmul.f32 %v10879_v11, %v10885_v63  ;;  %v10888_v60 = vperm.slane %v10887_v1, 0  ;;  %v646_v20 = vmul.f32 %v10879_v11, %v10889_v19  ;;  %v647_v56 = vmul.f32 %v10879_v11, %v10890_v21  ;;  %v10894_v45 = vld [vmem:[#allocation40_spill] sm:$0xff] }
  0x94   :  { %v648_v6 = vmul.f32 %v10879_v11, %v10891_v24  ;;  %v649_v4 = vmul.f32 %v10879_v11, %v10892_v37  ;;  %v650_v12 = vmul.f32 %v10879_v11, %v10893_v31  ;;  %v651_v55 = vmul.f32 %v10879_v11, %v10894_v45  ;;  %v10896_v45 = vld [vmem:[#allocation18_spill] sm:$0xff] }
  0x95   :  { %v645_v18 = vmul.f32 %v10879_v11, %v10888_v60  ;;  %v652_v47 = vmul.f32 %v10879_v11, %v10895_v44  ;;  %v653_v38 = vadd.f32 %v637_v13, %v621_v22  ;;  %v654_v14 = vadd.f32 %v638_v53, %v622_v23  ;;  %v10898_v11 = vld [vmem:[#allocation13_spill] sm:$0xff]  ;;  %v10900_v23 = vld [vmem:[#allocation19_spill] sm:$0xff]  ;;  %v10915_v13 = vld [vmem:[#allocation50_spill] sm:$0xff] }
  0x96   :  { %v655_v27 = vadd.f32 %v639_v57, %v623_v33  ;;  %v656_v30 = vadd.f32 %v640_v2, %v624_v62  ;;  %v657_v63 = vadd.f32 %v641_v3, %v625_v48  ;;  %v658_v41 = vadd.f32 %v642_v7, %v626_v43  ;;  %v10902_v62 = vld [vmem:[#allocation14_spill] sm:$0xff]  ;;  %v10904_v43 = vld [vmem:[#allocation20_spill] sm:$0xff]  ;;  %v10917_v57 = vld [vmem:[#allocation51_spill] sm:$0xff] }
  0x97   :  { %v659_v1 = vadd.f32 %v643_v34, %v627_v9  ;;  %v660_v60 = vadd.f32 %v644_v17, %v628_v50  ;;  %v661_v19 = vadd.f32 %v645_v18, %v629_v46  ;;  %v662_v21 = vadd.f32 %v646_v20, %v630_v32  ;;  %v5004_v50 = vld [vmem:[%s10226_s2 + $0x30] sm:$0xff]  ;;  %v10907_v46 = vld [vmem:[#allocation21_spill] sm:$0xff]  ;;  %v10924_v20 = vld [vmem:[#allocation55_spill] sm:$0xff] }
  0x98   :  { %v663_v24 = vadd.f32 %v647_v56, %v631_v16  ;;  %v664_v37 = vadd.f32 %v648_v6, %v632_v25  ;;  %v665_v59 = vadd.f32 %v649_v4, %v633_v58  ;;  %v666_v31 = vadd.f32 %v650_v12, %v634_v26  ;;  %10906 = vst [vmem:[#allocation23_spill] sm:$0xff] %v5004_v50  ;;  %v10909_v16 = vld [vmem:[#allocation31_spill] sm:$0xff]  ;;  %v10911_v58 = vld [vmem:[#allocation33_spill] sm:$0xff]  ;;  %v10919_v3 = vld [vmem:[#allocation52_spill] sm:$0xff] }
  0x99   :  { %v667_v8 = vadd.f32 %v651_v55, %v635_v28  ;;  %v668_v5 = vadd.f32 %v652_v47, %v636_v52  ;;  %v4987_v42 = vadd.f32 %v653_v38, %v10896_v45  ;;  %v4990_v22 = vadd.f32 %v654_v14, %v10898_v11  ;;  %v10913_v28 = vld [vmem:[#allocation49_spill] sm:$0xff]  ;;  %v10926_v6 = vld [vmem:[#allocation32_spill] sm:$0xff] }
  0x9a   :  { %v4993_v33 = vadd.f32 %v655_v27, %v10900_v23  ;;  %v4996_v48 = vadd.f32 %v656_v30, %v10902_v62  ;;  %v4999_v9 = vadd.f32 %v657_v63, %v10904_v43  ;;  %v5007_v32 = vadd.f32 %v658_v41, %v10907_v46  ;;  %v10921_v34 = vld [vmem:[#allocation53_spill] sm:$0xff]  ;;  %v10928_v12 = vld [vmem:[#allocation56_spill] sm:$0xff] }
  0x9b   :  { %10897 = vst [vmem:[#allocation6_spill] sm:$0xff] %v4987_v42  ;;  %v5010_v25 = vadd.f32 %v659_v1, %v10909_v16  ;;  %v5013_v26 = vadd.f32 %v660_v60, %v10911_v58  ;;  %v5016_v52 = vadd.f32 %v661_v19, %v10913_v28  ;;  %v5019_v53 = vadd.f32 %v662_v21, %v10915_v13  ;;  %v5033_v18 = vld [vmem:[%s10226_s2 + $0x38] sm:$0xff]  ;;  %v5052_v27 = vld [vmem:[%s10227_s3 + $0x30] sm:$0xff] }
  0x9c   :  { %10899 = vst [vmem:[#allocation8_spill] sm:$0xff] %v4990_v22  ;;  %v5022_v2 = vadd.f32 %v663_v24, %v10917_v57  ;;  %v5025_v7 = vadd.f32 %v664_v37, %v10919_v3  ;;  %v5028_v17 = vadd.f32 %v665_v59, %v10921_v34  ;;  %v5036_v56 = vadd.f32 %v666_v31, %v10924_v20  ;;  %v5065_v21 = vld [vmem:[%s10227_s3 + $0x38] sm:$0xff]  ;;  %v5086_v20 = vld [vmem:[%s10228_s0 + $0x6] sm:$0x3] }
  0x9d   :  { %10901 = vst [vmem:[#allocation9_spill] sm:$0xff] %v4993_v33  ;;  %v5039_v4 = vadd.f32 %v667_v8, %v10926_v6  ;;  %v5042_v55 = vadd.f32 %v668_v5, %v10928_v12  ;;  %v694_v44 = vrot.slane %v5004_v50, 1  ;;  %v695_v47 = vrot.slane %v5004_v50, 2  ;;  %v5187_v22 = vld [vmem:[%s10229_s1 + $0x6] sm:$0x3] }
  0x9e   :  { %10903 = vst [vmem:[#allocation10_spill] sm:$0xff] %v4996_v48  ;;  %v696_v59 = vrot.slane %v5004_v50, 3  ;;  %v697_v38 = vrot.slane %v5004_v50, 4  ;;  %v698_v14 = vrot.slane %v5004_v50, 5  ;;  %v699_v8 = vrot.slane %v5004_v50, 6 }
  0x9f   :  { %10905 = vst [vmem:[#allocation22_spill] sm:$0xff] %v4999_v9  ;;  %v700_v5 = vrot.slane %v5004_v50, 7  ;;  %v701_v30 = vrot.slane %v5033_v18, 1  ;;  %v702_v63 = vrot.slane %v5033_v18, 2  ;;  %v703_v41 = vrot.slane %v5033_v18, 3 }
  0xa0   :  { %10908 = vst [vmem:[#allocation24_spill] sm:$0xff] %v5007_v32  ;;  %v704_v1 = vrot.slane %v5033_v18, 4  ;;  %v705_v60 = vrot.slane %v5033_v18, 5  ;;  %v706_v19 = vrot.slane %v5033_v18, 6  ;;  %v707_v24 = vrot.slane %v5033_v18, 7 }
  0xa1   :  { %10910 = vst [vmem:[#allocation25_spill] sm:$0xff] %v5010_v25  ;;  %v713_v37 = vrot.slane %v5052_v27, 1  ;;  %v714_v31 = vrot.slane %v5052_v27, 2  ;;  %v715_v45 = vrot.slane %v5052_v27, 3  ;;  %v716_v11 = vrot.slane %v5052_v27, 4 }
  0xa2   :  { %10912 = vst [vmem:[#allocation26_spill] sm:$0xff] %v5013_v26  ;;  %v717_v23 = vrot.slane %v5052_v27, 5  ;;  %v718_v62 = vrot.slane %v5052_v27, 6  ;;  %v719_v43 = vrot.slane %v5052_v27, 7  ;;  %v720_v46 = vrot.slane %v5065_v21, 1 }
  0xa3   :  { %10914 = vst [vmem:[#allocation28_spill] sm:$0xff] %v5016_v52  ;;  %v721_v16 = vrot.slane %v5065_v21, 2  ;;  %v722_v58 = vrot.slane %v5065_v21, 3  ;;  %v723_v28 = vrot.slane %v5065_v21, 4  ;;  %v724_v13 = vrot.slane %v5065_v21, 5 }
  0xa4   :  { %10916 = vst [vmem:[#allocation29_spill] sm:$0xff] %v5019_v53  ;;  %v725_v57 = vrot.slane %v5065_v21, 6  ;;  %v726_v3 = vrot.slane %v5065_v21, 7  ;;  %v5088_v6 = vperm.slane %v694_v44, 0  ;;  %v5090_v12 = vperm.slane %v695_v47, 0 }
  0xa5   :  { %10918 = vst [vmem:[#allocation30_spill] sm:$0xff] %v5022_v2  ;;  %v10318_v34 = vperm.slane %v5033_v18, 0  ;;  %v5103_v2 = vperm.slane %v701_v30, 0  ;;  %v5105_v53 = vperm.slane %v702_v63, 0  ;;  %v5107_v44 = vperm.slane %v703_v41, 0 }
  0xa6   :  { %10920 = vst [vmem:[#allocation16_spill] sm:$0xff] %v5025_v7  ;;  %v5100_v7 = vperm.slane %v700_v5, 0  ;;  %v5109_v47 = vperm.slane %v704_v1, 0  ;;  %v5124_v30 = vmul.f32 %v5086_v20, %v5088_v6  ;;  %v5128_v63 = vmul.f32 %v5086_v20, %v5090_v12 }
  0xa7   :  { %10922 = vst [vmem:[#allocation11_spill] sm:$0xff] %v5028_v17  ;;  %v5098_v17 = vperm.slane %v699_v8, 0  ;;  %v10945_v8 = vperm.slane %v5004_v50, 0  ;;  %v5157_v52 = vmul.f32 %v5086_v20, %v5103_v2  ;;  %v5161_v26 = vmul.f32 %v5086_v20, %v5105_v53 }
  0xa8   :  { %10923 = vst [vmem:[#allocation17_spill] sm:$0xff] %v5033_v18  ;;  %v5165_v25 = vmul.f32 %v5086_v20, %v5107_v44  ;;  %v5169_v32 = vmul.f32 %v5086_v20, %v5109_v47  ;;  %v5189_v42 = vperm.slane %v713_v37, 0  ;;  %v10333_v33 = vperm.slane %v5065_v21, 0 }
  0xa9   :  { %10925 = vst [vmem:[#allocation12_spill] sm:$0xff] %v5036_v56  ;;  %v5096_v56 = vperm.slane %v698_v14, 0  ;;  %v5115_v14 = vperm.slane %v707_v24, 0  ;;  %v5120_v5 = vmul.f32 %v5086_v20, %v10945_v8  ;;  %v5148_v24 = vmul.f32 %v5086_v20, %v5100_v7 }
  0xaa   :  { %10927 = vst [vmem:[#allocation57_spill] sm:$0xff] %v5039_v4  ;;  %v5094_v4 = vperm.slane %v697_v38, 0  ;;  %v5113_v38 = vperm.slane %v706_v19, 0  ;;  %v5144_v19 = vmul.f32 %v5086_v20, %v5098_v17  ;;  %v5153_v8 = vmul.f32 %v5086_v20, %v10318_v34 }
  0xab   :  { %10929 = vst [vmem:[#allocation42_spill] sm:$0xff] %v5042_v55  ;;  %v5092_v55 = vperm.slane %v696_v59, 0  ;;  %v5111_v59 = vperm.slane %v705_v60, 0  ;;  %v5140_v60 = vmul.f32 %v5086_v20, %v5096_v56  ;;  %v5181_v48 = vmul.f32 %v5086_v20, %v5115_v14 }
  0xac   :  { %10930 = vst [vmem:[#allocation43_spill] sm:$0xff] %v5065_v21  ;;  %v5136_v1 = vmul.f32 %v5086_v20, %v5094_v4  ;;  %v5177_v9 = vmul.f32 %v5086_v20, %v5113_v38  ;;  %v5206_v18 = vperm.slane %v721_v16, 0  ;;  %v5208_v37 = vperm.slane %v722_v58, 0 }
  0xad   :  { %10931 = vst [vmem:[#allocation44_spill] sm:$0xff] %v5088_v6  ;;  %v5132_v41 = vmul.f32 %v5086_v20, %v5092_v55  ;;  %v5173_v34 = vmul.f32 %v5086_v20, %v5111_v59 }
  0xae   :  { %10932 = vst [vmem:[#allocation45_spill] sm:$0xff] %v5090_v12 }
  0xaf   :  { %10933 = vst [vmem:[#allocation46_spill] sm:$0xff] %v5092_v55 }
  0xb0   :  { %10934 = vst [vmem:[#allocation47_spill] sm:$0xff] %v5094_v4 }
  0xb1   :  { %10935 = vst [vmem:[#allocation15_spill] sm:$0xff] %v5096_v56  ;;  %v818_v56 = vmul.f32 %v5187_v22, %v5208_v37 }
  0xb2   :  { %10936 = vst [vmem:[#allocation41_spill] sm:$0xff] %v5098_v17  ;;  %v817_v17 = vmul.f32 %v5187_v22, %v5206_v18 }
  0xb3   :  { %10937 = vst [vmem:[#allocation58_spill] sm:$0xff] %v5100_v7 }
  0xb4   :  { %10938 = vst [vmem:[#allocation59_spill] sm:$0xff] %v5103_v2  ;;  %v5204_v2 = vperm.slane %v720_v46, 0  ;;  %v808_v46 = vmul.f32 %v5187_v22, %v5189_v42 }
  0xb5   :  { %10939 = vst [vmem:[#allocation60_spill] sm:$0xff] %v5105_v53  ;;  %v5199_v53 = vperm.slane %v718_v62, 0  ;;  %v10953_v62 = vperm.slane %v5052_v27, 0 }
  0xb6   :  { %10940 = vst [vmem:[#allocation61_spill] sm:$0xff] %v5107_v44  ;;  %v5195_v44 = vperm.slane %v716_v11, 0  ;;  %v5214_v11 = vperm.slane %v725_v57, 0  ;;  %v816_v7 = vmul.f32 %v5187_v22, %v5204_v2  ;;  %v824_v50 = vsub.f32 %v5124_v30, %v808_v46 }
  0xb7   :  { %10941 = vst [vmem:[#allocation7_spill] sm:$0xff] %v5109_v47  ;;  %v5191_v47 = vperm.slane %v714_v31, 0  ;;  %v5210_v31 = vperm.slane %v723_v28, 0  ;;  %v813_v57 = vmul.f32 %v5187_v22, %v5199_v53  ;;  %v834_v30 = vsub.f32 %v5165_v25, %v818_v56 }
  0xb8   :  { %10942 = vst [vmem:[#allocation48_spill] sm:$0xff] %v5111_v59  ;;  %v5193_v59 = vperm.slane %v715_v45, 0  ;;  %v5212_v45 = vperm.slane %v724_v13, 0  ;;  %v811_v28 = vmul.f32 %v5187_v22, %v5195_v44  ;;  %v821_v12 = vmul.f32 %v5187_v22, %v5214_v11 }
  0xb9   :  { %10943 = vst [vmem:[#allocation34_spill] sm:$0xff] %v5113_v38  ;;  %v5197_v38 = vperm.slane %v717_v23, 0  ;;  %v5216_v23 = vperm.slane %v726_v3, 0  ;;  %v809_v16 = vmul.f32 %v5187_v22, %v5191_v47  ;;  %v819_v4 = vmul.f32 %v5187_v22, %v5210_v31 }
  0xba   :  { %10944 = vst [vmem:[#allocation54_spill] sm:$0xff] %v5115_v14  ;;  %v5201_v14 = vperm.slane %v719_v43, 0  ;;  %v807_v43 = vmul.f32 %v5187_v22, %v10953_v62  ;;  %v810_v58 = vmul.f32 %v5187_v22, %v5193_v59  ;;  %v815_v62 = vmul.f32 %v5187_v22, %v10333_v33 }
  0xbb   :  { %10946 = vst [vmem:[#allocation35_spill] sm:$0xff] %v5187_v22  ;;  %v812_v13 = vmul.f32 %v5187_v22, %v5197_v38  ;;  %v820_v55 = vmul.f32 %v5187_v22, %v5212_v45  ;;  %v822_v33 = vmul.f32 %v5187_v22, %v5216_v23  ;;  %v861_v56 = vmul.f32 %v5086_v20, %v5199_v53 }
  0xbc   :  { %10947 = vst [vmem:[#allocation36_spill] sm:$0xff] %v5204_v2  ;;  %v814_v3 = vmul.f32 %v5187_v22, %v5201_v14  ;;  %v823_v6 = vsub.f32 %v5120_v5, %v807_v43  ;;  %v827_v2 = vsub.f32 %v5136_v1, %v811_v28  ;;  %v832_v22 = vsub.f32 %v5157_v52, %v816_v7  ;;  %v10975_v28 = vld [vmem:[#allocation45_spill] sm:$0xff] }
  0xbd   :  { %10948 = vst [vmem:[#allocation37_spill] sm:$0xff] %v5206_v18  ;;  %v825_v18 = vsub.f32 %v5128_v63, %v809_v16  ;;  %v833_v5 = vsub.f32 %v5161_v26, %v817_v17  ;;  %v835_v63 = vsub.f32 %v5169_v32, %v819_v4  ;;  %v837_v1 = vsub.f32 %v5177_v9, %v821_v12  ;;  %v10974_v16 = vld [vmem:[#allocation44_spill] sm:$0xff] }
  0xbe   :  { %10949 = vst [vmem:[#allocation38_spill] sm:$0xff] %v5208_v37  ;;  %v826_v37 = vsub.f32 %v5132_v41, %v810_v58  ;;  %v830_v21 = vsub.f32 %v5148_v24, %v814_v3  ;;  %v836_v41 = vsub.f32 %v5173_v34, %v820_v55  ;;  %v5272_v24 = vadd.f32 %v824_v50, %v4874_v10  ;;  %v10963_v55 = vld [vmem:[#allocation43_spill] sm:$0xff] }
  0xbf   :  { %10950 = vst [vmem:[#allocation39_spill] sm:$0xff] %v5210_v31  ;;  %v828_v31 = vsub.f32 %v5140_v60, %v812_v13  ;;  %v838_v60 = vsub.f32 %v5181_v48, %v822_v33  ;;  %v5275_v52 = vadd.f32 %v825_v18, %v4877_v0  ;;  %v5281_v32 = vadd.f32 %v827_v2, %v4883_v61 }
  0xc0   :  { %10951 = vst [vmem:[#allocation40_spill] sm:$0xff] %v5212_v45  ;;  %v829_v45 = vsub.f32 %v5144_v19, %v813_v57  ;;  %v5269_v19 = vadd.f32 %v823_v6, %v4871_v40  ;;  %v5278_v26 = vadd.f32 %v826_v37, %v4880_v54  ;;  %v5290_v40 = vadd.f32 %v830_v21, %v4892_v15  ;;  %v10958_v15 = vld [vmem:[#allocation4_spill] sm:$0xff]  ;;  %v10976_v57 = vld [vmem:[#allocation46_spill] sm:$0xff] }
  0xc1   :  { %10952 = vst [vmem:[#allocation27_spill] sm:$0xff] %v5214_v11  ;;  %v831_v11 = vsub.f32 %v5153_v8, %v815_v62  ;;  %v5284_v25 = vadd.f32 %v828_v31, %v4886_v51  ;;  %v5296_v0 = vadd.f32 %v832_v22, %v4898_v35  ;;  %v5299_v54 = vadd.f32 %v833_v5, %v4901_v36  ;;  %v10954_v51 = vld [vmem:[#allocation3_spill] sm:$0xff] }
  0xc2   :  { %v5287_v33 = vadd.f32 %v829_v45, %v4889_v29  ;;  %v5302_v61 = vadd.f32 %v834_v30, %v4904_v49  ;;  %v5305_v48 = vadd.f32 %v835_v63, %v10954_v51  ;;  %v10956_v29 = vld [vmem:[#allocation2_spill] sm:$0xff]  ;;  %v5311_v50 = vadd.f32 %v837_v1, %v10958_v15  ;;  %v10971_v45 = vld [vmem:[#allocation23_spill] sm:$0xff] }
  0xc3   :  { %v5293_v10 = vadd.f32 %v831_v11, %v4895_v39  ;;  %v5308_v9 = vadd.f32 %v836_v41, %v10956_v29  ;;  %v10960_v39 = vld [vmem:[#allocation5_spill] sm:$0xff]  ;;  %v10962_v35 = vperm.slane %v5052_v27, 0  ;;  %v856_v49 = vmul.f32 %v5086_v20, %v5189_v42  ;;  %v10965_v21 = vld [vmem:[#allocation36_spill] sm:$0xff]  ;;  %v10973_v43 = vld [vmem:[#allocation35_spill] sm:$0xff] }
  0xc4   :  { %10955 = vst [vmem:[#allocation18_spill] sm:$0xff] %v5305_v48  ;;  %v5314_v2 = vadd.f32 %v838_v60, %v10960_v39  ;;  %v857_v22 = vmul.f32 %v5086_v20, %v5191_v47  ;;  %v858_v7 = vmul.f32 %v5086_v20, %v5193_v59  ;;  %v859_v17 = vmul.f32 %v5086_v20, %v5195_v44  ;;  %v10966_v6 = vld [vmem:[#allocation37_spill] sm:$0xff]  ;;  %v10977_v62 = vld [vmem:[#allocation47_spill] sm:$0xff]  ;;  %v10980_v41 = vld [vmem:[#allocation58_spill] sm:$0xff] }
  0xc5   :  { %10957 = vst [vmem:[#allocation13_spill] sm:$0xff] %v5308_v9  ;;  %v855_v36 = vmul.f32 %v5086_v20, %v10962_v35  ;;  %v860_v18 = vmul.f32 %v5086_v20, %v5197_v38  ;;  %v862_v4 = vmul.f32 %v5086_v20, %v5201_v14  ;;  %v10964_v42 = vperm.slane %v10963_v55, 0  ;;  %v10967_v44 = vld [vmem:[#allocation38_spill] sm:$0xff]  ;;  %v10978_v30 = vld [vmem:[#allocation15_spill] sm:$0xff]  ;;  %v10981_v60 = vld [vmem:[#allocation17_spill] sm:$0xff] }
  0xc6   :  { %10959 = vst [vmem:[#allocation19_spill] sm:$0xff] %v5311_v50  ;;  %v864_v34 = vmul.f32 %v5086_v20, %v10965_v21  ;;  %v865_v12 = vmul.f32 %v5086_v20, %v10966_v6  ;;  %v866_v47 = vmul.f32 %v5086_v20, %v10967_v44  ;;  %v10968_v59 = vld [vmem:[#allocation39_spill] sm:$0xff]  ;;  %v870_v31 = vmul.f32 %v5086_v20, %v5216_v23  ;;  %v10984_v35 = vld [vmem:[#allocation60_spill] sm:$0xff] }
  0xc7   :  { %10961 = vst [vmem:[#allocation14_spill] sm:$0xff] %v5314_v2  ;;  %v863_v27 = vmul.f32 %v5086_v20, %v10964_v42  ;;  %v867_v38 = vmul.f32 %v5086_v20, %v10968_v59  ;;  %v10969_v53 = vld [vmem:[#allocation40_spill] sm:$0xff]  ;;  %v10972_v11 = vperm.slane %v10971_v45, 0  ;;  %v872_v58 = vmul.f32 %v10973_v43, %v10974_v16  ;;  %v10983_v15 = vld [vmem:[#allocation59_spill] sm:$0xff]  ;;  %v10985_v42 = vld [vmem:[#allocation61_spill] sm:$0xff] }
  0xc8   :  { %v868_v8 = vmul.f32 %v5086_v20, %v10969_v53  ;;  %v10970_v14 = vld [vmem:[#allocation27_spill] sm:$0xff]  ;;  %v873_v13 = vmul.f32 %v10973_v43, %v10975_v28  ;;  %v874_v3 = vmul.f32 %v10973_v43, %v10976_v57  ;;  %v875_v5 = vmul.f32 %v10973_v43, %v10977_v62  ;;  %v10987_v59 = vld [vmem:[#allocation48_spill] sm:$0xff] }
  0xc9   :  { %v869_v37 = vmul.f32 %v5086_v20, %v10970_v14  ;;  %v871_v46 = vmul.f32 %v10973_v43, %v10972_v11  ;;  %v876_v63 = vmul.f32 %v10973_v43, %v10978_v30  ;;  %v10979_v20 = vld [vmem:[#allocation41_spill] sm:$0xff]  ;;  %v878_v1 = vmul.f32 %v10973_v43, %v10980_v41  ;;  %v10986_v6 = vld [vmem:[#allocation7_spill] sm:$0xff]  ;;  %v10988_v14 = vld [vmem:[#allocation34_spill] sm:$0xff] }
  0xca   :  { %v877_v23 = vmul.f32 %v10973_v43, %v10979_v20  ;;  %v10982_v51 = vperm.slane %v10981_v60, 0  ;;  %v880_v39 = vmul.f32 %v10973_v43, %v10983_v15  ;;  %v881_v55 = vmul.f32 %v10973_v43, %v10984_v35  ;;  %v10989_v11 = vld [vmem:[#allocation54_spill] sm:$0xff] }
  0xcb   :  { %v882_v21 = vmul.f32 %v10973_v43, %v10985_v42  ;;  %v883_v44 = vmul.f32 %v10973_v43, %v10986_v6  ;;  %v884_v53 = vmul.f32 %v10973_v43, %v10987_v59  ;;  %v885_v45 = vmul.f32 %v10973_v43, %v10988_v14  ;;  %v10990_v14 = vld [vmem:[#allocation6_spill] sm:$0xff] }
  0xcc   :  { %v879_v29 = vmul.f32 %v10973_v43, %v10982_v51  ;;  %v886_v16 = vmul.f32 %v10973_v43, %v10989_v11  ;;  %v887_v28 = vadd.f32 %v871_v46, %v855_v36  ;;  %v888_v57 = vadd.f32 %v872_v58, %v856_v49  ;;  %v10992_v43 = vld [vmem:[#allocation8_spill] sm:$0xff]  ;;  %v10994_v49 = vld [vmem:[#allocation9_spill] sm:$0xff] }
  0xcd   :  { %v889_v62 = vadd.f32 %v873_v13, %v857_v22  ;;  %v890_v30 = vadd.f32 %v874_v3, %v858_v7  ;;  %v891_v20 = vadd.f32 %v875_v5, %v859_v17  ;;  %v892_v41 = vadd.f32 %v876_v63, %v860_v18  ;;  %v10996_v7 = vld [vmem:[#allocation10_spill] sm:$0xff]  ;;  %v11009_v46 = vld [vmem:[#allocation29_spill] sm:$0xff]  ;;  %v11013_v5 = vld [vmem:[#allocation16_spill] sm:$0xff] }
  0xce   :  { %v893_v60 = vadd.f32 %v877_v23, %v861_v56  ;;  %v894_v51 = vadd.f32 %v878_v1, %v862_v4  ;;  %v895_v15 = vadd.f32 %v879_v29, %v863_v27  ;;  %v896_v35 = vadd.f32 %v880_v39, %v864_v34  ;;  %v10998_v18 = vld [vmem:[#allocation22_spill] sm:$0xff]  ;;  %v11001_v27 = vld [vmem:[#allocation24_spill] sm:$0xff]  ;;  %v11015_v23 = vld [vmem:[#allocation11_spill] sm:$0xff] }
  0xcf   :  { %v897_v42 = vadd.f32 %v881_v55, %v865_v12  ;;  %v898_v6 = vadd.f32 %v882_v21, %v866_v47  ;;  %v899_v2 = vadd.f32 %v883_v44, %v867_v38  ;;  %v900_v59 = vadd.f32 %v884_v53, %v868_v8  ;;  %v5402_v4 = vld [vmem:[%s10226_s2 + $0x40] sm:$0xff]  ;;  %v11003_v12 = vld [vmem:[#allocation25_spill] sm:$0xff]  ;;  %v5431_v29 = vld [vmem:[%s10226_s2 + $0x48] sm:$0xff] }
  0xd0   :  { %v901_v50 = vadd.f32 %v885_v45, %v869_v37  ;;  %v902_v9 = vadd.f32 %v886_v16, %v870_v31  ;;  %v5385_v48 = vadd.f32 %v887_v28, %v10990_v14  ;;  %v5388_v36 = vadd.f32 %v888_v57, %v10992_v43  ;;  %11000 = vst [vmem:[#allocation50_spill] sm:$0xff] %v5402_v4  ;;  %v11005_v38 = vld [vmem:[#allocation26_spill] sm:$0xff]  ;;  %v11007_v37 = vld [vmem:[#allocation28_spill] sm:$0xff]  ;;  %v11020_v21 = vld [vmem:[#allocation57_spill] sm:$0xff] }
  0xd1   :  { %v5391_v22 = vadd.f32 %v889_v62, %v10994_v49  ;;  %v5394_v17 = vadd.f32 %v890_v30, %v10996_v7  ;;  %v5397_v56 = vadd.f32 %v891_v20, %v10998_v18  ;;  %v5405_v34 = vadd.f32 %v892_v41, %v11001_v27  ;;  %v11011_v13 = vld [vmem:[#allocation30_spill] sm:$0xff]  ;;  %11017 = vst [vmem:[#allocation4_spill] sm:$0xff] %v5431_v29  ;;  %v11018_v39 = vld [vmem:[#allocation12_spill] sm:$0xff] }
  0xd2   :  { %10991 = vst [vmem:[#allocation20_spill] sm:$0xff] %v5385_v48  ;;  %v5408_v47 = vadd.f32 %v893_v60, %v11003_v12  ;;  %v5411_v8 = vadd.f32 %v894_v51, %v11005_v38  ;;  %v5414_v31 = vadd.f32 %v895_v15, %v11007_v37  ;;  %v5417_v58 = vadd.f32 %v896_v35, %v11009_v46  ;;  %v11022_v53 = vld [vmem:[#allocation42_spill] sm:$0xff]  ;;  %v5463_v35 = vld [vmem:[%s10227_s3 + $0x48] sm:$0xff] }
  0xd3   :  { %10993 = vst [vmem:[#allocation21_spill] sm:$0xff] %v5388_v36  ;;  %v5420_v3 = vadd.f32 %v897_v42, %v11011_v13  ;;  %v5423_v63 = vadd.f32 %v898_v6, %v11013_v5  ;;  %v5426_v1 = vadd.f32 %v899_v2, %v11015_v23  ;;  %v5434_v55 = vadd.f32 %v900_v59, %v11018_v39  ;;  %v5450_v62 = vld [vmem:[%s10227_s3 + $0x40] sm:$0xff]  ;;  %v5484_v39 = vld [vmem:[%s10228_s0 + $0x8] sm:$0x3] }
  0xd4   :  { %10995 = vst [vmem:[#allocation31_spill] sm:$0xff] %v5391_v22  ;;  %v5437_v44 = vadd.f32 %v901_v50, %v11020_v21  ;;  %v5440_v45 = vadd.f32 %v902_v9, %v11022_v53  ;;  %v928_v11 = vrot.slane %v5402_v4, 1  ;;  %v929_v16 = vrot.slane %v5402_v4, 2  ;;  %v5585_v36 = vld [vmem:[%s10229_s1 + $0x8] sm:$0x3] }
  0xd5   :  { %10997 = vst [vmem:[#allocation33_spill] sm:$0xff] %v5394_v17  ;;  %v930_v2 = vrot.slane %v5402_v4, 3  ;;  %v931_v28 = vrot.slane %v5402_v4, 4  ;;  %v932_v57 = vrot.slane %v5402_v4, 5  ;;  %v933_v50 = vrot.slane %v5402_v4, 6 }
  0xd6   :  { %10999 = vst [vmem:[#allocation49_spill] sm:$0xff] %v5397_v56  ;;  %v934_v9 = vrot.slane %v5402_v4, 7  ;;  %v935_v30 = vrot.slane %v5431_v29, 1  ;;  %v936_v20 = vrot.slane %v5431_v29, 2  ;;  %v937_v41 = vrot.slane %v5431_v29, 3 }
  0xd7   :  { %11002 = vst [vmem:[#allocation51_spill] sm:$0xff] %v5405_v34  ;;  %v938_v60 = vrot.slane %v5431_v29, 4  ;;  %v939_v51 = vrot.slane %v5431_v29, 5  ;;  %v940_v15 = vrot.slane %v5431_v29, 6  ;;  %v941_v42 = vrot.slane %v5431_v29, 7 }
  0xd8   :  { %11004 = vst [vmem:[#allocation52_spill] sm:$0xff] %v5408_v47  ;;  %v947_v6 = vrot.slane %v5450_v62, 1  ;;  %v948_v59 = vrot.slane %v5450_v62, 2  ;;  %v949_v14 = vrot.slane %v5450_v62, 3  ;;  %v950_v43 = vrot.slane %v5450_v62, 4 }
  0xd9   :  { %11006 = vst [vmem:[#allocation53_spill] sm:$0xff] %v5411_v8  ;;  %v951_v49 = vrot.slane %v5450_v62, 5  ;;  %v952_v7 = vrot.slane %v5450_v62, 6  ;;  %v953_v18 = vrot.slane %v5450_v62, 7  ;;  %v954_v27 = vrot.slane %v5463_v35, 1 }
  0xda   :  { %11008 = vst [vmem:[#allocation55_spill] sm:$0xff] %v5414_v31  ;;  %v955_v12 = vrot.slane %v5463_v35, 2  ;;  %v956_v38 = vrot.slane %v5463_v35, 3  ;;  %v957_v37 = vrot.slane %v5463_v35, 4  ;;  %v958_v46 = vrot.slane %v5463_v35, 5 }
  0xdb   :  { %11010 = vst [vmem:[#allocation32_spill] sm:$0xff] %v5417_v58  ;;  %v959_v13 = vrot.slane %v5463_v35, 6  ;;  %v960_v5 = vrot.slane %v5463_v35, 7  ;;  %v5486_v21 = vperm.slane %v928_v11, 0  ;;  %v5488_v53 = vperm.slane %v929_v16, 0 }
  0xdc   :  { %11012 = vst [vmem:[#allocation56_spill] sm:$0xff] %v5420_v3  ;;  %v10345_v23 = vperm.slane %v5431_v29, 0  ;;  %v5501_v3 = vperm.slane %v935_v30, 0  ;;  %v5503_v58 = vperm.slane %v936_v20, 0  ;;  %v5505_v11 = vperm.slane %v937_v41, 0 }
  0xdd   :  { %11014 = vst [vmem:[#allocation3_spill] sm:$0xff] %v5423_v63  ;;  %v5498_v63 = vperm.slane %v934_v9, 0  ;;  %v5507_v16 = vperm.slane %v938_v60, 0  ;;  %v5522_v30 = vmul.f32 %v5484_v39, %v5486_v21  ;;  %v5526_v20 = vmul.f32 %v5484_v39, %v5488_v53 }
  0xde   :  { %11016 = vst [vmem:[#allocation2_spill] sm:$0xff] %v5426_v1  ;;  %v5496_v1 = vperm.slane %v933_v50, 0  ;;  %v11039_v50 = vperm.slane %v5402_v4, 0  ;;  %v5555_v31 = vmul.f32 %v5484_v39, %v5501_v3  ;;  %v5559_v8 = vmul.f32 %v5484_v39, %v5503_v58 }
  0xdf   :  { %11019 = vst [vmem:[#allocation5_spill] sm:$0xff] %v5434_v55  ;;  %v5494_v55 = vperm.slane %v932_v57, 0  ;;  %v5513_v57 = vperm.slane %v941_v42, 0  ;;  %v5546_v42 = vmul.f32 %v5484_v39, %v5498_v63  ;;  %v5563_v47 = vmul.f32 %v5484_v39, %v5505_v11 }
  0xe0   :  { %11021 = vst [vmem:[#allocation43_spill] sm:$0xff] %v5437_v44  ;;  %v5492_v44 = vperm.slane %v931_v28, 0  ;;  %v5511_v28 = vperm.slane %v940_v15, 0  ;;  %v5518_v9 = vmul.f32 %v5484_v39, %v11039_v50  ;;  %v5542_v15 = vmul.f32 %v5484_v39, %v5496_v1 }
  0xe1   :  { %11023 = vst [vmem:[#allocation36_spill] sm:$0xff] %v5440_v45  ;;  %v5490_v45 = vperm.slane %v930_v2, 0  ;;  %v5509_v2 = vperm.slane %v939_v51, 0  ;;  %v5538_v51 = vmul.f32 %v5484_v39, %v5494_v55  ;;  %v5551_v50 = vmul.f32 %v5484_v39, %v10345_v23 }
  0xe2   :  { %11024 = vst [vmem:[#allocation37_spill] sm:$0xff] %v5463_v35  ;;  %v5534_v60 = vmul.f32 %v5484_v39, %v5492_v44  ;;  %v5567_v34 = vmul.f32 %v5484_v39, %v5507_v16  ;;  %v5575_v56 = vmul.f32 %v5484_v39, %v5511_v28  ;;  %v5579_v17 = vmul.f32 %v5484_v39, %v5513_v57 }
  0xe3   :  { %11025 = vst [vmem:[#allocation38_spill] sm:$0xff] %v5486_v21  ;;  %v5530_v41 = vmul.f32 %v5484_v39, %v5490_v45  ;;  %v5571_v23 = vmul.f32 %v5484_v39, %v5509_v2  ;;  %v5587_v48 = vperm.slane %v947_v6, 0  ;;  %v10360_v22 = vperm.slane %v5463_v35, 0 }
  0xe4   :  { %11026 = vst [vmem:[#allocation39_spill] sm:$0xff] %v5488_v53  ;;  %v5604_v29 = vperm.slane %v955_v12, 0  ;;  %v5606_v6 = vperm.slane %v956_v38, 0 }
  0xe5   :  { %11027 = vst [vmem:[#allocation40_spill] sm:$0xff] %v5490_v45 }
  0xe6   :  { %11028 = vst [vmem:[#allocation27_spill] sm:$0xff] %v5492_v44 }
  0xe7   :  { %11029 = vst [vmem:[#allocation23_spill] sm:$0xff] %v5494_v55  ;;  %v1052_v55 = vmul.f32 %v5585_v36, %v5606_v6 }
  0xe8   :  { %11030 = vst [vmem:[#allocation35_spill] sm:$0xff] %v5496_v1  ;;  %v1051_v1 = vmul.f32 %v5585_v36, %v5604_v29 }
  0xe9   :  { %11031 = vst [vmem:[#allocation44_spill] sm:$0xff] %v5498_v63 }
  0xea   :  { %11032 = vst [vmem:[#allocation45_spill] sm:$0xff] %v5501_v3  ;;  %v5602_v3 = vperm.slane %v954_v27, 0  ;;  %v1042_v27 = vmul.f32 %v5585_v36, %v5587_v48 }
  0xeb   :  { %11033 = vst [vmem:[#allocation46_spill] sm:$0xff] %v5503_v58  ;;  %v5597_v58 = vperm.slane %v952_v7, 0  ;;  %v11047_v7 = vperm.slane %v5450_v62, 0 }
  0xec   :  { %11034 = vst [vmem:[#allocation47_spill] sm:$0xff] %v5505_v11  ;;  %v5593_v11 = vperm.slane %v950_v43, 0  ;;  %v5612_v43 = vperm.slane %v959_v13, 0  ;;  %v1050_v63 = vmul.f32 %v5585_v36, %v5602_v3  ;;  %v1058_v4 = vsub.f32 %v5522_v30, %v1042_v27 }
  0xed   :  { %11035 = vst [vmem:[#allocation15_spill] sm:$0xff] %v5507_v16  ;;  %v5589_v16 = vperm.slane %v948_v59, 0  ;;  %v5608_v59 = vperm.slane %v957_v37, 0  ;;  %v1047_v13 = vmul.f32 %v5585_v36, %v5597_v58  ;;  %v1068_v30 = vsub.f32 %v5563_v47, %v1052_v55 }
  0xee   :  { %11036 = vst [vmem:[#allocation41_spill] sm:$0xff] %v5509_v2  ;;  %v5591_v2 = vperm.slane %v949_v14, 0  ;;  %v5610_v14 = vperm.slane %v958_v46, 0  ;;  %v1045_v37 = vmul.f32 %v5585_v36, %v5593_v11  ;;  %v1055_v53 = vmul.f32 %v5585_v36, %v5612_v43 }
  0xef   :  { %11037 = vst [vmem:[#allocation58_spill] sm:$0xff] %v5511_v28  ;;  %v5595_v28 = vperm.slane %v951_v49, 0  ;;  %v5614_v49 = vperm.slane %v960_v5, 0  ;;  %v1043_v12 = vmul.f32 %v5585_v36, %v5589_v16  ;;  %v1053_v44 = vmul.f32 %v5585_v36, %v5608_v59 }
  0xf0   :  { %11038 = vst [vmem:[#allocation17_spill] sm:$0xff] %v5513_v57  ;;  %v5599_v57 = vperm.slane %v953_v18, 0  ;;  %v1041_v18 = vmul.f32 %v5585_v36, %v11047_v7  ;;  %v1044_v38 = vmul.f32 %v5585_v36, %v5591_v2  ;;  %v1049_v7 = vmul.f32 %v5585_v36, %v10360_v22 }
  0xf1   :  { %11040 = vst [vmem:[#allocation59_spill] sm:$0xff] %v5585_v36  ;;  %v1046_v46 = vmul.f32 %v5585_v36, %v5595_v28  ;;  %v1054_v45 = vmul.f32 %v5585_v36, %v5610_v14  ;;  %v1056_v22 = vmul.f32 %v5585_v36, %v5614_v49  ;;  %v1095_v55 = vmul.f32 %v5484_v39, %v5597_v58 }
  0xf2   :  { %11041 = vst [vmem:[#allocation60_spill] sm:$0xff] %v5602_v3  ;;  %v1048_v5 = vmul.f32 %v5585_v36, %v5599_v57  ;;  %v1057_v21 = vsub.f32 %v5518_v9, %v1041_v18  ;;  %v1061_v3 = vsub.f32 %v5534_v60, %v1045_v37  ;;  %v1066_v36 = vsub.f32 %v5555_v31, %v1050_v63  ;;  %v11069_v37 = vld [vmem:[#allocation39_spill] sm:$0xff] }
  0xf3   :  { %11042 = vst [vmem:[#allocation61_spill] sm:$0xff] %v5604_v29  ;;  %v1059_v29 = vsub.f32 %v5526_v20, %v1043_v12  ;;  %v1067_v9 = vsub.f32 %v5559_v8, %v1051_v1  ;;  %v1069_v20 = vsub.f32 %v5567_v34, %v1053_v44  ;;  %v1071_v60 = vsub.f32 %v5575_v56, %v1055_v53  ;;  %v11068_v12 = vld [vmem:[#allocation38_spill] sm:$0xff] }
  0xf4   :  { %11043 = vst [vmem:[#allocation7_spill] sm:$0xff] %v5606_v6  ;;  %v1060_v6 = vsub.f32 %v5530_v41, %v1044_v38  ;;  %v1064_v35 = vsub.f32 %v5546_v42, %v1048_v5  ;;  %v1070_v41 = vsub.f32 %v5571_v23, %v1054_v45  ;;  %v5670_v42 = vadd.f32 %v1058_v4, %v5272_v24  ;;  %v11057_v45 = vld [vmem:[#allocation37_spill] sm:$0xff] }
  0xf5   :  { %11044 = vst [vmem:[#allocation48_spill] sm:$0xff] %v5608_v59  ;;  %v1062_v59 = vsub.f32 %v5538_v51, %v1046_v46  ;;  %v1072_v51 = vsub.f32 %v5579_v17, %v1056_v22  ;;  %v5673_v31 = vadd.f32 %v1059_v29, %v5275_v52  ;;  %v5679_v34 = vadd.f32 %v1061_v3, %v5281_v32 }
  0xf6   :  { %11045 = vst [vmem:[#allocation34_spill] sm:$0xff] %v5610_v14  ;;  %v1063_v14 = vsub.f32 %v5542_v15, %v1047_v13  ;;  %v5667_v15 = vadd.f32 %v1057_v21, %v5269_v19  ;;  %v5676_v8 = vadd.f32 %v1060_v6, %v5278_v26  ;;  %v5688_v19 = vadd.f32 %v1064_v35, %v5290_v40  ;;  %v11052_v40 = vld [vmem:[#allocation19_spill] sm:$0xff]  ;;  %v11070_v13 = vld [vmem:[#allocation40_spill] sm:$0xff] }
  0xf7   :  { %11046 = vst [vmem:[#allocation54_spill] sm:$0xff] %v5612_v43  ;;  %v1065_v43 = vsub.f32 %v5551_v50, %v1049_v7  ;;  %v5682_v47 = vadd.f32 %v1062_v59, %v5284_v25  ;;  %v5694_v52 = vadd.f32 %v1066_v36, %v5296_v0  ;;  %v5697_v26 = vadd.f32 %v1067_v9, %v5299_v54  ;;  %v11048_v25 = vld [vmem:[#allocation18_spill] sm:$0xff]  ;;  %v11071_v7 = vld [vmem:[#allocation27_spill] sm:$0xff] }
  0xf8   :  { %v5685_v22 = vadd.f32 %v1063_v14, %v5287_v33  ;;  %v5700_v32 = vadd.f32 %v1068_v30, %v5302_v61  ;;  %v5703_v17 = vadd.f32 %v1069_v20, %v11048_v25  ;;  %v11050_v33 = vld [vmem:[#allocation13_spill] sm:$0xff]  ;;  %v5709_v4 = vadd.f32 %v1071_v60, %v11052_v40  ;;  %v11065_v14 = vld [vmem:[#allocation50_spill] sm:$0xff]  ;;  %v11067_v18 = vld [vmem:[#allocation59_spill] sm:$0xff] }
  0xf9   :  { %v5691_v24 = vadd.f32 %v1065_v43, %v5293_v10  ;;  %v5706_v56 = vadd.f32 %v1070_v41, %v11050_v33  ;;  %v11054_v10 = vld [vmem:[#allocation14_spill] sm:$0xff]  ;;  %v11056_v0 = vperm.slane %v5450_v62, 0  ;;  %v1090_v61 = vmul.f32 %v5484_v39, %v5587_v48  ;;  %v11059_v35 = vld [vmem:[#allocation60_spill] sm:$0xff]  ;;  %v11072_v30 = vld [vmem:[#allocation23_spill] sm:$0xff] }
  0xfa   :  { %11049 = vst [vmem:[#allocation6_spill] sm:$0xff] %v5703_v17  ;;  %v5712_v3 = vadd.f32 %v1072_v51, %v11054_v10  ;;  %v1091_v36 = vmul.f32 %v5484_v39, %v5589_v16  ;;  %v1092_v63 = vmul.f32 %v5484_v39, %v5591_v2  ;;  %v1093_v1 = vmul.f32 %v5484_v39, %v5593_v11  ;;  %v11060_v21 = vld [vmem:[#allocation61_spill] sm:$0xff]  ;;  %v11074_v41 = vld [vmem:[#allocation44_spill] sm:$0xff] }
  0xfb   :  { %11051 = vst [vmem:[#allocation8_spill] sm:$0xff] %v5706_v56  ;;  %v1089_v54 = vmul.f32 %v5484_v39, %v11056_v0  ;;  %v1094_v29 = vmul.f32 %v5484_v39, %v5595_v28  ;;  %v1096_v44 = vmul.f32 %v5484_v39, %v5599_v57  ;;  %v11058_v48 = vperm.slane %v11057_v45, 0  ;;  %v11061_v11 = vld [vmem:[#allocation7_spill] sm:$0xff]  ;;  %v11075_v51 = vld [vmem:[#allocation4_spill] sm:$0xff]  ;;  %v11077_v40 = vld [vmem:[#allocation45_spill] sm:$0xff] }
  0xfc   :  { %11053 = vst [vmem:[#allocation9_spill] sm:$0xff] %v5709_v4  ;;  %v1098_v23 = vmul.f32 %v5484_v39, %v11059_v35  ;;  %v1099_v53 = vmul.f32 %v5484_v39, %v11060_v21  ;;  %v1100_v16 = vmul.f32 %v5484_v39, %v11061_v11  ;;  %v11062_v2 = vld [vmem:[#allocation48_spill] sm:$0xff]  ;;  %v1104_v59 = vmul.f32 %v5484_v39, %v5614_v49  ;;  %v11078_v0 = vld [vmem:[#allocation46_spill] sm:$0xff]  ;;  %v11080_v21 = vld [vmem:[#allocation15_spill] sm:$0xff] }
  0xfd   :  { %11055 = vst [vmem:[#allocation10_spill] sm:$0xff] %v5712_v3  ;;  %v1097_v62 = vmul.f32 %v5484_v39, %v11058_v48  ;;  %v1101_v28 = vmul.f32 %v5484_v39, %v11062_v2  ;;  %v11063_v58 = vld [vmem:[#allocation34_spill] sm:$0xff]  ;;  %v11066_v43 = vperm.slane %v11065_v14, 0  ;;  %v1106_v38 = vmul.f32 %v11067_v18, %v11068_v12  ;;  %v11079_v48 = vld [vmem:[#allocation47_spill] sm:$0xff]  ;;  %v11081_v2 = vld [vmem:[#allocation41_spill] sm:$0xff] }
  0xfe   :  { %v1102_v50 = vmul.f32 %v5484_v39, %v11063_v58  ;;  %v11064_v57 = vld [vmem:[#allocation54_spill] sm:$0xff]  ;;  %v1107_v46 = vmul.f32 %v11067_v18, %v11069_v37  ;;  %v1108_v5 = vmul.f32 %v11067_v18, %v11070_v13  ;;  %v1109_v9 = vmul.f32 %v11067_v18, %v11071_v7 }
  0xff   :  { %v1103_v6 = vmul.f32 %v5484_v39, %v11064_v57  ;;  %v1105_v27 = vmul.f32 %v11067_v18, %v11066_v43  ;;  %v1110_v20 = vmul.f32 %v11067_v18, %v11072_v30  ;;  %v11073_v39 = vld [vmem:[#allocation35_spill] sm:$0xff]  ;;  %v1112_v60 = vmul.f32 %v11067_v18, %v11074_v41  ;;  %v11082_v57 = vld [vmem:[#allocation58_spill] sm:$0xff]  ;;  %v11083_v43 = vld [vmem:[#allocation17_spill] sm:$0xff] }
 0x100   :  { %v1111_v49 = vmul.f32 %v11067_v18, %v11073_v39  ;;  %v11076_v25 = vperm.slane %v11075_v51, 0  ;;  %v1114_v10 = vmul.f32 %v11067_v18, %v11077_v40  ;;  %v1115_v45 = vmul.f32 %v11067_v18, %v11078_v0 }
 0x101   :  { %v1116_v35 = vmul.f32 %v11067_v18, %v11079_v48  ;;  %v1117_v11 = vmul.f32 %v11067_v18, %v11080_v21  ;;  %v1118_v58 = vmul.f32 %v11067_v18, %v11081_v2  ;;  %v1119_v14 = vmul.f32 %v11067_v18, %v11082_v57  ;;  %v11084_v57 = vld [vmem:[#allocation20_spill] sm:$0xff] }
 0x102   :  { %v1113_v33 = vmul.f32 %v11067_v18, %v11076_v25  ;;  %v1120_v12 = vmul.f32 %v11067_v18, %v11083_v43  ;;  %v1121_v37 = vadd.f32 %v1105_v27, %v1089_v54  ;;  %v1122_v13 = vadd.f32 %v1106_v38, %v1090_v61  ;;  %v11086_v18 = vld [vmem:[#allocation21_spill] sm:$0xff]  ;;  %v11088_v61 = vld [vmem:[#allocation31_spill] sm:$0xff]  ;;  %v11103_v27 = vld [vmem:[#allocation32_spill] sm:$0xff] }
 0x103   :  { %v1123_v7 = vadd.f32 %v1107_v46, %v1091_v36  ;;  %v1124_v30 = vadd.f32 %v1108_v5, %v1092_v63  ;;  %v1125_v39 = vadd.f32 %v1109_v9, %v1093_v1  ;;  %v1126_v41 = vadd.f32 %v1110_v20, %v1094_v29  ;;  %v11090_v63 = vld [vmem:[#allocation33_spill] sm:$0xff]  ;;  %v11105_v46 = vld [vmem:[#allocation56_spill] sm:$0xff]  ;;  %v11107_v9 = vld [vmem:[#allocation3_spill] sm:$0xff] }
 0x104   :  { %v1127_v51 = vadd.f32 %v1111_v49, %v1095_v55  ;;  %v1128_v25 = vadd.f32 %v1112_v60, %v1096_v44  ;;  %v1129_v40 = vadd.f32 %v1113_v33, %v1097_v62  ;;  %v1130_v0 = vadd.f32 %v1114_v10, %v1098_v23  ;;  %v11092_v29 = vld [vmem:[#allocation49_spill] sm:$0xff]  ;;  %v5800_v44 = vld [vmem:[%s10226_s2 + $0x50] sm:$0xff]  ;;  %v11095_v62 = vld [vmem:[#allocation51_spill] sm:$0xff] }
 0x105   :  { %v1131_v48 = vadd.f32 %v1115_v45, %v1099_v53  ;;  %v1132_v21 = vadd.f32 %v1116_v35, %v1100_v16  ;;  %v1133_v3 = vadd.f32 %v1117_v11, %v1101_v28  ;;  %v1134_v2 = vadd.f32 %v1118_v58, %v1102_v50  ;;  %11094 = vst [vmem:[#allocation29_spill] sm:$0xff] %v5800_v44  ;;  %v11097_v53 = vld [vmem:[#allocation52_spill] sm:$0xff]  ;;  %v11099_v28 = vld [vmem:[#allocation53_spill] sm:$0xff]  ;;  %v11109_v49 = vld [vmem:[#allocation2_spill] sm:$0xff] }
 0x106   :  { %v1135_v4 = vadd.f32 %v1119_v14, %v1103_v6  ;;  %v1136_v56 = vadd.f32 %v1120_v12, %v1104_v59  ;;  %v5783_v17 = vadd.f32 %v1121_v37, %v11084_v57  ;;  %v5786_v54 = vadd.f32 %v1122_v13, %v11086_v18  ;;  %v11101_v6 = vld [vmem:[#allocation55_spill] sm:$0xff]  ;;  %v5829_v33 = vld [vmem:[%s10226_s2 + $0x58] sm:$0xff]  ;;  %v11116_v58 = vld [vmem:[#allocation36_spill] sm:$0xff] }
 0x107   :  { %v5789_v36 = vadd.f32 %v1123_v7, %v11088_v61  ;;  %v5792_v1 = vadd.f32 %v1124_v30, %v11090_v63  ;;  %v5795_v55 = vadd.f32 %v1125_v39, %v11092_v29  ;;  %v5803_v23 = vadd.f32 %v1126_v41, %v11095_v62  ;;  %11111 = vst [vmem:[#allocation19_spill] sm:$0xff] %v5829_v33  ;;  %v11112_v10 = vld [vmem:[#allocation5_spill] sm:$0xff]  ;;  %v11114_v35 = vld [vmem:[#allocation43_spill] sm:$0xff]  ;;  %v5848_v7 = vld [vmem:[%s10227_s3 + $0x50] sm:$0xff] }
 0x108   :  { %11085 = vst [vmem:[#allocation22_spill] sm:$0xff] %v5783_v17  ;;  %v5806_v16 = vadd.f32 %v1127_v51, %v11097_v53  ;;  %v5809_v50 = vadd.f32 %v1128_v25, %v11099_v28  ;;  %v5812_v59 = vadd.f32 %v1129_v40, %v11101_v6  ;;  %v5815_v38 = vadd.f32 %v1130_v0, %v11103_v27  ;;  %v5861_v0 = vld [vmem:[%s10227_s3 + $0x58] sm:$0xff] }
 0x109   :  { %11087 = vst [vmem:[#allocation24_spill] sm:$0xff] %v5786_v54  ;;  %v5818_v5 = vadd.f32 %v1131_v48, %v11105_v46  ;;  %v5821_v20 = vadd.f32 %v1132_v21, %v11107_v9  ;;  %v5824_v60 = vadd.f32 %v1133_v3, %v11109_v49  ;;  %v5832_v45 = vadd.f32 %v1134_v2, %v11112_v10  ;;  %v5882_v10 = vld [vmem:[%s10228_s0 + $0xa] sm:$0x3] }
 0x10a   :  { %11089 = vst [vmem:[#allocation25_spill] sm:$0xff] %v5789_v36  ;;  %v5835_v11 = vadd.f32 %v1135_v4, %v11114_v35  ;;  %v5838_v14 = vadd.f32 %v1136_v56, %v11116_v58  ;;  %v1162_v43 = vrot.slane %v5800_v44, 1  ;;  %v1163_v12 = vrot.slane %v5800_v44, 2  ;;  %v5983_v54 = vld [vmem:[%s10229_s1 + $0xa] sm:$0x3] }
 0x10b   :  { %11091 = vst [vmem:[#allocation26_spill] sm:$0xff] %v5792_v1  ;;  %v1164_v3 = vrot.slane %v5800_v44, 3  ;;  %v1165_v37 = vrot.slane %v5800_v44, 4  ;;  %v1166_v13 = vrot.slane %v5800_v44, 5  ;;  %v1167_v4 = vrot.slane %v5800_v44, 6 }
 0x10c   :  { %11093 = vst [vmem:[#allocation28_spill] sm:$0xff] %v5795_v55  ;;  %v1168_v56 = vrot.slane %v5800_v44, 7  ;;  %v1169_v30 = vrot.slane %v5829_v33, 1  ;;  %v1170_v39 = vrot.slane %v5829_v33, 2  ;;  %v1171_v41 = vrot.slane %v5829_v33, 3 }
 0x10d   :  { %11096 = vst [vmem:[#allocation30_spill] sm:$0xff] %v5803_v23  ;;  %v1172_v51 = vrot.slane %v5829_v33, 4  ;;  %v1173_v25 = vrot.slane %v5829_v33, 5  ;;  %v1174_v40 = vrot.slane %v5829_v33, 6  ;;  %v1175_v48 = vrot.slane %v5829_v33, 7 }
 0x10e   :  { %11098 = vst [vmem:[#allocation16_spill] sm:$0xff] %v5806_v16  ;;  %v1181_v21 = vrot.slane %v5848_v7, 1  ;;  %v1182_v2 = vrot.slane %v5848_v7, 2  ;;  %v1183_v57 = vrot.slane %v5848_v7, 3  ;;  %v1184_v18 = vrot.slane %v5848_v7, 4 }
 0x10f   :  { %11100 = vst [vmem:[#allocation11_spill] sm:$0xff] %v5809_v50  ;;  %v1185_v61 = vrot.slane %v5848_v7, 5  ;;  %v1186_v63 = vrot.slane %v5848_v7, 6  ;;  %v1187_v29 = vrot.slane %v5848_v7, 7  ;;  %v1188_v62 = vrot.slane %v5861_v0, 1 }
 0x110   :  { %11102 = vst [vmem:[#allocation12_spill] sm:$0xff] %v5812_v59  ;;  %v1189_v53 = vrot.slane %v5861_v0, 2  ;;  %v1190_v28 = vrot.slane %v5861_v0, 3  ;;  %v1191_v6 = vrot.slane %v5861_v0, 4  ;;  %v1192_v27 = vrot.slane %v5861_v0, 5 }
 0x111   :  { %11104 = vst [vmem:[#allocation57_spill] sm:$0xff] %v5815_v38  ;;  %v1193_v46 = vrot.slane %v5861_v0, 6  ;;  %v1194_v9 = vrot.slane %v5861_v0, 7  ;;  %v5884_v35 = vperm.slane %v1162_v43, 0  ;;  %v5886_v58 = vperm.slane %v1163_v12, 0 }
 0x112   :  { %11106 = vst [vmem:[#allocation42_spill] sm:$0xff] %v5818_v5  ;;  %v10372_v49 = vperm.slane %v5829_v33, 0  ;;  %v5899_v5 = vperm.slane %v1169_v30, 0  ;;  %v5901_v38 = vperm.slane %v1170_v39, 0  ;;  %v5903_v43 = vperm.slane %v1171_v41, 0 }
 0x113   :  { %11108 = vst [vmem:[#allocation18_spill] sm:$0xff] %v5821_v20  ;;  %v5896_v20 = vperm.slane %v1168_v56, 0  ;;  %v5905_v12 = vperm.slane %v1172_v51, 0  ;;  %v5920_v30 = vmul.f32 %v5882_v10, %v5884_v35  ;;  %v5924_v39 = vmul.f32 %v5882_v10, %v5886_v58 }
 0x114   :  { %11110 = vst [vmem:[#allocation13_spill] sm:$0xff] %v5824_v60  ;;  %v5894_v60 = vperm.slane %v1167_v4, 0  ;;  %v11133_v4 = vperm.slane %v5800_v44, 0  ;;  %v5953_v59 = vmul.f32 %v5882_v10, %v5899_v5  ;;  %v5957_v50 = vmul.f32 %v5882_v10, %v5901_v38 }
 0x115   :  { %11113 = vst [vmem:[#allocation14_spill] sm:$0xff] %v5832_v45  ;;  %v5892_v45 = vperm.slane %v1166_v13, 0  ;;  %v5911_v13 = vperm.slane %v1175_v48, 0  ;;  %v5944_v48 = vmul.f32 %v5882_v10, %v5896_v20  ;;  %v5961_v16 = vmul.f32 %v5882_v10, %v5903_v43 }
 0x116   :  { %11115 = vst [vmem:[#allocation37_spill] sm:$0xff] %v5835_v11  ;;  %v5890_v11 = vperm.slane %v1165_v37, 0  ;;  %v5909_v37 = vperm.slane %v1174_v40, 0  ;;  %v5916_v56 = vmul.f32 %v5882_v10, %v11133_v4  ;;  %v5940_v40 = vmul.f32 %v5882_v10, %v5894_v60 }
 0x117   :  { %11117 = vst [vmem:[#allocation60_spill] sm:$0xff] %v5838_v14  ;;  %v5888_v14 = vperm.slane %v1164_v3, 0  ;;  %v5907_v3 = vperm.slane %v1173_v25, 0  ;;  %v5936_v25 = vmul.f32 %v5882_v10, %v5892_v45  ;;  %v5949_v4 = vmul.f32 %v5882_v10, %v10372_v49 }
 0x118   :  { %11118 = vst [vmem:[#allocation61_spill] sm:$0xff] %v5861_v0  ;;  %v5932_v51 = vmul.f32 %v5882_v10, %v5890_v11  ;;  %v5965_v23 = vmul.f32 %v5882_v10, %v5905_v12  ;;  %v5973_v55 = vmul.f32 %v5882_v10, %v5909_v37  ;;  %v5977_v1 = vmul.f32 %v5882_v10, %v5911_v13 }
 0x119   :  { %11119 = vst [vmem:[#allocation7_spill] sm:$0xff] %v5884_v35  ;;  %v5928_v41 = vmul.f32 %v5882_v10, %v5888_v14  ;;  %v5969_v49 = vmul.f32 %v5882_v10, %v5907_v3  ;;  %v5985_v17 = vperm.slane %v1181_v21, 0  ;;  %v10387_v36 = vperm.slane %v5861_v0, 0 }
 0x11a   :  { %11120 = vst [vmem:[#allocation48_spill] sm:$0xff] %v5886_v58  ;;  %v6002_v33 = vperm.slane %v1189_v53, 0  ;;  %v6004_v21 = vperm.slane %v1190_v28, 0 }
 0x11b   :  { %11121 = vst [vmem:[#allocation34_spill] sm:$0xff] %v5888_v14 }
 0x11c   :  { %11122 = vst [vmem:[#allocation54_spill] sm:$0xff] %v5890_v11 }
 0x11d   :  { %11123 = vst [vmem:[#allocation50_spill] sm:$0xff] %v5892_v45  ;;  %v1286_v45 = vmul.f32 %v5983_v54, %v6004_v21 }
 0x11e   :  { %11124 = vst [vmem:[#allocation59_spill] sm:$0xff] %v5894_v60  ;;  %v1285_v60 = vmul.f32 %v5983_v54, %v6002_v33 }
 0x11f   :  { %11125 = vst [vmem:[#allocation38_spill] sm:$0xff] %v5896_v20 }
 0x120   :  { %11126 = vst [vmem:[#allocation39_spill] sm:$0xff] %v5899_v5  ;;  %v6000_v5 = vperm.slane %v1188_v62, 0  ;;  %v1276_v62 = vmul.f32 %v5983_v54, %v5985_v17 }
 0x121   :  { %11127 = vst [vmem:[#allocation40_spill] sm:$0xff] %v5901_v38  ;;  %v5995_v38 = vperm.slane %v1186_v63, 0  ;;  %v11141_v63 = vperm.slane %v5848_v7, 0 }
 0x122   :  { %11128 = vst [vmem:[#allocation27_spill] sm:$0xff] %v5903_v43  ;;  %v5991_v43 = vperm.slane %v1184_v18, 0  ;;  %v6010_v18 = vperm.slane %v1193_v46, 0  ;;  %v1284_v20 = vmul.f32 %v5983_v54, %v6000_v5  ;;  %v1292_v44 = vsub.f32 %v5920_v30, %v1276_v62 }
 0x123   :  { %11129 = vst [vmem:[#allocation23_spill] sm:$0xff] %v5905_v12  ;;  %v5987_v12 = vperm.slane %v1182_v2, 0  ;;  %v6006_v2 = vperm.slane %v1191_v6, 0  ;;  %v1281_v46 = vmul.f32 %v5983_v54, %v5995_v38  ;;  %v1302_v30 = vsub.f32 %v5961_v16, %v1286_v45 }
 0x124   :  { %11130 = vst [vmem:[#allocation35_spill] sm:$0xff] %v5907_v3  ;;  %v5989_v3 = vperm.slane %v1183_v57, 0  ;;  %v6008_v57 = vperm.slane %v1192_v27, 0  ;;  %v1279_v6 = vmul.f32 %v5983_v54, %v5991_v43  ;;  %v1289_v58 = vmul.f32 %v5983_v54, %v6010_v18 }
 0x125   :  { %11131 = vst [vmem:[#allocation44_spill] sm:$0xff] %v5909_v37  ;;  %v5993_v37 = vperm.slane %v1185_v61, 0  ;;  %v6012_v61 = vperm.slane %v1194_v9, 0  ;;  %v1277_v53 = vmul.f32 %v5983_v54, %v5987_v12  ;;  %v1287_v11 = vmul.f32 %v5983_v54, %v6006_v2 }
 0x126   :  { %11132 = vst [vmem:[#allocation4_spill] sm:$0xff] %v5911_v13  ;;  %v5997_v13 = vperm.slane %v1187_v29, 0  ;;  %v1275_v29 = vmul.f32 %v5983_v54, %v11141_v63  ;;  %v1278_v28 = vmul.f32 %v5983_v54, %v5989_v3  ;;  %v1283_v63 = vmul.f32 %v5983_v54, %v10387_v36 }
 0x127   :  { %11134 = vst [vmem:[#allocation45_spill] sm:$0xff] %v5983_v54  ;;  %v1280_v27 = vmul.f32 %v5983_v54, %v5993_v37  ;;  %v1288_v14 = vmul.f32 %v5983_v54, %v6008_v57  ;;  %v1290_v36 = vmul.f32 %v5983_v54, %v6012_v61  ;;  %v1329_v45 = vmul.f32 %v5882_v10, %v5995_v38 }
 0x128   :  { %11135 = vst [vmem:[#allocation46_spill] sm:$0xff] %v6000_v5  ;;  %v1282_v9 = vmul.f32 %v5983_v54, %v5997_v13  ;;  %v1291_v35 = vsub.f32 %v5916_v56, %v1275_v29  ;;  %v1295_v5 = vsub.f32 %v5932_v51, %v1279_v6  ;;  %v1300_v54 = vsub.f32 %v5953_v59, %v1284_v20  ;;  %v11163_v6 = vld [vmem:[#allocation48_spill] sm:$0xff] }
 0x129   :  { %11136 = vst [vmem:[#allocation47_spill] sm:$0xff] %v6002_v33  ;;  %v1293_v33 = vsub.f32 %v5924_v39, %v1277_v53  ;;  %v1301_v56 = vsub.f32 %v5957_v50, %v1285_v60  ;;  %v1303_v39 = vsub.f32 %v5965_v23, %v1287_v11  ;;  %v1305_v51 = vsub.f32 %v5973_v55, %v1289_v58  ;;  %v11162_v53 = vld [vmem:[#allocation7_spill] sm:$0xff] }
 0x12a   :  { %11137 = vst [vmem:[#allocation15_spill] sm:$0xff] %v6004_v21  ;;  %v1294_v21 = vsub.f32 %v5928_v41, %v1278_v28  ;;  %v1298_v0 = vsub.f32 %v5944_v48, %v1282_v9  ;;  %v1304_v41 = vsub.f32 %v5969_v49, %v1288_v14  ;;  %v6068_v48 = vadd.f32 %v1292_v44, %v5670_v42  ;;  %v11151_v14 = vld [vmem:[#allocation61_spill] sm:$0xff] }
 0x12b   :  { %11138 = vst [vmem:[#allocation41_spill] sm:$0xff] %v6006_v2  ;;  %v1296_v2 = vsub.f32 %v5936_v25, %v1280_v27  ;;  %v1306_v25 = vsub.f32 %v5977_v1, %v1290_v36  ;;  %v6071_v59 = vadd.f32 %v1293_v33, %v5673_v31  ;;  %v6077_v23 = vadd.f32 %v1295_v5, %v5679_v34 }
 0x12c   :  { %11139 = vst [vmem:[#allocation58_spill] sm:$0xff] %v6008_v57  ;;  %v1297_v57 = vsub.f32 %v5940_v40, %v1281_v46  ;;  %v6065_v40 = vadd.f32 %v1291_v35, %v5667_v15  ;;  %v6074_v50 = vadd.f32 %v1294_v21, %v5676_v8  ;;  %v6086_v15 = vadd.f32 %v1298_v0, %v5688_v19  ;;  %v11146_v19 = vld [vmem:[#allocation9_spill] sm:$0xff]  ;;  %v11164_v46 = vld [vmem:[#allocation34_spill] sm:$0xff] }
 0x12d   :  { %11140 = vst [vmem:[#allocation17_spill] sm:$0xff] %v6010_v18  ;;  %v1299_v18 = vsub.f32 %v5949_v4, %v1283_v63  ;;  %v6080_v16 = vadd.f32 %v1296_v2, %v5682_v47  ;;  %v6092_v31 = vadd.f32 %v1300_v54, %v5694_v52  ;;  %v6095_v8 = vadd.f32 %v1301_v56, %v5697_v26  ;;  %v11142_v47 = vld [vmem:[#allocation6_spill] sm:$0xff] }
 0x12e   :  { %v6083_v36 = vadd.f32 %v1297_v57, %v5685_v22  ;;  %v6098_v34 = vadd.f32 %v1302_v30, %v5700_v32  ;;  %v6101_v1 = vadd.f32 %v1303_v39, %v11142_v47  ;;  %v11144_v22 = vld [vmem:[#allocation8_spill] sm:$0xff]  ;;  %v6107_v44 = vadd.f32 %v1305_v51, %v11146_v19  ;;  %v11159_v57 = vld [vmem:[#allocation29_spill] sm:$0xff]  ;;  %v11165_v63 = vld [vmem:[#allocation54_spill] sm:$0xff] }
 0x12f   :  { %v6089_v42 = vadd.f32 %v1299_v18, %v5691_v24  ;;  %v6104_v55 = vadd.f32 %v1304_v41, %v11144_v22  ;;  %v11148_v24 = vld [vmem:[#allocation10_spill] sm:$0xff]  ;;  %v11150_v52 = vperm.slane %v5848_v7, 0  ;;  %v1324_v32 = vmul.f32 %v5882_v10, %v5985_v17  ;;  %v11161_v29 = vld [vmem:[#allocation45_spill] sm:$0xff]  ;;  %v11171_v19 = vld [vmem:[#allocation39_spill] sm:$0xff] }
 0x130   :  { %11143 = vst [vmem:[#allocation20_spill] sm:$0xff] %v6101_v1  ;;  %v6110_v5 = vadd.f32 %v1306_v25, %v11148_v24  ;;  %v1325_v54 = vmul.f32 %v5882_v10, %v5987_v12  ;;  %v1326_v20 = vmul.f32 %v5882_v10, %v5989_v3  ;;  %v1327_v60 = vmul.f32 %v5882_v10, %v5991_v43  ;;  %v11153_v0 = vld [vmem:[#allocation46_spill] sm:$0xff]  ;;  %v11154_v35 = vld [vmem:[#allocation47_spill] sm:$0xff] }
 0x131   :  { %11145 = vst [vmem:[#allocation21_spill] sm:$0xff] %v6104_v55  ;;  %v1323_v26 = vmul.f32 %v5882_v10, %v11150_v52  ;;  %v1328_v33 = vmul.f32 %v5882_v10, %v5993_v37  ;;  %v1330_v11 = vmul.f32 %v5882_v10, %v5997_v13  ;;  %v11152_v17 = vperm.slane %v11151_v14, 0  ;;  %v11155_v43 = vld [vmem:[#allocation15_spill] sm:$0xff]  ;;  %v11166_v30 = vld [vmem:[#allocation50_spill] sm:$0xff]  ;;  %v11172_v52 = vld [vmem:[#allocation40_spill] sm:$0xff] }
 0x132   :  { %11147 = vst [vmem:[#allocation31_spill] sm:$0xff] %v6107_v44  ;;  %v1332_v49 = vmul.f32 %v5882_v10, %v11153_v0  ;;  %v1333_v58 = vmul.f32 %v5882_v10, %v11154_v35  ;;  %v1334_v12 = vmul.f32 %v5882_v10, %v11155_v43  ;;  %v11156_v3 = vld [vmem:[#allocation41_spill] sm:$0xff]  ;;  %v1338_v2 = vmul.f32 %v5882_v10, %v6012_v61  ;;  %v11168_v41 = vld [vmem:[#allocation38_spill] sm:$0xff]  ;;  %v11169_v25 = vld [vmem:[#allocation19_spill] sm:$0xff] }
 0x133   :  { %11149 = vst [vmem:[#allocation33_spill] sm:$0xff] %v6110_v5  ;;  %v1331_v7 = vmul.f32 %v5882_v10, %v11152_v17  ;;  %v1335_v37 = vmul.f32 %v5882_v10, %v11156_v3  ;;  %v11157_v38 = vld [vmem:[#allocation58_spill] sm:$0xff]  ;;  %v11160_v18 = vperm.slane %v11159_v57, 0  ;;  %v1340_v28 = vmul.f32 %v11161_v29, %v11162_v53  ;;  %v11173_v17 = vld [vmem:[#allocation27_spill] sm:$0xff] }
 0x134   :  { %v1336_v4 = vmul.f32 %v5882_v10, %v11157_v38  ;;  %v11158_v13 = vld [vmem:[#allocation17_spill] sm:$0xff]  ;;  %v1341_v27 = vmul.f32 %v11161_v29, %v11163_v6  ;;  %v1342_v9 = vmul.f32 %v11161_v29, %v11164_v46  ;;  %v1343_v56 = vmul.f32 %v11161_v29, %v11165_v63  ;;  %v11174_v35 = vld [vmem:[#allocation23_spill] sm:$0xff] }
 0x135   :  { %v1337_v21 = vmul.f32 %v5882_v10, %v11158_v13  ;;  %v1339_v62 = vmul.f32 %v11161_v29, %v11160_v18  ;;  %v1344_v39 = vmul.f32 %v11161_v29, %v11166_v30  ;;  %v11167_v10 = vld [vmem:[#allocation59_spill] sm:$0xff]  ;;  %v1346_v51 = vmul.f32 %v11161_v29, %v11168_v41  ;;  %v11176_v13 = vld [vmem:[#allocation44_spill] sm:$0xff] }
 0x136   :  { %v1345_v61 = vmul.f32 %v11161_v29, %v11167_v10  ;;  %v11170_v47 = vperm.slane %v11169_v25, 0  ;;  %v1348_v24 = vmul.f32 %v11161_v29, %v11171_v19  ;;  %v1349_v14 = vmul.f32 %v11161_v29, %v11172_v52  ;;  %v11175_v3 = vld [vmem:[#allocation35_spill] sm:$0xff]  ;;  %v11177_v18 = vld [vmem:[#allocation4_spill] sm:$0xff] }
 0x137   :  { %v1350_v0 = vmul.f32 %v11161_v29, %v11173_v17  ;;  %v1351_v43 = vmul.f32 %v11161_v29, %v11174_v35  ;;  %v1352_v38 = vmul.f32 %v11161_v29, %v11175_v3  ;;  %v1353_v57 = vmul.f32 %v11161_v29, %v11176_v13  ;;  %v11178_v13 = vld [vmem:[#allocation22_spill] sm:$0xff] }
 0x138   :  { %v1347_v22 = vmul.f32 %v11161_v29, %v11170_v47  ;;  %v1354_v53 = vmul.f32 %v11161_v29, %v11177_v18  ;;  %v1355_v6 = vadd.f32 %v1339_v62, %v1323_v26  ;;  %v1356_v46 = vadd.f32 %v1340_v28, %v1324_v32  ;;  %v11180_v29 = vld [vmem:[#allocation24_spill] sm:$0xff]  ;;  %v11182_v32 = vld [vmem:[#allocation25_spill] sm:$0xff] }
 0x139   :  { %v1357_v63 = vadd.f32 %v1341_v27, %v1325_v54  ;;  %v1358_v30 = vadd.f32 %v1342_v9, %v1326_v20  ;;  %v1359_v10 = vadd.f32 %v1343_v56, %v1327_v60  ;;  %v1360_v41 = vadd.f32 %v1344_v39, %v1328_v33  ;;  %v11184_v20 = vld [vmem:[#allocation26_spill] sm:$0xff]  ;;  %v11186_v33 = vld [vmem:[#allocation28_spill] sm:$0xff]  ;;  %v11197_v62 = vld [vmem:[#allocation57_spill] sm:$0xff] }
 0x13a   :  { %v1361_v25 = vadd.f32 %v1345_v61, %v1329_v45  ;;  %v1362_v47 = vadd.f32 %v1346_v51, %v1330_v11  ;;  %v1363_v19 = vadd.f32 %v1347_v22, %v1331_v7  ;;  %v1364_v52 = vadd.f32 %v1348_v24, %v1332_v49  ;;  %v6198_v11 = vld [vmem:[%s10226_s2 + $0x60] sm:$0xff]  ;;  %v11203_v61 = vld [vmem:[#allocation13_spill] sm:$0xff]  ;;  %v6227_v22 = vld [vmem:[%s10226_s2 + $0x68] sm:$0xff] }
 0x13b   :  { %v1365_v17 = vadd.f32 %v1349_v14, %v1333_v58  ;;  %v1366_v35 = vadd.f32 %v1350_v0, %v1334_v12  ;;  %v1367_v5 = vadd.f32 %v1351_v43, %v1335_v37  ;;  %v1368_v3 = vadd.f32 %v1352_v38, %v1336_v4  ;;  %11188 = vst [vmem:[#allocation32_spill] sm:$0xff] %v6198_v11  ;;  %v11189_v7 = vld [vmem:[#allocation30_spill] sm:$0xff]  ;;  %v11191_v58 = vld [vmem:[#allocation16_spill] sm:$0xff]  ;;  %v11193_v37 = vld [vmem:[#allocation11_spill] sm:$0xff] }
 0x13c   :  { %v1369_v44 = vadd.f32 %v1353_v57, %v1337_v21  ;;  %v1370_v55 = vadd.f32 %v1354_v53, %v1338_v2  ;;  %v6181_v1 = vadd.f32 %v1355_v6, %v11178_v13  ;;  %v6184_v26 = vadd.f32 %v1356_v46, %v11180_v29  ;;  %v11195_v21 = vld [vmem:[#allocation12_spill] sm:$0xff]  ;;  %v11199_v27 = vld [vmem:[#allocation42_spill] sm:$0xff]  ;;  %11205 = vst [vmem:[#allocation9_spill] sm:$0xff] %v6227_v22  ;;  %v11208_v0 = vld [vmem:[#allocation37_spill] sm:$0xff] }
 0x13d   :  { %v6187_v54 = vadd.f32 %v1357_v63, %v11182_v32  ;;  %v6190_v60 = vadd.f32 %v1358_v30, %v11184_v20  ;;  %v6193_v45 = vadd.f32 %v1359_v10, %v11186_v33  ;;  %v6201_v49 = vadd.f32 %v1360_v41, %v11189_v7  ;;  %v11201_v56 = vld [vmem:[#allocation18_spill] sm:$0xff]  ;;  %v11210_v38 = vld [vmem:[#allocation60_spill] sm:$0xff] }
 0x13e   :  { %11179 = vst [vmem:[#allocation49_spill] sm:$0xff] %v6181_v1  ;;  %v6204_v12 = vadd.f32 %v1361_v25, %v11191_v58  ;;  %v6207_v4 = vadd.f32 %v1362_v47, %v11193_v37  ;;  %v6210_v2 = vadd.f32 %v1363_v19, %v11195_v21  ;;  %v6213_v28 = vadd.f32 %v1364_v52, %v11197_v62  ;;  %v11206_v24 = vld [vmem:[#allocation14_spill] sm:$0xff]  ;;  %v6259_v52 = vld [vmem:[%s10227_s3 + $0x68] sm:$0xff] }
 0x13f   :  { %11181 = vst [vmem:[#allocation51_spill] sm:$0xff] %v6184_v26  ;;  %v6216_v9 = vadd.f32 %v1365_v17, %v11199_v27  ;;  %v6219_v39 = vadd.f32 %v1366_v35, %v11201_v56  ;;  %v6222_v51 = vadd.f32 %v1367_v5, %v11203_v61  ;;  %v6230_v14 = vadd.f32 %v1368_v3, %v11206_v24  ;;  %v6246_v63 = vld [vmem:[%s10227_s3 + $0x60] sm:$0xff]  ;;  %v6280_v24 = vld [vmem:[%s10228_s0 + $0xc] sm:$0x3] }
 0x140   :  { %11183 = vst [vmem:[#allocation52_spill] sm:$0xff] %v6187_v54  ;;  %v6233_v43 = vadd.f32 %v1369_v44, %v11208_v0  ;;  %v6236_v57 = vadd.f32 %v1370_v55, %v11210_v38  ;;  %v1396_v18 = vrot.slane %v6198_v11, 1  ;;  %v1397_v53 = vrot.slane %v6198_v11, 2  ;;  %v6381_v26 = vld [vmem:[%s10229_s1 + $0xc] sm:$0x3] }
 0x141   :  { %11185 = vst [vmem:[#allocation53_spill] sm:$0xff] %v6190_v60  ;;  %v1398_v5 = vrot.slane %v6198_v11, 3  ;;  %v1399_v6 = vrot.slane %v6198_v11, 4  ;;  %v1400_v46 = vrot.slane %v6198_v11, 5  ;;  %v1401_v44 = vrot.slane %v6198_v11, 6 }
 0x142   :  { %11187 = vst [vmem:[#allocation55_spill] sm:$0xff] %v6193_v45  ;;  %v1402_v55 = vrot.slane %v6198_v11, 7  ;;  %v1403_v30 = vrot.slane %v6227_v22, 1  ;;  %v1404_v10 = vrot.slane %v6227_v22, 2  ;;  %v1405_v41 = vrot.slane %v6227_v22, 3 }
 0x143   :  { %11190 = vst [vmem:[#allocation56_spill] sm:$0xff] %v6201_v49  ;;  %v1406_v25 = vrot.slane %v6227_v22, 4  ;;  %v1407_v47 = vrot.slane %v6227_v22, 5  ;;  %v1408_v19 = vrot.slane %v6227_v22, 6  ;;  %v1409_v17 = vrot.slane %v6227_v22, 7 }
 0x144   :  { %11192 = vst [vmem:[#allocation3_spill] sm:$0xff] %v6204_v12  ;;  %v1415_v35 = vrot.slane %v6246_v63, 1  ;;  %v1416_v3 = vrot.slane %v6246_v63, 2  ;;  %v1417_v13 = vrot.slane %v6246_v63, 3  ;;  %v1418_v29 = vrot.slane %v6246_v63, 4 }
 0x145   :  { %11194 = vst [vmem:[#allocation2_spill] sm:$0xff] %v6207_v4  ;;  %v1419_v32 = vrot.slane %v6246_v63, 5  ;;  %v1420_v20 = vrot.slane %v6246_v63, 6  ;;  %v1421_v33 = vrot.slane %v6246_v63, 7  ;;  %v1422_v7 = vrot.slane %v6259_v52, 1 }
 0x146   :  { %11196 = vst [vmem:[#allocation5_spill] sm:$0xff] %v6210_v2  ;;  %v1423_v58 = vrot.slane %v6259_v52, 2  ;;  %v1424_v37 = vrot.slane %v6259_v52, 3  ;;  %v1425_v21 = vrot.slane %v6259_v52, 4  ;;  %v1426_v62 = vrot.slane %v6259_v52, 5 }
 0x147   :  { %11198 = vst [vmem:[#allocation43_spill] sm:$0xff] %v6213_v28  ;;  %v1427_v27 = vrot.slane %v6259_v52, 6  ;;  %v1428_v56 = vrot.slane %v6259_v52, 7  ;;  %v6282_v0 = vperm.slane %v1396_v18, 0  ;;  %v6284_v38 = vperm.slane %v1397_v53, 0 }
 0x148   :  { %11200 = vst [vmem:[#allocation36_spill] sm:$0xff] %v6216_v9  ;;  %v10399_v61 = vperm.slane %v6227_v22, 0  ;;  %v6297_v9 = vperm.slane %v1403_v30, 0  ;;  %v6299_v28 = vperm.slane %v1404_v10, 0  ;;  %v6301_v18 = vperm.slane %v1405_v41, 0 }
 0x149   :  { %11202 = vst [vmem:[#allocation6_spill] sm:$0xff] %v6219_v39  ;;  %v6294_v39 = vperm.slane %v1402_v55, 0  ;;  %v6303_v53 = vperm.slane %v1406_v25, 0  ;;  %v6318_v30 = vmul.f32 %v6280_v24, %v6282_v0  ;;  %v6322_v10 = vmul.f32 %v6280_v24, %v6284_v38 }
 0x14a   :  { %11204 = vst [vmem:[#allocation8_spill] sm:$0xff] %v6222_v51  ;;  %v6292_v51 = vperm.slane %v1401_v44, 0  ;;  %v11227_v44 = vperm.slane %v6198_v11, 0  ;;  %v6351_v2 = vmul.f32 %v6280_v24, %v6297_v9  ;;  %v6355_v4 = vmul.f32 %v6280_v24, %v6299_v28 }
 0x14b   :  { %11207 = vst [vmem:[#allocation10_spill] sm:$0xff] %v6230_v14  ;;  %v6290_v14 = vperm.slane %v1400_v46, 0  ;;  %v6309_v46 = vperm.slane %v1409_v17, 0  ;;  %v6342_v17 = vmul.f32 %v6280_v24, %v6294_v39  ;;  %v6359_v12 = vmul.f32 %v6280_v24, %v6301_v18 }
 0x14c   :  { %11209 = vst [vmem:[#allocation61_spill] sm:$0xff] %v6233_v43  ;;  %v6288_v43 = vperm.slane %v1399_v6, 0  ;;  %v6307_v6 = vperm.slane %v1408_v19, 0  ;;  %v6314_v55 = vmul.f32 %v6280_v24, %v11227_v44  ;;  %v6338_v19 = vmul.f32 %v6280_v24, %v6292_v51 }
 0x14d   :  { %11211 = vst [vmem:[#allocation46_spill] sm:$0xff] %v6236_v57  ;;  %v6286_v57 = vperm.slane %v1398_v5, 0  ;;  %v6305_v5 = vperm.slane %v1407_v47, 0  ;;  %v6334_v47 = vmul.f32 %v6280_v24, %v6290_v14  ;;  %v6347_v44 = vmul.f32 %v6280_v24, %v10399_v61 }
 0x14e   :  { %11212 = vst [vmem:[#allocation47_spill] sm:$0xff] %v6259_v52  ;;  %v6330_v25 = vmul.f32 %v6280_v24, %v6288_v43  ;;  %v6363_v49 = vmul.f32 %v6280_v24, %v6303_v53  ;;  %v6371_v45 = vmul.f32 %v6280_v24, %v6307_v6  ;;  %v6375_v60 = vmul.f32 %v6280_v24, %v6309_v46 }
 0x14f   :  { %11213 = vst [vmem:[#allocation15_spill] sm:$0xff] %v6282_v0  ;;  %v6326_v41 = vmul.f32 %v6280_v24, %v6286_v57  ;;  %v6367_v61 = vmul.f32 %v6280_v24, %v6305_v5  ;;  %v6383_v1 = vperm.slane %v1415_v35, 0  ;;  %v10414_v54 = vperm.slane %v6259_v52, 0 }
 0x150   :  { %11214 = vst [vmem:[#allocation41_spill] sm:$0xff] %v6284_v38  ;;  %v6400_v22 = vperm.slane %v1423_v58, 0  ;;  %v6402_v35 = vperm.slane %v1424_v37, 0 }
 0x151   :  { %11215 = vst [vmem:[#allocation58_spill] sm:$0xff] %v6286_v57 }
 0x152   :  { %11216 = vst [vmem:[#allocation17_spill] sm:$0xff] %v6288_v43 }
 0x153   :  { %11217 = vst [vmem:[#allocation29_spill] sm:$0xff] %v6290_v14  ;;  %v1520_v14 = vmul.f32 %v6381_v26, %v6402_v35 }
 0x154   :  { %11218 = vst [vmem:[#allocation45_spill] sm:$0xff] %v6292_v51  ;;  %v1519_v51 = vmul.f32 %v6381_v26, %v6400_v22 }
 0x155   :  { %11219 = vst [vmem:[#allocation7_spill] sm:$0xff] %v6294_v39 }
 0x156   :  { %11220 = vst [vmem:[#allocation48_spill] sm:$0xff] %v6297_v9  ;;  %v6398_v9 = vperm.slane %v1422_v7, 0  ;;  %v1510_v7 = vmul.f32 %v6381_v26, %v6383_v1 }
 0x157   :  { %11221 = vst [vmem:[#allocation34_spill] sm:$0xff] %v6299_v28  ;;  %v6393_v28 = vperm.slane %v1420_v20, 0  ;;  %v11235_v20 = vperm.slane %v6246_v63, 0 }
 0x158   :  { %11222 = vst [vmem:[#allocation54_spill] sm:$0xff] %v6301_v18  ;;  %v6389_v18 = vperm.slane %v1418_v29, 0  ;;  %v6408_v29 = vperm.slane %v1427_v27, 0  ;;  %v1518_v39 = vmul.f32 %v6381_v26, %v6398_v9  ;;  %v1526_v11 = vsub.f32 %v6318_v30, %v1510_v7 }
 0x159   :  { %11223 = vst [vmem:[#allocation50_spill] sm:$0xff] %v6303_v53  ;;  %v6385_v53 = vperm.slane %v1416_v3, 0  ;;  %v6404_v3 = vperm.slane %v1425_v21, 0  ;;  %v1515_v27 = vmul.f32 %v6381_v26, %v6393_v28  ;;  %v1536_v30 = vsub.f32 %v6359_v12, %v1520_v14 }
 0x15a   :  { %11224 = vst [vmem:[#allocation59_spill] sm:$0xff] %v6305_v5  ;;  %v6387_v5 = vperm.slane %v1417_v13, 0  ;;  %v6406_v13 = vperm.slane %v1426_v62, 0  ;;  %v1513_v21 = vmul.f32 %v6381_v26, %v6389_v18  ;;  %v1523_v38 = vmul.f32 %v6381_v26, %v6408_v29 }
 0x15b   :  { %11225 = vst [vmem:[#allocation38_spill] sm:$0xff] %v6307_v6  ;;  %v6391_v6 = vperm.slane %v1419_v32, 0  ;;  %v6410_v32 = vperm.slane %v1428_v56, 0  ;;  %v1511_v58 = vmul.f32 %v6381_v26, %v6385_v53  ;;  %v1521_v43 = vmul.f32 %v6381_v26, %v6404_v3 }
 0x15c   :  { %11226 = vst [vmem:[#allocation19_spill] sm:$0xff] %v6309_v46  ;;  %v6395_v46 = vperm.slane %v1421_v33, 0  ;;  %v1509_v33 = vmul.f32 %v6381_v26, %v11235_v20  ;;  %v1512_v37 = vmul.f32 %v6381_v26, %v6387_v5  ;;  %v1517_v20 = vmul.f32 %v6381_v26, %v10414_v54 }
 0x15d   :  { %11228 = vst [vmem:[#allocation39_spill] sm:$0xff] %v6381_v26  ;;  %v1514_v62 = vmul.f32 %v6381_v26, %v6391_v6  ;;  %v1522_v57 = vmul.f32 %v6381_v26, %v6406_v13  ;;  %v1524_v54 = vmul.f32 %v6381_v26, %v6410_v32  ;;  %v1563_v14 = vmul.f32 %v6280_v24, %v6393_v28 }
 0x15e   :  { %11229 = vst [vmem:[#allocation40_spill] sm:$0xff] %v6398_v9  ;;  %v1516_v56 = vmul.f32 %v6381_v26, %v6395_v46  ;;  %v1525_v0 = vsub.f32 %v6314_v55, %v1509_v33  ;;  %v1529_v9 = vsub.f32 %v6330_v25, %v1513_v21  ;;  %v1534_v26 = vsub.f32 %v6351_v2, %v1518_v39  ;;  %v11257_v21 = vld [vmem:[#allocation41_spill] sm:$0xff] }
 0x15f   :  { %11230 = vst [vmem:[#allocation27_spill] sm:$0xff] %v6400_v22  ;;  %v1527_v22 = vsub.f32 %v6322_v10, %v1511_v58  ;;  %v1535_v55 = vsub.f32 %v6355_v4, %v1519_v51  ;;  %v1537_v10 = vsub.f32 %v6363_v49, %v1521_v43  ;;  %v1539_v25 = vsub.f32 %v6371_v45, %v1523_v38  ;;  %v11256_v58 = vld [vmem:[#allocation15_spill] sm:$0xff] }
 0x160   :  { %11231 = vst [vmem:[#allocation23_spill] sm:$0xff] %v6402_v35  ;;  %v1528_v35 = vsub.f32 %v6326_v41, %v1512_v37  ;;  %v1532_v52 = vsub.f32 %v6342_v17, %v1516_v56  ;;  %v1538_v41 = vsub.f32 %v6367_v61, %v1522_v57  ;;  %v6466_v17 = vadd.f32 %v1526_v11, %v6068_v48  ;;  %v11245_v57 = vld [vmem:[#allocation47_spill] sm:$0xff] }
 0x161   :  { %11232 = vst [vmem:[#allocation35_spill] sm:$0xff] %v6404_v3  ;;  %v1530_v3 = vsub.f32 %v6334_v47, %v1514_v62  ;;  %v1540_v47 = vsub.f32 %v6375_v60, %v1524_v54  ;;  %v6469_v2 = vadd.f32 %v1527_v22, %v6071_v59  ;;  %v6475_v49 = vadd.f32 %v1529_v9, %v6077_v23 }
 0x162   :  { %11233 = vst [vmem:[#allocation44_spill] sm:$0xff] %v6406_v13  ;;  %v1531_v13 = vsub.f32 %v6338_v19, %v1515_v27  ;;  %v6463_v19 = vadd.f32 %v1525_v0, %v6065_v40  ;;  %v6472_v4 = vadd.f32 %v1528_v35, %v6074_v50  ;;  %v6484_v40 = vadd.f32 %v1532_v52, %v6086_v15  ;;  %v11240_v15 = vld [vmem:[#allocation31_spill] sm:$0xff]  ;;  %v11258_v27 = vld [vmem:[#allocation58_spill] sm:$0xff] }
 0x163   :  { %11234 = vst [vmem:[#allocation4_spill] sm:$0xff] %v6408_v29  ;;  %v1533_v29 = vsub.f32 %v6347_v44, %v1517_v20  ;;  %v6478_v12 = vadd.f32 %v1530_v3, %v6080_v16  ;;  %v6490_v59 = vadd.f32 %v1534_v26, %v6092_v31  ;;  %v6493_v50 = vadd.f32 %v1535_v55, %v6095_v8  ;;  %v11236_v16 = vld [vmem:[#allocation20_spill] sm:$0xff]  ;;  %v11259_v20 = vld [vmem:[#allocation17_spill] sm:$0xff] }
 0x164   :  { %v6481_v54 = vadd.f32 %v1531_v13, %v6083_v36  ;;  %v6496_v23 = vadd.f32 %v1536_v30, %v6098_v34  ;;  %v6499_v60 = vadd.f32 %v1537_v10, %v11236_v16  ;;  %v11238_v36 = vld [vmem:[#allocation21_spill] sm:$0xff]  ;;  %v6505_v11 = vadd.f32 %v1539_v25, %v11240_v15  ;;  %v11253_v13 = vld [vmem:[#allocation32_spill] sm:$0xff]  ;;  %v11255_v33 = vld [vmem:[#allocation39_spill] sm:$0xff] }
 0x165   :  { %v6487_v48 = vadd.f32 %v1533_v29, %v6089_v42  ;;  %v6502_v45 = vadd.f32 %v1538_v41, %v11238_v36  ;;  %v11242_v42 = vld [vmem:[#allocation33_spill] sm:$0xff]  ;;  %v11244_v31 = vperm.slane %v6246_v63, 0  ;;  %v1558_v34 = vmul.f32 %v6280_v24, %v6383_v1  ;;  %v11247_v52 = vld [vmem:[#allocation40_spill] sm:$0xff]  ;;  %v11262_v41 = vld [vmem:[#allocation7_spill] sm:$0xff] }
 0x166   :  { %11237 = vst [vmem:[#allocation22_spill] sm:$0xff] %v6499_v60  ;;  %v6508_v9 = vadd.f32 %v1540_v47, %v11242_v42  ;;  %v1559_v26 = vmul.f32 %v6280_v24, %v6385_v53  ;;  %v1560_v39 = vmul.f32 %v6280_v24, %v6387_v5  ;;  %v1561_v51 = vmul.f32 %v6280_v24, %v6389_v18  ;;  %v11248_v0 = vld [vmem:[#allocation27_spill] sm:$0xff]  ;;  %v11260_v30 = vld [vmem:[#allocation29_spill] sm:$0xff]  ;;  %v11265_v15 = vld [vmem:[#allocation48_spill] sm:$0xff] }
 0x167   :  { %11239 = vst [vmem:[#allocation24_spill] sm:$0xff] %v6502_v45  ;;  %v1557_v8 = vmul.f32 %v6280_v24, %v11244_v31  ;;  %v1562_v22 = vmul.f32 %v6280_v24, %v6391_v6  ;;  %v1564_v43 = vmul.f32 %v6280_v24, %v6395_v46  ;;  %v11246_v1 = vperm.slane %v11245_v57, 0  ;;  %v11249_v18 = vld [vmem:[#allocation23_spill] sm:$0xff]  ;;  %v11263_v47 = vld [vmem:[#allocation9_spill] sm:$0xff]  ;;  %v11266_v31 = vld [vmem:[#allocation34_spill] sm:$0xff] }
 0x168   :  { %11241 = vst [vmem:[#allocation25_spill] sm:$0xff] %v6505_v11  ;;  %v1566_v61 = vmul.f32 %v6280_v24, %v11247_v52  ;;  %v1567_v38 = vmul.f32 %v6280_v24, %v11248_v0  ;;  %v1568_v53 = vmul.f32 %v6280_v24, %v11249_v18  ;;  %v11250_v5 = vld [vmem:[#allocation35_spill] sm:$0xff]  ;;  %v1572_v3 = vmul.f32 %v6280_v24, %v6410_v32  ;;  %v11268_v0 = vld [vmem:[#allocation50_spill] sm:$0xff] }
 0x169   :  { %11243 = vst [vmem:[#allocation26_spill] sm:$0xff] %v6508_v9  ;;  %v1565_v63 = vmul.f32 %v6280_v24, %v11246_v1  ;;  %v1569_v6 = vmul.f32 %v6280_v24, %v11250_v5  ;;  %v11251_v28 = vld [vmem:[#allocation44_spill] sm:$0xff]  ;;  %v11254_v29 = vperm.slane %v11253_v13, 0  ;;  %v1574_v37 = vmul.f32 %v11255_v33, %v11256_v58  ;;  %v11267_v1 = vld [vmem:[#allocation54_spill] sm:$0xff]  ;;  %v11269_v5 = vld [vmem:[#allocation59_spill] sm:$0xff] }
 0x16a   :  { %v1570_v44 = vmul.f32 %v6280_v24, %v11251_v28  ;;  %v11252_v46 = vld [vmem:[#allocation4_spill] sm:$0xff]  ;;  %v1575_v62 = vmul.f32 %v11255_v33, %v11257_v21  ;;  %v1576_v56 = vmul.f32 %v11255_v33, %v11258_v27  ;;  %v1577_v55 = vmul.f32 %v11255_v33, %v11259_v20 }
 0x16b   :  { %v1571_v35 = vmul.f32 %v6280_v24, %v11252_v46  ;;  %v1573_v7 = vmul.f32 %v11255_v33, %v11254_v29  ;;  %v1578_v10 = vmul.f32 %v11255_v33, %v11260_v30  ;;  %v11261_v24 = vld [vmem:[#allocation45_spill] sm:$0xff]  ;;  %v1580_v25 = vmul.f32 %v11255_v33, %v11262_v41  ;;  %v11270_v46 = vld [vmem:[#allocation38_spill] sm:$0xff]  ;;  %v11271_v29 = vld [vmem:[#allocation19_spill] sm:$0xff] }
 0x16c   :  { %v1579_v32 = vmul.f32 %v11255_v33, %v11261_v24  ;;  %v11264_v16 = vperm.slane %v11263_v47, 0  ;;  %v1582_v42 = vmul.f32 %v11255_v33, %v11265_v15  ;;  %v1583_v57 = vmul.f32 %v11255_v33, %v11266_v31 }
 0x16d   :  { %v1584_v52 = vmul.f32 %v11255_v33, %v11267_v1  ;;  %v1585_v18 = vmul.f32 %v11255_v33, %v11268_v0  ;;  %v1586_v28 = vmul.f32 %v11255_v33, %v11269_v5  ;;  %v1587_v13 = vmul.f32 %v11255_v33, %v11270_v46  ;;  %v11272_v46 = vld [vmem:[#allocation49_spill] sm:$0xff] }
 0x16e   :  { %v1581_v36 = vmul.f32 %v11255_v33, %v11264_v16  ;;  %v1588_v58 = vmul.f32 %v11255_v33, %v11271_v29  ;;  %v1589_v21 = vadd.f32 %v1573_v7, %v1557_v8  ;;  %v1590_v27 = vadd.f32 %v1574_v37, %v1558_v34  ;;  %v11274_v33 = vld [vmem:[#allocation51_spill] sm:$0xff]  ;;  %v11276_v34 = vld [vmem:[#allocation52_spill] sm:$0xff] }
 0x16f   :  { %v1591_v20 = vadd.f32 %v1575_v62, %v1559_v26  ;;  %v1592_v30 = vadd.f32 %v1576_v56, %v1560_v39  ;;  %v1593_v24 = vadd.f32 %v1577_v55, %v1561_v51  ;;  %v1594_v41 = vadd.f32 %v1578_v10, %v1562_v22  ;;  %v11278_v39 = vld [vmem:[#allocation53_spill] sm:$0xff]  ;;  %v11280_v22 = vld [vmem:[#allocation55_spill] sm:$0xff]  ;;  %v11293_v62 = vld [vmem:[#allocation36_spill] sm:$0xff] }
 0x170   :  { %v1595_v47 = vadd.f32 %v1579_v32, %v1563_v14  ;;  %v1596_v16 = vadd.f32 %v1580_v25, %v1564_v43  ;;  %v1597_v15 = vadd.f32 %v1581_v36, %v1565_v63  ;;  %v1598_v31 = vadd.f32 %v1582_v42, %v1566_v61  ;;  %v6596_v43 = vld [vmem:[%s10226_s2 + $0x70] sm:$0xff]  ;;  %v11291_v7 = vld [vmem:[#allocation43_spill] sm:$0xff]  ;;  %v11295_v55 = vld [vmem:[#allocation6_spill] sm:$0xff] }
 0x171   :  { %v1599_v1 = vadd.f32 %v1583_v57, %v1567_v38  ;;  %v1600_v0 = vadd.f32 %v1584_v52, %v1568_v53  ;;  %v1601_v9 = vadd.f32 %v1585_v18, %v1569_v6  ;;  %v1602_v5 = vadd.f32 %v1586_v28, %v1570_v44  ;;  %11282 = vst [vmem:[#allocation57_spill] sm:$0xff] %v6596_v43  ;;  %v11283_v63 = vld [vmem:[#allocation56_spill] sm:$0xff]  ;;  %v11285_v38 = vld [vmem:[#allocation3_spill] sm:$0xff]  ;;  %v11287_v6 = vld [vmem:[#allocation2_spill] sm:$0xff] }
 0x172   :  { %v1603_v11 = vadd.f32 %v1587_v13, %v1571_v35  ;;  %v1604_v45 = vadd.f32 %v1588_v58, %v1572_v3  ;;  %v6579_v60 = vadd.f32 %v1589_v21, %v11272_v46  ;;  %v6582_v8 = vadd.f32 %v1590_v27, %v11274_v33  ;;  %v11289_v35 = vld [vmem:[#allocation5_spill] sm:$0xff]  ;;  %v11297_v32 = vld [vmem:[#allocation8_spill] sm:$0xff]  ;;  %v11300_v42 = vld [vmem:[#allocation10_spill] sm:$0xff] }
 0x173   :  { %v6585_v26 = vadd.f32 %v1591_v20, %v11276_v34  ;;  %v6588_v51 = vadd.f32 %v1592_v30, %v11278_v39  ;;  %v6591_v14 = vadd.f32 %v1593_v24, %v11280_v22  ;;  %v6599_v61 = vadd.f32 %v1594_v41, %v11283_v63  ;;  %v6625_v36 = vld [vmem:[%s10226_s2 + $0x78] sm:$0xff]  ;;  %v11304_v28 = vld [vmem:[#allocation46_spill] sm:$0xff]  ;;  %v6644_v20 = vld [vmem:[%s10227_s3 + $0x70] sm:$0xff] }
 0x174   :  { %11273 = vst [vmem:[#allocation28_spill] sm:$0xff] %v6579_v60  ;;  %v6602_v53 = vadd.f32 %v1595_v47, %v11285_v38  ;;  %v6605_v44 = vadd.f32 %v1596_v16, %v11287_v6  ;;  %v6608_v3 = vadd.f32 %v1597_v15, %v11289_v35  ;;  %v6611_v37 = vadd.f32 %v1598_v31, %v11291_v7  ;;  %v11302_v52 = vld [vmem:[#allocation61_spill] sm:$0xff] }
 0x175   :  { %11275 = vst [vmem:[#allocation30_spill] sm:$0xff] %v6582_v8  ;;  %v6614_v56 = vadd.f32 %v1599_v1, %v11293_v62  ;;  %v6617_v10 = vadd.f32 %v1600_v0, %v11295_v55  ;;  %v6620_v25 = vadd.f32 %v1601_v9, %v11297_v32  ;;  %v6628_v57 = vadd.f32 %v1602_v5, %v11300_v42  ;;  %v6657_v31 = vld [vmem:[%s10227_s3 + $0x78] sm:$0xff]  ;;  %v6678_v42 = vld [vmem:[%s10228_s0 + $0xe] sm:$0x3] }
 0x176   :  { %11277 = vst [vmem:[#allocation16_spill] sm:$0xff] %v6585_v26  ;;  %v6631_v18 = vadd.f32 %v1603_v11, %v11302_v52  ;;  %v6634_v13 = vadd.f32 %v1604_v45, %v11304_v28  ;;  %v1630_v29 = vrot.slane %v6596_v43, 1  ;;  %v1631_v58 = vrot.slane %v6596_v43, 2  ;;  %v6779_v8 = vld [vmem:[%s10229_s1 + $0xe] sm:$0x3] }
 0x177   :  { %11279 = vst [vmem:[#allocation11_spill] sm:$0xff] %v6588_v51  ;;  %v1632_v9 = vrot.slane %v6596_v43, 3  ;;  %v1633_v21 = vrot.slane %v6596_v43, 4  ;;  %v1634_v27 = vrot.slane %v6596_v43, 5  ;;  %v1635_v11 = vrot.slane %v6596_v43, 6 }
 0x178   :  { %11281 = vst [vmem:[#allocation12_spill] sm:$0xff] %v6591_v14  ;;  %v1636_v45 = vrot.slane %v6596_v43, 7  ;;  %v1637_v30 = vrot.slane %v6625_v36, 1  ;;  %v1638_v24 = vrot.slane %v6625_v36, 2  ;;  %v1639_v41 = vrot.slane %v6625_v36, 3 }
 0x179   :  { %11284 = vst [vmem:[#allocation42_spill] sm:$0xff] %v6599_v61  ;;  %v1640_v47 = vrot.slane %v6625_v36, 4  ;;  %v1641_v16 = vrot.slane %v6625_v36, 5  ;;  %v1642_v15 = vrot.slane %v6625_v36, 6  ;;  %v1643_v1 = vrot.slane %v6625_v36, 7 }
 0x17a   :  { %11286 = vst [vmem:[#allocation18_spill] sm:$0xff] %v6602_v53  ;;  %v1649_v0 = vrot.slane %v6644_v20, 1  ;;  %v1650_v5 = vrot.slane %v6644_v20, 2  ;;  %v1651_v46 = vrot.slane %v6644_v20, 3  ;;  %v1652_v33 = vrot.slane %v6644_v20, 4 }
 0x17b   :  { %11288 = vst [vmem:[#allocation13_spill] sm:$0xff] %v6605_v44  ;;  %v1653_v34 = vrot.slane %v6644_v20, 5  ;;  %v1654_v39 = vrot.slane %v6644_v20, 6  ;;  %v1655_v22 = vrot.slane %v6644_v20, 7  ;;  %v1656_v63 = vrot.slane %v6657_v31, 1 }
 0x17c   :  { %11290 = vst [vmem:[#allocation14_spill] sm:$0xff] %v6608_v3  ;;  %v1657_v38 = vrot.slane %v6657_v31, 2  ;;  %v1658_v6 = vrot.slane %v6657_v31, 3  ;;  %v1659_v35 = vrot.slane %v6657_v31, 4  ;;  %v1660_v7 = vrot.slane %v6657_v31, 5 }
 0x17d   :  { %11292 = vst [vmem:[#allocation37_spill] sm:$0xff] %v6611_v37  ;;  %v1661_v62 = vrot.slane %v6657_v31, 6  ;;  %v1662_v55 = vrot.slane %v6657_v31, 7  ;;  %v6680_v52 = vperm.slane %v1630_v29, 0  ;;  %v6682_v28 = vperm.slane %v1631_v58, 0 }
 0x17e   :  { %11294 = vst [vmem:[#allocation60_spill] sm:$0xff] %v6614_v56  ;;  %v10426_v32 = vperm.slane %v6625_v36, 0  ;;  %v6695_v56 = vperm.slane %v1637_v30, 0  ;;  %v6697_v37 = vperm.slane %v1638_v24, 0  ;;  %v6699_v29 = vperm.slane %v1639_v41, 0 }
 0x17f   :  { %11296 = vst [vmem:[#allocation20_spill] sm:$0xff] %v6617_v10  ;;  %v6692_v10 = vperm.slane %v1636_v45, 0  ;;  %v6701_v58 = vperm.slane %v1640_v47, 0  ;;  %v6716_v30 = vmul.f32 %v6678_v42, %v6680_v52  ;;  %v6720_v24 = vmul.f32 %v6678_v42, %v6682_v28 }
 0x180   :  { %11298 = vst [vmem:[#allocation21_spill] sm:$0xff] %v6620_v25  ;;  %v6690_v25 = vperm.slane %v1635_v11, 0  ;;  %v11321_v11 = vperm.slane %v6596_v43, 0  ;;  %v6749_v3 = vmul.f32 %v6678_v42, %v6695_v56  ;;  %v6753_v44 = vmul.f32 %v6678_v42, %v6697_v37 }
 0x181   :  { %11299 = vst [vmem:[#allocation31_spill] sm:$0xff] %v6625_v36  ;;  %v6757_v53 = vmul.f32 %v6678_v42, %v6699_v29  ;;  %v6761_v61 = vmul.f32 %v6678_v42, %v6701_v58  ;;  %v6781_v60 = vperm.slane %v1649_v0, 0  ;;  %v10441_v26 = vperm.slane %v6657_v31, 0 }
 0x182   :  { %11301 = vst [vmem:[#allocation33_spill] sm:$0xff] %v6628_v57  ;;  %v6688_v57 = vperm.slane %v1634_v27, 0  ;;  %v6707_v27 = vperm.slane %v1643_v1, 0  ;;  %v6712_v45 = vmul.f32 %v6678_v42, %v11321_v11  ;;  %v6740_v1 = vmul.f32 %v6678_v42, %v6692_v10 }
 0x183   :  { %11303 = vst [vmem:[#allocation47_spill] sm:$0xff] %v6631_v18  ;;  %v6686_v18 = vperm.slane %v1633_v21, 0  ;;  %v6705_v21 = vperm.slane %v1642_v15, 0  ;;  %v6736_v15 = vmul.f32 %v6678_v42, %v6690_v25  ;;  %v6745_v11 = vmul.f32 %v6678_v42, %v10426_v32 }
 0x184   :  { %11305 = vst [vmem:[#allocation40_spill] sm:$0xff] %v6634_v13  ;;  %v6684_v13 = vperm.slane %v1632_v9, 0  ;;  %v6703_v9 = vperm.slane %v1641_v16, 0  ;;  %v6732_v16 = vmul.f32 %v6678_v42, %v6688_v57  ;;  %v6773_v51 = vmul.f32 %v6678_v42, %v6707_v27 }
 0x185   :  { %11306 = vst [vmem:[#allocation27_spill] sm:$0xff] %v6657_v31  ;;  %v6728_v47 = vmul.f32 %v6678_v42, %v6686_v18  ;;  %v6769_v14 = vmul.f32 %v6678_v42, %v6705_v21  ;;  %v6798_v36 = vperm.slane %v1657_v38, 0  ;;  %v6800_v0 = vperm.slane %v1658_v6, 0 }
 0x186   :  { %11307 = vst [vmem:[#allocation23_spill] sm:$0xff] %v6680_v52  ;;  %v6724_v41 = vmul.f32 %v6678_v42, %v6684_v13  ;;  %v6765_v32 = vmul.f32 %v6678_v42, %v6703_v9 }
 0x187   :  { %11308 = vst [vmem:[#allocation35_spill] sm:$0xff] %v6682_v28 }
 0x188   :  { %11309 = vst [vmem:[#allocation44_spill] sm:$0xff] %v6684_v13 }
 0x189   :  { %11310 = vst [vmem:[#allocation4_spill] sm:$0xff] %v6686_v18 }
 0x18a   :  { %11311 = vst [vmem:[#allocation32_spill] sm:$0xff] %v6688_v57  ;;  %v1754_v57 = vmul.f32 %v6779_v8, %v6800_v0 }
 0x18b   :  { %11312 = vst [vmem:[#allocation39_spill] sm:$0xff] %v6690_v25  ;;  %v1753_v25 = vmul.f32 %v6779_v8, %v6798_v36 }
 0x18c   :  { %11313 = vst [vmem:[#allocation15_spill] sm:$0xff] %v6692_v10 }
 0x18d   :  { %11314 = vst [vmem:[#allocation41_spill] sm:$0xff] %v6695_v56  ;;  %v6796_v56 = vperm.slane %v1656_v63, 0  ;;  %v1744_v63 = vmul.f32 %v6779_v8, %v6781_v60 }
 0x18e   :  { %11315 = vst [vmem:[#allocation58_spill] sm:$0xff] %v6697_v37  ;;  %v6791_v37 = vperm.slane %v1654_v39, 0  ;;  %v11329_v39 = vperm.slane %v6644_v20, 0 }
 0x18f   :  { %11316 = vst [vmem:[#allocation17_spill] sm:$0xff] %v6699_v29  ;;  %v6787_v29 = vperm.slane %v1652_v33, 0  ;;  %v6806_v33 = vperm.slane %v1661_v62, 0  ;;  %v1752_v10 = vmul.f32 %v6779_v8, %v6796_v56  ;;  %v1760_v43 = vsub.f32 %v6716_v30, %v1744_v63 }
 0x190   :  { %11317 = vst [vmem:[#allocation29_spill] sm:$0xff] %v6701_v58  ;;  %v6783_v58 = vperm.slane %v1650_v5, 0  ;;  %v6802_v5 = vperm.slane %v1659_v35, 0  ;;  %v1749_v62 = vmul.f32 %v6779_v8, %v6791_v37  ;;  %v1770_v30 = vsub.f32 %v6757_v53, %v1754_v57 }
 0x191   :  { %11318 = vst [vmem:[#allocation45_spill] sm:$0xff] %v6703_v9  ;;  %v6785_v9 = vperm.slane %v1651_v46, 0  ;;  %v6804_v46 = vperm.slane %v1660_v7, 0  ;;  %v1747_v35 = vmul.f32 %v6779_v8, %v6787_v29  ;;  %v1757_v28 = vmul.f32 %v6779_v8, %v6806_v33 }
 0x192   :  { %11319 = vst [vmem:[#allocation7_spill] sm:$0xff] %v6705_v21  ;;  %v6789_v21 = vperm.slane %v1653_v34, 0  ;;  %v6808_v34 = vperm.slane %v1662_v55, 0  ;;  %v1745_v38 = vmul.f32 %v6779_v8, %v6783_v58  ;;  %v1755_v18 = vmul.f32 %v6779_v8, %v6802_v5 }
 0x193   :  { %11320 = vst [vmem:[#allocation9_spill] sm:$0xff] %v6707_v27  ;;  %v6793_v27 = vperm.slane %v1655_v22, 0  ;;  %v1743_v22 = vmul.f32 %v6779_v8, %v11329_v39  ;;  %v1746_v6 = vmul.f32 %v6779_v8, %v6785_v9  ;;  %v1751_v39 = vmul.f32 %v6779_v8, %v10441_v26 }
 0x194   :  { %11322 = vst [vmem:[#allocation48_spill] sm:$0xff] %v6779_v8  ;;  %v1748_v7 = vmul.f32 %v6779_v8, %v6789_v21  ;;  %v1756_v13 = vmul.f32 %v6779_v8, %v6804_v46  ;;  %v1758_v26 = vmul.f32 %v6779_v8, %v6808_v34  ;;  %v1797_v57 = vmul.f32 %v6678_v42, %v6791_v37 }
 0x195   :  { %11323 = vst [vmem:[#allocation34_spill] sm:$0xff] %v6796_v56  ;;  %v1750_v55 = vmul.f32 %v6779_v8, %v6793_v27  ;;  %v1759_v52 = vsub.f32 %v6712_v45, %v1743_v22  ;;  %v1763_v56 = vsub.f32 %v6728_v47, %v1747_v35  ;;  %v1768_v8 = vsub.f32 %v6749_v3, %v1752_v10  ;;  %v11351_v35 = vld [vmem:[#allocation35_spill] sm:$0xff] }
 0x196   :  { %11324 = vst [vmem:[#allocation54_spill] sm:$0xff] %v6798_v36  ;;  %v1761_v36 = vsub.f32 %v6720_v24, %v1745_v38  ;;  %v1769_v45 = vsub.f32 %v6753_v44, %v1753_v25  ;;  %v1771_v24 = vsub.f32 %v6761_v61, %v1755_v18  ;;  %v1773_v47 = vsub.f32 %v6769_v14, %v1757_v28  ;;  %v11350_v38 = vld [vmem:[#allocation23_spill] sm:$0xff] }
 0x197   :  { %11325 = vst [vmem:[#allocation50_spill] sm:$0xff] %v6800_v0  ;;  %v1762_v0 = vsub.f32 %v6724_v41, %v1746_v6  ;;  %v1766_v31 = vsub.f32 %v6740_v1, %v1750_v55  ;;  %v1772_v41 = vsub.f32 %v6765_v32, %v1756_v13  ;;  %v6864_v1 = vadd.f32 %v1760_v43, %v6466_v17  ;;  %v11339_v13 = vld [vmem:[#allocation27_spill] sm:$0xff] }
 0x198   :  { %11326 = vst [vmem:[#allocation59_spill] sm:$0xff] %v6802_v5  ;;  %v1764_v5 = vsub.f32 %v6732_v16, %v1748_v7  ;;  %v1774_v16 = vsub.f32 %v6773_v51, %v1758_v26  ;;  %v6867_v3 = vadd.f32 %v1761_v36, %v6469_v2  ;;  %v6873_v61 = vadd.f32 %v1763_v56, %v6475_v49 }
 0x199   :  { %11327 = vst [vmem:[#allocation38_spill] sm:$0xff] %v6804_v46  ;;  %v1765_v46 = vsub.f32 %v6736_v15, %v1749_v62  ;;  %v6861_v15 = vadd.f32 %v1759_v52, %v6463_v19  ;;  %v6870_v44 = vadd.f32 %v1762_v0, %v6472_v4  ;;  %v6882_v19 = vadd.f32 %v1766_v31, %v6484_v40  ;;  %v11334_v40 = vld [vmem:[#allocation25_spill] sm:$0xff]  ;;  %v11352_v62 = vld [vmem:[#allocation44_spill] sm:$0xff] }
 0x19a   :  { %11328 = vst [vmem:[#allocation19_spill] sm:$0xff] %v6806_v33  ;;  %v1767_v33 = vsub.f32 %v6745_v11, %v1751_v39  ;;  %v6876_v53 = vadd.f32 %v1764_v5, %v6478_v12  ;;  %v6888_v2 = vadd.f32 %v1768_v8, %v6490_v59  ;;  %v6891_v4 = vadd.f32 %v1769_v45, %v6493_v50  ;;  %v11330_v12 = vld [vmem:[#allocation22_spill] sm:$0xff]  ;;  %v11353_v39 = vld [vmem:[#allocation4_spill] sm:$0xff] }
 0x19b   :  { %v6879_v26 = vadd.f32 %v1765_v46, %v6481_v54  ;;  %v6894_v49 = vadd.f32 %v1770_v30, %v6496_v23  ;;  %v6897_v51 = vadd.f32 %v1771_v24, %v11330_v12  ;;  %v11332_v54 = vld [vmem:[#allocation24_spill] sm:$0xff]  ;;  %v6903_v43 = vadd.f32 %v1773_v47, %v11334_v40  ;;  %v11347_v46 = vld [vmem:[#allocation57_spill] sm:$0xff] }
 0x19c   :  { %v6885_v17 = vadd.f32 %v1767_v33, %v6487_v48  ;;  %v6900_v14 = vadd.f32 %v1772_v41, %v11332_v54  ;;  %v11336_v48 = vld [vmem:[#allocation26_spill] sm:$0xff]  ;;  %v11338_v59 = vperm.slane %v6644_v20, 0  ;;  %v1792_v23 = vmul.f32 %v6678_v42, %v6781_v60  ;;  %v11349_v22 = vld [vmem:[#allocation48_spill] sm:$0xff]  ;;  %v11356_v41 = vld [vmem:[#allocation15_spill] sm:$0xff] }
 0x19d   :  { %11331 = vst [vmem:[#allocation49_spill] sm:$0xff] %v6897_v51  ;;  %v6906_v56 = vadd.f32 %v1774_v16, %v11336_v48  ;;  %v1793_v8 = vmul.f32 %v6678_v42, %v6783_v58  ;;  %v1794_v10 = vmul.f32 %v6678_v42, %v6785_v9  ;;  %v1795_v25 = vmul.f32 %v6678_v42, %v6787_v29  ;;  %v11341_v31 = vld [vmem:[#allocation34_spill] sm:$0xff]  ;;  %v11354_v30 = vld [vmem:[#allocation32_spill] sm:$0xff]  ;;  %v11357_v16 = vld [vmem:[#allocation31_spill] sm:$0xff] }
 0x19e   :  { %11333 = vst [vmem:[#allocation51_spill] sm:$0xff] %v6900_v14  ;;  %v1791_v50 = vmul.f32 %v6678_v42, %v11338_v59  ;;  %v1796_v36 = vmul.f32 %v6678_v42, %v6789_v21  ;;  %v1798_v18 = vmul.f32 %v6678_v42, %v6793_v27  ;;  %v11340_v60 = vperm.slane %v11339_v13, 0  ;;  %v11342_v52 = vld [vmem:[#allocation54_spill] sm:$0xff]  ;;  %v11359_v40 = vld [vmem:[#allocation41_spill] sm:$0xff] }
 0x19f   :  { %11335 = vst [vmem:[#allocation52_spill] sm:$0xff] %v6903_v43  ;;  %v1800_v32 = vmul.f32 %v6678_v42, %v11341_v31  ;;  %v1801_v28 = vmul.f32 %v6678_v42, %v11342_v52  ;;  %v11343_v29 = vld [vmem:[#allocation50_spill] sm:$0xff]  ;;  %v11344_v9 = vld [vmem:[#allocation59_spill] sm:$0xff]  ;;  %v1806_v5 = vmul.f32 %v6678_v42, %v6808_v34  ;;  %v11348_v33 = vperm.slane %v11347_v46, 0  ;;  %v11362_v52 = vld [vmem:[#allocation29_spill] sm:$0xff] }
 0x1a0   :  { %11337 = vst [vmem:[#allocation53_spill] sm:$0xff] %v6906_v56  ;;  %v1799_v20 = vmul.f32 %v6678_v42, %v11340_v60  ;;  %v1802_v58 = vmul.f32 %v6678_v42, %v11343_v29  ;;  %v1803_v21 = vmul.f32 %v6678_v42, %v11344_v9  ;;  %v11345_v37 = vld [vmem:[#allocation38_spill] sm:$0xff]  ;;  %v1808_v6 = vmul.f32 %v11349_v22, %v11350_v38  ;;  %v11361_v60 = vld [vmem:[#allocation17_spill] sm:$0xff] }
 0x1a1   :  { %v1804_v11 = vmul.f32 %v6678_v42, %v11345_v37  ;;  %v11346_v27 = vld [vmem:[#allocation19_spill] sm:$0xff]  ;;  %v1807_v63 = vmul.f32 %v11349_v22, %v11348_v33  ;;  %v1809_v7 = vmul.f32 %v11349_v22, %v11351_v35  ;;  %v1810_v55 = vmul.f32 %v11349_v22, %v11352_v62  ;;  %v11360_v59 = vld [vmem:[#allocation58_spill] sm:$0xff]  ;;  %v11363_v9 = vld [vmem:[#allocation45_spill] sm:$0xff] }
 0x1a2   :  { %v1805_v0 = vmul.f32 %v6678_v42, %v11346_v27  ;;  %v1811_v45 = vmul.f32 %v11349_v22, %v11353_v39  ;;  %v1812_v24 = vmul.f32 %v11349_v22, %v11354_v30  ;;  %v11355_v42 = vld [vmem:[#allocation39_spill] sm:$0xff]  ;;  %v1814_v47 = vmul.f32 %v11349_v22, %v11356_v41  ;;  %v11365_v33 = vld [vmem:[#allocation9_spill] sm:$0xff] }
 0x1a3   :  { %v1813_v34 = vmul.f32 %v11349_v22, %v11355_v42  ;;  %v11358_v12 = vperm.slane %v11357_v16, 0  ;;  %v1816_v48 = vmul.f32 %v11349_v22, %v11359_v40  ;;  %v1817_v13 = vmul.f32 %v11349_v22, %v11360_v59  ;;  %v11364_v27 = vld [vmem:[#allocation7_spill] sm:$0xff] }
 0x1a4   :  { %v1818_v31 = vmul.f32 %v11349_v22, %v11361_v60  ;;  %v1819_v29 = vmul.f32 %v11349_v22, %v11362_v52  ;;  %v1820_v37 = vmul.f32 %v11349_v22, %v11363_v9  ;;  %v1821_v46 = vmul.f32 %v11349_v22, %v11364_v27  ;;  %v11366_v27 = vld [vmem:[#allocation28_spill] sm:$0xff] }
 0x1a5   :  { %v1815_v54 = vmul.f32 %v11349_v22, %v11358_v12  ;;  %v1822_v38 = vmul.f32 %v11349_v22, %v11365_v33  ;;  %v1823_v35 = vadd.f32 %v1807_v63, %v1791_v50  ;;  %v1824_v62 = vadd.f32 %v1808_v6, %v1792_v23  ;;  %v11368_v22 = vld [vmem:[#allocation30_spill] sm:$0xff]  ;;  %v11370_v23 = vld [vmem:[#allocation16_spill] sm:$0xff]  ;;  %v11385_v63 = vld [vmem:[#allocation37_spill] sm:$0xff] }
 0x1a6   :  { %v1825_v39 = vadd.f32 %v1809_v7, %v1793_v8  ;;  %v1826_v30 = vadd.f32 %v1810_v55, %v1794_v10  ;;  %v1827_v42 = vadd.f32 %v1811_v45, %v1795_v25  ;;  %v1828_v41 = vadd.f32 %v1812_v24, %v1796_v36  ;;  %v11372_v10 = vld [vmem:[#allocation11_spill] sm:$0xff]  ;;  %v11374_v36 = vld [vmem:[#allocation12_spill] sm:$0xff] }
 0x1a7   :  { %v1829_v16 = vadd.f32 %v1813_v34, %v1797_v57  ;;  %v1830_v12 = vadd.f32 %v1814_v47, %v1798_v18  ;;  %v1831_v40 = vadd.f32 %v1815_v54, %v1799_v20  ;;  %v1832_v59 = vadd.f32 %v1816_v48, %v1800_v32  ;;  %v6994_v18 = vld [vmem:[%s10226_s2 + $0x80] sm:$0xff]  ;;  %v11387_v7 = vld [vmem:[#allocation60_spill] sm:$0xff]  ;;  %v11391_v34 = vld [vmem:[#allocation21_spill] sm:$0xff] }
 0x1a8   :  { %v1833_v60 = vadd.f32 %v1817_v13, %v1801_v28  ;;  %v1834_v52 = vadd.f32 %v1818_v31, %v1802_v58  ;;  %v1835_v56 = vadd.f32 %v1819_v29, %v1803_v21  ;;  %v1836_v9 = vadd.f32 %v1820_v37, %v1804_v11  ;;  %11376 = vst [vmem:[#allocation43_spill] sm:$0xff] %v6994_v18  ;;  %v11377_v20 = vld [vmem:[#allocation42_spill] sm:$0xff]  ;;  %v11381_v21 = vld [vmem:[#allocation13_spill] sm:$0xff]  ;;  %v11389_v45 = vld [vmem:[#allocation20_spill] sm:$0xff] }
 0x1a9   :  { %v1837_v43 = vadd.f32 %v1821_v46, %v1805_v0  ;;  %v1838_v14 = vadd.f32 %v1822_v38, %v1806_v5  ;;  %v6977_v51 = vadd.f32 %v1823_v35, %v11366_v27  ;;  %v6980_v50 = vadd.f32 %v1824_v62, %v11368_v22  ;;  %v11379_v28 = vld [vmem:[#allocation18_spill] sm:$0xff]  ;;  %v7023_v54 = vld [vmem:[%s10226_s2 + $0x88] sm:$0xff]  ;;  %v11394_v48 = vld [vmem:[#allocation33_spill] sm:$0xff] }
 0x1aa   :  { %v6983_v8 = vadd.f32 %v1825_v39, %v11370_v23  ;;  %v6986_v25 = vadd.f32 %v1826_v30, %v11372_v10  ;;  %v6989_v57 = vadd.f32 %v1827_v42, %v11374_v36  ;;  %v6997_v32 = vadd.f32 %v1828_v41, %v11377_v20  ;;  %v11383_v0 = vld [vmem:[#allocation14_spill] sm:$0xff]  ;;  %11393 = vst [vmem:[#allocation25_spill] sm:$0xff] %v7023_v54  ;;  %v11396_v31 = vld [vmem:[#allocation47_spill] sm:$0xff]  ;;  %v11398_v37 = vld [vmem:[#allocation40_spill] sm:$0xff] }
 0x1ab   :  { %11367 = vst [vmem:[#allocation55_spill] sm:$0xff] %v6977_v51  ;;  %v7000_v58 = vadd.f32 %v1829_v16, %v11379_v28  ;;  %v7003_v11 = vadd.f32 %v1830_v12, %v11381_v21  ;;  %v7006_v5 = vadd.f32 %v1831_v40, %v11383_v0  ;;  %v7009_v6 = vadd.f32 %v1832_v59, %v11385_v63  ;;  %v7042_v39 = vld [vmem:[%s10227_s3 + $0x80] sm:$0xff]  ;;  %v7055_v59 = vld [vmem:[%s10227_s3 + $0x88] sm:$0xff] }
 0x1ac   :  { %11369 = vst [vmem:[#allocation56_spill] sm:$0xff] %v6980_v50  ;;  %v7012_v55 = vadd.f32 %v1833_v60, %v11387_v7  ;;  %v7015_v24 = vadd.f32 %v1834_v52, %v11389_v45  ;;  %v7018_v47 = vadd.f32 %v1835_v56, %v11391_v34  ;;  %v7026_v13 = vadd.f32 %v1836_v9, %v11394_v48  ;;  %v7076_v48 = vld [vmem:[%s10228_s0 + $0x10] sm:$0x3] }
 0x1ad   :  { %11371 = vst [vmem:[#allocation3_spill] sm:$0xff] %v6983_v8  ;;  %v7029_v29 = vadd.f32 %v1837_v43, %v11396_v31  ;;  %v7032_v46 = vadd.f32 %v1838_v14, %v11398_v37  ;;  %v1864_v33 = vrot.slane %v6994_v18, 1  ;;  %v1865_v38 = vrot.slane %v6994_v18, 2  ;;  %v7177_v50 = vld [vmem:[%s10229_s1 + $0x10] sm:$0x3] }
 0x1ae   :  { %11373 = vst [vmem:[#allocation2_spill] sm:$0xff] %v6986_v25  ;;  %v1866_v56 = vrot.slane %v6994_v18, 3  ;;  %v1867_v35 = vrot.slane %v6994_v18, 4  ;;  %v1868_v62 = vrot.slane %v6994_v18, 5  ;;  %v1869_v43 = vrot.slane %v6994_v18, 6 }
 0x1af   :  { %11375 = vst [vmem:[#allocation5_spill] sm:$0xff] %v6989_v57  ;;  %v1870_v14 = vrot.slane %v6994_v18, 7  ;;  %v1871_v30 = vrot.slane %v7023_v54, 1  ;;  %v1872_v42 = vrot.slane %v7023_v54, 2  ;;  %v1873_v41 = vrot.slane %v7023_v54, 3 }
 0x1b0   :  { %11378 = vst [vmem:[#allocation36_spill] sm:$0xff] %v6997_v32  ;;  %v1874_v16 = vrot.slane %v7023_v54, 4  ;;  %v1875_v12 = vrot.slane %v7023_v54, 5  ;;  %v1876_v40 = vrot.slane %v7023_v54, 6  ;;  %v1877_v60 = vrot.slane %v7023_v54, 7 }
 0x1b1   :  { %11380 = vst [vmem:[#allocation6_spill] sm:$0xff] %v7000_v58  ;;  %v1883_v52 = vrot.slane %v7042_v39, 1  ;;  %v1884_v9 = vrot.slane %v7042_v39, 2  ;;  %v1885_v27 = vrot.slane %v7042_v39, 3  ;;  %v1886_v22 = vrot.slane %v7042_v39, 4 }
 0x1b2   :  { %11382 = vst [vmem:[#allocation8_spill] sm:$0xff] %v7003_v11  ;;  %v1887_v23 = vrot.slane %v7042_v39, 5  ;;  %v1888_v10 = vrot.slane %v7042_v39, 6  ;;  %v1889_v36 = vrot.slane %v7042_v39, 7  ;;  %v1890_v20 = vrot.slane %v7055_v59, 1 }
 0x1b3   :  { %11384 = vst [vmem:[#allocation10_spill] sm:$0xff] %v7006_v5  ;;  %v1891_v28 = vrot.slane %v7055_v59, 2  ;;  %v1892_v21 = vrot.slane %v7055_v59, 3  ;;  %v1893_v0 = vrot.slane %v7055_v59, 4  ;;  %v1894_v63 = vrot.slane %v7055_v59, 5 }
 0x1b4   :  { %11386 = vst [vmem:[#allocation61_spill] sm:$0xff] %v7009_v6  ;;  %v1895_v7 = vrot.slane %v7055_v59, 6  ;;  %v1896_v45 = vrot.slane %v7055_v59, 7  ;;  %v7078_v31 = vperm.slane %v1864_v33, 0  ;;  %v7080_v37 = vperm.slane %v1865_v38, 0 }
 0x1b5   :  { %11388 = vst [vmem:[#allocation46_spill] sm:$0xff] %v7012_v55  ;;  %v10453_v34 = vperm.slane %v7023_v54, 0  ;;  %v7093_v55 = vperm.slane %v1871_v30, 0  ;;  %v7095_v6 = vperm.slane %v1872_v42, 0  ;;  %v7097_v33 = vperm.slane %v1873_v41, 0 }
 0x1b6   :  { %11390 = vst [vmem:[#allocation22_spill] sm:$0xff] %v7015_v24  ;;  %v7090_v24 = vperm.slane %v1870_v14, 0  ;;  %v7099_v38 = vperm.slane %v1874_v16, 0  ;;  %v7114_v30 = vmul.f32 %v7076_v48, %v7078_v31  ;;  %v7118_v42 = vmul.f32 %v7076_v48, %v7080_v37 }
 0x1b7   :  { %11392 = vst [vmem:[#allocation24_spill] sm:$0xff] %v7018_v47  ;;  %v7088_v47 = vperm.slane %v1869_v43, 0  ;;  %v11415_v43 = vperm.slane %v6994_v18, 0  ;;  %v7147_v5 = vmul.f32 %v7076_v48, %v7093_v55  ;;  %v7151_v11 = vmul.f32 %v7076_v48, %v7095_v6 }
 0x1b8   :  { %11395 = vst [vmem:[#allocation26_spill] sm:$0xff] %v7026_v13  ;;  %v7086_v13 = vperm.slane %v1868_v62, 0  ;;  %v7105_v62 = vperm.slane %v1877_v60, 0  ;;  %v7138_v60 = vmul.f32 %v7076_v48, %v7090_v24  ;;  %v7155_v58 = vmul.f32 %v7076_v48, %v7097_v33 }
 0x1b9   :  { %11397 = vst [vmem:[#allocation27_spill] sm:$0xff] %v7029_v29  ;;  %v7084_v29 = vperm.slane %v1867_v35, 0  ;;  %v7103_v35 = vperm.slane %v1876_v40, 0  ;;  %v7110_v14 = vmul.f32 %v7076_v48, %v11415_v43  ;;  %v7134_v40 = vmul.f32 %v7076_v48, %v7088_v47 }
 0x1ba   :  { %11399 = vst [vmem:[#allocation34_spill] sm:$0xff] %v7032_v46  ;;  %v7082_v46 = vperm.slane %v1866_v56, 0  ;;  %v7101_v56 = vperm.slane %v1875_v12, 0  ;;  %v7130_v12 = vmul.f32 %v7076_v48, %v7086_v13  ;;  %v7143_v43 = vmul.f32 %v7076_v48, %v10453_v34 }
 0x1bb   :  { %11400 = vst [vmem:[#allocation54_spill] sm:$0xff] %v7055_v59  ;;  %v7126_v16 = vmul.f32 %v7076_v48, %v7084_v29  ;;  %v7159_v32 = vmul.f32 %v7076_v48, %v7099_v38  ;;  %v7167_v57 = vmul.f32 %v7076_v48, %v7103_v35  ;;  %v7171_v25 = vmul.f32 %v7076_v48, %v7105_v62 }
 0x1bc   :  { %11401 = vst [vmem:[#allocation50_spill] sm:$0xff] %v7078_v31  ;;  %v7122_v41 = vmul.f32 %v7076_v48, %v7082_v46  ;;  %v7163_v34 = vmul.f32 %v7076_v48, %v7101_v56  ;;  %v7179_v51 = vperm.slane %v1883_v52, 0  ;;  %v10468_v8 = vperm.slane %v7055_v59, 0 }
 0x1bd   :  { %11402 = vst [vmem:[#allocation59_spill] sm:$0xff] %v7080_v37  ;;  %v7196_v54 = vperm.slane %v1891_v28, 0  ;;  %v7198_v52 = vperm.slane %v1892_v21, 0 }
 0x1be   :  { %11403 = vst [vmem:[#allocation38_spill] sm:$0xff] %v7082_v46 }
 0x1bf   :  { %11404 = vst [vmem:[#allocation19_spill] sm:$0xff] %v7084_v29 }
 0x1c0   :  { %11405 = vst [vmem:[#allocation57_spill] sm:$0xff] %v7086_v13  ;;  %v1988_v13 = vmul.f32 %v7177_v50, %v7198_v52 }
 0x1c1   :  { %11406 = vst [vmem:[#allocation48_spill] sm:$0xff] %v7088_v47  ;;  %v1987_v47 = vmul.f32 %v7177_v50, %v7196_v54 }
 0x1c2   :  { %11407 = vst [vmem:[#allocation23_spill] sm:$0xff] %v7090_v24 }
 0x1c3   :  { %11408 = vst [vmem:[#allocation35_spill] sm:$0xff] %v7093_v55  ;;  %v7194_v55 = vperm.slane %v1890_v20, 0  ;;  %v1978_v20 = vmul.f32 %v7177_v50, %v7179_v51 }
 0x1c4   :  { %11409 = vst [vmem:[#allocation44_spill] sm:$0xff] %v7095_v6  ;;  %v7189_v6 = vperm.slane %v1888_v10, 0  ;;  %v11423_v10 = vperm.slane %v7042_v39, 0 }
 0x1c5   :  { %11410 = vst [vmem:[#allocation4_spill] sm:$0xff] %v7097_v33  ;;  %v7185_v33 = vperm.slane %v1886_v22, 0  ;;  %v7204_v22 = vperm.slane %v1895_v7, 0  ;;  %v1986_v24 = vmul.f32 %v7177_v50, %v7194_v55  ;;  %v1994_v18 = vsub.f32 %v7114_v30, %v1978_v20 }
 0x1c6   :  { %11411 = vst [vmem:[#allocation32_spill] sm:$0xff] %v7099_v38  ;;  %v7181_v38 = vperm.slane %v1884_v9, 0  ;;  %v7200_v9 = vperm.slane %v1893_v0, 0  ;;  %v1983_v7 = vmul.f32 %v7177_v50, %v7189_v6  ;;  %v2004_v30 = vsub.f32 %v7155_v58, %v1988_v13 }
 0x1c7   :  { %11412 = vst [vmem:[#allocation39_spill] sm:$0xff] %v7101_v56  ;;  %v7183_v56 = vperm.slane %v1885_v27, 0  ;;  %v7202_v27 = vperm.slane %v1894_v63, 0  ;;  %v1981_v0 = vmul.f32 %v7177_v50, %v7185_v33  ;;  %v1991_v37 = vmul.f32 %v7177_v50, %v7204_v22 }
 0x1c8   :  { %11413 = vst [vmem:[#allocation15_spill] sm:$0xff] %v7103_v35  ;;  %v7187_v35 = vperm.slane %v1887_v23, 0  ;;  %v7206_v23 = vperm.slane %v1896_v45, 0  ;;  %v1979_v28 = vmul.f32 %v7177_v50, %v7181_v38  ;;  %v1989_v29 = vmul.f32 %v7177_v50, %v7200_v9 }
 0x1c9   :  { %11414 = vst [vmem:[#allocation31_spill] sm:$0xff] %v7105_v62  ;;  %v7191_v62 = vperm.slane %v1889_v36, 0  ;;  %v1977_v36 = vmul.f32 %v7177_v50, %v11423_v10  ;;  %v1980_v21 = vmul.f32 %v7177_v50, %v7183_v56  ;;  %v1985_v10 = vmul.f32 %v7177_v50, %v10468_v8 }
 0x1ca   :  { %11416 = vst [vmem:[#allocation41_spill] sm:$0xff] %v7177_v50  ;;  %v1982_v63 = vmul.f32 %v7177_v50, %v7187_v35  ;;  %v1990_v46 = vmul.f32 %v7177_v50, %v7202_v27  ;;  %v1992_v8 = vmul.f32 %v7177_v50, %v7206_v23  ;;  %v2031_v13 = vmul.f32 %v7076_v48, %v7189_v6 }
 0x1cb   :  { %11417 = vst [vmem:[#allocation58_spill] sm:$0xff] %v7194_v55  ;;  %v1984_v45 = vmul.f32 %v7177_v50, %v7191_v62  ;;  %v1993_v31 = vsub.f32 %v7110_v14, %v1977_v36  ;;  %v1997_v55 = vsub.f32 %v7126_v16, %v1981_v0  ;;  %v2002_v50 = vsub.f32 %v7147_v5, %v1986_v24  ;;  %v11445_v0 = vld [vmem:[#allocation59_spill] sm:$0xff] }
 0x1cc   :  { %11418 = vst [vmem:[#allocation17_spill] sm:$0xff] %v7196_v54  ;;  %v1995_v54 = vsub.f32 %v7118_v42, %v1979_v28  ;;  %v2003_v14 = vsub.f32 %v7151_v11, %v1987_v47  ;;  %v2005_v42 = vsub.f32 %v7159_v32, %v1989_v29  ;;  %v2007_v16 = vsub.f32 %v7167_v57, %v1991_v37  ;;  %v11444_v28 = vld [vmem:[#allocation50_spill] sm:$0xff] }
 0x1cd   :  { %11419 = vst [vmem:[#allocation29_spill] sm:$0xff] %v7198_v52  ;;  %v1996_v52 = vsub.f32 %v7122_v41, %v1980_v21  ;;  %v2000_v59 = vsub.f32 %v7138_v60, %v1984_v45  ;;  %v2006_v41 = vsub.f32 %v7163_v34, %v1990_v46  ;;  %v7262_v60 = vadd.f32 %v1994_v18, %v6864_v1  ;;  %v11433_v46 = vld [vmem:[#allocation54_spill] sm:$0xff] }
 0x1ce   :  { %11420 = vst [vmem:[#allocation45_spill] sm:$0xff] %v7200_v9  ;;  %v1998_v9 = vsub.f32 %v7130_v12, %v1982_v63  ;;  %v2008_v12 = vsub.f32 %v7171_v25, %v1992_v8  ;;  %v7265_v5 = vadd.f32 %v1995_v54, %v6867_v3  ;;  %v7271_v32 = vadd.f32 %v1997_v55, %v6873_v61 }
 0x1cf   :  { %11421 = vst [vmem:[#allocation7_spill] sm:$0xff] %v7202_v27  ;;  %v1999_v27 = vsub.f32 %v7134_v40, %v1983_v7  ;;  %v7259_v40 = vadd.f32 %v1993_v31, %v6861_v15  ;;  %v7268_v11 = vadd.f32 %v1996_v52, %v6870_v44  ;;  %v7280_v15 = vadd.f32 %v2000_v59, %v6882_v19  ;;  %v11428_v19 = vld [vmem:[#allocation52_spill] sm:$0xff]  ;;  %v11446_v7 = vld [vmem:[#allocation38_spill] sm:$0xff] }
 0x1d0   :  { %11422 = vst [vmem:[#allocation9_spill] sm:$0xff] %v7204_v22  ;;  %v2001_v22 = vsub.f32 %v7143_v43, %v1985_v10  ;;  %v7274_v58 = vadd.f32 %v1998_v9, %v6876_v53  ;;  %v7286_v3 = vadd.f32 %v2002_v50, %v6888_v2  ;;  %v7289_v44 = vadd.f32 %v2003_v14, %v6891_v4  ;;  %v11424_v53 = vld [vmem:[#allocation49_spill] sm:$0xff]  ;;  %v11447_v10 = vld [vmem:[#allocation19_spill] sm:$0xff] }
 0x1d1   :  { %v7277_v8 = vadd.f32 %v1999_v27, %v6879_v26  ;;  %v7292_v61 = vadd.f32 %v2004_v30, %v6894_v49  ;;  %v7295_v25 = vadd.f32 %v2005_v42, %v11424_v53  ;;  %v11426_v26 = vld [vmem:[#allocation51_spill] sm:$0xff]  ;;  %v7301_v18 = vadd.f32 %v2007_v16, %v11428_v19  ;;  %v11443_v36 = vld [vmem:[#allocation41_spill] sm:$0xff] }
 0x1d2   :  { %v7283_v1 = vadd.f32 %v2001_v22, %v6885_v17  ;;  %v7298_v57 = vadd.f32 %v2006_v41, %v11426_v26  ;;  %v11430_v17 = vld [vmem:[#allocation53_spill] sm:$0xff]  ;;  %v11432_v2 = vperm.slane %v7042_v39, 0  ;;  %v2026_v49 = vmul.f32 %v7076_v48, %v7179_v51  ;;  %v11435_v59 = vld [vmem:[#allocation58_spill] sm:$0xff]  ;;  %v11441_v27 = vld [vmem:[#allocation43_spill] sm:$0xff] }
 0x1d3   :  { %11425 = vst [vmem:[#allocation28_spill] sm:$0xff] %v7295_v25  ;;  %v7304_v55 = vadd.f32 %v2008_v12, %v11430_v17  ;;  %v2027_v50 = vmul.f32 %v7076_v48, %v7181_v38  ;;  %v2028_v24 = vmul.f32 %v7076_v48, %v7183_v56  ;;  %v2029_v47 = vmul.f32 %v7076_v48, %v7185_v33  ;;  %v11436_v31 = vld [vmem:[#allocation17_spill] sm:$0xff]  ;;  %v11450_v41 = vld [vmem:[#allocation23_spill] sm:$0xff] }
 0x1d4   :  { %11427 = vst [vmem:[#allocation30_spill] sm:$0xff] %v7298_v57  ;;  %v2025_v4 = vmul.f32 %v7076_v48, %v11432_v2  ;;  %v2030_v54 = vmul.f32 %v7076_v48, %v7187_v35  ;;  %v2032_v29 = vmul.f32 %v7076_v48, %v7191_v62  ;;  %v11434_v51 = vperm.slane %v11433_v46, 0  ;;  %v11437_v33 = vld [vmem:[#allocation29_spill] sm:$0xff]  ;;  %v11453_v19 = vld [vmem:[#allocation35_spill] sm:$0xff]  ;;  %v11454_v2 = vld [vmem:[#allocation44_spill] sm:$0xff] }
 0x1d5   :  { %11429 = vst [vmem:[#allocation16_spill] sm:$0xff] %v7301_v18  ;;  %v2034_v34 = vmul.f32 %v7076_v48, %v11435_v59  ;;  %v2035_v37 = vmul.f32 %v7076_v48, %v11436_v31  ;;  %v2036_v38 = vmul.f32 %v7076_v48, %v11437_v33  ;;  %v11438_v56 = vld [vmem:[#allocation45_spill] sm:$0xff]  ;;  %v2040_v9 = vmul.f32 %v7076_v48, %v7206_v23  ;;  %v11456_v31 = vld [vmem:[#allocation32_spill] sm:$0xff] }
 0x1d6   :  { %11431 = vst [vmem:[#allocation11_spill] sm:$0xff] %v7304_v55  ;;  %v2033_v39 = vmul.f32 %v7076_v48, %v11434_v51  ;;  %v2037_v35 = vmul.f32 %v7076_v48, %v11438_v56  ;;  %v11439_v6 = vld [vmem:[#allocation7_spill] sm:$0xff]  ;;  %v11442_v22 = vperm.slane %v11441_v27, 0  ;;  %v2042_v21 = vmul.f32 %v11443_v36, %v11444_v28  ;;  %v11448_v30 = vld [vmem:[#allocation57_spill] sm:$0xff]  ;;  %v11455_v51 = vld [vmem:[#allocation4_spill] sm:$0xff] }
 0x1d7   :  { %v2038_v43 = vmul.f32 %v7076_v48, %v11439_v6  ;;  %v11440_v62 = vld [vmem:[#allocation9_spill] sm:$0xff]  ;;  %v2043_v63 = vmul.f32 %v11443_v36, %v11445_v0  ;;  %v2044_v45 = vmul.f32 %v11443_v36, %v11446_v7  ;;  %v2045_v14 = vmul.f32 %v11443_v36, %v11447_v10  ;;  %v11457_v56 = vld [vmem:[#allocation39_spill] sm:$0xff] }
 0x1d8   :  { %v2039_v52 = vmul.f32 %v7076_v48, %v11440_v62  ;;  %v2041_v20 = vmul.f32 %v11443_v36, %v11442_v22  ;;  %v2046_v42 = vmul.f32 %v11443_v36, %v11448_v30  ;;  %v11449_v48 = vld [vmem:[#allocation48_spill] sm:$0xff]  ;;  %v2048_v16 = vmul.f32 %v11443_v36, %v11450_v41  ;;  %v11451_v12 = vld [vmem:[#allocation25_spill] sm:$0xff]  ;;  %v11458_v62 = vld [vmem:[#allocation15_spill] sm:$0xff] }
 0x1d9   :  { %v2047_v23 = vmul.f32 %v11443_v36, %v11449_v48  ;;  %v11452_v53 = vperm.slane %v11451_v12, 0  ;;  %v2050_v17 = vmul.f32 %v11443_v36, %v11453_v19  ;;  %v2051_v46 = vmul.f32 %v11443_v36, %v11454_v2  ;;  %v11459_v22 = vld [vmem:[#allocation31_spill] sm:$0xff] }
 0x1da   :  { %v2052_v59 = vmul.f32 %v11443_v36, %v11455_v51  ;;  %v2053_v33 = vmul.f32 %v11443_v36, %v11456_v31  ;;  %v2054_v6 = vmul.f32 %v11443_v36, %v11457_v56  ;;  %v2055_v27 = vmul.f32 %v11443_v36, %v11458_v62  ;;  %v11460_v62 = vld [vmem:[#allocation55_spill] sm:$0xff] }
 0x1db   :  { %v2049_v26 = vmul.f32 %v11443_v36, %v11452_v53  ;;  %v2056_v28 = vmul.f32 %v11443_v36, %v11459_v22  ;;  %v2057_v0 = vadd.f32 %v2041_v20, %v2025_v4  ;;  %v2058_v7 = vadd.f32 %v2042_v21, %v2026_v49  ;;  %v11462_v36 = vld [vmem:[#allocation56_spill] sm:$0xff]  ;;  %v11464_v49 = vld [vmem:[#allocation3_spill] sm:$0xff]  ;;  %v11479_v20 = vld [vmem:[#allocation61_spill] sm:$0xff] }
 0x1dc   :  { %v2059_v10 = vadd.f32 %v2043_v63, %v2027_v50  ;;  %v2060_v30 = vadd.f32 %v2044_v45, %v2028_v24  ;;  %v2061_v48 = vadd.f32 %v2045_v14, %v2029_v47  ;;  %v2062_v41 = vadd.f32 %v2046_v42, %v2030_v54  ;;  %v11466_v24 = vld [vmem:[#allocation2_spill] sm:$0xff]  ;;  %v11468_v54 = vld [vmem:[#allocation5_spill] sm:$0xff] }
 0x1dd   :  { %v2063_v12 = vadd.f32 %v2047_v23, %v2031_v13  ;;  %v2064_v53 = vadd.f32 %v2048_v16, %v2032_v29  ;;  %v2065_v19 = vadd.f32 %v2049_v26, %v2033_v39  ;;  %v2066_v2 = vadd.f32 %v2050_v17, %v2034_v34  ;;  %v7392_v29 = vld [vmem:[%s10226_s2 + $0x90] sm:$0xff]  ;;  %v11481_v63 = vld [vmem:[#allocation46_spill] sm:$0xff]  ;;  %v7421_v26 = vld [vmem:[%s10226_s2 + $0x98] sm:$0xff] }
 0x1de   :  { %v2067_v51 = vadd.f32 %v2051_v46, %v2035_v37  ;;  %v2068_v31 = vadd.f32 %v2052_v59, %v2036_v38  ;;  %v2069_v55 = vadd.f32 %v2053_v33, %v2037_v35  ;;  %v2070_v56 = vadd.f32 %v2054_v6, %v2038_v43  ;;  %11470 = vst [vmem:[#allocation37_spill] sm:$0xff] %v7392_v29  ;;  %v11471_v39 = vld [vmem:[#allocation36_spill] sm:$0xff]  ;;  %v11473_v37 = vld [vmem:[#allocation6_spill] sm:$0xff]  ;;  %v11490_v59 = vld [vmem:[#allocation27_spill] sm:$0xff] }
 0x1df   :  { %v2071_v18 = vadd.f32 %v2055_v27, %v2039_v52  ;;  %v2072_v57 = vadd.f32 %v2056_v28, %v2040_v9  ;;  %v7375_v25 = vadd.f32 %v2057_v0, %v11460_v62  ;;  %v7378_v4 = vadd.f32 %v2058_v7, %v11462_v36  ;;  %v11475_v35 = vld [vmem:[#allocation8_spill] sm:$0xff]  ;;  %v11477_v52 = vld [vmem:[#allocation10_spill] sm:$0xff]  ;;  %11487 = vst [vmem:[#allocation52_spill] sm:$0xff] %v7421_v26 }
 0x1e0   :  { %v7381_v50 = vadd.f32 %v2059_v10, %v11464_v49  ;;  %v7384_v47 = vadd.f32 %v2060_v30, %v11466_v24  ;;  %v7387_v13 = vadd.f32 %v2061_v48, %v11468_v54  ;;  %v7395_v34 = vadd.f32 %v2062_v41, %v11471_v39  ;;  %v11483_v14 = vld [vmem:[#allocation22_spill] sm:$0xff]  ;;  %v11485_v23 = vld [vmem:[#allocation24_spill] sm:$0xff] }
 0x1e1   :  { %11461 = vst [vmem:[#allocation12_spill] sm:$0xff] %v7375_v25  ;;  %v7398_v38 = vadd.f32 %v2063_v12, %v11473_v37  ;;  %v7401_v43 = vadd.f32 %v2064_v53, %v11475_v35  ;;  %v7404_v9 = vadd.f32 %v2065_v19, %v11477_v52  ;;  %v7407_v21 = vadd.f32 %v2066_v2, %v11479_v20  ;;  %v11488_v17 = vld [vmem:[#allocation26_spill] sm:$0xff]  ;;  %v7440_v10 = vld [vmem:[%s10227_s3 + $0x90] sm:$0xff]  ;;  %v7453_v2 = vld [vmem:[%s10227_s3 + $0x98] sm:$0xff] }
 0x1e2   :  { %11463 = vst [vmem:[#allocation42_spill] sm:$0xff] %v7378_v4  ;;  %v7410_v45 = vadd.f32 %v2067_v51, %v11481_v63  ;;  %v7413_v42 = vadd.f32 %v2068_v31, %v11483_v14  ;;  %v7416_v16 = vadd.f32 %v2069_v55, %v11485_v23  ;;  %v7424_v46 = vadd.f32 %v2070_v56, %v11488_v17  ;;  %v11492_v6 = vld [vmem:[#allocation34_spill] sm:$0xff]  ;;  %v7474_v17 = vld [vmem:[%s10228_s0 + $0x12] sm:$0x3] }
 0x1e3   :  { %11465 = vst [vmem:[#allocation18_spill] sm:$0xff] %v7381_v50  ;;  %v7427_v33 = vadd.f32 %v2071_v18, %v11490_v59  ;;  %v7430_v27 = vadd.f32 %v2072_v57, %v11492_v6  ;;  %v2098_v22 = vrot.slane %v7392_v29, 1  ;;  %v2099_v28 = vrot.slane %v7392_v29, 2  ;;  %v7575_v4 = vld [vmem:[%s10229_s1 + $0x12] sm:$0x3] }
 0x1e4   :  { %11467 = vst [vmem:[#allocation13_spill] sm:$0xff] %v7384_v47  ;;  %v2100_v55 = vrot.slane %v7392_v29, 3  ;;  %v2101_v0 = vrot.slane %v7392_v29, 4  ;;  %v2102_v7 = vrot.slane %v7392_v29, 5  ;;  %v2103_v18 = vrot.slane %v7392_v29, 6 }
 0x1e5   :  { %11469 = vst [vmem:[#allocation14_spill] sm:$0xff] %v7387_v13  ;;  %v2104_v57 = vrot.slane %v7392_v29, 7  ;;  %v2105_v30 = vrot.slane %v7421_v26, 1  ;;  %v2106_v48 = vrot.slane %v7421_v26, 2  ;;  %v2107_v41 = vrot.slane %v7421_v26, 3 }
 0x1e6   :  { %11472 = vst [vmem:[#allocation60_spill] sm:$0xff] %v7395_v34  ;;  %v2108_v12 = vrot.slane %v7421_v26, 4  ;;  %v2109_v53 = vrot.slane %v7421_v26, 5  ;;  %v2110_v19 = vrot.slane %v7421_v26, 6  ;;  %v2111_v51 = vrot.slane %v7421_v26, 7 }
 0x1e7   :  { %11474 = vst [vmem:[#allocation20_spill] sm:$0xff] %v7398_v38  ;;  %v2117_v31 = vrot.slane %v7440_v10, 1  ;;  %v2118_v56 = vrot.slane %v7440_v10, 2  ;;  %v2119_v62 = vrot.slane %v7440_v10, 3  ;;  %v2120_v36 = vrot.slane %v7440_v10, 4 }
 0x1e8   :  { %11476 = vst [vmem:[#allocation21_spill] sm:$0xff] %v7401_v43  ;;  %v2121_v49 = vrot.slane %v7440_v10, 5  ;;  %v2122_v24 = vrot.slane %v7440_v10, 6  ;;  %v2123_v54 = vrot.slane %v7440_v10, 7  ;;  %v2124_v39 = vrot.slane %v7453_v2, 1 }
 0x1e9   :  { %11478 = vst [vmem:[#allocation33_spill] sm:$0xff] %v7404_v9  ;;  %v2125_v37 = vrot.slane %v7453_v2, 2  ;;  %v2126_v35 = vrot.slane %v7453_v2, 3  ;;  %v2127_v52 = vrot.slane %v7453_v2, 4  ;;  %v2128_v20 = vrot.slane %v7453_v2, 5 }
 0x1ea   :  { %11480 = vst [vmem:[#allocation47_spill] sm:$0xff] %v7407_v21  ;;  %v2129_v63 = vrot.slane %v7453_v2, 6  ;;  %v2130_v14 = vrot.slane %v7453_v2, 7  ;;  %v7476_v59 = vperm.slane %v2098_v22, 0  ;;  %v7478_v6 = vperm.slane %v2099_v28, 0 }
 0x1eb   :  { %11482 = vst [vmem:[#allocation40_spill] sm:$0xff] %v7410_v45  ;;  %v10480_v23 = vperm.slane %v7421_v26, 0  ;;  %v7491_v45 = vperm.slane %v2105_v30, 0  ;;  %v7493_v21 = vperm.slane %v2106_v48, 0  ;;  %v7495_v22 = vperm.slane %v2107_v41, 0 }
 0x1ec   :  { %11484 = vst [vmem:[#allocation49_spill] sm:$0xff] %v7413_v42  ;;  %v7488_v42 = vperm.slane %v2104_v57, 0  ;;  %v7497_v28 = vperm.slane %v2108_v12, 0  ;;  %v7512_v30 = vmul.f32 %v7474_v17, %v7476_v59  ;;  %v7516_v48 = vmul.f32 %v7474_v17, %v7478_v6 }
 0x1ed   :  { %11486 = vst [vmem:[#allocation51_spill] sm:$0xff] %v7416_v16  ;;  %v7486_v16 = vperm.slane %v2103_v18, 0  ;;  %v11509_v18 = vperm.slane %v7392_v29, 0  ;;  %v7545_v9 = vmul.f32 %v7474_v17, %v7491_v45  ;;  %v7549_v43 = vmul.f32 %v7474_v17, %v7493_v21 }
 0x1ee   :  { %11489 = vst [vmem:[#allocation53_spill] sm:$0xff] %v7424_v46  ;;  %v7484_v46 = vperm.slane %v2102_v7, 0  ;;  %v7503_v7 = vperm.slane %v2111_v51, 0  ;;  %v7536_v51 = vmul.f32 %v7474_v17, %v7488_v42  ;;  %v7553_v38 = vmul.f32 %v7474_v17, %v7495_v22 }
 0x1ef   :  { %11491 = vst [vmem:[#allocation54_spill] sm:$0xff] %v7427_v33  ;;  %v7482_v33 = vperm.slane %v2101_v0, 0  ;;  %v7501_v0 = vperm.slane %v2110_v19, 0  ;;  %v7508_v57 = vmul.f32 %v7474_v17, %v11509_v18  ;;  %v7532_v19 = vmul.f32 %v7474_v17, %v7486_v16 }
 0x1f0   :  { %11493 = vst [vmem:[#allocation58_spill] sm:$0xff] %v7430_v27  ;;  %v7480_v27 = vperm.slane %v2100_v55, 0  ;;  %v7499_v55 = vperm.slane %v2109_v53, 0  ;;  %v7528_v53 = vmul.f32 %v7474_v17, %v7484_v46  ;;  %v7541_v18 = vmul.f32 %v7474_v17, %v10480_v23 }
 0x1f1   :  { %11494 = vst [vmem:[#allocation17_spill] sm:$0xff] %v7453_v2  ;;  %v7524_v12 = vmul.f32 %v7474_v17, %v7482_v33  ;;  %v7557_v34 = vmul.f32 %v7474_v17, %v7497_v28  ;;  %v7565_v13 = vmul.f32 %v7474_v17, %v7501_v0  ;;  %v7569_v47 = vmul.f32 %v7474_v17, %v7503_v7 }
 0x1f2   :  { %11495 = vst [vmem:[#allocation29_spill] sm:$0xff] %v7476_v59  ;;  %v7520_v41 = vmul.f32 %v7474_v17, %v7480_v27  ;;  %v7561_v23 = vmul.f32 %v7474_v17, %v7499_v55  ;;  %v7577_v25 = vperm.slane %v2117_v31, 0  ;;  %v10495_v50 = vperm.slane %v7453_v2, 0 }
 0x1f3   :  { %11496 = vst [vmem:[#allocation45_spill] sm:$0xff] %v7478_v6  ;;  %v7594_v26 = vperm.slane %v2125_v37, 0  ;;  %v7596_v31 = vperm.slane %v2126_v35, 0 }
 0x1f4   :  { %11497 = vst [vmem:[#allocation7_spill] sm:$0xff] %v7480_v27 }
 0x1f5   :  { %11498 = vst [vmem:[#allocation9_spill] sm:$0xff] %v7482_v33 }
 0x1f6   :  { %11499 = vst [vmem:[#allocation43_spill] sm:$0xff] %v7484_v46  ;;  %v2222_v46 = vmul.f32 %v7575_v4, %v7596_v31 }
 0x1f7   :  { %11500 = vst [vmem:[#allocation41_spill] sm:$0xff] %v7486_v16  ;;  %v2221_v16 = vmul.f32 %v7575_v4, %v7594_v26 }
 0x1f8   :  { %11501 = vst [vmem:[#allocation50_spill] sm:$0xff] %v7488_v42 }
 0x1f9   :  { %11502 = vst [vmem:[#allocation59_spill] sm:$0xff] %v7491_v45  ;;  %v7592_v45 = vperm.slane %v2124_v39, 0  ;;  %v2212_v39 = vmul.f32 %v7575_v4, %v7577_v25 }
 0x1fa   :  { %11503 = vst [vmem:[#allocation38_spill] sm:$0xff] %v7493_v21  ;;  %v7587_v21 = vperm.slane %v2122_v24, 0  ;;  %v11517_v24 = vperm.slane %v7440_v10, 0 }
 0x1fb   :  { %11504 = vst [vmem:[#allocation19_spill] sm:$0xff] %v7495_v22  ;;  %v7583_v22 = vperm.slane %v2120_v36, 0  ;;  %v7602_v36 = vperm.slane %v2129_v63, 0  ;;  %v2220_v42 = vmul.f32 %v7575_v4, %v7592_v45  ;;  %v2228_v29 = vsub.f32 %v7512_v30, %v2212_v39 }
 0x1fc   :  { %11505 = vst [vmem:[#allocation57_spill] sm:$0xff] %v7497_v28  ;;  %v7579_v28 = vperm.slane %v2118_v56, 0  ;;  %v7598_v56 = vperm.slane %v2127_v52, 0  ;;  %v2217_v63 = vmul.f32 %v7575_v4, %v7587_v21  ;;  %v2238_v30 = vsub.f32 %v7553_v38, %v2222_v46 }
 0x1fd   :  { %11506 = vst [vmem:[#allocation48_spill] sm:$0xff] %v7499_v55  ;;  %v7581_v55 = vperm.slane %v2119_v62, 0  ;;  %v7600_v62 = vperm.slane %v2128_v20, 0  ;;  %v2215_v52 = vmul.f32 %v7575_v4, %v7583_v22  ;;  %v2225_v6 = vmul.f32 %v7575_v4, %v7602_v36 }
 0x1fe   :  { %11507 = vst [vmem:[#allocation23_spill] sm:$0xff] %v7501_v0  ;;  %v7585_v0 = vperm.slane %v2121_v49, 0  ;;  %v7604_v49 = vperm.slane %v2130_v14, 0  ;;  %v2213_v37 = vmul.f32 %v7575_v4, %v7579_v28  ;;  %v2223_v33 = vmul.f32 %v7575_v4, %v7598_v56 }
 0x1ff   :  { %11508 = vst [vmem:[#allocation25_spill] sm:$0xff] %v7503_v7  ;;  %v7589_v7 = vperm.slane %v2123_v54, 0  ;;  %v2211_v54 = vmul.f32 %v7575_v4, %v11517_v24  ;;  %v2214_v35 = vmul.f32 %v7575_v4, %v7581_v55  ;;  %v2219_v24 = vmul.f32 %v7575_v4, %v10495_v50 }
 0x200   :  { %11510 = vst [vmem:[#allocation35_spill] sm:$0xff] %v7575_v4  ;;  %v2216_v20 = vmul.f32 %v7575_v4, %v7585_v0  ;;  %v2224_v27 = vmul.f32 %v7575_v4, %v7600_v62  ;;  %v2226_v50 = vmul.f32 %v7575_v4, %v7604_v49  ;;  %v2265_v46 = vmul.f32 %v7474_v17, %v7587_v21 }
 0x201   :  { %11511 = vst [vmem:[#allocation44_spill] sm:$0xff] %v7592_v45  ;;  %v2218_v14 = vmul.f32 %v7575_v4, %v7589_v7  ;;  %v2227_v59 = vsub.f32 %v7508_v57, %v2211_v54  ;;  %v2231_v45 = vsub.f32 %v7524_v12, %v2215_v52  ;;  %v2236_v4 = vsub.f32 %v7545_v9, %v2220_v42  ;;  %v11539_v52 = vld [vmem:[#allocation45_spill] sm:$0xff] }
 0x202   :  { %11512 = vst [vmem:[#allocation4_spill] sm:$0xff] %v7594_v26  ;;  %v2229_v26 = vsub.f32 %v7516_v48, %v2213_v37  ;;  %v2237_v57 = vsub.f32 %v7549_v43, %v2221_v16  ;;  %v2239_v48 = vsub.f32 %v7557_v34, %v2223_v33  ;;  %v2241_v12 = vsub.f32 %v7565_v13, %v2225_v6  ;;  %v11538_v37 = vld [vmem:[#allocation29_spill] sm:$0xff] }
 0x203   :  { %11513 = vst [vmem:[#allocation32_spill] sm:$0xff] %v7596_v31  ;;  %v2230_v31 = vsub.f32 %v7520_v41, %v2214_v35  ;;  %v2234_v2 = vsub.f32 %v7536_v51, %v2218_v14  ;;  %v2240_v41 = vsub.f32 %v7561_v23, %v2224_v27  ;;  %v7660_v51 = vadd.f32 %v2228_v29, %v7262_v60  ;;  %v11527_v27 = vld [vmem:[#allocation17_spill] sm:$0xff] }
 0x204   :  { %11514 = vst [vmem:[#allocation39_spill] sm:$0xff] %v7598_v56  ;;  %v2232_v56 = vsub.f32 %v7528_v53, %v2216_v20  ;;  %v2242_v53 = vsub.f32 %v7569_v47, %v2226_v50  ;;  %v7663_v9 = vadd.f32 %v2229_v26, %v7265_v5  ;;  %v7669_v34 = vadd.f32 %v2231_v45, %v7271_v32 }
 0x205   :  { %11515 = vst [vmem:[#allocation15_spill] sm:$0xff] %v7600_v62  ;;  %v2233_v62 = vsub.f32 %v7532_v19, %v2217_v63  ;;  %v7657_v19 = vadd.f32 %v2227_v59, %v7259_v40  ;;  %v7666_v43 = vadd.f32 %v2230_v31, %v7268_v11  ;;  %v7678_v40 = vadd.f32 %v2234_v2, %v7280_v15  ;;  %v11522_v15 = vld [vmem:[#allocation16_spill] sm:$0xff]  ;;  %v11540_v63 = vld [vmem:[#allocation7_spill] sm:$0xff] }
 0x206   :  { %11516 = vst [vmem:[#allocation31_spill] sm:$0xff] %v7602_v36  ;;  %v2235_v36 = vsub.f32 %v7541_v18, %v2219_v24  ;;  %v7672_v38 = vadd.f32 %v2232_v56, %v7274_v58  ;;  %v7684_v5 = vadd.f32 %v2236_v4, %v7286_v3  ;;  %v7687_v11 = vadd.f32 %v2237_v57, %v7289_v44  ;;  %v11518_v58 = vld [vmem:[#allocation28_spill] sm:$0xff]  ;;  %v11541_v24 = vld [vmem:[#allocation9_spill] sm:$0xff] }
 0x207   :  { %v7675_v50 = vadd.f32 %v2233_v62, %v7277_v8  ;;  %v7690_v32 = vadd.f32 %v2238_v30, %v7292_v61  ;;  %v7693_v47 = vadd.f32 %v2239_v48, %v11518_v58  ;;  %v11520_v8 = vld [vmem:[#allocation30_spill] sm:$0xff]  ;;  %v7699_v29 = vadd.f32 %v2241_v12, %v11522_v15  ;;  %v11535_v62 = vld [vmem:[#allocation37_spill] sm:$0xff]  ;;  %v11537_v54 = vld [vmem:[#allocation35_spill] sm:$0xff] }
 0x208   :  { %v7681_v60 = vadd.f32 %v2235_v36, %v7283_v1  ;;  %v7696_v13 = vadd.f32 %v2240_v41, %v11520_v8  ;;  %v11524_v1 = vld [vmem:[#allocation11_spill] sm:$0xff]  ;;  %v11526_v3 = vperm.slane %v7440_v10, 0  ;;  %v2260_v61 = vmul.f32 %v7474_v17, %v7577_v25  ;;  %v11529_v2 = vld [vmem:[#allocation44_spill] sm:$0xff]  ;;  %v11544_v41 = vld [vmem:[#allocation50_spill] sm:$0xff] }
 0x209   :  { %11519 = vst [vmem:[#allocation55_spill] sm:$0xff] %v7693_v47  ;;  %v7702_v45 = vadd.f32 %v2242_v53, %v11524_v1  ;;  %v2261_v4 = vmul.f32 %v7474_v17, %v7579_v28  ;;  %v2262_v42 = vmul.f32 %v7474_v17, %v7581_v55  ;;  %v2263_v16 = vmul.f32 %v7474_v17, %v7583_v22  ;;  %v11530_v59 = vld [vmem:[#allocation4_spill] sm:$0xff]  ;;  %v11542_v30 = vld [vmem:[#allocation43_spill] sm:$0xff] }
 0x20a   :  { %11521 = vst [vmem:[#allocation56_spill] sm:$0xff] %v7696_v13  ;;  %v2259_v44 = vmul.f32 %v7474_v17, %v11526_v3  ;;  %v2264_v26 = vmul.f32 %v7474_v17, %v7585_v0  ;;  %v2266_v33 = vmul.f32 %v7474_v17, %v7589_v7  ;;  %v11528_v25 = vperm.slane %v11527_v27, 0  ;;  %v11531_v22 = vld [vmem:[#allocation32_spill] sm:$0xff]  ;;  %v11547_v15 = vld [vmem:[#allocation59_spill] sm:$0xff]  ;;  %v11548_v3 = vld [vmem:[#allocation38_spill] sm:$0xff] }
 0x20b   :  { %11523 = vst [vmem:[#allocation3_spill] sm:$0xff] %v7699_v29  ;;  %v2268_v23 = vmul.f32 %v7474_v17, %v11529_v2  ;;  %v2269_v6 = vmul.f32 %v7474_v17, %v11530_v59  ;;  %v2270_v28 = vmul.f32 %v7474_v17, %v11531_v22  ;;  %v11532_v55 = vld [vmem:[#allocation39_spill] sm:$0xff]  ;;  %v2274_v56 = vmul.f32 %v7474_v17, %v7604_v49  ;;  %v11545_v53 = vld [vmem:[#allocation52_spill] sm:$0xff]  ;;  %v11550_v59 = vld [vmem:[#allocation57_spill] sm:$0xff] }
 0x20c   :  { %11525 = vst [vmem:[#allocation2_spill] sm:$0xff] %v7702_v45  ;;  %v2267_v10 = vmul.f32 %v7474_v17, %v11528_v25  ;;  %v2271_v0 = vmul.f32 %v7474_v17, %v11532_v55  ;;  %v11533_v21 = vld [vmem:[#allocation15_spill] sm:$0xff]  ;;  %v11536_v36 = vperm.slane %v11535_v62, 0  ;;  %v2276_v35 = vmul.f32 %v11537_v54, %v11538_v37  ;;  %v11551_v55 = vld [vmem:[#allocation48_spill] sm:$0xff] }
 0x20d   :  { %v2272_v18 = vmul.f32 %v7474_v17, %v11533_v21  ;;  %v11534_v7 = vld [vmem:[#allocation31_spill] sm:$0xff]  ;;  %v2277_v20 = vmul.f32 %v11537_v54, %v11539_v52  ;;  %v2278_v14 = vmul.f32 %v11537_v54, %v11540_v63  ;;  %v2279_v57 = vmul.f32 %v11537_v54, %v11541_v24 }
 0x20e   :  { %v2273_v31 = vmul.f32 %v7474_v17, %v11534_v7  ;;  %v2275_v39 = vmul.f32 %v11537_v54, %v11536_v36  ;;  %v2280_v48 = vmul.f32 %v11537_v54, %v11542_v30  ;;  %v11543_v17 = vld [vmem:[#allocation41_spill] sm:$0xff]  ;;  %v2282_v12 = vmul.f32 %v11537_v54, %v11544_v41  ;;  %v11549_v25 = vld [vmem:[#allocation19_spill] sm:$0xff] }
 0x20f   :  { %v2281_v49 = vmul.f32 %v11537_v54, %v11543_v17  ;;  %v11546_v58 = vperm.slane %v11545_v53, 0  ;;  %v2284_v1 = vmul.f32 %v11537_v54, %v11547_v15  ;;  %v2285_v27 = vmul.f32 %v11537_v54, %v11548_v3  ;;  %v11552_v7 = vld [vmem:[#allocation23_spill] sm:$0xff]  ;;  %v11553_v36 = vld [vmem:[#allocation25_spill] sm:$0xff] }
 0x210   :  { %v2286_v2 = vmul.f32 %v11537_v54, %v11549_v25  ;;  %v2287_v22 = vmul.f32 %v11537_v54, %v11550_v59  ;;  %v2288_v21 = vmul.f32 %v11537_v54, %v11551_v55  ;;  %v2289_v62 = vmul.f32 %v11537_v54, %v11552_v7  ;;  %v11554_v7 = vld [vmem:[#allocation12_spill] sm:$0xff] }
 0x211   :  { %v2283_v8 = vmul.f32 %v11537_v54, %v11546_v58  ;;  %v2290_v37 = vmul.f32 %v11537_v54, %v11553_v36  ;;  %v2291_v52 = vadd.f32 %v2275_v39, %v2259_v44  ;;  %v2292_v63 = vadd.f32 %v2276_v35, %v2260_v61  ;;  %v11556_v54 = vld [vmem:[#allocation42_spill] sm:$0xff]  ;;  %v11573_v39 = vld [vmem:[#allocation47_spill] sm:$0xff] }
 0x212   :  { %v2293_v24 = vadd.f32 %v2277_v20, %v2261_v4  ;;  %v2294_v30 = vadd.f32 %v2278_v14, %v2262_v42  ;;  %v2295_v17 = vadd.f32 %v2279_v57, %v2263_v16  ;;  %v2296_v41 = vadd.f32 %v2280_v48, %v2264_v26  ;;  %v11558_v61 = vld [vmem:[#allocation18_spill] sm:$0xff]  ;;  %v11560_v42 = vld [vmem:[#allocation13_spill] sm:$0xff]  ;;  %v11575_v20 = vld [vmem:[#allocation40_spill] sm:$0xff] }
 0x213   :  { %v2297_v53 = vadd.f32 %v2281_v49, %v2265_v46  ;;  %v2298_v58 = vadd.f32 %v2282_v12, %v2266_v33  ;;  %v2299_v15 = vadd.f32 %v2283_v8, %v2267_v10  ;;  %v2300_v3 = vadd.f32 %v2284_v1, %v2268_v23  ;;  %v11562_v26 = vld [vmem:[#allocation14_spill] sm:$0xff]  ;;  %v11565_v10 = vld [vmem:[#allocation60_spill] sm:$0xff]  ;;  %v11577_v57 = vld [vmem:[#allocation49_spill] sm:$0xff] }
 0x214   :  { %v2301_v25 = vadd.f32 %v2285_v27, %v2269_v6  ;;  %v2302_v59 = vadd.f32 %v2286_v2, %v2270_v28  ;;  %v2303_v45 = vadd.f32 %v2287_v22, %v2271_v0  ;;  %v2304_v55 = vadd.f32 %v2288_v21, %v2272_v18  ;;  %v7790_v33 = vld [vmem:[%s10226_s2 + $0xa0] sm:$0xff]  ;;  %v11567_v6 = vld [vmem:[#allocation20_spill] sm:$0xff]  ;;  %v11569_v0 = vld [vmem:[#allocation21_spill] sm:$0xff] }
 0x215   :  { %v2305_v29 = vadd.f32 %v2289_v62, %v2273_v31  ;;  %v2306_v13 = vadd.f32 %v2290_v37, %v2274_v56  ;;  %v7773_v47 = vadd.f32 %v2291_v52, %v11554_v7  ;;  %v7776_v44 = vadd.f32 %v2292_v63, %v11556_v54  ;;  %11564 = vst [vmem:[#allocation61_spill] sm:$0xff] %v7790_v33  ;;  %v11571_v31 = vld [vmem:[#allocation33_spill] sm:$0xff]  ;;  %v11579_v49 = vld [vmem:[#allocation51_spill] sm:$0xff]  ;;  %v11584_v2 = vld [vmem:[#allocation54_spill] sm:$0xff] }
 0x216   :  { %v7779_v4 = vadd.f32 %v2293_v24, %v11558_v61  ;;  %v7782_v16 = vadd.f32 %v2294_v30, %v11560_v42  ;;  %v7785_v46 = vadd.f32 %v2295_v17, %v11562_v26  ;;  %v7793_v23 = vadd.f32 %v2296_v41, %v11565_v10  ;;  %v7819_v8 = vld [vmem:[%s10226_s2 + $0xa8] sm:$0xff]  ;;  %v11582_v1 = vld [vmem:[#allocation53_spill] sm:$0xff]  ;;  %v11586_v21 = vld [vmem:[#allocation58_spill] sm:$0xff] }
 0x217   :  { %11555 = vst [vmem:[#allocation5_spill] sm:$0xff] %v7773_v47  ;;  %v7796_v28 = vadd.f32 %v2297_v53, %v11567_v6  ;;  %v7799_v18 = vadd.f32 %v2298_v58, %v11569_v0  ;;  %v7802_v56 = vadd.f32 %v2299_v15, %v11571_v31  ;;  %v7805_v35 = vadd.f32 %v2300_v3, %v11573_v39  ;;  %v7838_v24 = vld [vmem:[%s10227_s3 + $0xa0] sm:$0xff]  ;;  %v7851_v3 = vld [vmem:[%s10227_s3 + $0xa8] sm:$0xff] }
 0x218   :  { %11557 = vst [vmem:[#allocation36_spill] sm:$0xff] %v7776_v44  ;;  %v7808_v14 = vadd.f32 %v2301_v25, %v11575_v20  ;;  %v7811_v48 = vadd.f32 %v2302_v59, %v11577_v57  ;;  %v7814_v12 = vadd.f32 %v2303_v45, %v11579_v49  ;;  %v7822_v27 = vadd.f32 %v2304_v55, %v11582_v1  ;;  %v7872_v1 = vld [vmem:[%s10228_s0 + $0x14] sm:$0x3] }
 0x219   :  { %11559 = vst [vmem:[#allocation6_spill] sm:$0xff] %v7779_v4  ;;  %v7825_v22 = vadd.f32 %v2305_v29, %v11584_v2  ;;  %v7828_v62 = vadd.f32 %v2306_v13, %v11586_v21  ;;  %v2332_v36 = vrot.slane %v7790_v33, 1  ;;  %v2333_v37 = vrot.slane %v7790_v33, 2  ;;  %v7973_v44 = vld [vmem:[%s10229_s1 + $0x14] sm:$0x3] }
 0x21a   :  { %11561 = vst [vmem:[#allocation8_spill] sm:$0xff] %v7782_v16  ;;  %v2334_v45 = vrot.slane %v7790_v33, 3  ;;  %v2335_v52 = vrot.slane %v7790_v33, 4  ;;  %v2336_v63 = vrot.slane %v7790_v33, 5  ;;  %v2337_v29 = vrot.slane %v7790_v33, 6 }
 0x21b   :  { %11563 = vst [vmem:[#allocation10_spill] sm:$0xff] %v7785_v46  ;;  %v2338_v13 = vrot.slane %v7790_v33, 7  ;;  %v2339_v30 = vrot.slane %v7819_v8, 1  ;;  %v2340_v17 = vrot.slane %v7819_v8, 2  ;;  %v2341_v41 = vrot.slane %v7819_v8, 3 }
 0x21c   :  { %11566 = vst [vmem:[#allocation46_spill] sm:$0xff] %v7793_v23  ;;  %v2342_v53 = vrot.slane %v7819_v8, 4  ;;  %v2343_v58 = vrot.slane %v7819_v8, 5  ;;  %v2344_v15 = vrot.slane %v7819_v8, 6  ;;  %v2345_v25 = vrot.slane %v7819_v8, 7 }
 0x21d   :  { %11568 = vst [vmem:[#allocation22_spill] sm:$0xff] %v7796_v28  ;;  %v2351_v59 = vrot.slane %v7838_v24, 1  ;;  %v2352_v55 = vrot.slane %v7838_v24, 2  ;;  %v2353_v7 = vrot.slane %v7838_v24, 3  ;;  %v2354_v54 = vrot.slane %v7838_v24, 4 }
 0x21e   :  { %11570 = vst [vmem:[#allocation24_spill] sm:$0xff] %v7799_v18  ;;  %v2355_v61 = vrot.slane %v7838_v24, 5  ;;  %v2356_v42 = vrot.slane %v7838_v24, 6  ;;  %v2357_v26 = vrot.slane %v7838_v24, 7  ;;  %v2358_v10 = vrot.slane %v7851_v3, 1 }
 0x21f   :  { %11572 = vst [vmem:[#allocation26_spill] sm:$0xff] %v7802_v56  ;;  %v2359_v6 = vrot.slane %v7851_v3, 2  ;;  %v2360_v0 = vrot.slane %v7851_v3, 3  ;;  %v2361_v31 = vrot.slane %v7851_v3, 4  ;;  %v2362_v39 = vrot.slane %v7851_v3, 5 }
 0x220   :  { %11574 = vst [vmem:[#allocation27_spill] sm:$0xff] %v7805_v35  ;;  %v2363_v20 = vrot.slane %v7851_v3, 6  ;;  %v2364_v57 = vrot.slane %v7851_v3, 7  ;;  %v7874_v2 = vperm.slane %v2332_v36, 0  ;;  %v7876_v21 = vperm.slane %v2333_v37, 0 }
 0x221   :  { %11576 = vst [vmem:[#allocation34_spill] sm:$0xff] %v7808_v14  ;;  %v10507_v49 = vperm.slane %v7819_v8, 0  ;;  %v7889_v14 = vperm.slane %v2339_v30, 0  ;;  %v7891_v35 = vperm.slane %v2340_v17, 0  ;;  %v7893_v36 = vperm.slane %v2341_v41, 0 }
 0x222   :  { %11578 = vst [vmem:[#allocation28_spill] sm:$0xff] %v7811_v48  ;;  %v7886_v48 = vperm.slane %v2338_v13, 0  ;;  %v7895_v37 = vperm.slane %v2342_v53, 0  ;;  %v7910_v30 = vmul.f32 %v7872_v1, %v7874_v2  ;;  %v7914_v17 = vmul.f32 %v7872_v1, %v7876_v21 }
 0x223   :  { %11580 = vst [vmem:[#allocation30_spill] sm:$0xff] %v7814_v12  ;;  %v7884_v12 = vperm.slane %v2337_v29, 0  ;;  %v11603_v29 = vperm.slane %v7790_v33, 0  ;;  %v7943_v56 = vmul.f32 %v7872_v1, %v7889_v14  ;;  %v7947_v18 = vmul.f32 %v7872_v1, %v7891_v35 }
 0x224   :  { %11581 = vst [vmem:[#allocation16_spill] sm:$0xff] %v7819_v8  ;;  %v7951_v28 = vmul.f32 %v7872_v1, %v7893_v36  ;;  %v7955_v23 = vmul.f32 %v7872_v1, %v7895_v37  ;;  %v7975_v47 = vperm.slane %v2351_v59, 0  ;;  %v10522_v4 = vperm.slane %v7851_v3, 0 }
 0x225   :  { %11583 = vst [vmem:[#allocation11_spill] sm:$0xff] %v7822_v27  ;;  %v7882_v27 = vperm.slane %v2336_v63, 0  ;;  %v7901_v63 = vperm.slane %v2345_v25, 0  ;;  %v7906_v13 = vmul.f32 %v7872_v1, %v11603_v29  ;;  %v7934_v25 = vmul.f32 %v7872_v1, %v7886_v48 }
 0x226   :  { %11585 = vst [vmem:[#allocation17_spill] sm:$0xff] %v7825_v22  ;;  %v7880_v22 = vperm.slane %v2335_v52, 0  ;;  %v7899_v52 = vperm.slane %v2344_v15, 0  ;;  %v7930_v15 = vmul.f32 %v7872_v1, %v7884_v12  ;;  %v7939_v29 = vmul.f32 %v7872_v1, %v10507_v49 }
 0x227   :  { %11587 = vst [vmem:[#allocation44_spill] sm:$0xff] %v7828_v62  ;;  %v7878_v62 = vperm.slane %v2334_v45, 0  ;;  %v7897_v45 = vperm.slane %v2343_v58, 0  ;;  %v7926_v58 = vmul.f32 %v7872_v1, %v7882_v27  ;;  %v7967_v16 = vmul.f32 %v7872_v1, %v7901_v63 }
 0x228   :  { %11588 = vst [vmem:[#allocation4_spill] sm:$0xff] %v7851_v3  ;;  %v7922_v53 = vmul.f32 %v7872_v1, %v7880_v22  ;;  %v7963_v46 = vmul.f32 %v7872_v1, %v7899_v52  ;;  %v7992_v8 = vperm.slane %v2359_v6, 0  ;;  %v7994_v59 = vperm.slane %v2360_v0, 0 }
 0x229   :  { %11589 = vst [vmem:[#allocation32_spill] sm:$0xff] %v7874_v2  ;;  %v7918_v41 = vmul.f32 %v7872_v1, %v7878_v62  ;;  %v7959_v49 = vmul.f32 %v7872_v1, %v7897_v45 }
 0x22a   :  { %11590 = vst [vmem:[#allocation39_spill] sm:$0xff] %v7876_v21 }
 0x22b   :  { %11591 = vst [vmem:[#allocation15_spill] sm:$0xff] %v7878_v62 }
 0x22c   :  { %11592 = vst [vmem:[#allocation31_spill] sm:$0xff] %v7880_v22 }
 0x22d   :  { %11593 = vst [vmem:[#allocation37_spill] sm:$0xff] %v7882_v27  ;;  %v2456_v27 = vmul.f32 %v7973_v44, %v7994_v59 }
 0x22e   :  { %11594 = vst [vmem:[#allocation35_spill] sm:$0xff] %v7884_v12  ;;  %v2455_v12 = vmul.f32 %v7973_v44, %v7992_v8 }
 0x22f   :  { %11595 = vst [vmem:[#allocation29_spill] sm:$0xff] %v7886_v48 }
 0x230   :  { %11596 = vst [vmem:[#allocation45_spill] sm:$0xff] %v7889_v14  ;;  %v7990_v14 = vperm.slane %v2358_v10, 0  ;;  %v2446_v10 = vmul.f32 %v7973_v44, %v7975_v47 }
 0x231   :  { %11597 = vst [vmem:[#allocation7_spill] sm:$0xff] %v7891_v35  ;;  %v7985_v35 = vperm.slane %v2356_v42, 0  ;;  %v11611_v42 = vperm.slane %v7838_v24, 0 }
 0x232   :  { %11598 = vst [vmem:[#allocation9_spill] sm:$0xff] %v7893_v36  ;;  %v7981_v36 = vperm.slane %v2354_v54, 0  ;;  %v8000_v54 = vperm.slane %v2363_v20, 0  ;;  %v2454_v48 = vmul.f32 %v7973_v44, %v7990_v14  ;;  %v2462_v33 = vsub.f32 %v7910_v30, %v2446_v10 }
 0x233   :  { %11599 = vst [vmem:[#allocation43_spill] sm:$0xff] %v7895_v37  ;;  %v7977_v37 = vperm.slane %v2352_v55, 0  ;;  %v7996_v55 = vperm.slane %v2361_v31, 0  ;;  %v2451_v20 = vmul.f32 %v7973_v44, %v7985_v35  ;;  %v2472_v30 = vsub.f32 %v7951_v28, %v2456_v27 }
 0x234   :  { %11600 = vst [vmem:[#allocation41_spill] sm:$0xff] %v7897_v45  ;;  %v7979_v45 = vperm.slane %v2353_v7, 0  ;;  %v7998_v7 = vperm.slane %v2362_v39, 0  ;;  %v2449_v31 = vmul.f32 %v7973_v44, %v7981_v36  ;;  %v2459_v21 = vmul.f32 %v7973_v44, %v8000_v54 }
 0x235   :  { %11601 = vst [vmem:[#allocation50_spill] sm:$0xff] %v7899_v52  ;;  %v7983_v52 = vperm.slane %v2355_v61, 0  ;;  %v8002_v61 = vperm.slane %v2364_v57, 0  ;;  %v2447_v6 = vmul.f32 %v7973_v44, %v7977_v37  ;;  %v2457_v22 = vmul.f32 %v7973_v44, %v7996_v55 }
 0x236   :  { %11602 = vst [vmem:[#allocation52_spill] sm:$0xff] %v7901_v63  ;;  %v7987_v63 = vperm.slane %v2357_v26, 0  ;;  %v2445_v26 = vmul.f32 %v7973_v44, %v11611_v42  ;;  %v2448_v0 = vmul.f32 %v7973_v44, %v7979_v45  ;;  %v2453_v42 = vmul.f32 %v7973_v44, %v10522_v4 }
 0x237   :  { %11604 = vst [vmem:[#allocation59_spill] sm:$0xff] %v7973_v44  ;;  %v2450_v39 = vmul.f32 %v7973_v44, %v7983_v52  ;;  %v2458_v62 = vmul.f32 %v7973_v44, %v7998_v7  ;;  %v2460_v4 = vmul.f32 %v7973_v44, %v8002_v61  ;;  %v2499_v27 = vmul.f32 %v7872_v1, %v7985_v35 }
 0x238   :  { %11605 = vst [vmem:[#allocation38_spill] sm:$0xff] %v7990_v14  ;;  %v2452_v57 = vmul.f32 %v7973_v44, %v7987_v63  ;;  %v2461_v2 = vsub.f32 %v7906_v13, %v2445_v26  ;;  %v2465_v14 = vsub.f32 %v7922_v53, %v2449_v31  ;;  %v2470_v44 = vsub.f32 %v7943_v56, %v2454_v48  ;;  %v11633_v31 = vld [vmem:[#allocation39_spill] sm:$0xff] }
 0x239   :  { %11606 = vst [vmem:[#allocation19_spill] sm:$0xff] %v7992_v8  ;;  %v2463_v8 = vsub.f32 %v7914_v17, %v2447_v6  ;;  %v2471_v13 = vsub.f32 %v7947_v18, %v2455_v12  ;;  %v2473_v17 = vsub.f32 %v7955_v23, %v2457_v22  ;;  %v2475_v53 = vsub.f32 %v7963_v46, %v2459_v21  ;;  %v11632_v6 = vld [vmem:[#allocation32_spill] sm:$0xff] }
 0x23a   :  { %11607 = vst [vmem:[#allocation57_spill] sm:$0xff] %v7994_v59  ;;  %v2464_v59 = vsub.f32 %v7918_v41, %v2448_v0  ;;  %v2468_v3 = vsub.f32 %v7934_v25, %v2452_v57  ;;  %v2474_v41 = vsub.f32 %v7959_v49, %v2458_v62  ;;  %v8058_v25 = vadd.f32 %v2462_v33, %v7660_v51  ;;  %v11621_v62 = vld [vmem:[#allocation4_spill] sm:$0xff] }
 0x23b   :  { %11608 = vst [vmem:[#allocation48_spill] sm:$0xff] %v7996_v55  ;;  %v2466_v55 = vsub.f32 %v7926_v58, %v2450_v39  ;;  %v2476_v58 = vsub.f32 %v7967_v16, %v2460_v4  ;;  %v8061_v56 = vadd.f32 %v2463_v8, %v7663_v9  ;;  %v8067_v23 = vadd.f32 %v2465_v14, %v7669_v34 }
 0x23c   :  { %11609 = vst [vmem:[#allocation23_spill] sm:$0xff] %v7998_v7  ;;  %v2467_v7 = vsub.f32 %v7930_v15, %v2451_v20  ;;  %v8055_v15 = vadd.f32 %v2461_v2, %v7657_v19  ;;  %v8064_v18 = vadd.f32 %v2464_v59, %v7666_v43  ;;  %v8076_v19 = vadd.f32 %v2468_v3, %v7678_v40  ;;  %v11616_v40 = vld [vmem:[#allocation3_spill] sm:$0xff] }
 0x23d   :  { %11610 = vst [vmem:[#allocation25_spill] sm:$0xff] %v8000_v54  ;;  %v2469_v54 = vsub.f32 %v7939_v29, %v2453_v42  ;;  %v8070_v28 = vadd.f32 %v2466_v55, %v7672_v38  ;;  %v8082_v9 = vadd.f32 %v2470_v44, %v7684_v5  ;;  %v8085_v43 = vadd.f32 %v2471_v13, %v7687_v11  ;;  %v11612_v38 = vld [vmem:[#allocation55_spill] sm:$0xff] }
 0x23e   :  { %v8073_v4 = vadd.f32 %v2467_v7, %v7675_v50  ;;  %v8088_v34 = vadd.f32 %v2472_v30, %v7690_v32  ;;  %v8091_v16 = vadd.f32 %v2473_v17, %v11612_v38  ;;  %v11614_v50 = vld [vmem:[#allocation56_spill] sm:$0xff]  ;;  %v8097_v33 = vadd.f32 %v2475_v53, %v11616_v40  ;;  %v11629_v7 = vld [vmem:[#allocation61_spill] sm:$0xff]  ;;  %v11631_v26 = vld [vmem:[#allocation59_spill] sm:$0xff] }
 0x23f   :  { %v8079_v51 = vadd.f32 %v2469_v54, %v7681_v60  ;;  %v8094_v46 = vadd.f32 %v2474_v41, %v11614_v50  ;;  %v11618_v60 = vld [vmem:[#allocation2_spill] sm:$0xff]  ;;  %v11620_v5 = vperm.slane %v7838_v24, 0  ;;  %v2494_v32 = vmul.f32 %v7872_v1, %v7975_v47  ;;  %v11634_v20 = vld [vmem:[#allocation15_spill] sm:$0xff]  ;;  %v11636_v30 = vld [vmem:[#allocation37_spill] sm:$0xff] }
 0x240   :  { %11613 = vst [vmem:[#allocation12_spill] sm:$0xff] %v8091_v16  ;;  %v8100_v14 = vadd.f32 %v2476_v58, %v11618_v60  ;;  %v2495_v44 = vmul.f32 %v7872_v1, %v7977_v37  ;;  %v2496_v48 = vmul.f32 %v7872_v1, %v7979_v45  ;;  %v2497_v12 = vmul.f32 %v7872_v1, %v7981_v36  ;;  %v11623_v3 = vld [vmem:[#allocation38_spill] sm:$0xff]  ;;  %v11624_v2 = vld [vmem:[#allocation19_spill] sm:$0xff]  ;;  %v11638_v41 = vld [vmem:[#allocation29_spill] sm:$0xff] }
 0x241   :  { %11615 = vst [vmem:[#allocation42_spill] sm:$0xff] %v8094_v46  ;;  %v2493_v11 = vmul.f32 %v7872_v1, %v11620_v5  ;;  %v2498_v8 = vmul.f32 %v7872_v1, %v7983_v52  ;;  %v2500_v22 = vmul.f32 %v7872_v1, %v7987_v63  ;;  %v11622_v47 = vperm.slane %v11621_v62, 0  ;;  %v11625_v36 = vld [vmem:[#allocation57_spill] sm:$0xff]  ;;  %v11635_v42 = vld [vmem:[#allocation31_spill] sm:$0xff]  ;;  %v11639_v58 = vld [vmem:[#allocation16_spill] sm:$0xff] }
 0x242   :  { %11617 = vst [vmem:[#allocation18_spill] sm:$0xff] %v8097_v33  ;;  %v2502_v49 = vmul.f32 %v7872_v1, %v11623_v3  ;;  %v2503_v21 = vmul.f32 %v7872_v1, %v11624_v2  ;;  %v2504_v37 = vmul.f32 %v7872_v1, %v11625_v36  ;;  %v11626_v45 = vld [vmem:[#allocation48_spill] sm:$0xff]  ;;  %v2508_v55 = vmul.f32 %v7872_v1, %v8002_v61  ;;  %v11641_v40 = vld [vmem:[#allocation45_spill] sm:$0xff]  ;;  %v11642_v5 = vld [vmem:[#allocation7_spill] sm:$0xff] }
 0x243   :  { %11619 = vst [vmem:[#allocation13_spill] sm:$0xff] %v8100_v14  ;;  %v2501_v24 = vmul.f32 %v7872_v1, %v11622_v47  ;;  %v2505_v52 = vmul.f32 %v7872_v1, %v11626_v45  ;;  %v11627_v35 = vld [vmem:[#allocation23_spill] sm:$0xff]  ;;  %v11630_v54 = vperm.slane %v11629_v7, 0  ;;  %v2510_v0 = vmul.f32 %v11631_v26, %v11632_v6  ;;  %v11643_v47 = vld [vmem:[#allocation9_spill] sm:$0xff] }
 0x244   :  { %v2506_v29 = vmul.f32 %v7872_v1, %v11627_v35  ;;  %v11628_v63 = vld [vmem:[#allocation25_spill] sm:$0xff]  ;;  %v2511_v39 = vmul.f32 %v11631_v26, %v11633_v31  ;;  %v2512_v57 = vmul.f32 %v11631_v26, %v11634_v20  ;;  %v2513_v13 = vmul.f32 %v11631_v26, %v11635_v42  ;;  %v11644_v2 = vld [vmem:[#allocation43_spill] sm:$0xff] }
 0x245   :  { %v2507_v59 = vmul.f32 %v7872_v1, %v11628_v63  ;;  %v2509_v10 = vmul.f32 %v11631_v26, %v11630_v54  ;;  %v2514_v17 = vmul.f32 %v11631_v26, %v11636_v30  ;;  %v11637_v1 = vld [vmem:[#allocation35_spill] sm:$0xff]  ;;  %v2516_v53 = vmul.f32 %v11631_v26, %v11638_v41  ;;  %v11645_v45 = vld [vmem:[#allocation41_spill] sm:$0xff]  ;;  %v11646_v63 = vld [vmem:[#allocation50_spill] sm:$0xff] }
 0x246   :  { %v2515_v61 = vmul.f32 %v11631_v26, %v11637_v1  ;;  %v11640_v38 = vperm.slane %v11639_v58, 0  ;;  %v2518_v60 = vmul.f32 %v11631_v26, %v11641_v40  ;;  %v2519_v62 = vmul.f32 %v11631_v26, %v11642_v5  ;;  %v11647_v54 = vld [vmem:[#allocation52_spill] sm:$0xff] }
 0x247   :  { %v2520_v3 = vmul.f32 %v11631_v26, %v11643_v47  ;;  %v2521_v36 = vmul.f32 %v11631_v26, %v11644_v2  ;;  %v2522_v35 = vmul.f32 %v11631_v26, %v11645_v45  ;;  %v2523_v7 = vmul.f32 %v11631_v26, %v11646_v63  ;;  %v11648_v63 = vld [vmem:[#allocation5_spill] sm:$0xff] }
 0x248   :  { %v2517_v50 = vmul.f32 %v11631_v26, %v11640_v38  ;;  %v2524_v6 = vmul.f32 %v11631_v26, %v11647_v54  ;;  %v2525_v31 = vadd.f32 %v2509_v10, %v2493_v11  ;;  %v2526_v20 = vadd.f32 %v2510_v0, %v2494_v32  ;;  %v11650_v26 = vld [vmem:[#allocation36_spill] sm:$0xff]  ;;  %v11652_v32 = vld [vmem:[#allocation6_spill] sm:$0xff]  ;;  %v11667_v10 = vld [vmem:[#allocation27_spill] sm:$0xff] }
 0x249   :  { %v2527_v42 = vadd.f32 %v2511_v39, %v2495_v44  ;;  %v2528_v30 = vadd.f32 %v2512_v57, %v2496_v48  ;;  %v2529_v1 = vadd.f32 %v2513_v13, %v2497_v12  ;;  %v2530_v41 = vadd.f32 %v2514_v17, %v2498_v8  ;;  %v11654_v48 = vld [vmem:[#allocation8_spill] sm:$0xff]  ;;  %v11656_v8 = vld [vmem:[#allocation10_spill] sm:$0xff] }
 0x24a   :  { %v2531_v58 = vadd.f32 %v2515_v61, %v2499_v27  ;;  %v2532_v38 = vadd.f32 %v2516_v53, %v2500_v22  ;;  %v2533_v40 = vadd.f32 %v2517_v50, %v2501_v24  ;;  %v2534_v5 = vadd.f32 %v2518_v60, %v2502_v49  ;;  %v8188_v22 = vld [vmem:[%s10226_s2 + $0xb0] sm:$0xff]  ;;  %v11659_v24 = vld [vmem:[#allocation46_spill] sm:$0xff]  ;;  %v8217_v50 = vld [vmem:[%s10226_s2 + $0xb8] sm:$0xff] }
 0x24b   :  { %v2535_v47 = vadd.f32 %v2519_v62, %v2503_v21  ;;  %v2536_v2 = vadd.f32 %v2520_v3, %v2504_v37  ;;  %v2537_v14 = vadd.f32 %v2521_v36, %v2505_v52  ;;  %v2538_v45 = vadd.f32 %v2522_v35, %v2506_v29  ;;  %11658 = vst [vmem:[#allocation47_spill] sm:$0xff] %v8188_v22  ;;  %v11661_v21 = vld [vmem:[#allocation22_spill] sm:$0xff]  ;;  %v11663_v52 = vld [vmem:[#allocation24_spill] sm:$0xff]  ;;  %v11676_v60 = vld [vmem:[#allocation11_spill] sm:$0xff] }
 0x24c   :  { %v2539_v33 = vadd.f32 %v2523_v7, %v2507_v59  ;;  %v2540_v46 = vadd.f32 %v2524_v6, %v2508_v55  ;;  %v8171_v16 = vadd.f32 %v2525_v31, %v11648_v63  ;;  %v8174_v11 = vadd.f32 %v2526_v20, %v11650_v26  ;;  %v11665_v59 = vld [vmem:[#allocation26_spill] sm:$0xff]  ;;  %v11671_v13 = vld [vmem:[#allocation28_spill] sm:$0xff]  ;;  %11675 = vst [vmem:[#allocation3_spill] sm:$0xff] %v8217_v50  ;;  %v11678_v3 = vld [vmem:[#allocation17_spill] sm:$0xff] }
 0x24d   :  { %v8177_v44 = vadd.f32 %v2527_v42, %v11652_v32  ;;  %v8180_v12 = vadd.f32 %v2528_v30, %v11654_v48  ;;  %v8183_v27 = vadd.f32 %v2529_v1, %v11656_v8  ;;  %v8191_v49 = vadd.f32 %v2530_v41, %v11659_v24  ;;  %v11669_v39 = vld [vmem:[#allocation34_spill] sm:$0xff]  ;;  %v11680_v35 = vld [vmem:[#allocation44_spill] sm:$0xff] }
 0x24e   :  { %11649 = vst [vmem:[#allocation14_spill] sm:$0xff] %v8171_v16  ;;  %v8194_v37 = vadd.f32 %v2531_v58, %v11661_v21  ;;  %v8197_v29 = vadd.f32 %v2532_v38, %v11663_v52  ;;  %v8200_v55 = vadd.f32 %v2533_v40, %v11665_v59  ;;  %v8203_v0 = vadd.f32 %v2534_v5, %v11667_v10  ;;  %v11673_v61 = vld [vmem:[#allocation30_spill] sm:$0xff]  ;;  %v8236_v42 = vld [vmem:[%s10227_s3 + $0xb0] sm:$0xff]  ;;  %v8249_v5 = vld [vmem:[%s10227_s3 + $0xb8] sm:$0xff] }
 0x24f   :  { %11651 = vst [vmem:[#allocation60_spill] sm:$0xff] %v8174_v11  ;;  %v8206_v57 = vadd.f32 %v2535_v47, %v11669_v39  ;;  %v8209_v17 = vadd.f32 %v2536_v2, %v11671_v13  ;;  %v8212_v53 = vadd.f32 %v2537_v14, %v11673_v61  ;;  %v8220_v62 = vadd.f32 %v2538_v45, %v11676_v60  ;;  %v8270_v60 = vld [vmem:[%s10228_s0 + $0x16] sm:$0x3] }
 0x250   :  { %11653 = vst [vmem:[#allocation20_spill] sm:$0xff] %v8177_v44  ;;  %v8223_v36 = vadd.f32 %v2539_v33, %v11678_v3  ;;  %v8226_v7 = vadd.f32 %v2540_v46, %v11680_v35  ;;  %v2566_v54 = vrot.slane %v8188_v22, 1  ;;  %v2567_v6 = vrot.slane %v8188_v22, 2  ;;  %v8371_v11 = vld [vmem:[%s10229_s1 + $0x16] sm:$0x3] }
 0x251   :  { %11655 = vst [vmem:[#allocation21_spill] sm:$0xff] %v8180_v12  ;;  %v2568_v14 = vrot.slane %v8188_v22, 3  ;;  %v2569_v31 = vrot.slane %v8188_v22, 4  ;;  %v2570_v20 = vrot.slane %v8188_v22, 5  ;;  %v2571_v33 = vrot.slane %v8188_v22, 6 }
 0x252   :  { %11657 = vst [vmem:[#allocation33_spill] sm:$0xff] %v8183_v27  ;;  %v2572_v46 = vrot.slane %v8188_v22, 7  ;;  %v2573_v30 = vrot.slane %v8217_v50, 1  ;;  %v2574_v1 = vrot.slane %v8217_v50, 2  ;;  %v2575_v41 = vrot.slane %v8217_v50, 3 }
 0x253   :  { %11660 = vst [vmem:[#allocation40_spill] sm:$0xff] %v8191_v49  ;;  %v2576_v58 = vrot.slane %v8217_v50, 4  ;;  %v2577_v38 = vrot.slane %v8217_v50, 5  ;;  %v2578_v40 = vrot.slane %v8217_v50, 6  ;;  %v2579_v47 = vrot.slane %v8217_v50, 7 }
 0x254   :  { %11662 = vst [vmem:[#allocation49_spill] sm:$0xff] %v8194_v37  ;;  %v2585_v2 = vrot.slane %v8236_v42, 1  ;;  %v2586_v45 = vrot.slane %v8236_v42, 2  ;;  %v2587_v63 = vrot.slane %v8236_v42, 3  ;;  %v2588_v26 = vrot.slane %v8236_v42, 4 }
 0x255   :  { %11664 = vst [vmem:[#allocation51_spill] sm:$0xff] %v8197_v29  ;;  %v2589_v32 = vrot.slane %v8236_v42, 5  ;;  %v2590_v48 = vrot.slane %v8236_v42, 6  ;;  %v2591_v8 = vrot.slane %v8236_v42, 7  ;;  %v2592_v24 = vrot.slane %v8249_v5, 1 }
 0x256   :  { %11666 = vst [vmem:[#allocation53_spill] sm:$0xff] %v8200_v55  ;;  %v2593_v21 = vrot.slane %v8249_v5, 2  ;;  %v2594_v52 = vrot.slane %v8249_v5, 3  ;;  %v2595_v59 = vrot.slane %v8249_v5, 4  ;;  %v2596_v10 = vrot.slane %v8249_v5, 5 }
 0x257   :  { %11668 = vst [vmem:[#allocation54_spill] sm:$0xff] %v8203_v0  ;;  %v2597_v39 = vrot.slane %v8249_v5, 6  ;;  %v2598_v13 = vrot.slane %v8249_v5, 7  ;;  %v8272_v3 = vperm.slane %v2566_v54, 0  ;;  %v8274_v35 = vperm.slane %v2567_v6, 0 }
 0x258   :  { %11670 = vst [vmem:[#allocation58_spill] sm:$0xff] %v8206_v57  ;;  %v10534_v61 = vperm.slane %v8217_v50, 0  ;;  %v8287_v57 = vperm.slane %v2573_v30, 0  ;;  %v8289_v0 = vperm.slane %v2574_v1, 0  ;;  %v8291_v54 = vperm.slane %v2575_v41, 0 }
 0x259   :  { %11672 = vst [vmem:[#allocation55_spill] sm:$0xff] %v8209_v17  ;;  %v8284_v17 = vperm.slane %v2572_v46, 0  ;;  %v8293_v6 = vperm.slane %v2576_v58, 0  ;;  %v8308_v30 = vmul.f32 %v8270_v60, %v8272_v3  ;;  %v8312_v1 = vmul.f32 %v8270_v60, %v8274_v35 }
 0x25a   :  { %11674 = vst [vmem:[#allocation56_spill] sm:$0xff] %v8212_v53  ;;  %v8282_v53 = vperm.slane %v2571_v33, 0  ;;  %v11697_v33 = vperm.slane %v8188_v22, 0  ;;  %v8341_v55 = vmul.f32 %v8270_v60, %v8287_v57  ;;  %v8345_v29 = vmul.f32 %v8270_v60, %v8289_v0 }
 0x25b   :  { %11677 = vst [vmem:[#allocation2_spill] sm:$0xff] %v8220_v62  ;;  %v8280_v62 = vperm.slane %v2570_v20, 0  ;;  %v8299_v20 = vperm.slane %v2579_v47, 0  ;;  %v8332_v47 = vmul.f32 %v8270_v60, %v8284_v17  ;;  %v8349_v37 = vmul.f32 %v8270_v60, %v8291_v54 }
 0x25c   :  { %11679 = vst [vmem:[#allocation4_spill] sm:$0xff] %v8223_v36  ;;  %v8278_v36 = vperm.slane %v2569_v31, 0  ;;  %v8297_v31 = vperm.slane %v2578_v40, 0  ;;  %v8304_v46 = vmul.f32 %v8270_v60, %v11697_v33  ;;  %v8328_v40 = vmul.f32 %v8270_v60, %v8282_v53 }
 0x25d   :  { %11681 = vst [vmem:[#allocation38_spill] sm:$0xff] %v8226_v7  ;;  %v8276_v7 = vperm.slane %v2568_v14, 0  ;;  %v8295_v14 = vperm.slane %v2577_v38, 0  ;;  %v8324_v38 = vmul.f32 %v8270_v60, %v8280_v62  ;;  %v8337_v33 = vmul.f32 %v8270_v60, %v10534_v61 }
 0x25e   :  { %11682 = vst [vmem:[#allocation19_spill] sm:$0xff] %v8249_v5  ;;  %v8320_v58 = vmul.f32 %v8270_v60, %v8278_v36  ;;  %v8353_v49 = vmul.f32 %v8270_v60, %v8293_v6  ;;  %v8361_v27 = vmul.f32 %v8270_v60, %v8297_v31  ;;  %v8365_v12 = vmul.f32 %v8270_v60, %v8299_v20 }
 0x25f   :  { %11683 = vst [vmem:[#allocation57_spill] sm:$0xff] %v8272_v3  ;;  %v8316_v41 = vmul.f32 %v8270_v60, %v8276_v7  ;;  %v8357_v61 = vmul.f32 %v8270_v60, %v8295_v14  ;;  %v8373_v16 = vperm.slane %v2585_v2, 0  ;;  %v10549_v44 = vperm.slane %v8249_v5, 0 }
 0x260   :  { %11684 = vst [vmem:[#allocation48_spill] sm:$0xff] %v8274_v35  ;;  %v8390_v50 = vperm.slane %v2593_v21, 0  ;;  %v8392_v2 = vperm.slane %v2594_v52, 0 }
 0x261   :  { %11685 = vst [vmem:[#allocation23_spill] sm:$0xff] %v8276_v7 }
 0x262   :  { %11686 = vst [vmem:[#allocation25_spill] sm:$0xff] %v8278_v36 }
 0x263   :  { %11687 = vst [vmem:[#allocation61_spill] sm:$0xff] %v8280_v62  ;;  %v2690_v62 = vmul.f32 %v8371_v11, %v8392_v2 }
 0x264   :  { %11688 = vst [vmem:[#allocation59_spill] sm:$0xff] %v8282_v53  ;;  %v2689_v53 = vmul.f32 %v8371_v11, %v8390_v50 }
 0x265   :  { %11689 = vst [vmem:[#allocation32_spill] sm:$0xff] %v8284_v17 }
 0x266   :  { %11690 = vst [vmem:[#allocation39_spill] sm:$0xff] %v8287_v57  ;;  %v8388_v57 = vperm.slane %v2592_v24, 0  ;;  %v2680_v24 = vmul.f32 %v8371_v11, %v8373_v16 }
 0x267   :  { %11691 = vst [vmem:[#allocation15_spill] sm:$0xff] %v8289_v0  ;;  %v8383_v0 = vperm.slane %v2590_v48, 0  ;;  %v11705_v48 = vperm.slane %v8236_v42, 0 }
 0x268   :  { %11692 = vst [vmem:[#allocation31_spill] sm:$0xff] %v8291_v54  ;;  %v8379_v54 = vperm.slane %v2588_v26, 0  ;;  %v8398_v26 = vperm.slane %v2597_v39, 0  ;;  %v2688_v17 = vmul.f32 %v8371_v11, %v8388_v57  ;;  %v2696_v22 = vsub.f32 %v8308_v30, %v2680_v24 }
 0x269   :  { %11693 = vst [vmem:[#allocation37_spill] sm:$0xff] %v8293_v6  ;;  %v8375_v6 = vperm.slane %v2586_v45, 0  ;;  %v8394_v45 = vperm.slane %v2595_v59, 0  ;;  %v2685_v39 = vmul.f32 %v8371_v11, %v8383_v0  ;;  %v2706_v30 = vsub.f32 %v8349_v37, %v2690_v62 }
 0x26a   :  { %11694 = vst [vmem:[#allocation35_spill] sm:$0xff] %v8295_v14  ;;  %v8377_v14 = vperm.slane %v2587_v63, 0  ;;  %v8396_v63 = vperm.slane %v2596_v10, 0  ;;  %v2683_v59 = vmul.f32 %v8371_v11, %v8379_v54  ;;  %v2693_v35 = vmul.f32 %v8371_v11, %v8398_v26 }
 0x26b   :  { %11695 = vst [vmem:[#allocation29_spill] sm:$0xff] %v8297_v31  ;;  %v8381_v31 = vperm.slane %v2589_v32, 0  ;;  %v8400_v32 = vperm.slane %v2598_v13, 0  ;;  %v2681_v21 = vmul.f32 %v8371_v11, %v8375_v6  ;;  %v2691_v36 = vmul.f32 %v8371_v11, %v8394_v45 }
 0x26c   :  { %11696 = vst [vmem:[#allocation16_spill] sm:$0xff] %v8299_v20  ;;  %v8385_v20 = vperm.slane %v2591_v8, 0  ;;  %v2679_v8 = vmul.f32 %v8371_v11, %v11705_v48  ;;  %v2682_v52 = vmul.f32 %v8371_v11, %v8377_v14  ;;  %v2687_v48 = vmul.f32 %v8371_v11, %v10549_v44 }
 0x26d   :  { %11698 = vst [vmem:[#allocation45_spill] sm:$0xff] %v8371_v11  ;;  %v2684_v10 = vmul.f32 %v8371_v11, %v8381_v31  ;;  %v2692_v7 = vmul.f32 %v8371_v11, %v8396_v63  ;;  %v2694_v44 = vmul.f32 %v8371_v11, %v8400_v32  ;;  %v2733_v62 = vmul.f32 %v8270_v60, %v8383_v0 }
 0x26e   :  { %11699 = vst [vmem:[#allocation7_spill] sm:$0xff] %v8388_v57  ;;  %v2686_v13 = vmul.f32 %v8371_v11, %v8385_v20  ;;  %v2695_v3 = vsub.f32 %v8304_v46, %v2679_v8  ;;  %v2699_v57 = vsub.f32 %v8320_v58, %v2683_v59  ;;  %v2704_v11 = vsub.f32 %v8341_v55, %v2688_v17  ;;  %v11727_v59 = vld [vmem:[#allocation48_spill] sm:$0xff] }
 0x26f   :  { %11700 = vst [vmem:[#allocation9_spill] sm:$0xff] %v8390_v50  ;;  %v2697_v50 = vsub.f32 %v8312_v1, %v2681_v21  ;;  %v2705_v46 = vsub.f32 %v8345_v29, %v2689_v53  ;;  %v2707_v1 = vsub.f32 %v8353_v49, %v2691_v36  ;;  %v2709_v58 = vsub.f32 %v8361_v27, %v2693_v35  ;;  %v11726_v21 = vld [vmem:[#allocation57_spill] sm:$0xff] }
 0x270   :  { %11701 = vst [vmem:[#allocation43_spill] sm:$0xff] %v8392_v2  ;;  %v2698_v2 = vsub.f32 %v8316_v41, %v2682_v52  ;;  %v2702_v5 = vsub.f32 %v8332_v47, %v2686_v13  ;;  %v2708_v41 = vsub.f32 %v8357_v61, %v2692_v7  ;;  %v8456_v47 = vadd.f32 %v2696_v22, %v8058_v25  ;;  %v11715_v7 = vld [vmem:[#allocation19_spill] sm:$0xff] }
 0x271   :  { %11702 = vst [vmem:[#allocation41_spill] sm:$0xff] %v8394_v45  ;;  %v2700_v45 = vsub.f32 %v8324_v38, %v2684_v10  ;;  %v2710_v38 = vsub.f32 %v8365_v12, %v2694_v44  ;;  %v8459_v55 = vadd.f32 %v2697_v50, %v8061_v56  ;;  %v8465_v49 = vadd.f32 %v2699_v57, %v8067_v23 }
 0x272   :  { %11703 = vst [vmem:[#allocation50_spill] sm:$0xff] %v8396_v63  ;;  %v2701_v63 = vsub.f32 %v8328_v40, %v2685_v39  ;;  %v8453_v40 = vadd.f32 %v2695_v3, %v8055_v15  ;;  %v8462_v29 = vadd.f32 %v2698_v2, %v8064_v18  ;;  %v8474_v15 = vadd.f32 %v2702_v5, %v8076_v19  ;;  %v11710_v19 = vld [vmem:[#allocation18_spill] sm:$0xff]  ;;  %v11728_v39 = vld [vmem:[#allocation23_spill] sm:$0xff] }
 0x273   :  { %11704 = vst [vmem:[#allocation52_spill] sm:$0xff] %v8398_v26  ;;  %v2703_v26 = vsub.f32 %v8337_v33, %v2687_v48  ;;  %v8468_v37 = vadd.f32 %v2700_v45, %v8070_v28  ;;  %v8480_v56 = vadd.f32 %v2704_v11, %v8082_v9  ;;  %v8483_v18 = vadd.f32 %v2705_v46, %v8085_v43  ;;  %v11706_v28 = vld [vmem:[#allocation12_spill] sm:$0xff]  ;;  %v11729_v48 = vld [vmem:[#allocation25_spill] sm:$0xff] }
 0x274   :  { %v8471_v44 = vadd.f32 %v2701_v63, %v8073_v4  ;;  %v8486_v23 = vadd.f32 %v2706_v30, %v8088_v34  ;;  %v8489_v12 = vadd.f32 %v2707_v1, %v11706_v28  ;;  %v11708_v4 = vld [vmem:[#allocation42_spill] sm:$0xff]  ;;  %v8495_v22 = vadd.f32 %v2709_v58, %v11710_v19  ;;  %v11723_v63 = vld [vmem:[#allocation47_spill] sm:$0xff]  ;;  %v11725_v8 = vld [vmem:[#allocation45_spill] sm:$0xff] }
 0x275   :  { %v8477_v25 = vadd.f32 %v2703_v26, %v8079_v51  ;;  %v8492_v27 = vadd.f32 %v2708_v41, %v11708_v4  ;;  %v11712_v51 = vld [vmem:[#allocation13_spill] sm:$0xff]  ;;  %v11714_v9 = vperm.slane %v8236_v42, 0  ;;  %v2728_v34 = vmul.f32 %v8270_v60, %v8373_v16  ;;  %v11717_v5 = vld [vmem:[#allocation7_spill] sm:$0xff]  ;;  %v11732_v41 = vld [vmem:[#allocation32_spill] sm:$0xff] }
 0x276   :  { %11707 = vst [vmem:[#allocation5_spill] sm:$0xff] %v8489_v12  ;;  %v8498_v57 = vadd.f32 %v2710_v38, %v11712_v51  ;;  %v2729_v11 = vmul.f32 %v8270_v60, %v8375_v6  ;;  %v2730_v17 = vmul.f32 %v8270_v60, %v8377_v14  ;;  %v2731_v53 = vmul.f32 %v8270_v60, %v8379_v54  ;;  %v11718_v3 = vld [vmem:[#allocation9_spill] sm:$0xff]  ;;  %v11733_v38 = vld [vmem:[#allocation3_spill] sm:$0xff] }
 0x277   :  { %11709 = vst [vmem:[#allocation36_spill] sm:$0xff] %v8492_v27  ;;  %v2727_v43 = vmul.f32 %v8270_v60, %v11714_v9  ;;  %v2732_v50 = vmul.f32 %v8270_v60, %v8381_v31  ;;  %v2734_v36 = vmul.f32 %v8270_v60, %v8385_v20  ;;  %v11716_v16 = vperm.slane %v11715_v7, 0  ;;  %v11719_v54 = vld [vmem:[#allocation43_spill] sm:$0xff]  ;;  %v11730_v30 = vld [vmem:[#allocation61_spill] sm:$0xff] }
 0x278   :  { %11711 = vst [vmem:[#allocation6_spill] sm:$0xff] %v8495_v22  ;;  %v2736_v61 = vmul.f32 %v8270_v60, %v11717_v5  ;;  %v2737_v35 = vmul.f32 %v8270_v60, %v11718_v3  ;;  %v2738_v6 = vmul.f32 %v8270_v60, %v11719_v54  ;;  %v11720_v14 = vld [vmem:[#allocation41_spill] sm:$0xff]  ;;  %v2742_v45 = vmul.f32 %v8270_v60, %v8400_v32  ;;  %v11735_v19 = vld [vmem:[#allocation39_spill] sm:$0xff] }
 0x279   :  { %11713 = vst [vmem:[#allocation8_spill] sm:$0xff] %v8498_v57  ;;  %v2735_v42 = vmul.f32 %v8270_v60, %v11716_v16  ;;  %v2739_v31 = vmul.f32 %v8270_v60, %v11720_v14  ;;  %v11721_v0 = vld [vmem:[#allocation50_spill] sm:$0xff]  ;;  %v11724_v26 = vperm.slane %v11723_v63, 0  ;;  %v2744_v52 = vmul.f32 %v11725_v8, %v11726_v21  ;;  %v11736_v9 = vld [vmem:[#allocation15_spill] sm:$0xff]  ;;  %v11738_v3 = vld [vmem:[#allocation37_spill] sm:$0xff] }
 0x27a   :  { %v2740_v33 = vmul.f32 %v8270_v60, %v11721_v0  ;;  %v11722_v20 = vld [vmem:[#allocation52_spill] sm:$0xff]  ;;  %v2745_v10 = vmul.f32 %v11725_v8, %v11727_v59  ;;  %v2746_v13 = vmul.f32 %v11725_v8, %v11728_v39  ;;  %v2747_v46 = vmul.f32 %v11725_v8, %v11729_v48  ;;  %v11737_v16 = vld [vmem:[#allocation31_spill] sm:$0xff] }
 0x27b   :  { %v2741_v2 = vmul.f32 %v8270_v60, %v11722_v20  ;;  %v2743_v24 = vmul.f32 %v11725_v8, %v11724_v26  ;;  %v2748_v1 = vmul.f32 %v11725_v8, %v11730_v30  ;;  %v11731_v60 = vld [vmem:[#allocation59_spill] sm:$0xff]  ;;  %v2750_v58 = vmul.f32 %v11725_v8, %v11732_v41  ;;  %v11740_v20 = vld [vmem:[#allocation29_spill] sm:$0xff]  ;;  %v11741_v26 = vld [vmem:[#allocation16_spill] sm:$0xff] }
 0x27c   :  { %v2749_v32 = vmul.f32 %v11725_v8, %v11731_v60  ;;  %v11734_v28 = vperm.slane %v11733_v38, 0  ;;  %v2752_v51 = vmul.f32 %v11725_v8, %v11735_v19  ;;  %v2753_v7 = vmul.f32 %v11725_v8, %v11736_v9  ;;  %v11739_v14 = vld [vmem:[#allocation35_spill] sm:$0xff] }
 0x27d   :  { %v2754_v5 = vmul.f32 %v11725_v8, %v11737_v16  ;;  %v2755_v54 = vmul.f32 %v11725_v8, %v11738_v3  ;;  %v2756_v0 = vmul.f32 %v11725_v8, %v11739_v14  ;;  %v2757_v63 = vmul.f32 %v11725_v8, %v11740_v20  ;;  %v11742_v20 = vld [vmem:[#allocation14_spill] sm:$0xff] }
 0x27e   :  { %v2751_v4 = vmul.f32 %v11725_v8, %v11734_v28  ;;  %v2758_v21 = vmul.f32 %v11725_v8, %v11741_v26  ;;  %v2759_v59 = vadd.f32 %v2743_v24, %v2727_v43  ;;  %v2760_v39 = vadd.f32 %v2744_v52, %v2728_v34  ;;  %v11744_v8 = vld [vmem:[#allocation60_spill] sm:$0xff]  ;;  %v11761_v24 = vld [vmem:[#allocation54_spill] sm:$0xff] }
 0x27f   :  { %v2761_v48 = vadd.f32 %v2745_v10, %v2729_v11  ;;  %v2762_v30 = vadd.f32 %v2746_v13, %v2730_v17  ;;  %v2763_v60 = vadd.f32 %v2747_v46, %v2731_v53  ;;  %v2764_v41 = vadd.f32 %v2748_v1, %v2732_v50  ;;  %v11746_v34 = vld [vmem:[#allocation20_spill] sm:$0xff]  ;;  %v11748_v17 = vld [vmem:[#allocation21_spill] sm:$0xff]  ;;  %v11763_v10 = vld [vmem:[#allocation58_spill] sm:$0xff] }
 0x280   :  { %v2765_v38 = vadd.f32 %v2749_v32, %v2733_v62  ;;  %v2766_v28 = vadd.f32 %v2750_v58, %v2734_v36  ;;  %v2767_v19 = vadd.f32 %v2751_v4, %v2735_v42  ;;  %v2768_v9 = vadd.f32 %v2752_v51, %v2736_v61  ;;  %v11750_v50 = vld [vmem:[#allocation33_spill] sm:$0xff]  ;;  %v8586_v36 = vld [vmem:[%s10226_s2 + $0xc0] sm:$0xff]  ;;  %v11753_v42 = vld [vmem:[#allocation40_spill] sm:$0xff] }
 0x281   :  { %v2769_v16 = vadd.f32 %v2753_v7, %v2737_v35  ;;  %v2770_v3 = vadd.f32 %v2754_v5, %v2738_v6  ;;  %v2771_v57 = vadd.f32 %v2755_v54, %v2739_v31  ;;  %v2772_v14 = vadd.f32 %v2756_v0, %v2740_v33  ;;  %11752 = vst [vmem:[#allocation27_spill] sm:$0xff] %v8586_v36  ;;  %v11755_v35 = vld [vmem:[#allocation49_spill] sm:$0xff]  ;;  %v11757_v31 = vld [vmem:[#allocation51_spill] sm:$0xff]  ;;  %v11767_v32 = vld [vmem:[#allocation56_spill] sm:$0xff] }
 0x282   :  { %v2773_v22 = vadd.f32 %v2757_v63, %v2741_v2  ;;  %v2774_v27 = vadd.f32 %v2758_v21, %v2742_v45  ;;  %v8569_v12 = vadd.f32 %v2759_v59, %v11742_v20  ;;  %v8572_v43 = vadd.f32 %v2760_v39, %v11744_v8  ;;  %v11759_v2 = vld [vmem:[#allocation53_spill] sm:$0xff]  ;;  %v11765_v46 = vld [vmem:[#allocation55_spill] sm:$0xff]  ;;  %v11770_v51 = vld [vmem:[#allocation2_spill] sm:$0xff] }
 0x283   :  { %v8575_v11 = vadd.f32 %v2761_v48, %v11746_v34  ;;  %v8578_v53 = vadd.f32 %v2762_v30, %v11748_v17  ;;  %v8581_v62 = vadd.f32 %v2763_v60, %v11750_v50  ;;  %v8589_v61 = vadd.f32 %v2764_v41, %v11753_v42  ;;  %v8615_v4 = vld [vmem:[%s10226_s2 + $0xc8] sm:$0xff]  ;;  %v11772_v5 = vld [vmem:[#allocation4_spill] sm:$0xff]  ;;  %v11774_v0 = vld [vmem:[#allocation38_spill] sm:$0xff] }
 0x284   :  { %11743 = vst [vmem:[#allocation10_spill] sm:$0xff] %v8569_v12  ;;  %v8592_v6 = vadd.f32 %v2765_v38, %v11755_v35  ;;  %v8595_v33 = vadd.f32 %v2766_v28, %v11757_v31  ;;  %v8598_v45 = vadd.f32 %v2767_v19, %v11759_v2  ;;  %v8601_v52 = vadd.f32 %v2768_v9, %v11761_v24  ;;  %v8634_v48 = vld [vmem:[%s10227_s3 + $0xc0] sm:$0xff]  ;;  %v8647_v9 = vld [vmem:[%s10227_s3 + $0xc8] sm:$0xff] }
 0x285   :  { %11745 = vst [vmem:[#allocation46_spill] sm:$0xff] %v8572_v43  ;;  %v8604_v13 = vadd.f32 %v2769_v16, %v11763_v10  ;;  %v8607_v1 = vadd.f32 %v2770_v3, %v11765_v46  ;;  %v8610_v58 = vadd.f32 %v2771_v57, %v11767_v32  ;;  %v8618_v7 = vadd.f32 %v2772_v14, %v11770_v51  ;;  %v8668_v51 = vld [vmem:[%s10228_s0 + $0x18] sm:$0x3] }
 0x286   :  { %11747 = vst [vmem:[#allocation22_spill] sm:$0xff] %v8575_v11  ;;  %v8621_v54 = vadd.f32 %v2773_v22, %v11772_v5  ;;  %v8624_v63 = vadd.f32 %v2774_v27, %v11774_v0  ;;  %v2800_v26 = vrot.slane %v8586_v36, 1  ;;  %v2801_v21 = vrot.slane %v8586_v36, 2  ;;  %v8769_v43 = vld [vmem:[%s10229_s1 + $0x18] sm:$0x3] }
 0x287   :  { %11749 = vst [vmem:[#allocation24_spill] sm:$0xff] %v8578_v53  ;;  %v2802_v57 = vrot.slane %v8586_v36, 3  ;;  %v2803_v59 = vrot.slane %v8586_v36, 4  ;;  %v2804_v39 = vrot.slane %v8586_v36, 5  ;;  %v2805_v22 = vrot.slane %v8586_v36, 6 }
 0x288   :  { %11751 = vst [vmem:[#allocation26_spill] sm:$0xff] %v8581_v62  ;;  %v2806_v27 = vrot.slane %v8586_v36, 7  ;;  %v2807_v30 = vrot.slane %v8615_v4, 1  ;;  %v2808_v60 = vrot.slane %v8615_v4, 2  ;;  %v2809_v41 = vrot.slane %v8615_v4, 3 }
 0x289   :  { %11754 = vst [vmem:[#allocation34_spill] sm:$0xff] %v8589_v61  ;;  %v2810_v38 = vrot.slane %v8615_v4, 4  ;;  %v2811_v28 = vrot.slane %v8615_v4, 5  ;;  %v2812_v19 = vrot.slane %v8615_v4, 6  ;;  %v2813_v16 = vrot.slane %v8615_v4, 7 }
 0x28a   :  { %11756 = vst [vmem:[#allocation28_spill] sm:$0xff] %v8592_v6  ;;  %v2819_v3 = vrot.slane %v8634_v48, 1  ;;  %v2820_v14 = vrot.slane %v8634_v48, 2  ;;  %v2821_v20 = vrot.slane %v8634_v48, 3  ;;  %v2822_v8 = vrot.slane %v8634_v48, 4 }
 0x28b   :  { %11758 = vst [vmem:[#allocation30_spill] sm:$0xff] %v8595_v33  ;;  %v2823_v34 = vrot.slane %v8634_v48, 5  ;;  %v2824_v17 = vrot.slane %v8634_v48, 6  ;;  %v2825_v50 = vrot.slane %v8634_v48, 7  ;;  %v2826_v42 = vrot.slane %v8647_v9, 1 }
 0x28c   :  { %11760 = vst [vmem:[#allocation11_spill] sm:$0xff] %v8598_v45  ;;  %v2827_v35 = vrot.slane %v8647_v9, 2  ;;  %v2828_v31 = vrot.slane %v8647_v9, 3  ;;  %v2829_v2 = vrot.slane %v8647_v9, 4  ;;  %v2830_v24 = vrot.slane %v8647_v9, 5 }
 0x28d   :  { %11762 = vst [vmem:[#allocation17_spill] sm:$0xff] %v8601_v52  ;;  %v2831_v10 = vrot.slane %v8647_v9, 6  ;;  %v2832_v46 = vrot.slane %v8647_v9, 7  ;;  %v8670_v5 = vperm.slane %v2800_v26, 0  ;;  %v8672_v0 = vperm.slane %v2801_v21, 0 }
 0x28e   :  { %11764 = vst [vmem:[#allocation44_spill] sm:$0xff] %v8604_v13  ;;  %v10561_v32 = vperm.slane %v8615_v4, 0  ;;  %v8685_v13 = vperm.slane %v2807_v30, 0  ;;  %v8687_v52 = vperm.slane %v2808_v60, 0  ;;  %v8689_v26 = vperm.slane %v2809_v41, 0 }
 0x28f   :  { %11766 = vst [vmem:[#allocation12_spill] sm:$0xff] %v8607_v1  ;;  %v8682_v1 = vperm.slane %v2806_v27, 0  ;;  %v8691_v21 = vperm.slane %v2810_v38, 0  ;;  %v8706_v30 = vmul.f32 %v8668_v51, %v8670_v5  ;;  %v8710_v60 = vmul.f32 %v8668_v51, %v8672_v0 }
 0x290   :  { %11768 = vst [vmem:[#allocation42_spill] sm:$0xff] %v8610_v58  ;;  %v8680_v58 = vperm.slane %v2805_v22, 0  ;;  %v11791_v22 = vperm.slane %v8586_v36, 0  ;;  %v8739_v45 = vmul.f32 %v8668_v51, %v8685_v13  ;;  %v8743_v33 = vmul.f32 %v8668_v51, %v8687_v52 }
 0x291   :  { %11769 = vst [vmem:[#allocation18_spill] sm:$0xff] %v8615_v4  ;;  %v8747_v6 = vmul.f32 %v8668_v51, %v8689_v26  ;;  %v8751_v61 = vmul.f32 %v8668_v51, %v8691_v21  ;;  %v8771_v12 = vperm.slane %v2819_v3, 0  ;;  %v10576_v11 = vperm.slane %v8647_v9, 0 }
 0x292   :  { %11771 = vst [vmem:[#allocation13_spill] sm:$0xff] %v8618_v7  ;;  %v8678_v7 = vperm.slane %v2804_v39, 0  ;;  %v8697_v39 = vperm.slane %v2813_v16, 0  ;;  %v8702_v27 = vmul.f32 %v8668_v51, %v11791_v22  ;;  %v8730_v16 = vmul.f32 %v8668_v51, %v8682_v1 }
 0x293   :  { %11773 = vst [vmem:[#allocation19_spill] sm:$0xff] %v8621_v54  ;;  %v8676_v54 = vperm.slane %v2803_v59, 0  ;;  %v8695_v59 = vperm.slane %v2812_v19, 0  ;;  %v8726_v19 = vmul.f32 %v8668_v51, %v8680_v58  ;;  %v8735_v22 = vmul.f32 %v8668_v51, %v10561_v32 }
 0x294   :  { %11775 = vst [vmem:[#allocation7_spill] sm:$0xff] %v8624_v63  ;;  %v8674_v63 = vperm.slane %v2802_v57, 0  ;;  %v8693_v57 = vperm.slane %v2811_v28, 0  ;;  %v8722_v28 = vmul.f32 %v8668_v51, %v8678_v7  ;;  %v8763_v53 = vmul.f32 %v8668_v51, %v8697_v39 }
 0x295   :  { %11776 = vst [vmem:[#allocation9_spill] sm:$0xff] %v8647_v9  ;;  %v8718_v38 = vmul.f32 %v8668_v51, %v8676_v54  ;;  %v8759_v62 = vmul.f32 %v8668_v51, %v8695_v59  ;;  %v8788_v4 = vperm.slane %v2827_v35, 0  ;;  %v8790_v3 = vperm.slane %v2828_v31, 0 }
 0x296   :  { %11777 = vst [vmem:[#allocation43_spill] sm:$0xff] %v8670_v5  ;;  %v8714_v41 = vmul.f32 %v8668_v51, %v8674_v63  ;;  %v8755_v32 = vmul.f32 %v8668_v51, %v8693_v57 }
 0x297   :  { %11778 = vst [vmem:[#allocation41_spill] sm:$0xff] %v8672_v0 }
 0x298   :  { %11779 = vst [vmem:[#allocation50_spill] sm:$0xff] %v8674_v63 }
 0x299   :  { %11780 = vst [vmem:[#allocation52_spill] sm:$0xff] %v8676_v54 }
 0x29a   :  { %11781 = vst [vmem:[#allocation47_spill] sm:$0xff] %v8678_v7  ;;  %v2924_v7 = vmul.f32 %v8769_v43, %v8790_v3 }
 0x29b   :  { %11782 = vst [vmem:[#allocation45_spill] sm:$0xff] %v8680_v58  ;;  %v2923_v58 = vmul.f32 %v8769_v43, %v8788_v4 }
 0x29c   :  { %11783 = vst [vmem:[#allocation57_spill] sm:$0xff] %v8682_v1 }
 0x29d   :  { %11784 = vst [vmem:[#allocation48_spill] sm:$0xff] %v8685_v13  ;;  %v8786_v13 = vperm.slane %v2826_v42, 0  ;;  %v2914_v42 = vmul.f32 %v8769_v43, %v8771_v12 }
 0x29e   :  { %11785 = vst [vmem:[#allocation23_spill] sm:$0xff] %v8687_v52  ;;  %v8781_v52 = vperm.slane %v2824_v17, 0  ;;  %v11799_v17 = vperm.slane %v8634_v48, 0 }
 0x29f   :  { %11786 = vst [vmem:[#allocation25_spill] sm:$0xff] %v8689_v26  ;;  %v8777_v26 = vperm.slane %v2822_v8, 0  ;;  %v8796_v8 = vperm.slane %v2831_v10, 0  ;;  %v2922_v1 = vmul.f32 %v8769_v43, %v8786_v13  ;;  %v2930_v36 = vsub.f32 %v8706_v30, %v2914_v42 }
 0x2a0   :  { %11787 = vst [vmem:[#allocation61_spill] sm:$0xff] %v8691_v21  ;;  %v8773_v21 = vperm.slane %v2820_v14, 0  ;;  %v8792_v14 = vperm.slane %v2829_v2, 0  ;;  %v2919_v10 = vmul.f32 %v8769_v43, %v8781_v52  ;;  %v2940_v30 = vsub.f32 %v8747_v6, %v2924_v7 }
 0x2a1   :  { %11788 = vst [vmem:[#allocation59_spill] sm:$0xff] %v8693_v57  ;;  %v8775_v57 = vperm.slane %v2821_v20, 0  ;;  %v8794_v20 = vperm.slane %v2830_v24, 0  ;;  %v2917_v2 = vmul.f32 %v8769_v43, %v8777_v26  ;;  %v2927_v0 = vmul.f32 %v8769_v43, %v8796_v8 }
 0x2a2   :  { %11789 = vst [vmem:[#allocation32_spill] sm:$0xff] %v8695_v59  ;;  %v8779_v59 = vperm.slane %v2823_v34, 0  ;;  %v8798_v34 = vperm.slane %v2832_v46, 0  ;;  %v2915_v35 = vmul.f32 %v8769_v43, %v8773_v21  ;;  %v2925_v54 = vmul.f32 %v8769_v43, %v8792_v14 }
 0x2a3   :  { %11790 = vst [vmem:[#allocation3_spill] sm:$0xff] %v8697_v39  ;;  %v8783_v39 = vperm.slane %v2825_v50, 0  ;;  %v2913_v50 = vmul.f32 %v8769_v43, %v11799_v17  ;;  %v2916_v31 = vmul.f32 %v8769_v43, %v8775_v57  ;;  %v2921_v17 = vmul.f32 %v8769_v43, %v10576_v11 }
 0x2a4   :  { %11792 = vst [vmem:[#allocation39_spill] sm:$0xff] %v8769_v43  ;;  %v2918_v24 = vmul.f32 %v8769_v43, %v8779_v59  ;;  %v2926_v63 = vmul.f32 %v8769_v43, %v8794_v20  ;;  %v2928_v11 = vmul.f32 %v8769_v43, %v8798_v34  ;;  %v2967_v7 = vmul.f32 %v8668_v51, %v8781_v52 }
 0x2a5   :  { %11793 = vst [vmem:[#allocation15_spill] sm:$0xff] %v8786_v13  ;;  %v2920_v46 = vmul.f32 %v8769_v43, %v8783_v39  ;;  %v2929_v5 = vsub.f32 %v8702_v27, %v2913_v50  ;;  %v2933_v13 = vsub.f32 %v8718_v38, %v2917_v2  ;;  %v2938_v43 = vsub.f32 %v8739_v45, %v2922_v1  ;;  %v11821_v2 = vld [vmem:[#allocation41_spill] sm:$0xff] }
 0x2a6   :  { %11794 = vst [vmem:[#allocation31_spill] sm:$0xff] %v8788_v4  ;;  %v2931_v4 = vsub.f32 %v8710_v60, %v2915_v35  ;;  %v2939_v27 = vsub.f32 %v8743_v33, %v2923_v58  ;;  %v2941_v60 = vsub.f32 %v8751_v61, %v2925_v54  ;;  %v2943_v38 = vsub.f32 %v8759_v62, %v2927_v0  ;;  %v11820_v35 = vld [vmem:[#allocation43_spill] sm:$0xff] }
 0x2a7   :  { %11795 = vst [vmem:[#allocation37_spill] sm:$0xff] %v8790_v3  ;;  %v2932_v3 = vsub.f32 %v8714_v41, %v2916_v31  ;;  %v2936_v9 = vsub.f32 %v8730_v16, %v2920_v46  ;;  %v2942_v41 = vsub.f32 %v8755_v32, %v2926_v63  ;;  %v8854_v16 = vadd.f32 %v2930_v36, %v8456_v47  ;;  %v11809_v63 = vld [vmem:[#allocation9_spill] sm:$0xff] }
 0x2a8   :  { %11796 = vst [vmem:[#allocation35_spill] sm:$0xff] %v8792_v14  ;;  %v2934_v14 = vsub.f32 %v8722_v28, %v2918_v24  ;;  %v2944_v28 = vsub.f32 %v8763_v53, %v2928_v11  ;;  %v8857_v45 = vadd.f32 %v2931_v4, %v8459_v55  ;;  %v8863_v61 = vadd.f32 %v2933_v13, %v8465_v49 }
 0x2a9   :  { %11797 = vst [vmem:[#allocation29_spill] sm:$0xff] %v8794_v20  ;;  %v2935_v20 = vsub.f32 %v8726_v19, %v2919_v10  ;;  %v8851_v19 = vadd.f32 %v2929_v5, %v8453_v40  ;;  %v8860_v33 = vadd.f32 %v2932_v3, %v8462_v29  ;;  %v8872_v40 = vadd.f32 %v2936_v9, %v8474_v15  ;;  %v11804_v15 = vld [vmem:[#allocation6_spill] sm:$0xff] }
 0x2aa   :  { %11798 = vst [vmem:[#allocation16_spill] sm:$0xff] %v8796_v8  ;;  %v2937_v8 = vsub.f32 %v8735_v22, %v2921_v17  ;;  %v8866_v6 = vadd.f32 %v2934_v14, %v8468_v37  ;;  %v8878_v55 = vadd.f32 %v2938_v43, %v8480_v56  ;;  %v8881_v29 = vadd.f32 %v2939_v27, %v8483_v18  ;;  %v11800_v37 = vld [vmem:[#allocation5_spill] sm:$0xff]  ;;  %v11822_v10 = vld [vmem:[#allocation50_spill] sm:$0xff]  ;;  %v11823_v17 = vld [vmem:[#allocation52_spill] sm:$0xff] }
 0x2ab   :  { %v8869_v11 = vadd.f32 %v2935_v20, %v8471_v44  ;;  %v8884_v49 = vadd.f32 %v2940_v30, %v8486_v23  ;;  %v8887_v53 = vadd.f32 %v2941_v60, %v11800_v37  ;;  %v11802_v44 = vld [vmem:[#allocation36_spill] sm:$0xff]  ;;  %v8893_v36 = vadd.f32 %v2943_v38, %v11804_v15  ;;  %v11817_v20 = vld [vmem:[#allocation27_spill] sm:$0xff] }
 0x2ac   :  { %v8875_v47 = vadd.f32 %v2937_v8, %v8477_v25  ;;  %v8890_v62 = vadd.f32 %v2942_v41, %v11802_v44  ;;  %v11806_v25 = vld [vmem:[#allocation8_spill] sm:$0xff]  ;;  %v11808_v56 = vperm.slane %v8634_v48, 0  ;;  %v2962_v23 = vmul.f32 %v8668_v51, %v8771_v12  ;;  %v11811_v9 = vld [vmem:[#allocation15_spill] sm:$0xff]  ;;  %v11826_v41 = vld [vmem:[#allocation57_spill] sm:$0xff] }
 0x2ad   :  { %11801 = vst [vmem:[#allocation14_spill] sm:$0xff] %v8887_v53  ;;  %v8896_v13 = vadd.f32 %v2944_v28, %v11806_v25  ;;  %v2963_v43 = vmul.f32 %v8668_v51, %v8773_v21  ;;  %v2964_v1 = vmul.f32 %v8668_v51, %v8775_v57  ;;  %v2965_v58 = vmul.f32 %v8668_v51, %v8777_v26  ;;  %v11812_v5 = vld [vmem:[#allocation31_spill] sm:$0xff]  ;;  %v11827_v28 = vld [vmem:[#allocation18_spill] sm:$0xff]  ;;  %v11829_v15 = vld [vmem:[#allocation48_spill] sm:$0xff] }
 0x2ae   :  { %11803 = vst [vmem:[#allocation60_spill] sm:$0xff] %v8890_v62  ;;  %v2961_v18 = vmul.f32 %v8668_v51, %v11808_v56  ;;  %v2966_v4 = vmul.f32 %v8668_v51, %v8779_v59  ;;  %v2968_v54 = vmul.f32 %v8668_v51, %v8783_v39  ;;  %v11810_v12 = vperm.slane %v11809_v63, 0  ;;  %v11813_v26 = vld [vmem:[#allocation37_spill] sm:$0xff]  ;;  %v11819_v50 = vld [vmem:[#allocation39_spill] sm:$0xff] }
 0x2af   :  { %11805 = vst [vmem:[#allocation20_spill] sm:$0xff] %v8893_v36  ;;  %v2970_v32 = vmul.f32 %v8668_v51, %v11811_v9  ;;  %v2971_v0 = vmul.f32 %v8668_v51, %v11812_v5  ;;  %v2972_v21 = vmul.f32 %v8668_v51, %v11813_v26  ;;  %v11814_v57 = vld [vmem:[#allocation35_spill] sm:$0xff]  ;;  %v2976_v14 = vmul.f32 %v8668_v51, %v8798_v34  ;;  %v11832_v5 = vld [vmem:[#allocation61_spill] sm:$0xff] }
 0x2b0   :  { %11807 = vst [vmem:[#allocation21_spill] sm:$0xff] %v8896_v13  ;;  %v2969_v48 = vmul.f32 %v8668_v51, %v11810_v12  ;;  %v2973_v59 = vmul.f32 %v8668_v51, %v11814_v57  ;;  %v11815_v52 = vld [vmem:[#allocation29_spill] sm:$0xff]  ;;  %v11818_v8 = vperm.slane %v11817_v20, 0  ;;  %v2978_v31 = vmul.f32 %v11819_v50, %v11820_v35  ;;  %v11824_v30 = vld [vmem:[#allocation47_spill] sm:$0xff] }
 0x2b1   :  { %v2974_v22 = vmul.f32 %v8668_v51, %v11815_v52  ;;  %v11816_v39 = vld [vmem:[#allocation16_spill] sm:$0xff]  ;;  %v2979_v24 = vmul.f32 %v11819_v50, %v11821_v2  ;;  %v2980_v46 = vmul.f32 %v11819_v50, %v11822_v10  ;;  %v2981_v27 = vmul.f32 %v11819_v50, %v11823_v17  ;;  %v11830_v56 = vld [vmem:[#allocation23_spill] sm:$0xff]  ;;  %v11831_v12 = vld [vmem:[#allocation25_spill] sm:$0xff] }
 0x2b2   :  { %v2975_v3 = vmul.f32 %v8668_v51, %v11816_v39  ;;  %v2977_v42 = vmul.f32 %v11819_v50, %v11818_v8  ;;  %v2982_v60 = vmul.f32 %v11819_v50, %v11824_v30  ;;  %v11825_v51 = vld [vmem:[#allocation45_spill] sm:$0xff]  ;;  %v2984_v38 = vmul.f32 %v11819_v50, %v11826_v41  ;;  %v11833_v57 = vld [vmem:[#allocation59_spill] sm:$0xff]  ;;  %v11834_v39 = vld [vmem:[#allocation32_spill] sm:$0xff] }
 0x2b3   :  { %v2983_v34 = vmul.f32 %v11819_v50, %v11825_v51  ;;  %v11828_v37 = vperm.slane %v11827_v28, 0  ;;  %v2986_v25 = vmul.f32 %v11819_v50, %v11829_v15  ;;  %v2987_v63 = vmul.f32 %v11819_v50, %v11830_v56  ;;  %v11835_v8 = vld [vmem:[#allocation3_spill] sm:$0xff] }
 0x2b4   :  { %v2988_v9 = vmul.f32 %v11819_v50, %v11831_v12  ;;  %v2989_v26 = vmul.f32 %v11819_v50, %v11832_v5  ;;  %v2990_v52 = vmul.f32 %v11819_v50, %v11833_v57  ;;  %v2991_v20 = vmul.f32 %v11819_v50, %v11834_v39  ;;  %v11836_v39 = vld [vmem:[#allocation10_spill] sm:$0xff] }
 0x2b5   :  { %v2985_v44 = vmul.f32 %v11819_v50, %v11828_v37  ;;  %v2992_v35 = vmul.f32 %v11819_v50, %v11835_v8  ;;  %v2993_v2 = vadd.f32 %v2977_v42, %v2961_v18  ;;  %v2994_v10 = vadd.f32 %v2978_v31, %v2962_v23  ;;  %v11838_v50 = vld [vmem:[#allocation46_spill] sm:$0xff]  ;;  %v11855_v42 = vld [vmem:[#allocation17_spill] sm:$0xff] }
 0x2b6   :  { %v2995_v17 = vadd.f32 %v2979_v24, %v2963_v43  ;;  %v2996_v30 = vadd.f32 %v2980_v46, %v2964_v1  ;;  %v2997_v51 = vadd.f32 %v2981_v27, %v2965_v58  ;;  %v2998_v41 = vadd.f32 %v2982_v60, %v2966_v4  ;;  %v11840_v23 = vld [vmem:[#allocation22_spill] sm:$0xff]  ;;  %v11842_v1 = vld [vmem:[#allocation24_spill] sm:$0xff] }
 0x2b7   :  { %v2999_v28 = vadd.f32 %v2983_v34, %v2967_v7  ;;  %v3000_v37 = vadd.f32 %v2984_v38, %v2968_v54  ;;  %v3001_v15 = vadd.f32 %v2985_v44, %v2969_v48  ;;  %v3002_v56 = vadd.f32 %v2986_v25, %v2970_v32  ;;  %v11844_v4 = vld [vmem:[#allocation26_spill] sm:$0xff]  ;;  %v8984_v54 = vld [vmem:[%s10226_s2 + $0xd0] sm:$0xff]  ;;  %v9013_v44 = vld [vmem:[%s10226_s2 + $0xd8] sm:$0xff] }
 0x2b8   :  { %v3003_v12 = vadd.f32 %v2987_v63, %v2971_v0  ;;  %v3004_v5 = vadd.f32 %v2988_v9, %v2972_v21  ;;  %v3005_v13 = vadd.f32 %v2989_v26, %v2973_v59  ;;  %v3006_v57 = vadd.f32 %v2990_v52, %v2974_v22  ;;  %11846 = vst [vmem:[#allocation54_spill] sm:$0xff] %v8984_v54  ;;  %v11847_v48 = vld [vmem:[#allocation34_spill] sm:$0xff]  ;;  %v11849_v0 = vld [vmem:[#allocation28_spill] sm:$0xff]  ;;  %v11864_v25 = vld [vmem:[#allocation13_spill] sm:$0xff] }
 0x2b9   :  { %v3007_v36 = vadd.f32 %v2991_v20, %v2975_v3  ;;  %v3008_v62 = vadd.f32 %v2992_v35, %v2976_v14  ;;  %v8967_v53 = vadd.f32 %v2993_v2, %v11836_v39  ;;  %v8970_v18 = vadd.f32 %v2994_v10, %v11838_v50  ;;  %v11851_v59 = vld [vmem:[#allocation30_spill] sm:$0xff]  ;;  %v11853_v3 = vld [vmem:[#allocation11_spill] sm:$0xff]  ;;  %v11857_v24 = vld [vmem:[#allocation44_spill] sm:$0xff]  ;;  %11863 = vst [vmem:[#allocation6_spill] sm:$0xff] %v9013_v44 }
 0x2ba   :  { %v8973_v43 = vadd.f32 %v2995_v17, %v11840_v23  ;;  %v8976_v58 = vadd.f32 %v2996_v30, %v11842_v1  ;;  %v8979_v7 = vadd.f32 %v2997_v51, %v11844_v4  ;;  %v8987_v32 = vadd.f32 %v2998_v41, %v11847_v48  ;;  %v11859_v27 = vld [vmem:[#allocation12_spill] sm:$0xff]  ;;  %v11861_v34 = vld [vmem:[#allocation42_spill] sm:$0xff]  ;;  %v11866_v9 = vld [vmem:[#allocation19_spill] sm:$0xff] }
 0x2bb   :  { %11837 = vst [vmem:[#allocation33_spill] sm:$0xff] %v8967_v53  ;;  %v8990_v21 = vadd.f32 %v2999_v28, %v11849_v0  ;;  %v8993_v22 = vadd.f32 %v3000_v37, %v11851_v59  ;;  %v8996_v14 = vadd.f32 %v3001_v15, %v11853_v3  ;;  %v8999_v31 = vadd.f32 %v3002_v56, %v11855_v42  ;;  %v11868_v52 = vld [vmem:[#allocation7_spill] sm:$0xff]  ;;  %v9032_v17 = vld [vmem:[%s10227_s3 + $0xd0] sm:$0xff]  ;;  %v9045_v56 = vld [vmem:[%s10227_s3 + $0xd8] sm:$0xff] }
 0x2bc   :  { %11839 = vst [vmem:[#allocation40_spill] sm:$0xff] %v8970_v18  ;;  %v9002_v46 = vadd.f32 %v3003_v12, %v11857_v24  ;;  %v9005_v60 = vadd.f32 %v3004_v5, %v11859_v27  ;;  %v9008_v38 = vadd.f32 %v3005_v13, %v11861_v34  ;;  %v9016_v63 = vadd.f32 %v3006_v57, %v11864_v25  ;;  %v9066_v25 = vld [vmem:[%s10228_s0 + $0x1a] sm:$0x3] }
 0x2bd   :  { %11841 = vst [vmem:[#allocation49_spill] sm:$0xff] %v8973_v43  ;;  %v9019_v26 = vadd.f32 %v3007_v36, %v11866_v9  ;;  %v9022_v20 = vadd.f32 %v3008_v62, %v11868_v52  ;;  %v3034_v8 = vrot.slane %v8984_v54, 1  ;;  %v3035_v35 = vrot.slane %v8984_v54, 2  ;;  %v9167_v18 = vld [vmem:[%s10229_s1 + $0x1a] sm:$0x3] }
 0x2be   :  { %11843 = vst [vmem:[#allocation51_spill] sm:$0xff] %v8976_v58  ;;  %v3036_v13 = vrot.slane %v8984_v54, 3  ;;  %v3037_v2 = vrot.slane %v8984_v54, 4  ;;  %v3038_v10 = vrot.slane %v8984_v54, 5  ;;  %v3039_v36 = vrot.slane %v8984_v54, 6 }
 0x2bf   :  { %11845 = vst [vmem:[#allocation53_spill] sm:$0xff] %v8979_v7  ;;  %v3040_v62 = vrot.slane %v8984_v54, 7  ;;  %v3041_v30 = vrot.slane %v9013_v44, 1  ;;  %v3042_v51 = vrot.slane %v9013_v44, 2  ;;  %v3043_v41 = vrot.slane %v9013_v44, 3 }
 0x2c0   :  { %11848 = vst [vmem:[#allocation58_spill] sm:$0xff] %v8987_v32  ;;  %v3044_v28 = vrot.slane %v9013_v44, 4  ;;  %v3045_v37 = vrot.slane %v9013_v44, 5  ;;  %v3046_v15 = vrot.slane %v9013_v44, 6  ;;  %v3047_v12 = vrot.slane %v9013_v44, 7 }
 0x2c1   :  { %11850 = vst [vmem:[#allocation55_spill] sm:$0xff] %v8990_v21  ;;  %v3053_v5 = vrot.slane %v9032_v17, 1  ;;  %v3054_v57 = vrot.slane %v9032_v17, 2  ;;  %v3055_v39 = vrot.slane %v9032_v17, 3  ;;  %v3056_v50 = vrot.slane %v9032_v17, 4 }
 0x2c2   :  { %11852 = vst [vmem:[#allocation56_spill] sm:$0xff] %v8993_v22  ;;  %v3057_v23 = vrot.slane %v9032_v17, 5  ;;  %v3058_v1 = vrot.slane %v9032_v17, 6  ;;  %v3059_v4 = vrot.slane %v9032_v17, 7  ;;  %v3060_v48 = vrot.slane %v9045_v56, 1 }
 0x2c3   :  { %11854 = vst [vmem:[#allocation2_spill] sm:$0xff] %v8996_v14  ;;  %v3061_v0 = vrot.slane %v9045_v56, 2  ;;  %v3062_v59 = vrot.slane %v9045_v56, 3  ;;  %v3063_v3 = vrot.slane %v9045_v56, 4  ;;  %v3064_v42 = vrot.slane %v9045_v56, 5 }
 0x2c4   :  { %11856 = vst [vmem:[#allocation4_spill] sm:$0xff] %v8999_v31  ;;  %v3065_v24 = vrot.slane %v9045_v56, 6  ;;  %v3066_v27 = vrot.slane %v9045_v56, 7  ;;  %v9068_v9 = vperm.slane %v3034_v8, 0  ;;  %v9070_v52 = vperm.slane %v3035_v35, 0 }
 0x2c5   :  { %11858 = vst [vmem:[#allocation38_spill] sm:$0xff] %v9002_v46  ;;  %v10588_v34 = vperm.slane %v9013_v44, 0  ;;  %v9083_v46 = vperm.slane %v3041_v30, 0  ;;  %v9085_v31 = vperm.slane %v3042_v51, 0  ;;  %v9087_v8 = vperm.slane %v3043_v41, 0 }
 0x2c6   :  { %11860 = vst [vmem:[#allocation5_spill] sm:$0xff] %v9005_v60  ;;  %v9080_v60 = vperm.slane %v3040_v62, 0  ;;  %v9089_v35 = vperm.slane %v3044_v28, 0  ;;  %v9104_v30 = vmul.f32 %v9066_v25, %v9068_v9  ;;  %v9108_v51 = vmul.f32 %v9066_v25, %v9070_v52 }
 0x2c7   :  { %11862 = vst [vmem:[#allocation36_spill] sm:$0xff] %v9008_v38  ;;  %v9078_v38 = vperm.slane %v3039_v36, 0  ;;  %v11885_v36 = vperm.slane %v8984_v54, 0  ;;  %v9137_v14 = vmul.f32 %v9066_v25, %v9083_v46  ;;  %v9141_v22 = vmul.f32 %v9066_v25, %v9085_v31 }
 0x2c8   :  { %11865 = vst [vmem:[#allocation8_spill] sm:$0xff] %v9016_v63  ;;  %v9076_v63 = vperm.slane %v3038_v10, 0  ;;  %v9095_v10 = vperm.slane %v3047_v12, 0  ;;  %v9128_v12 = vmul.f32 %v9066_v25, %v9080_v60  ;;  %v9145_v21 = vmul.f32 %v9066_v25, %v9087_v8 }
 0x2c9   :  { %11867 = vst [vmem:[#allocation9_spill] sm:$0xff] %v9019_v26  ;;  %v9074_v26 = vperm.slane %v3037_v2, 0  ;;  %v9093_v2 = vperm.slane %v3046_v15, 0  ;;  %v9100_v62 = vmul.f32 %v9066_v25, %v11885_v36  ;;  %v9124_v15 = vmul.f32 %v9066_v25, %v9078_v38 }
 0x2ca   :  { %11869 = vst [vmem:[#allocation15_spill] sm:$0xff] %v9022_v20  ;;  %v9072_v20 = vperm.slane %v3036_v13, 0  ;;  %v9091_v13 = vperm.slane %v3045_v37, 0  ;;  %v9120_v37 = vmul.f32 %v9066_v25, %v9076_v63  ;;  %v9133_v36 = vmul.f32 %v9066_v25, %v10588_v34 }
 0x2cb   :  { %11870 = vst [vmem:[#allocation31_spill] sm:$0xff] %v9045_v56  ;;  %v9116_v28 = vmul.f32 %v9066_v25, %v9074_v26  ;;  %v9149_v32 = vmul.f32 %v9066_v25, %v9089_v35  ;;  %v9157_v7 = vmul.f32 %v9066_v25, %v9093_v2  ;;  %v9161_v58 = vmul.f32 %v9066_v25, %v9095_v10 }
 0x2cc   :  { %11871 = vst [vmem:[#allocation37_spill] sm:$0xff] %v9068_v9  ;;  %v9112_v41 = vmul.f32 %v9066_v25, %v9072_v20  ;;  %v9153_v34 = vmul.f32 %v9066_v25, %v9091_v13  ;;  %v9169_v53 = vperm.slane %v3053_v5, 0  ;;  %v10603_v43 = vperm.slane %v9045_v56, 0 }
 0x2cd   :  { %11872 = vst [vmem:[#allocation35_spill] sm:$0xff] %v9070_v52  ;;  %v9186_v44 = vperm.slane %v3061_v0, 0  ;;  %v9188_v5 = vperm.slane %v3062_v59, 0 }
 0x2ce   :  { %11873 = vst [vmem:[#allocation29_spill] sm:$0xff] %v9072_v20 }
 0x2cf   :  { %11874 = vst [vmem:[#allocation16_spill] sm:$0xff] %v9074_v26 }
 0x2d0   :  { %11875 = vst [vmem:[#allocation27_spill] sm:$0xff] %v9076_v63  ;;  %v3158_v63 = vmul.f32 %v9167_v18, %v9188_v5 }
 0x2d1   :  { %11876 = vst [vmem:[#allocation39_spill] sm:$0xff] %v9078_v38  ;;  %v3157_v38 = vmul.f32 %v9167_v18, %v9186_v44 }
 0x2d2   :  { %11877 = vst [vmem:[#allocation43_spill] sm:$0xff] %v9080_v60 }
 0x2d3   :  { %11878 = vst [vmem:[#allocation41_spill] sm:$0xff] %v9083_v46  ;;  %v9184_v46 = vperm.slane %v3060_v48, 0  ;;  %v3148_v48 = vmul.f32 %v9167_v18, %v9169_v53 }
 0x2d4   :  { %11879 = vst [vmem:[#allocation50_spill] sm:$0xff] %v9085_v31  ;;  %v9179_v31 = vperm.slane %v3058_v1, 0  ;;  %v11893_v1 = vperm.slane %v9032_v17, 0 }
 0x2d5   :  { %11880 = vst [vmem:[#allocation52_spill] sm:$0xff] %v9087_v8  ;;  %v9175_v8 = vperm.slane %v3056_v50, 0  ;;  %v9194_v50 = vperm.slane %v3065_v24, 0  ;;  %v3156_v60 = vmul.f32 %v9167_v18, %v9184_v46  ;;  %v3164_v54 = vsub.f32 %v9104_v30, %v3148_v48 }
 0x2d6   :  { %11881 = vst [vmem:[#allocation47_spill] sm:$0xff] %v9089_v35  ;;  %v9171_v35 = vperm.slane %v3054_v57, 0  ;;  %v9190_v57 = vperm.slane %v3063_v3, 0  ;;  %v3153_v24 = vmul.f32 %v9167_v18, %v9179_v31  ;;  %v3174_v30 = vsub.f32 %v9145_v21, %v3158_v63 }
 0x2d7   :  { %11882 = vst [vmem:[#allocation45_spill] sm:$0xff] %v9091_v13  ;;  %v9173_v13 = vperm.slane %v3055_v39, 0  ;;  %v9192_v39 = vperm.slane %v3064_v42, 0  ;;  %v3151_v3 = vmul.f32 %v9167_v18, %v9175_v8  ;;  %v3161_v52 = vmul.f32 %v9167_v18, %v9194_v50 }
 0x2d8   :  { %11883 = vst [vmem:[#allocation57_spill] sm:$0xff] %v9093_v2  ;;  %v9177_v2 = vperm.slane %v3057_v23, 0  ;;  %v9196_v23 = vperm.slane %v3066_v27, 0  ;;  %v3149_v0 = vmul.f32 %v9167_v18, %v9171_v35  ;;  %v3159_v26 = vmul.f32 %v9167_v18, %v9190_v57 }
 0x2d9   :  { %11884 = vst [vmem:[#allocation18_spill] sm:$0xff] %v9095_v10  ;;  %v9181_v10 = vperm.slane %v3059_v4, 0  ;;  %v3147_v4 = vmul.f32 %v9167_v18, %v11893_v1  ;;  %v3150_v59 = vmul.f32 %v9167_v18, %v9173_v13  ;;  %v3155_v1 = vmul.f32 %v9167_v18, %v10603_v43 }
 0x2da   :  { %11886 = vst [vmem:[#allocation48_spill] sm:$0xff] %v9167_v18  ;;  %v3152_v42 = vmul.f32 %v9167_v18, %v9177_v2  ;;  %v3160_v20 = vmul.f32 %v9167_v18, %v9192_v39  ;;  %v3162_v43 = vmul.f32 %v9167_v18, %v9196_v23  ;;  %v3201_v63 = vmul.f32 %v9066_v25, %v9179_v31 }
 0x2db   :  { %11887 = vst [vmem:[#allocation23_spill] sm:$0xff] %v9184_v46  ;;  %v3154_v27 = vmul.f32 %v9167_v18, %v9181_v10  ;;  %v3163_v9 = vsub.f32 %v9100_v62, %v3147_v4  ;;  %v3167_v46 = vsub.f32 %v9116_v28, %v3151_v3  ;;  %v3172_v18 = vsub.f32 %v9137_v14, %v3156_v60  ;;  %v11915_v3 = vld [vmem:[#allocation35_spill] sm:$0xff] }
 0x2dc   :  { %11888 = vst [vmem:[#allocation25_spill] sm:$0xff] %v9186_v44  ;;  %v3165_v44 = vsub.f32 %v9108_v51, %v3149_v0  ;;  %v3173_v62 = vsub.f32 %v9141_v22, %v3157_v38  ;;  %v3175_v51 = vsub.f32 %v9149_v32, %v3159_v26  ;;  %v3177_v28 = vsub.f32 %v9157_v7, %v3161_v52  ;;  %v11914_v0 = vld [vmem:[#allocation37_spill] sm:$0xff] }
 0x2dd   :  { %11889 = vst [vmem:[#allocation61_spill] sm:$0xff] %v9188_v5  ;;  %v3166_v5 = vsub.f32 %v9112_v41, %v3150_v59  ;;  %v3170_v56 = vsub.f32 %v9128_v12, %v3154_v27  ;;  %v3176_v41 = vsub.f32 %v9153_v34, %v3160_v20  ;;  %v9252_v12 = vadd.f32 %v3164_v54, %v8854_v16  ;;  %v11903_v20 = vld [vmem:[#allocation31_spill] sm:$0xff] }
 0x2de   :  { %11890 = vst [vmem:[#allocation59_spill] sm:$0xff] %v9190_v57  ;;  %v3168_v57 = vsub.f32 %v9120_v37, %v3152_v42  ;;  %v3178_v37 = vsub.f32 %v9161_v58, %v3162_v43  ;;  %v9255_v14 = vadd.f32 %v3165_v44, %v8857_v45  ;;  %v9261_v32 = vadd.f32 %v3167_v46, %v8863_v61 }
 0x2df   :  { %11891 = vst [vmem:[#allocation32_spill] sm:$0xff] %v9192_v39  ;;  %v3169_v39 = vsub.f32 %v9124_v15, %v3153_v24  ;;  %v9249_v15 = vadd.f32 %v3163_v9, %v8851_v19  ;;  %v9258_v22 = vadd.f32 %v3166_v5, %v8860_v33  ;;  %v9270_v19 = vadd.f32 %v3170_v56, %v8872_v40  ;;  %v11898_v40 = vld [vmem:[#allocation20_spill] sm:$0xff]  ;;  %v11916_v24 = vld [vmem:[#allocation29_spill] sm:$0xff] }
 0x2e0   :  { %11892 = vst [vmem:[#allocation3_spill] sm:$0xff] %v9194_v50  ;;  %v3171_v50 = vsub.f32 %v9133_v36, %v3155_v1  ;;  %v9264_v21 = vadd.f32 %v3168_v57, %v8866_v6  ;;  %v9276_v45 = vadd.f32 %v3172_v18, %v8878_v55  ;;  %v9279_v33 = vadd.f32 %v3173_v62, %v8881_v29  ;;  %v11894_v6 = vld [vmem:[#allocation14_spill] sm:$0xff]  ;;  %v11917_v1 = vld [vmem:[#allocation16_spill] sm:$0xff] }
 0x2e1   :  { %v9267_v43 = vadd.f32 %v3169_v39, %v8869_v11  ;;  %v9282_v61 = vadd.f32 %v3174_v30, %v8884_v49  ;;  %v9285_v58 = vadd.f32 %v3175_v51, %v11894_v6  ;;  %v11896_v11 = vld [vmem:[#allocation60_spill] sm:$0xff]  ;;  %v9291_v54 = vadd.f32 %v3177_v28, %v11898_v40  ;;  %v11911_v39 = vld [vmem:[#allocation54_spill] sm:$0xff]  ;;  %v11918_v30 = vld [vmem:[#allocation27_spill] sm:$0xff] }
 0x2e2   :  { %v9273_v16 = vadd.f32 %v3171_v50, %v8875_v47  ;;  %v9288_v7 = vadd.f32 %v3176_v41, %v11896_v11  ;;  %v11900_v47 = vld [vmem:[#allocation21_spill] sm:$0xff]  ;;  %v11902_v55 = vperm.slane %v9032_v17, 0  ;;  %v3196_v49 = vmul.f32 %v9066_v25, %v9169_v53  ;;  %v11905_v56 = vld [vmem:[#allocation23_spill] sm:$0xff]  ;;  %v11913_v4 = vld [vmem:[#allocation48_spill] sm:$0xff] }
 0x2e3   :  { %11895 = vst [vmem:[#allocation10_spill] sm:$0xff] %v9285_v58  ;;  %v9294_v46 = vadd.f32 %v3178_v37, %v11900_v47  ;;  %v3197_v18 = vmul.f32 %v9066_v25, %v9171_v35  ;;  %v3198_v60 = vmul.f32 %v9066_v25, %v9173_v13  ;;  %v3199_v38 = vmul.f32 %v9066_v25, %v9175_v8  ;;  %v11906_v9 = vld [vmem:[#allocation25_spill] sm:$0xff]  ;;  %v11920_v41 = vld [vmem:[#allocation43_spill] sm:$0xff]  ;;  %v11921_v37 = vld [vmem:[#allocation6_spill] sm:$0xff] }
 0x2e4   :  { %11897 = vst [vmem:[#allocation46_spill] sm:$0xff] %v9288_v7  ;;  %v3195_v29 = vmul.f32 %v9066_v25, %v11902_v55  ;;  %v3200_v44 = vmul.f32 %v9066_v25, %v9177_v2  ;;  %v3202_v26 = vmul.f32 %v9066_v25, %v9181_v10  ;;  %v11904_v53 = vperm.slane %v11903_v20, 0  ;;  %v11907_v8 = vld [vmem:[#allocation61_spill] sm:$0xff]  ;;  %v11924_v55 = vld [vmem:[#allocation50_spill] sm:$0xff] }
 0x2e5   :  { %11899 = vst [vmem:[#allocation22_spill] sm:$0xff] %v9291_v54  ;;  %v3204_v34 = vmul.f32 %v9066_v25, %v11905_v56  ;;  %v3205_v52 = vmul.f32 %v9066_v25, %v11906_v9  ;;  %v3206_v35 = vmul.f32 %v9066_v25, %v11907_v8  ;;  %v11908_v13 = vld [vmem:[#allocation59_spill] sm:$0xff]  ;;  %v3210_v57 = vmul.f32 %v9066_v25, %v9196_v23  ;;  %v11923_v40 = vld [vmem:[#allocation41_spill] sm:$0xff] }
 0x2e6   :  { %11901 = vst [vmem:[#allocation24_spill] sm:$0xff] %v9294_v46  ;;  %v3203_v17 = vmul.f32 %v9066_v25, %v11904_v53  ;;  %v3207_v2 = vmul.f32 %v9066_v25, %v11908_v13  ;;  %v11909_v31 = vld [vmem:[#allocation32_spill] sm:$0xff]  ;;  %v11912_v50 = vperm.slane %v11911_v39, 0  ;;  %v3212_v59 = vmul.f32 %v11913_v4, %v11914_v0  ;;  %v11926_v9 = vld [vmem:[#allocation47_spill] sm:$0xff]  ;;  %v11927_v13 = vld [vmem:[#allocation45_spill] sm:$0xff] }
 0x2e7   :  { %v3208_v36 = vmul.f32 %v9066_v25, %v11909_v31  ;;  %v11910_v10 = vld [vmem:[#allocation3_spill] sm:$0xff]  ;;  %v3213_v42 = vmul.f32 %v11913_v4, %v11915_v3  ;;  %v3214_v27 = vmul.f32 %v11913_v4, %v11916_v24  ;;  %v3215_v62 = vmul.f32 %v11913_v4, %v11917_v1  ;;  %v11925_v53 = vld [vmem:[#allocation52_spill] sm:$0xff] }
 0x2e8   :  { %v3209_v5 = vmul.f32 %v9066_v25, %v11910_v10  ;;  %v3211_v48 = vmul.f32 %v11913_v4, %v11912_v50  ;;  %v3216_v51 = vmul.f32 %v11913_v4, %v11918_v30  ;;  %v11919_v25 = vld [vmem:[#allocation39_spill] sm:$0xff]  ;;  %v3218_v28 = vmul.f32 %v11913_v4, %v11920_v41  ;;  %v11928_v10 = vld [vmem:[#allocation57_spill] sm:$0xff]  ;;  %v11929_v50 = vld [vmem:[#allocation18_spill] sm:$0xff] }
 0x2e9   :  { %v3217_v23 = vmul.f32 %v11913_v4, %v11919_v25  ;;  %v11922_v6 = vperm.slane %v11921_v37, 0  ;;  %v3220_v47 = vmul.f32 %v11913_v4, %v11923_v40  ;;  %v3221_v20 = vmul.f32 %v11913_v4, %v11924_v55 }
 0x2ea   :  { %v3222_v56 = vmul.f32 %v11913_v4, %v11925_v53  ;;  %v3223_v8 = vmul.f32 %v11913_v4, %v11926_v9  ;;  %v3224_v31 = vmul.f32 %v11913_v4, %v11927_v13  ;;  %v3225_v39 = vmul.f32 %v11913_v4, %v11928_v10  ;;  %v11930_v10 = vld [vmem:[#allocation33_spill] sm:$0xff] }
 0x2eb   :  { %v3219_v11 = vmul.f32 %v11913_v4, %v11922_v6  ;;  %v3226_v0 = vmul.f32 %v11913_v4, %v11929_v50  ;;  %v3227_v3 = vadd.f32 %v3211_v48, %v3195_v29  ;;  %v3228_v24 = vadd.f32 %v3212_v59, %v3196_v49  ;;  %v11932_v4 = vld [vmem:[#allocation40_spill] sm:$0xff]  ;;  %v11934_v49 = vld [vmem:[#allocation49_spill] sm:$0xff] }
 0x2ec   :  { %v3229_v1 = vadd.f32 %v3213_v42, %v3197_v18  ;;  %v3230_v30 = vadd.f32 %v3214_v27, %v3198_v60  ;;  %v3231_v25 = vadd.f32 %v3215_v62, %v3199_v38  ;;  %v3232_v41 = vadd.f32 %v3216_v51, %v3200_v44  ;;  %v11936_v60 = vld [vmem:[#allocation51_spill] sm:$0xff]  ;;  %v11938_v44 = vld [vmem:[#allocation53_spill] sm:$0xff]  ;;  %v11949_v48 = vld [vmem:[#allocation4_spill] sm:$0xff] }
 0x2ed   :  { %v3233_v37 = vadd.f32 %v3217_v23, %v3201_v63  ;;  %v3234_v6 = vadd.f32 %v3218_v28, %v3202_v26  ;;  %v3235_v40 = vadd.f32 %v3219_v11, %v3203_v17  ;;  %v3236_v55 = vadd.f32 %v3220_v47, %v3204_v34  ;;  %v9382_v26 = vld [vmem:[%s10226_s2 + $0xe0] sm:$0xff]  ;;  %v11953_v62 = vld [vmem:[#allocation5_spill] sm:$0xff]  ;;  %v11955_v23 = vld [vmem:[#allocation36_spill] sm:$0xff] }
 0x2ee   :  { %v3237_v53 = vadd.f32 %v3221_v20, %v3205_v52  ;;  %v3238_v9 = vadd.f32 %v3222_v56, %v3206_v35  ;;  %v3239_v46 = vadd.f32 %v3223_v8, %v3207_v2  ;;  %v3240_v13 = vadd.f32 %v3224_v31, %v3208_v36  ;;  %11940 = vst [vmem:[#allocation17_spill] sm:$0xff] %v9382_v26  ;;  %v11941_v17 = vld [vmem:[#allocation58_spill] sm:$0xff]  ;;  %v11943_v52 = vld [vmem:[#allocation55_spill] sm:$0xff]  ;;  %v11945_v2 = vld [vmem:[#allocation56_spill] sm:$0xff] }
 0x2ef   :  { %v3241_v54 = vadd.f32 %v3225_v39, %v3209_v5  ;;  %v3242_v7 = vadd.f32 %v3226_v0, %v3210_v57  ;;  %v9365_v58 = vadd.f32 %v3227_v3, %v11930_v10  ;;  %v9368_v29 = vadd.f32 %v3228_v24, %v11932_v4  ;;  %v11947_v5 = vld [vmem:[#allocation2_spill] sm:$0xff]  ;;  %v9411_v11 = vld [vmem:[%s10226_s2 + $0xe8] sm:$0xff]  ;;  %v11958_v47 = vld [vmem:[#allocation8_spill] sm:$0xff] }
 0x2f0   :  { %v9371_v18 = vadd.f32 %v3229_v1, %v11934_v49  ;;  %v9374_v38 = vadd.f32 %v3230_v30, %v11936_v60  ;;  %v9377_v63 = vadd.f32 %v3231_v25, %v11938_v44  ;;  %v9385_v34 = vadd.f32 %v3232_v41, %v11941_v17  ;;  %v11951_v42 = vld [vmem:[#allocation38_spill] sm:$0xff]  ;;  %11957 = vst [vmem:[#allocation20_spill] sm:$0xff] %v9411_v11  ;;  %v11960_v56 = vld [vmem:[#allocation9_spill] sm:$0xff]  ;;  %v11962_v31 = vld [vmem:[#allocation15_spill] sm:$0xff] }
 0x2f1   :  { %11931 = vst [vmem:[#allocation26_spill] sm:$0xff] %v9365_v58  ;;  %v9388_v35 = vadd.f32 %v3233_v37, %v11943_v52  ;;  %v9391_v36 = vadd.f32 %v3234_v6, %v11945_v2  ;;  %v9394_v57 = vadd.f32 %v3235_v40, %v11947_v5  ;;  %v9397_v59 = vadd.f32 %v3236_v55, %v11949_v48  ;;  %v9430_v1 = vld [vmem:[%s10227_s3 + $0xe0] sm:$0xff]  ;;  %v9443_v55 = vld [vmem:[%s10227_s3 + $0xe8] sm:$0xff] }
 0x2f2   :  { %11933 = vst [vmem:[#allocation34_spill] sm:$0xff] %v9368_v29  ;;  %v9400_v27 = vadd.f32 %v3237_v53, %v11951_v42  ;;  %v9403_v51 = vadd.f32 %v3238_v9, %v11953_v62  ;;  %v9406_v28 = vadd.f32 %v3239_v46, %v11955_v23  ;;  %v9414_v20 = vadd.f32 %v3240_v13, %v11958_v47  ;;  %v9464_v47 = vld [vmem:[%s10228_s0 + $0x1c] sm:$0x3] }
 0x2f3   :  { %11935 = vst [vmem:[#allocation28_spill] sm:$0xff] %v9371_v18  ;;  %v9417_v8 = vadd.f32 %v3241_v54, %v11960_v56  ;;  %v9420_v39 = vadd.f32 %v3242_v7, %v11962_v31  ;;  %v3268_v50 = vrot.slane %v9382_v26, 1  ;;  %v3269_v0 = vrot.slane %v9382_v26, 2  ;;  %v9565_v29 = vld [vmem:[%s10229_s1 + $0x1c] sm:$0x3] }
 0x2f4   :  { %11937 = vst [vmem:[#allocation30_spill] sm:$0xff] %v9374_v38  ;;  %v3270_v46 = vrot.slane %v9382_v26, 3  ;;  %v3271_v3 = vrot.slane %v9382_v26, 4  ;;  %v3272_v24 = vrot.slane %v9382_v26, 5  ;;  %v3273_v54 = vrot.slane %v9382_v26, 6 }
 0x2f5   :  { %11939 = vst [vmem:[#allocation11_spill] sm:$0xff] %v9377_v63  ;;  %v3274_v7 = vrot.slane %v9382_v26, 7  ;;  %v3275_v30 = vrot.slane %v9411_v11, 1  ;;  %v3276_v25 = vrot.slane %v9411_v11, 2  ;;  %v3277_v41 = vrot.slane %v9411_v11, 3 }
 0x2f6   :  { %11942 = vst [vmem:[#allocation44_spill] sm:$0xff] %v9385_v34  ;;  %v3278_v37 = vrot.slane %v9411_v11, 4  ;;  %v3279_v6 = vrot.slane %v9411_v11, 5  ;;  %v3280_v40 = vrot.slane %v9411_v11, 6  ;;  %v3281_v53 = vrot.slane %v9411_v11, 7 }
 0x2f7   :  { %11944 = vst [vmem:[#allocation12_spill] sm:$0xff] %v9388_v35  ;;  %v3287_v9 = vrot.slane %v9430_v1, 1  ;;  %v3288_v13 = vrot.slane %v9430_v1, 2  ;;  %v3289_v10 = vrot.slane %v9430_v1, 3  ;;  %v3290_v4 = vrot.slane %v9430_v1, 4 }
 0x2f8   :  { %11946 = vst [vmem:[#allocation42_spill] sm:$0xff] %v9391_v36  ;;  %v3291_v49 = vrot.slane %v9430_v1, 5  ;;  %v3292_v60 = vrot.slane %v9430_v1, 6  ;;  %v3293_v44 = vrot.slane %v9430_v1, 7  ;;  %v3294_v17 = vrot.slane %v9443_v55, 1 }
 0x2f9   :  { %11948 = vst [vmem:[#allocation13_spill] sm:$0xff] %v9394_v57  ;;  %v3295_v52 = vrot.slane %v9443_v55, 2  ;;  %v3296_v2 = vrot.slane %v9443_v55, 3  ;;  %v3297_v5 = vrot.slane %v9443_v55, 4  ;;  %v3298_v48 = vrot.slane %v9443_v55, 5 }
 0x2fa   :  { %11950 = vst [vmem:[#allocation19_spill] sm:$0xff] %v9397_v59  ;;  %v3299_v42 = vrot.slane %v9443_v55, 6  ;;  %v3300_v62 = vrot.slane %v9443_v55, 7  ;;  %v9466_v56 = vperm.slane %v3268_v50, 0  ;;  %v9468_v31 = vperm.slane %v3269_v0, 0 }
 0x2fb   :  { %11952 = vst [vmem:[#allocation7_spill] sm:$0xff] %v9400_v27  ;;  %v10615_v23 = vperm.slane %v9411_v11, 0  ;;  %v9481_v27 = vperm.slane %v3275_v30, 0  ;;  %v9483_v59 = vperm.slane %v3276_v25, 0  ;;  %v9485_v50 = vperm.slane %v3277_v41, 0 }
 0x2fc   :  { %11954 = vst [vmem:[#allocation14_spill] sm:$0xff] %v9403_v51  ;;  %v9478_v51 = vperm.slane %v3274_v7, 0  ;;  %v9487_v0 = vperm.slane %v3278_v37, 0  ;;  %v9502_v30 = vmul.f32 %v9464_v47, %v9466_v56  ;;  %v9506_v25 = vmul.f32 %v9464_v47, %v9468_v31 }
 0x2fd   :  { %11956 = vst [vmem:[#allocation60_spill] sm:$0xff] %v9406_v28  ;;  %v9476_v28 = vperm.slane %v3273_v54, 0  ;;  %v11979_v54 = vperm.slane %v9382_v26, 0  ;;  %v9535_v57 = vmul.f32 %v9464_v47, %v9481_v27  ;;  %v9539_v36 = vmul.f32 %v9464_v47, %v9483_v59 }
 0x2fe   :  { %11959 = vst [vmem:[#allocation21_spill] sm:$0xff] %v9414_v20  ;;  %v9474_v20 = vperm.slane %v3272_v24, 0  ;;  %v9493_v24 = vperm.slane %v3281_v53, 0  ;;  %v9526_v53 = vmul.f32 %v9464_v47, %v9478_v51  ;;  %v9543_v35 = vmul.f32 %v9464_v47, %v9485_v50 }
 0x2ff   :  { %11961 = vst [vmem:[#allocation31_spill] sm:$0xff] %v9417_v8  ;;  %v9472_v8 = vperm.slane %v3271_v3, 0  ;;  %v9491_v3 = vperm.slane %v3280_v40, 0  ;;  %v9498_v7 = vmul.f32 %v9464_v47, %v11979_v54  ;;  %v9522_v40 = vmul.f32 %v9464_v47, %v9476_v28 }
 0x300   :  { %11963 = vst [vmem:[#allocation23_spill] sm:$0xff] %v9420_v39  ;;  %v9470_v39 = vperm.slane %v3270_v46, 0  ;;  %v9489_v46 = vperm.slane %v3279_v6, 0  ;;  %v9518_v6 = vmul.f32 %v9464_v47, %v9474_v20  ;;  %v9531_v54 = vmul.f32 %v9464_v47, %v10615_v23 }
 0x301   :  { %11964 = vst [vmem:[#allocation25_spill] sm:$0xff] %v9443_v55  ;;  %v9514_v37 = vmul.f32 %v9464_v47, %v9472_v8  ;;  %v9547_v34 = vmul.f32 %v9464_v47, %v9487_v0  ;;  %v9555_v63 = vmul.f32 %v9464_v47, %v9491_v3  ;;  %v9559_v38 = vmul.f32 %v9464_v47, %v9493_v24 }
 0x302   :  { %11965 = vst [vmem:[#allocation61_spill] sm:$0xff] %v9466_v56  ;;  %v9510_v41 = vmul.f32 %v9464_v47, %v9470_v39  ;;  %v9551_v23 = vmul.f32 %v9464_v47, %v9489_v46  ;;  %v9567_v58 = vperm.slane %v3287_v9, 0  ;;  %v10630_v18 = vperm.slane %v9443_v55, 0 }
 0x303   :  { %11966 = vst [vmem:[#allocation59_spill] sm:$0xff] %v9468_v31  ;;  %v9584_v11 = vperm.slane %v3295_v52, 0  ;;  %v9586_v9 = vperm.slane %v3296_v2, 0 }
 0x304   :  { %11967 = vst [vmem:[#allocation32_spill] sm:$0xff] %v9470_v39 }
 0x305   :  { %11968 = vst [vmem:[#allocation3_spill] sm:$0xff] %v9472_v8 }
 0x306   :  { %11969 = vst [vmem:[#allocation54_spill] sm:$0xff] %v9474_v20  ;;  %v3392_v20 = vmul.f32 %v9565_v29, %v9586_v9 }
 0x307   :  { %11970 = vst [vmem:[#allocation48_spill] sm:$0xff] %v9476_v28  ;;  %v3391_v28 = vmul.f32 %v9565_v29, %v9584_v11 }
 0x308   :  { %11971 = vst [vmem:[#allocation37_spill] sm:$0xff] %v9478_v51 }
 0x309   :  { %11972 = vst [vmem:[#allocation35_spill] sm:$0xff] %v9481_v27  ;;  %v9582_v27 = vperm.slane %v3294_v17, 0  ;;  %v3382_v17 = vmul.f32 %v9565_v29, %v9567_v58 }
 0x30a   :  { %11973 = vst [vmem:[#allocation29_spill] sm:$0xff] %v9483_v59  ;;  %v9577_v59 = vperm.slane %v3292_v60, 0  ;;  %v11987_v60 = vperm.slane %v9430_v1, 0 }
 0x30b   :  { %11974 = vst [vmem:[#allocation16_spill] sm:$0xff] %v9485_v50  ;;  %v9573_v50 = vperm.slane %v3290_v4, 0  ;;  %v9592_v4 = vperm.slane %v3299_v42, 0  ;;  %v3390_v51 = vmul.f32 %v9565_v29, %v9582_v27  ;;  %v3398_v26 = vsub.f32 %v9502_v30, %v3382_v17 }
 0x30c   :  { %11975 = vst [vmem:[#allocation27_spill] sm:$0xff] %v9487_v0  ;;  %v9569_v0 = vperm.slane %v3288_v13, 0  ;;  %v9588_v13 = vperm.slane %v3297_v5, 0  ;;  %v3387_v42 = vmul.f32 %v9565_v29, %v9577_v59  ;;  %v3408_v30 = vsub.f32 %v9543_v35, %v3392_v20 }
 0x30d   :  { %11976 = vst [vmem:[#allocation39_spill] sm:$0xff] %v9489_v46  ;;  %v9571_v46 = vperm.slane %v3289_v10, 0  ;;  %v9590_v10 = vperm.slane %v3298_v48, 0  ;;  %v3385_v5 = vmul.f32 %v9565_v29, %v9573_v50  ;;  %v3395_v31 = vmul.f32 %v9565_v29, %v9592_v4 }
 0x30e   :  { %11977 = vst [vmem:[#allocation43_spill] sm:$0xff] %v9491_v3  ;;  %v9575_v3 = vperm.slane %v3291_v49, 0  ;;  %v9594_v49 = vperm.slane %v3300_v62, 0  ;;  %v3383_v52 = vmul.f32 %v9565_v29, %v9569_v0  ;;  %v3393_v8 = vmul.f32 %v9565_v29, %v9588_v13 }
 0x30f   :  { %11978 = vst [vmem:[#allocation6_spill] sm:$0xff] %v9493_v24  ;;  %v9579_v24 = vperm.slane %v3293_v44, 0  ;;  %v3381_v44 = vmul.f32 %v9565_v29, %v11987_v60  ;;  %v3384_v2 = vmul.f32 %v9565_v29, %v9571_v46  ;;  %v3389_v60 = vmul.f32 %v9565_v29, %v10630_v18 }
 0x310   :  { %11980 = vst [vmem:[#allocation41_spill] sm:$0xff] %v9565_v29  ;;  %v3386_v48 = vmul.f32 %v9565_v29, %v9575_v3  ;;  %v3394_v39 = vmul.f32 %v9565_v29, %v9590_v10  ;;  %v3396_v18 = vmul.f32 %v9565_v29, %v9594_v49  ;;  %v3435_v20 = vmul.f32 %v9464_v47, %v9577_v59 }
 0x311   :  { %11981 = vst [vmem:[#allocation50_spill] sm:$0xff] %v9582_v27  ;;  %v3388_v62 = vmul.f32 %v9565_v29, %v9579_v24  ;;  %v3397_v56 = vsub.f32 %v9498_v7, %v3381_v44  ;;  %v3401_v27 = vsub.f32 %v9514_v37, %v3385_v5  ;;  %v3406_v29 = vsub.f32 %v9535_v57, %v3390_v51  ;;  %v12008_v5 = vld [vmem:[#allocation59_spill] sm:$0xff] }
 0x312   :  { %11982 = vst [vmem:[#allocation52_spill] sm:$0xff] %v9584_v11  ;;  %v3399_v11 = vsub.f32 %v9506_v25, %v3383_v52  ;;  %v3407_v7 = vsub.f32 %v9539_v36, %v3391_v28  ;;  %v3409_v25 = vsub.f32 %v9547_v34, %v3393_v8  ;;  %v3411_v37 = vsub.f32 %v9555_v63, %v3395_v31  ;;  %v12007_v52 = vld [vmem:[#allocation61_spill] sm:$0xff] }
 0x313   :  { %11983 = vst [vmem:[#allocation47_spill] sm:$0xff] %v9586_v9  ;;  %v3400_v9 = vsub.f32 %v9510_v41, %v3384_v2  ;;  %v3404_v55 = vsub.f32 %v9526_v53, %v3388_v62  ;;  %v3410_v41 = vsub.f32 %v9551_v23, %v3394_v39  ;;  %v9650_v53 = vadd.f32 %v3398_v26, %v9252_v12  ;;  %v11996_v39 = vld [vmem:[#allocation25_spill] sm:$0xff] }
 0x314   :  { %11984 = vst [vmem:[#allocation45_spill] sm:$0xff] %v9588_v13  ;;  %v3402_v13 = vsub.f32 %v9518_v6, %v3386_v48  ;;  %v3412_v6 = vsub.f32 %v9559_v38, %v3396_v18  ;;  %v9653_v57 = vadd.f32 %v3399_v11, %v9255_v14  ;;  %v9659_v34 = vadd.f32 %v3401_v27, %v9261_v32 }
 0x315   :  { %11985 = vst [vmem:[#allocation57_spill] sm:$0xff] %v9590_v10  ;;  %v3403_v10 = vsub.f32 %v9522_v40, %v3387_v42  ;;  %v9647_v40 = vadd.f32 %v3397_v56, %v9249_v15  ;;  %v9656_v36 = vadd.f32 %v3400_v9, %v9258_v22  ;;  %v9668_v15 = vadd.f32 %v3404_v55, %v9270_v19  ;;  %v11991_v19 = vld [vmem:[#allocation22_spill] sm:$0xff]  ;;  %v12009_v42 = vld [vmem:[#allocation32_spill] sm:$0xff] }
 0x316   :  { %11986 = vst [vmem:[#allocation18_spill] sm:$0xff] %v9592_v4  ;;  %v3405_v4 = vsub.f32 %v9531_v54, %v3389_v60  ;;  %v9662_v35 = vadd.f32 %v3402_v13, %v9264_v21  ;;  %v9674_v14 = vadd.f32 %v3406_v29, %v9276_v45  ;;  %v9677_v22 = vadd.f32 %v3407_v7, %v9279_v33  ;;  %v11988_v21 = vld [vmem:[#allocation10_spill] sm:$0xff]  ;;  %v12010_v60 = vld [vmem:[#allocation3_spill] sm:$0xff] }
 0x317   :  { %v9665_v18 = vadd.f32 %v3403_v10, %v9267_v43  ;;  %v9680_v32 = vadd.f32 %v3408_v30, %v9282_v61  ;;  %v9683_v38 = vadd.f32 %v3409_v25, %v11988_v21  ;;  %v11989_v43 = vld [vmem:[#allocation46_spill] sm:$0xff]  ;;  %v9689_v26 = vadd.f32 %v3411_v37, %v11991_v19  ;;  %v12004_v10 = vld [vmem:[#allocation17_spill] sm:$0xff]  ;;  %v12016_v19 = vld [vmem:[#allocation35_spill] sm:$0xff] }
 0x318   :  { %v9671_v12 = vadd.f32 %v3405_v4, %v9273_v16  ;;  %v9686_v63 = vadd.f32 %v3410_v41, %v11989_v43  ;;  %v11993_v16 = vld [vmem:[#allocation24_spill] sm:$0xff]  ;;  %v11995_v45 = vperm.slane %v9430_v1, 0  ;;  %v3430_v61 = vmul.f32 %v9464_v47, %v9567_v58  ;;  %v11998_v55 = vld [vmem:[#allocation50_spill] sm:$0xff]  ;;  %v12006_v44 = vld [vmem:[#allocation41_spill] sm:$0xff] }
 0x319   :  { %11992 = vst [vmem:[#allocation40_spill] sm:$0xff] %v9689_v26  ;;  %v9692_v27 = vadd.f32 %v3412_v6, %v11993_v16  ;;  %v3431_v29 = vmul.f32 %v9464_v47, %v9569_v0  ;;  %v3432_v51 = vmul.f32 %v9464_v47, %v9571_v46  ;;  %v3433_v28 = vmul.f32 %v9464_v47, %v9573_v50  ;;  %v11999_v56 = vld [vmem:[#allocation52_spill] sm:$0xff]  ;;  %v12011_v30 = vld [vmem:[#allocation54_spill] sm:$0xff]  ;;  %v12013_v41 = vld [vmem:[#allocation37_spill] sm:$0xff] }
 0x31a   :  { %11990 = vst [vmem:[#allocation33_spill] sm:$0xff] %v9686_v63  ;;  %v3429_v33 = vmul.f32 %v9464_v47, %v11995_v45  ;;  %v3434_v11 = vmul.f32 %v9464_v47, %v9575_v3  ;;  %v3436_v8 = vmul.f32 %v9464_v47, %v9579_v24  ;;  %v11997_v58 = vperm.slane %v11996_v39, 0  ;;  %v12000_v50 = vld [vmem:[#allocation47_spill] sm:$0xff]  ;;  %v12014_v6 = vld [vmem:[#allocation20_spill] sm:$0xff]  ;;  %v12017_v45 = vld [vmem:[#allocation29_spill] sm:$0xff] }
 0x31b   :  { %11994 = vst [vmem:[#allocation49_spill] sm:$0xff] %v9692_v27  ;;  %v3438_v23 = vmul.f32 %v9464_v47, %v11998_v55  ;;  %v3439_v31 = vmul.f32 %v9464_v47, %v11999_v56  ;;  %v3440_v0 = vmul.f32 %v9464_v47, %v12000_v50  ;;  %v12001_v46 = vld [vmem:[#allocation45_spill] sm:$0xff]  ;;  %v3444_v13 = vmul.f32 %v9464_v47, %v9594_v49  ;;  %v12019_v56 = vld [vmem:[#allocation27_spill] sm:$0xff] }
 0x31c   :  { %v3437_v1 = vmul.f32 %v9464_v47, %v11997_v58  ;;  %v3441_v3 = vmul.f32 %v9464_v47, %v12001_v46  ;;  %v12002_v59 = vld [vmem:[#allocation57_spill] sm:$0xff]  ;;  %v12005_v4 = vperm.slane %v12004_v10, 0  ;;  %v3446_v2 = vmul.f32 %v12006_v44, %v12007_v52  ;;  %v12018_v58 = vld [vmem:[#allocation16_spill] sm:$0xff]  ;;  %v12020_v46 = vld [vmem:[#allocation39_spill] sm:$0xff] }
 0x31d   :  { %v3442_v54 = vmul.f32 %v9464_v47, %v12002_v59  ;;  %v12003_v24 = vld [vmem:[#allocation18_spill] sm:$0xff]  ;;  %v3447_v48 = vmul.f32 %v12006_v44, %v12008_v5  ;;  %v3448_v62 = vmul.f32 %v12006_v44, %v12009_v42  ;;  %v3449_v7 = vmul.f32 %v12006_v44, %v12010_v60 }
 0x31e   :  { %v3443_v9 = vmul.f32 %v9464_v47, %v12003_v24  ;;  %v3445_v17 = vmul.f32 %v12006_v44, %v12005_v4  ;;  %v3450_v25 = vmul.f32 %v12006_v44, %v12011_v30  ;;  %v12012_v47 = vld [vmem:[#allocation48_spill] sm:$0xff]  ;;  %v3452_v37 = vmul.f32 %v12006_v44, %v12013_v41  ;;  %v12021_v24 = vld [vmem:[#allocation43_spill] sm:$0xff]  ;;  %v12022_v4 = vld [vmem:[#allocation6_spill] sm:$0xff] }
 0x31f   :  { %v3451_v49 = vmul.f32 %v12006_v44, %v12012_v47  ;;  %v12015_v21 = vperm.slane %v12014_v6, 0  ;;  %v3454_v16 = vmul.f32 %v12006_v44, %v12016_v19  ;;  %v3455_v39 = vmul.f32 %v12006_v44, %v12017_v45 }
 0x320   :  { %v3456_v55 = vmul.f32 %v12006_v44, %v12018_v58  ;;  %v3457_v50 = vmul.f32 %v12006_v44, %v12019_v56  ;;  %v3458_v59 = vmul.f32 %v12006_v44, %v12020_v46  ;;  %v3459_v10 = vmul.f32 %v12006_v44, %v12021_v24 }
 0x321   :  { %v3453_v43 = vmul.f32 %v12006_v44, %v12015_v21  ;;  %v3460_v52 = vmul.f32 %v12006_v44, %v12022_v4  ;;  %v3461_v5 = vadd.f32 %v3445_v17, %v3429_v33  ;;  %v3462_v42 = vadd.f32 %v3446_v2, %v3430_v61  ;;  %v12027_v33 = vld [vmem:[#allocation26_spill] sm:$0xff]  ;;  %v12043_v17 = vld [vmem:[#allocation13_spill] sm:$0xff] }
 0x322   :  { %v3463_v60 = vadd.f32 %v3447_v48, %v3431_v29  ;;  %v3464_v30 = vadd.f32 %v3448_v62, %v3432_v51  ;;  %v3465_v47 = vadd.f32 %v3449_v7, %v3433_v28  ;;  %v3466_v41 = vadd.f32 %v3450_v25, %v3434_v11  ;;  %v9776_v29 = vld [vmem:[%s10226_s2 + $0xf0] sm:$0xff]  ;;  %v12029_v51 = vld [vmem:[#allocation34_spill] sm:$0xff]  ;;  %v9805_v48 = vld [vmem:[%s10226_s2 + $0xf8] sm:$0xff] }
 0x323   :  { %v3467_v6 = vadd.f32 %v3451_v49, %v3435_v20  ;;  %v3468_v21 = vadd.f32 %v3452_v37, %v3436_v8  ;;  %v3469_v19 = vadd.f32 %v3453_v43, %v3437_v1  ;;  %v3470_v45 = vadd.f32 %v3454_v16, %v3438_v23  ;;  %v12031_v11 = vld [vmem:[#allocation28_spill] sm:$0xff]  ;;  %v12033_v8 = vld [vmem:[#allocation30_spill] sm:$0xff]  ;;  %v12035_v23 = vld [vmem:[#allocation11_spill] sm:$0xff]  ;;  %12045 = vst [vmem:[#allocation10_spill] sm:$0xff] %v9805_v48 }
 0x324   :  { %v3471_v58 = vadd.f32 %v3455_v39, %v3439_v31  ;;  %v3472_v56 = vadd.f32 %v3456_v55, %v3440_v0  ;;  %v9762_v27 = vadd.f32 %v3457_v50, %v3441_v3  ;;  %v9764_v46 = vadd.f32 %v3458_v59, %v3442_v54  ;;  %v12037_v0 = vld [vmem:[#allocation44_spill] sm:$0xff]  ;;  %v12046_v62 = vld [vmem:[#allocation19_spill] sm:$0xff]  ;;  %v12050_v37 = vld [vmem:[#allocation14_spill] sm:$0xff] }
 0x325   :  { %v9766_v24 = vadd.f32 %v3459_v10, %v3443_v9  ;;  %v9768_v26 = vadd.f32 %v3460_v52, %v3444_v13  ;;  %v9771_v61 = vadd.f32 %v3461_v5, %v12027_v33  ;;  %v9779_v28 = vadd.f32 %v3462_v42, %v12029_v51  ;;  %v12039_v54 = vld [vmem:[#allocation12_spill] sm:$0xff]  ;;  %v12041_v13 = vld [vmem:[#allocation42_spill] sm:$0xff]  ;;  %v12048_v25 = vld [vmem:[#allocation7_spill] sm:$0xff] }
 0x326   :  { %12023 = vst [vmem:[#allocation51_spill] sm:$0xff] %v9762_v27  ;;  %v9782_v20 = vadd.f32 %v3463_v60, %v12031_v11  ;;  %v9785_v1 = vadd.f32 %v3464_v30, %v12033_v8  ;;  %v9788_v31 = vadd.f32 %v3465_v47, %v12035_v23  ;;  %v9791_v3 = vadd.f32 %v3466_v41, %v12037_v0  ;;  %v9824_v10 = vld [vmem:[%s10227_s3 + $0xf0] sm:$0xff] }
 0x327   :  { %12024 = vst [vmem:[#allocation53_spill] sm:$0xff] %v9764_v46  ;;  %v9794_v9 = vadd.f32 %v3467_v6, %v12039_v54  ;;  %v9797_v44 = vadd.f32 %v3468_v21, %v12041_v13  ;;  %v9800_v2 = vadd.f32 %v3469_v19, %v12043_v17  ;;  %v9808_v7 = vadd.f32 %v3470_v45, %v12046_v62  ;;  %v9837_v6 = vld [vmem:[%s10227_s3 + $0xf8] sm:$0xff] }
 0x328   :  { %12025 = vst [vmem:[#allocation58_spill] sm:$0xff] %v9766_v24  ;;  %v9811_v49 = vadd.f32 %v3471_v58, %v12048_v25  ;;  %v9814_v43 = vadd.f32 %v3472_v56, %v12050_v37  ;;  %v3502_v16 = vrot.slane %v9776_v29, 1  ;;  %v3503_v39 = vrot.slane %v9776_v29, 2  ;;  %v9866_v24 = vld [vmem:[%s10228_s0 + $0x1e] sm:$0x3] }
 0x329   :  { %12026 = vst [vmem:[#allocation55_spill] sm:$0xff] %v9768_v26  ;;  %v3504_v55 = vrot.slane %v9776_v29, 3  ;;  %v3505_v50 = vrot.slane %v9776_v29, 4  ;;  %v3506_v59 = vrot.slane %v9776_v29, 5  ;;  %v3507_v4 = vrot.slane %v9776_v29, 6 }
 0x32a   :  { %12028 = vst [vmem:[#allocation56_spill] sm:$0xff] %v9771_v61  ;;  %v3508_v52 = vrot.slane %v9776_v29, 7  ;;  %v3509_v5 = vrot.slane %v9805_v48, 1  ;;  %v3510_v42 = vrot.slane %v9805_v48, 2  ;;  %v3511_v60 = vrot.slane %v9805_v48, 3 }
 0x32b   :  { %12030 = vst [vmem:[#allocation2_spill] sm:$0xff] %v9779_v28  ;;  %v3512_v30 = vrot.slane %v9805_v48, 4  ;;  %v3513_v47 = vrot.slane %v9805_v48, 5  ;;  %v3514_v41 = vrot.slane %v9805_v48, 6  ;;  %v3515_v21 = vrot.slane %v9805_v48, 7 }
 0x32c   :  { %12032 = vst [vmem:[#allocation4_spill] sm:$0xff] %v9782_v20  ;;  %v3521_v19 = vrot.slane %v9824_v10, 1  ;;  %v3522_v45 = vrot.slane %v9824_v10, 2  ;;  %v3523_v58 = vrot.slane %v9824_v10, 3  ;;  %v3524_v56 = vrot.slane %v9824_v10, 4 }
 0x32d   :  { %12034 = vst [vmem:[#allocation38_spill] sm:$0xff] %v9785_v1  ;;  %v3525_v33 = vrot.slane %v9824_v10, 5  ;;  %v3526_v51 = vrot.slane %v9824_v10, 6  ;;  %v3527_v11 = vrot.slane %v9824_v10, 7  ;;  %v3528_v8 = vrot.slane %v9837_v6, 1 }
 0x32e   :  { %12036 = vst [vmem:[#allocation5_spill] sm:$0xff] %v9788_v31  ;;  %v3529_v23 = vrot.slane %v9837_v6, 2  ;;  %v3530_v0 = vrot.slane %v9837_v6, 3  ;;  %v3531_v54 = vrot.slane %v9837_v6, 4  ;;  %v3532_v13 = vrot.slane %v9837_v6, 5 }
 0x32f   :  { %12038 = vst [vmem:[#allocation36_spill] sm:$0xff] %v9791_v3  ;;  %v3533_v17 = vrot.slane %v9837_v6, 6  ;;  %v9855_v37 = vperm.slane %v3502_v16, 0  ;;  %v9859_v26 = vperm.slane %v3504_v55, 0  ;;  %v9870_v46 = vperm.slane %v3507_v4, 0 }
 0x330   :  { %12040 = vst [vmem:[#allocation8_spill] sm:$0xff] %v9794_v9  ;;  %v9872_v62 = vperm.slane %v3508_v52, 0  ;;  %v9883_v25 = vperm.slane %v3510_v42, 0  ;;  %v9889_v4 = vperm.slane %v3512_v30, 0  ;;  %v9891_v52 = vperm.slane %v3513_v47, 0 }
 0x331   :  { %12042 = vst [vmem:[#allocation9_spill] sm:$0xff] %v9797_v44  ;;  %v9893_v16 = vperm.slane %v3522_v45, 0  ;;  %v9895_v27 = vperm.slane %v3514_v41, 0  ;;  %v9897_v44 = vperm.slane %v3515_v21, 0  ;;  %v12059_v55 = vperm.slane %v9776_v29, 0 }
 0x332   :  { %12044 = vst [vmem:[#allocation15_spill] sm:$0xff] %v9800_v2  ;;  %v9885_v2 = vperm.slane %v3521_v19, 0  ;;  %v9902_v42 = vperm.slane %v3523_v58, 0  ;;  %v9908_v47 = vperm.slane %v3524_v56, 0  ;;  %v12061_v19 = vperm.slane %v9824_v10, 0 }
 0x333   :  { %12047 = vst [vmem:[#allocation46_spill] sm:$0xff] %v9808_v7  ;;  %v9868_v7 = vperm.slane %v3506_v59, 0  ;;  %v9887_v59 = vperm.slane %v3511_v60, 0  ;;  %v3568_v60 = vmul.f32 %v9866_v24, %v9855_v37  ;;  %v3570_v21 = vmul.f32 %v9866_v24, %v9859_v26 }
 0x334   :  { %12049 = vst [vmem:[#allocation22_spill] sm:$0xff] %v9811_v49  ;;  %v9861_v49 = vperm.slane %v3505_v50, 0  ;;  %v9881_v50 = vperm.slane %v3509_v5, 0  ;;  %v3567_v5 = vmul.f32 %v9866_v24, %v12059_v55  ;;  %v9917_v58 = vperm.slane %v3525_v33, 0 }
 0x335   :  { %12051 = vst [vmem:[#allocation24_spill] sm:$0xff] %v9814_v43  ;;  %v9857_v43 = vperm.slane %v3503_v39, 0  ;;  %v9878_v39 = vld [vmem:[%s10229_s1 + $0x1e] sm:$0x3]  ;;  %v3572_v9 = vmul.f32 %v9866_v24, %v9868_v7  ;;  %v3573_v56 = vmul.f32 %v9866_v24, %v9870_v46  ;;  %v9925_v3 = vperm.slane %v3526_v51, 0 }
 0x336   :  { %12052 = vst [vmem:[#allocation25_spill] sm:$0xff] %v9861_v49  ;;  %v3615_v41 = vmul.f32 %v9878_v39, %v12061_v19  ;;  %v3571_v45 = vmul.f32 %v9866_v24, %v9861_v49  ;;  %v3616_v55 = vmul.f32 %v9878_v39, %v9885_v2  ;;  %v3617_v19 = vmul.f32 %v9878_v39, %v9893_v16 }
 0x337   :  { %12053 = vst [vmem:[#allocation50_spill] sm:$0xff] %v9868_v7  ;;  %v3569_v30 = vmul.f32 %v9866_v24, %v9857_v43  ;;  %v3574_v31 = vmul.f32 %v9866_v24, %v9872_v62  ;;  %v12063_v33 = vperm.slane %v9805_v48, 0  ;;  %v9934_v20 = vperm.slane %v3527_v11, 0 }
 0x338   :  { %12054 = vst [vmem:[#allocation52_spill] sm:$0xff] %v9870_v46  ;;  %v3618_v28 = vmul.f32 %v9878_v39, %v9902_v42  ;;  %v3576_v61 = vmul.f32 %v9866_v24, %v9881_v50  ;;  %v3619_v46 = vmul.f32 %v9878_v39, %v9908_v47  ;;  %v3631_v7 = vsub.f32 %v3567_v5, %v3615_v41 }
 0x339   :  { %12055 = vst [vmem:[#allocation47_spill] sm:$0xff] %v9872_v62  ;;  %v3575_v1 = vmul.f32 %v9866_v24, %v12063_v33  ;;  %v3577_v62 = vmul.f32 %v9866_v24, %v9883_v25  ;;  %v9945_v48 = vperm.slane %v3528_v8, 0  ;;  %v3620_v11 = vmul.f32 %v9878_v39, %v9917_v58 }
 0x33a   :  { %12056 = vst [vmem:[#allocation45_spill] sm:$0xff] %v9881_v50  ;;  %v3632_v33 = vsub.f32 %v3568_v60, %v3616_v55  ;;  %v3578_v63 = vmul.f32 %v9866_v24, %v9887_v59  ;;  %v9951_v49 = vperm.slane %v3529_v23, 0  ;;  %v3621_v51 = vmul.f32 %v9878_v39, %v9925_v3 }
 0x33b   :  { %12057 = vst [vmem:[#allocation57_spill] sm:$0xff] %v9883_v25  ;;  %v3633_v50 = vsub.f32 %v3569_v30, %v3617_v19  ;;  %v9957_v5 = vperm.slane %v3531_v54, 0  ;;  %v3622_v8 = vmul.f32 %v9878_v39, %v9934_v20  ;;  %v3634_v41 = vsub.f32 %v3570_v21, %v3618_v28 }
 0x33c   :  { %12058 = vst [vmem:[#allocation18_spill] sm:$0xff] %v9887_v59  ;;  %v9961_v25 = vperm.slane %v3532_v13, 0  ;;  %v12064_v60 = vperm.slane %v9837_v6, 0  ;;  %v3635_v23 = vsub.f32 %v3571_v45, %v3619_v46  ;;  %v3647_v59 = vadd.f32 %v3631_v7, %v9647_v40 }
 0x33d   :  { %12060 = vst [vmem:[#allocation17_spill] sm:$0xff] %v9908_v47  ;;  %v9955_v47 = vperm.slane %v3530_v0, 0  ;;  %v3624_v0 = vmul.f32 %v9878_v39, %v9945_v48  ;;  %v3636_v54 = vsub.f32 %v3572_v9, %v3620_v11  ;;  %v3648_v30 = vadd.f32 %v3632_v33, %v9650_v53 }
 0x33e   :  { %12062 = vst [vmem:[#allocation41_spill] sm:$0xff] %v9917_v58  ;;  %v3623_v55 = vmul.f32 %v9878_v39, %v12064_v60  ;;  %v9967_v58 = vperm.slane %v3533_v17, 0  ;;  %v12065_v19 = vrot.slane %v9837_v6, 7  ;;  %v3625_v13 = vmul.f32 %v9878_v39, %v9951_v49 }
 0x33f   :  { %v3637_v21 = vsub.f32 %v3573_v56, %v3621_v51  ;;  %v3649_v46 = vadd.f32 %v3633_v50, %v9653_v57  ;;  %v3626_v40 = vmul.f32 %v9878_v39, %v9955_v47  ;;  %v3638_v7 = vsub.f32 %v3574_v31, %v3622_v8  ;;  %3728 = vst.msk [vmem:[%s10230_s4] sm:$0x3] %vm3727_vm0, %v3647_v59 }
 0x340   :  { %v9974_v28 = vperm.slane %v12065_v19, 0  ;;  %v3650_v17 = vadd.f32 %v3634_v41, %v9656_v36  ;;  %v3579_v53 = vmul.f32 %v9866_v24, %v9889_v4  ;;  %v3627_v9 = vmul.f32 %v9878_v39, %v9957_v5  ;;  %3729 = vst.msk [vmem:[%s10230_s4 + $0x2] sm:$0x3] %vm3727_vm0, %v3648_v30  ;;  %v12069_v19 = vld [vmem:[#allocation25_spill] sm:$0xff] }
 0x341   :  { %v3639_v45 = vsub.f32 %v3575_v1, %v3623_v55  ;;  %v3651_v11 = vadd.f32 %v3635_v23, %v9659_v34  ;;  %v3580_v57 = vmul.f32 %v9866_v24, %v9891_v52  ;;  %v3628_v36 = vmul.f32 %v9878_v39, %v9961_v25  ;;  %3730 = vst.msk [vmem:[%s10230_s4 + $0x4] sm:$0x3] %vm3727_vm0, %v3649_v46 }
 0x342   :  { %v3640_v31 = vsub.f32 %v3576_v61, %v3624_v0  ;;  %v3652_v50 = vadd.f32 %v3636_v54, %v9662_v35  ;;  %v3581_v34 = vmul.f32 %v9866_v24, %v9895_v27  ;;  %v3629_v1 = vmul.f32 %v9878_v39, %v9967_v58  ;;  %3731 = vst.msk [vmem:[%s10230_s4 + $0x6] sm:$0x3] %vm3727_vm0, %v3650_v17  ;;  %v12073_v17 = vld [vmem:[#allocation40_spill] sm:$0xff] }
 0x343   :  { %v3641_v59 = vsub.f32 %v3577_v62, %v3625_v13  ;;  %v3653_v56 = vadd.f32 %v3637_v21, %v9665_v18  ;;  %v3582_v35 = vmul.f32 %v9866_v24, %v9897_v44  ;;  %v3630_v61 = vmul.f32 %v9878_v39, %v9974_v28  ;;  %3732 = vst.msk [vmem:[%s10230_s4 + $0x8] sm:$0x3] %vm3727_vm0, %v3651_v11 }
 0x344   :  { %v3642_v51 = vsub.f32 %v3578_v63, %v3626_v40  ;;  %v3654_v33 = vadd.f32 %v3638_v7, %v9668_v15  ;;  %v3643_v18 = vsub.f32 %v3579_v53, %v3627_v9  ;;  %v3655_v62 = vadd.f32 %v3639_v45, %v9671_v12  ;;  %3733 = vst.msk [vmem:[%s10230_s4 + $0xa] sm:$0x3] %vm3727_vm0, %v3652_v50  ;;  %v12072_v40 = vld [vmem:[#allocation50_spill] sm:$0xff]  ;;  %v12074_v45 = vld [vmem:[#allocation52_spill] sm:$0xff] }
 0x345   :  { %v12066_v8 = vperm.slane %v9824_v10, 0  ;;  %v12067_v60 = vperm.slane %v9776_v29, 0  ;;  %v3644_v15 = vsub.f32 %v3580_v57, %v3628_v36  ;;  %v3656_v63 = vadd.f32 %v3640_v31, %v9674_v14  ;;  %3734 = vst.msk [vmem:[%s10230_s4 + $0xc] sm:$0x3] %vm3727_vm0, %v3653_v56  ;;  %v12071_v21 = vld [vmem:[#allocation41_spill] sm:$0xff] }
 0x346   :  { %v3664_v23 = vmul.f32 %v9866_v24, %v9885_v2  ;;  %v3680_v12 = vmul.f32 %v9878_v39, %v9855_v37  ;;  %v3645_v29 = vsub.f32 %v3581_v34, %v3629_v1  ;;  %v3657_v10 = vadd.f32 %v3641_v59, %v9677_v22  ;;  %3735 = vst.msk [vmem:[%s10230_s4 + $0xe] sm:$0x3] %vm3727_vm0, %v3654_v33  ;;  %v12075_v36 = vld [vmem:[#allocation49_spill] sm:$0xff]  ;;  %v12076_v34 = vld [vmem:[#allocation47_spill] sm:$0xff] }
 0x347   :  { %v3663_v41 = vmul.f32 %v9866_v24, %v12066_v8  ;;  %v3679_v55 = vmul.f32 %v9878_v39, %v12067_v60  ;;  %v3665_v0 = vmul.f32 %v9866_v24, %v9893_v16  ;;  %v3681_v14 = vmul.f32 %v9878_v39, %v9857_v43  ;;  %v12068_v16 = vld [vmem:[#allocation17_spill] sm:$0xff]  ;;  %3736 = vst.msk [vmem:[%s10230_s4 + $0x10] sm:$0x3] %vm3727_vm0, %v3655_v62  ;;  %v12082_v60 = vld [vmem:[#allocation2_spill] sm:$0xff] }
 0x348   :  { %v3646_v2 = vsub.f32 %v3582_v35, %v3630_v61  ;;  %v3658_v37 = vadd.f32 %v3642_v51, %v9680_v32  ;;  %v3666_v54 = vmul.f32 %v9866_v24, %v9902_v42  ;;  %v3682_v22 = vmul.f32 %v9878_v39, %v9859_v26  ;;  %v12070_v26 = vld [vmem:[#allocation33_spill] sm:$0xff]  ;;  %3737 = vst.msk [vmem:[%s10230_s4 + $0x12] sm:$0x3] %vm3727_vm0, %v3656_v63  ;;  %v12078_v35 = vld [vmem:[#allocation10_spill] sm:$0xff] }
 0x349   :  { %v3659_v43 = vadd.f32 %v3643_v18, %v9683_v38  ;;  %v3667_v30 = vmul.f32 %v9866_v24, %v12068_v16  ;;  %v3683_v13 = vmul.f32 %v9878_v39, %v12069_v19  ;;  %v3695_v32 = vadd.f32 %v3679_v55, %v3663_v41  ;;  %3738 = vst.msk [vmem:[%s10230_s4 + $0x14] sm:$0x3] %vm3727_vm0, %v3657_v10  ;;  %v12080_v18 = vld [vmem:[#allocation56_spill] sm:$0xff]  ;;  %v12081_v8 = vld [vmem:[#allocation45_spill] sm:$0xff] }
 0x34a   :  { %v3660_v42 = vadd.f32 %v3644_v15, %v12070_v26  ;;  %v3668_v46 = vmul.f32 %v9866_v24, %v12071_v21  ;;  %v3684_v38 = vmul.f32 %v9878_v39, %v12072_v40  ;;  %v3696_v7 = vadd.f32 %v3680_v12, %v3664_v23  ;;  %3739 = vst.msk [vmem:[%s10230_s4 + $0x16] sm:$0x3] %vm3727_vm0, %v3658_v37  ;;  %v12083_v63 = vld [vmem:[#allocation57_spill] sm:$0xff]  ;;  %v12086_v37 = vld [vmem:[#allocation38_spill] sm:$0xff]  ;;  %v12089_v21 = vld [vmem:[#allocation8_spill] sm:$0xff] }
 0x34b   :  { %v3661_v53 = vadd.f32 %v3645_v29, %v12073_v17  ;;  %v3669_v9 = vmul.f32 %v9866_v24, %v9925_v3  ;;  %v3685_v11 = vmul.f32 %v9878_v39, %v12074_v45  ;;  %v3697_v57 = vadd.f32 %v3681_v14, %v3665_v0  ;;  %3740 = vst.msk [vmem:[%s10230_s4 + $0x18] sm:$0x3] %vm3727_vm0, %v3659_v43  ;;  %v12084_v29 = vld [vmem:[#allocation4_spill] sm:$0xff]  ;;  %v12085_v0 = vld [vmem:[#allocation18_spill] sm:$0xff]  ;;  %v12087_v16 = vld [vmem:[#allocation5_spill] sm:$0xff] }
 0x34c   :  { %v3662_v31 = vadd.f32 %v3646_v2, %v12075_v36  ;;  %v3670_v50 = vmul.f32 %v9866_v24, %v9934_v20  ;;  %v3686_v1 = vmul.f32 %v9878_v39, %v12076_v34  ;;  %v3698_v59 = vadd.f32 %v3682_v22, %v3666_v54  ;;  %3741 = vst.msk [vmem:[%s10230_s4 + $0x1a] sm:$0x3] %vm3727_vm0, %v3660_v42  ;;  %v12097_v36 = vld [vmem:[#allocation31_spill] sm:$0xff] }
 0x34d   :  { %v12077_v3 = vperm.slane %v9837_v6, 0  ;;  %v12079_v61 = vperm.slane %v12078_v35, 0  ;;  %v3699_v33 = vadd.f32 %v3683_v13, %v3667_v30  ;;  %v3711_v20 = vadd.f32 %v3695_v32, %v12080_v18  ;;  %3742 = vst.msk [vmem:[%s10230_s4 + $0x1c] sm:$0x3] %vm3727_vm0, %v3661_v53  ;;  %v12088_v32 = vld [vmem:[#allocation36_spill] sm:$0xff] }
 0x34e   :  { %v3672_v62 = vmul.f32 %v9866_v24, %v9945_v48  ;;  %v3688_v6 = vmul.f32 %v9878_v39, %v12081_v8  ;;  %v3700_v41 = vadd.f32 %v3684_v38, %v3668_v46  ;;  %v3712_v55 = vadd.f32 %v3696_v7, %v12082_v60  ;;  %3743 = vst.msk [vmem:[%s10230_s4 + $0x1e] sm:$0x3] %vm3727_vm0, %v3662_v31  ;;  %v12090_v38 = vld [vmem:[#allocation9_spill] sm:$0xff]  ;;  %v12092_v7 = vld [vmem:[#allocation51_spill] sm:$0xff]  ;;  %v12098_v31 = vld [vmem:[#allocation58_spill] sm:$0xff] }
 0x34f   :  { %v3671_v56 = vmul.f32 %v9866_v24, %v12077_v3  ;;  %v3687_v51 = vmul.f32 %v9878_v39, %v12079_v61  ;;  %v3673_v15 = vmul.f32 %v9866_v24, %v9951_v49  ;;  %v3689_v23 = vmul.f32 %v9878_v39, %v12083_v63  ;;  %3744 = vst.msk [vmem:[%s10231_s5] sm:$0x3] %vm3727_vm0, %v3711_v20  ;;  %v12100_v3 = vld [vmem:[#allocation23_spill] sm:$0xff] }
 0x350   :  { %v3701_v12 = vadd.f32 %v3685_v11, %v3669_v9  ;;  %v3713_v48 = vadd.f32 %v3697_v57, %v12084_v29  ;;  %v3674_v10 = vmul.f32 %v9866_v24, %v9955_v47  ;;  %v3690_v14 = vmul.f32 %v9878_v39, %v12085_v0  ;;  %3745 = vst.msk [vmem:[%s10231_s5 + $0x2] sm:$0x3] %vm3727_vm0, %v3712_v55  ;;  %v12093_v9 = vld [vmem:[#allocation15_spill] sm:$0xff]  ;;  %v12096_v11 = vld [vmem:[#allocation46_spill] sm:$0xff] }
 0x351   :  { %v3702_v2 = vadd.f32 %v3686_v1, %v3670_v50  ;;  %v3714_v49 = vadd.f32 %v3698_v59, %v12086_v37  ;;  %v3675_v54 = vmul.f32 %v9866_v24, %v9957_v5  ;;  %v3691_v22 = vmul.f32 %v9878_v39, %v9889_v4  ;;  %v12099_v1 = vld [vmem:[#allocation22_spill] sm:$0xff] }
 0x352   :  { %v3703_v43 = vadd.f32 %v3687_v51, %v3671_v56  ;;  %v3715_v47 = vadd.f32 %v3699_v33, %v12087_v16  ;;  %v3676_v30 = vmul.f32 %v9866_v24, %v9961_v25  ;;  %v3692_v19 = vmul.f32 %v9878_v39, %v9891_v52  ;;  %3746 = vst.msk [vmem:[%s10231_s5 + $0x4] sm:$0x3] %vm3727_vm0, %v3713_v48  ;;  %v12101_v56 = vld [vmem:[#allocation55_spill] sm:$0xff]  ;;  %v12102_v51 = vld [vmem:[#allocation24_spill] sm:$0xff] }
 0x353   :  { %v3704_v13 = vadd.f32 %v3688_v6, %v3672_v62  ;;  %v3716_v5 = vadd.f32 %v3700_v41, %v12088_v32  ;;  %v3677_v4 = vmul.f32 %v9866_v24, %v9967_v58  ;;  %v3693_v26 = vmul.f32 %v9878_v39, %v9895_v27  ;;  %3747 = vst.msk [vmem:[%s10231_s5 + $0x6] sm:$0x3] %vm3727_vm0, %v3714_v49  ;;  %v12091_v27 = vld [vmem:[#allocation60_spill] sm:$0xff] }
 0x354   :  { %v3705_v42 = vadd.f32 %v3689_v23, %v3673_v15  ;;  %v3717_v25 = vadd.f32 %v3701_v12, %v12089_v21  ;;  %v3678_v52 = vmul.f32 %v9866_v24, %v9974_v28  ;;  %v3694_v46 = vmul.f32 %v9878_v39, %v9897_v44  ;;  %3748 = vst.msk [vmem:[%s10231_s5 + $0x8] sm:$0x3] %vm3727_vm0, %v3715_v47  ;;  %v12094_v24 = vld [vmem:[#allocation21_spill] sm:$0xff] }
 0x355   :  { %v3706_v40 = vadd.f32 %v3690_v14, %v3674_v10  ;;  %v3718_v58 = vadd.f32 %v3702_v2, %v12090_v38  ;;  %v3489_v17 = vadd.f32 %v12092_v7, %v12091_v27  ;;  %v3707_v53 = vadd.f32 %v3691_v22, %v3675_v54  ;;  %v12095_v44 = vld [vmem:[#allocation53_spill] sm:$0xff]  ;;  %3749 = vst.msk [vmem:[%s10231_s5 + $0xa] sm:$0x3] %vm3727_vm0, %v3716_v5 }
 0x356   :  { %v3719_v45 = vadd.f32 %v3703_v43, %v12093_v9  ;;  %v3490_v39 = vadd.f32 %v12095_v44, %v12094_v24  ;;  %v3708_v28 = vadd.f32 %v3692_v19, %v3676_v30  ;;  %v3720_v57 = vadd.f32 %v3704_v13, %v12096_v11  ;;  %3750 = vst.msk [vmem:[%s10231_s5 + $0xc] sm:$0x3] %vm3727_vm0, %v3717_v25 }
 0x357   :  { %v3491_v50 = vadd.f32 %v12098_v31, %v12097_v36  ;;  %v3709_v34 = vadd.f32 %v3693_v26, %v3677_v4  ;;  %v3721_v59 = vadd.f32 %v3705_v42, %v12099_v1  ;;  %v3492_v35 = vadd.f32 %v12101_v56, %v12100_v3  ;;  %3751 = vst.msk [vmem:[%s10231_s5 + $0xe] sm:$0x3] %vm3727_vm0, %v3718_v58 }
 0x358   :  { %v3710_v61 = vadd.f32 %v3694_v46, %v3678_v52  ;;  %v3722_v33 = vadd.f32 %v3706_v40, %v12102_v51  ;;  %v3723_v18 = vadd.f32 %v3707_v53, %v3489_v17  ;;  %3752 = vst.msk [vmem:[%s10231_s5 + $0x10] sm:$0x3] %vm3727_vm0, %v3719_v45  ;;  %v3724_v20 = vadd.f32 %v3708_v28, %v3490_v39 }
 0x359   :  { %3753 = vst.msk [vmem:[%s10231_s5 + $0x12] sm:$0x3] %vm3727_vm0, %v3720_v57  ;;  %v3725_v62 = vadd.f32 %v3709_v34, %v3491_v50 }
 0x35a   :  { %3754 = vst.msk [vmem:[%s10231_s5 + $0x14] sm:$0x3] %vm3727_vm0, %v3721_v59  ;;  %v3726_v8 = vadd.f32 %v3710_v61, %v3492_v35 }
 0x35b   :  { %3755 = vst.msk [vmem:[%s10231_s5 + $0x16] sm:$0x3] %vm3727_vm0, %v3722_v33 }
 0x35c   :  { %3756 = vst.msk [vmem:[%s10231_s5 + $0x18] sm:$0x3] %vm3727_vm0, %v3723_v18 }
 0x35d   :  { %3757 = vst.msk [vmem:[%s10231_s5 + $0x1a] sm:$0x3] %vm3727_vm0, %v3724_v20 }
 0x35e   :  { %3758 = vst.msk [vmem:[%s10231_s5 + $0x1c] sm:$0x3] %vm3727_vm0, %v3725_v62 }
 0x35f   :  { %3759 = vst.msk [vmem:[%s10231_s5 + $0x1e] sm:$0x3] %vm3727_vm0, %v3726_v8 }

// kernel: fno2d_forward.12
= control target key start
LH: loop header
LB: loop body
LE: loop exit
PB: predicated region body
PF: predicated region fallthrough
CT: control target
= control target key end

     0   :  { %v192_v3 = vmov 0   ;;  %vm61_vm0 = vcmask 130048   ;;  %s275_s1 = inlined_call_operand.vmem [shape: bf16[16,512], index: 1, kind: input, shape index: {}]   ;;  %s276_s0 = inlined_call_operand.vmem [shape: bf16[16,16], index: 0, kind: input, shape index: {}]   ;;  %s277_s2 = inlined_call_operand.vmem [shape: f32[16,1], index: 2, kind: input, shape index: {}]   ;;  %s278_s3 = inlined_call_operand.vmem [shape: bf16[16,512], index: 3, kind: input, shape index: {}]   ;;  %s279_s4 = inlined_call_operand.vmem [shape: bf16[16,512], index: 4, kind: output, shape index: {}]  }
   0x1   :  { %v167_v0 = vld [vmem:[%s275_s1] sm:$0xf]  ;;  %v188_v1 = vld [vmem:[%s275_s1 + $0xc] sm:$0xf0]  ;;  %v186_v2 = vld [vmem:[%s275_s1 + $0x4] sm:$0xf]  ;;  %191 = vset.pattern.permute.xlu0 %v192_v3 }
   0x2   :  { %v168_v4 = vor.u32 %v188_v1, %v167_v0  ;;  %v169_v5 = vld [vmem:[%s275_s1 + $0x10] sm:$0xf0]  ;;  %v175_v6 = vld [vmem:[%s275_s1 + $0x8] sm:$0xf]  ;;  %v189_v7 = vld [vmem:[%s275_s1 + $0x14] sm:$0xf0] }
   0x3   :  { %v172_v8 = vor.u32 %v186_v2, %v169_v5  ;;  %v176_v9 = vor.u32 %v189_v7, %v175_v6  ;;  %v187_v10 = vld [vmem:[%s275_s1 + $0xc] sm:$0xf]  ;;  %v177_v11 = vld [vmem:[%s275_s1 + $0x18] sm:$0xf0]  ;;  %v185_v12 = vld [vmem:[%s276_s0] sm:$0xff] }
   0x4   :  { %72 = vmatpush.bf16.msra.mxu0 %v168_v4  ;;  %v180_v13 = vor.u32 %v187_v10, %v177_v11  ;;  %v24_v14 = vld [vmem:[%s277_s2] sm:$0xff]  ;;  %v25_v15 = vld [vmem:[%s277_s2 + $0x8] sm:$0xff]  ;;  %v123_v27 = vld [vmem:[%s278_s3 + $0x10] sm:$0xff] }
   0x5   :  { %86 = vmatpush.bf16.msra.mxu1 %v172_v8  ;;  %100 = vmatpush.bf16.msra.mxu2 %v176_v9  ;;  %v121_v16 = vld [vmem:[%s278_s3] sm:$0xff]  ;;  %v122_v25 = vld [vmem:[%s278_s3 + $0x8] sm:$0xff]  ;;  %v129_v34 = vunpack.c.l.bf16 %v123_v27  ;;  %v130_v39 = vunpack.c.h.bf16 %v123_v27  ;;  %v124_v47 = vld [vmem:[%s278_s3 + $0x18] sm:$0xff] }
   0x6   :  { %114 = vmatpush.bf16.msra.mxu3 %v180_v13  ;;  %28 = vperm.xlu0 %191, %v24_v14   ;;  %v125_v18 = vunpack.c.l.bf16 %v121_v16  ;;  %v126_v20 = vunpack.c.h.bf16 %v121_v16  ;;  %v127_v30 = vunpack.c.l.bf16 %v122_v25  ;;  %v128_v33 = vunpack.c.h.bf16 %v122_v25 }
   0x7   :  { %181 = vmatmul.msk.bf16.vlgmr.msra.gmra.mxu0 %vm61_vm0, %v185_v12  ;;  %v131_v53 = vunpack.c.l.bf16 %v124_v47  ;;  %v132_v56 = vunpack.c.h.bf16 %v124_v47 }
   0x8   :  { %182 = vmatmul.msk.bf16.vlgmr.msra.gmra.mxu1 %vm61_vm0, %v185_v12  ;;  %183 = vmatmul.msk.bf16.vlgmr.msra.gmra.mxu2 %vm61_vm0, %v185_v12 }
   0x9   :  { %184 = vmatmul.msk.bf16.vlgmr.msra.gmra.mxu3 %vm61_vm0, %v185_v12 }
   0xe   :  { %33 = vperm.xlu0 %191, %v25_v15  }
  0x78   :  { %v29_v17 = vpop.permute.xlu0 %28 }
  0x80   :  { %v34_v31 = vpop.permute.xlu0 %33 }
  0x84   :  { %v74_v19 = vpop.f32.mrf.mxu0 }
  0x85   :  { %v75_v21 = vadd.f32 %v74_v19, %v29_v17  ;;  %v88_v22 = vpop.f32.mrf.mxu1 }
  0x86   :  { %v89_v23 = vadd.f32 %v88_v22, %v29_v17 }
  0x87   :  { %v133_v24 = vadd.f32 %v125_v18, %v75_v21 }
  0x88   :  { %v134_v26 = vadd.f32 %v126_v20, %v89_v23 }
  0x89   :  { %v141_v28 = vmax.f32 %v133_v24, 0.0 }
  0x8a   :  { %v142_v29 = vmax.f32 %v134_v26, 0.0 }
  0x8b   :  { %v102_v32 = vpop.f32.mrf.mxu2 }
  0x8c   :  { %v149_v35 = vpack.c.bf16 %v142_v29, %v141_v28  ;;  %v103_v36 = vadd.f32 %v102_v32, %v29_v17  ;;  %v116_v37 = vpop.f32.mrf.mxu3  ;;  %v76_v38 = vpop.f32.mrf.mxu0 }
  0x8d   :  { %v117_v40 = vadd.f32 %v116_v37, %v29_v17  ;;  %v77_v41 = vadd.f32 %v76_v38, %v34_v31  ;;  %v90_v42 = vpop.f32.mrf.mxu1 }
  0x8e   :  { %153 = vst [vmem:[%s279_s4] sm:$0xff] %v149_v35  ;;  %v135_v43 = vadd.f32 %v127_v30, %v103_v36  ;;  %v91_v44 = vadd.f32 %v90_v42, %v34_v31 }
  0x8f   :  { %v136_v45 = vadd.f32 %v128_v33, %v117_v40  ;;  %v137_v46 = vadd.f32 %v129_v34, %v77_v41 }
  0x90   :  { %v143_v48 = vmax.f32 %v135_v43, 0.0  ;;  %v138_v49 = vadd.f32 %v130_v39, %v91_v44 }
  0x91   :  { %v144_v50 = vmax.f32 %v136_v45, 0.0  ;;  %v145_v51 = vmax.f32 %v137_v46, 0.0 }
  0x92   :  { %v146_v52 = vmax.f32 %v138_v49, 0.0 }
  0x93   :  { %v150_v54 = vpack.c.bf16 %v144_v50, %v143_v48  ;;  %v104_v55 = vpop.f32.mrf.mxu2 }
  0x94   :  { %v151_v57 = vpack.c.bf16 %v146_v52, %v145_v51  ;;  %v105_v58 = vadd.f32 %v104_v55, %v34_v31  ;;  %v118_v59 = vpop.f32.mrf.mxu3 }
  0x95   :  { %154 = vst [vmem:[%s279_s4 + $0x8] sm:$0xff] %v150_v54  ;;  %v119_v60 = vadd.f32 %v118_v59, %v34_v31 }
  0x96   :  { %155 = vst [vmem:[%s279_s4 + $0x10] sm:$0xff] %v151_v57  ;;  %v139_v61 = vadd.f32 %v131_v53, %v105_v58 }
  0x97   :  { %v140_v62 = vadd.f32 %v132_v56, %v119_v60 }
  0x98   :  { %v147_v63 = vmax.f32 %v139_v61, 0.0 }
  0x99   :  { %v148_v0 = vmax.f32 %v140_v62, 0.0 }
  0x9b   :  { %v152_v1 = vpack.c.bf16 %v148_v0, %v147_v63 }
  0x9d   :  { %156 = vst [vmem:[%s279_s4 + $0x18] sm:$0xff] %v152_v1 }

// kernel: fno2d_forward.18
= control target key start
LH: loop header
LB: loop body
LE: loop exit
PB: predicated region body
PF: predicated region fallthrough
CT: control target
= control target key end

     0   :  { %v184_v3 = vmov 0   ;;  %vm61_vm0 = vcmask 130048   ;;  %s267_s1 = inlined_call_operand.vmem [shape: bf16[16,512], index: 1, kind: input, shape index: {}]   ;;  %s268_s0 = inlined_call_operand.vmem [shape: bf16[16,16], index: 0, kind: input, shape index: {}]   ;;  %s269_s2 = inlined_call_operand.vmem [shape: f32[16,1], index: 2, kind: input, shape index: {}]   ;;  %s270_s3 = inlined_call_operand.vmem [shape: bf16[16,512], index: 3, kind: input, shape index: {}]   ;;  %s271_s4 = inlined_call_operand.vmem [shape: bf16[16,512], index: 4, kind: output, shape index: {}]  }
   0x1   :  { %v159_v0 = vld [vmem:[%s267_s1] sm:$0xf]  ;;  %v180_v1 = vld [vmem:[%s267_s1 + $0xc] sm:$0xf0]  ;;  %v178_v2 = vld [vmem:[%s267_s1 + $0x4] sm:$0xf]  ;;  %183 = vset.pattern.permute.xlu0 %v184_v3 }
   0x2   :  { %v160_v4 = vor.u32 %v180_v1, %v159_v0  ;;  %v161_v5 = vld [vmem:[%s267_s1 + $0x10] sm:$0xf0]  ;;  %v167_v6 = vld [vmem:[%s267_s1 + $0x8] sm:$0xf]  ;;  %v181_v7 = vld [vmem:[%s267_s1 + $0x14] sm:$0xf0] }
   0x3   :  { %v164_v8 = vor.u32 %v178_v2, %v161_v5  ;;  %v168_v9 = vor.u32 %v181_v7, %v167_v6  ;;  %v179_v10 = vld [vmem:[%s267_s1 + $0xc] sm:$0xf]  ;;  %v169_v11 = vld [vmem:[%s267_s1 + $0x18] sm:$0xf0]  ;;  %v177_v12 = vld [vmem:[%s268_s0] sm:$0xff] }
   0x4   :  { %72 = vmatpush.bf16.msra.mxu0 %v160_v4  ;;  %v172_v13 = vor.u32 %v179_v10, %v169_v11  ;;  %v24_v14 = vld [vmem:[%s269_s2] sm:$0xff]  ;;  %v25_v15 = vld [vmem:[%s269_s2 + $0x8] sm:$0xff]  ;;  %v123_v27 = vld [vmem:[%s270_s3 + $0x10] sm:$0xff] }
   0x5   :  { %86 = vmatpush.bf16.msra.mxu1 %v164_v8  ;;  %100 = vmatpush.bf16.msra.mxu2 %v168_v9  ;;  %v121_v16 = vld [vmem:[%s270_s3] sm:$0xff]  ;;  %v122_v25 = vld [vmem:[%s270_s3 + $0x8] sm:$0xff]  ;;  %v129_v33 = vunpack.c.l.bf16 %v123_v27  ;;  %v130_v37 = vunpack.c.h.bf16 %v123_v27  ;;  %v124_v45 = vld [vmem:[%s270_s3 + $0x18] sm:$0xff] }
   0x6   :  { %114 = vmatpush.bf16.msra.mxu3 %v172_v13  ;;  %28 = vperm.xlu0 %183, %v24_v14   ;;  %v125_v18 = vunpack.c.l.bf16 %v121_v16  ;;  %v126_v20 = vunpack.c.h.bf16 %v121_v16  ;;  %v127_v29 = vunpack.c.l.bf16 %v122_v25  ;;  %v128_v32 = vunpack.c.h.bf16 %v122_v25 }
   0x7   :  { %173 = vmatmul.msk.bf16.vlgmr.msra.gmra.mxu0 %vm61_vm0, %v177_v12  ;;  %v131_v49 = vunpack.c.l.bf16 %v124_v45  ;;  %v132_v51 = vunpack.c.h.bf16 %v124_v45 }
   0x8   :  { %174 = vmatmul.msk.bf16.vlgmr.msra.gmra.mxu1 %vm61_vm0, %v177_v12  ;;  %175 = vmatmul.msk.bf16.vlgmr.msra.gmra.mxu2 %vm61_vm0, %v177_v12 }
   0x9   :  { %176 = vmatmul.msk.bf16.vlgmr.msra.gmra.mxu3 %vm61_vm0, %v177_v12 }
   0xe   :  { %33 = vperm.xlu0 %183, %v25_v15  }
  0x78   :  { %v29_v17 = vpop.permute.xlu0 %28 }
  0x80   :  { %v34_v30 = vpop.permute.xlu0 %33 }
  0x84   :  { %v74_v19 = vpop.f32.mrf.mxu0 }
  0x85   :  { %v75_v21 = vadd.f32 %v74_v19, %v29_v17  ;;  %v88_v22 = vpop.f32.mrf.mxu1 }
  0x86   :  { %v89_v23 = vadd.f32 %v88_v22, %v29_v17 }
  0x87   :  { %v133_v24 = vadd.f32 %v125_v18, %v75_v21 }
  0x88   :  { %v134_v26 = vadd.f32 %v126_v20, %v89_v23 }
  0x8a   :  { %v141_v28 = vpack.c.bf16 %v134_v26, %v133_v24 }
  0x8b   :  { %v102_v31 = vpop.f32.mrf.mxu2 }
  0x8c   :  { %145 = vst [vmem:[%s271_s4] sm:$0xff] %v141_v28  ;;  %v103_v34 = vadd.f32 %v102_v31, %v29_v17  ;;  %v116_v35 = vpop.f32.mrf.mxu3  ;;  %v76_v36 = vpop.f32.mrf.mxu0 }
  0x8d   :  { %v117_v38 = vadd.f32 %v116_v35, %v29_v17  ;;  %v77_v39 = vadd.f32 %v76_v36, %v34_v30  ;;  %v90_v40 = vpop.f32.mrf.mxu1 }
  0x8e   :  { %v135_v41 = vadd.f32 %v127_v29, %v103_v34  ;;  %v91_v42 = vadd.f32 %v90_v40, %v34_v30 }
  0x8f   :  { %v136_v43 = vadd.f32 %v128_v32, %v117_v38  ;;  %v137_v44 = vadd.f32 %v129_v33, %v77_v39 }
  0x90   :  { %v138_v46 = vadd.f32 %v130_v37, %v91_v42 }
  0x91   :  { %v142_v47 = vpack.c.bf16 %v136_v43, %v135_v41 }
  0x92   :  { %v143_v48 = vpack.c.bf16 %v138_v46, %v137_v44 }
  0x93   :  { %146 = vst [vmem:[%s271_s4 + $0x8] sm:$0xff] %v142_v47  ;;  %v104_v50 = vpop.f32.mrf.mxu2 }
  0x94   :  { %147 = vst [vmem:[%s271_s4 + $0x10] sm:$0xff] %v143_v48  ;;  %v105_v52 = vadd.f32 %v104_v50, %v34_v30  ;;  %v118_v53 = vpop.f32.mrf.mxu3 }
  0x95   :  { %v119_v54 = vadd.f32 %v118_v53, %v34_v30 }
  0x96   :  { %v139_v55 = vadd.f32 %v131_v49, %v105_v52 }
  0x97   :  { %v140_v56 = vadd.f32 %v132_v51, %v119_v54 }
  0x99   :  { %v144_v57 = vpack.c.bf16 %v140_v56, %v139_v55 }
  0x9b   :  { %148 = vst [vmem:[%s271_s4 + $0x18] sm:$0xff] %v144_v57 }

// kernel: fno2d_forward.19
= control target key start
LH: loop header
LB: loop body
LE: loop exit
PB: predicated region body
PF: predicated region fallthrough
CT: control target
= control target key end

     0   :  { %v688_v0 = vmov 0   ;;  %vm197_vm0 = vcmask 130048   ;;  %vm580_vm1 = vcmask 1041408   ;;  %vm582_vm2 = vcmask 1045508   ;;  %s1006_s2 = inlined_call_operand.vmem [shape: f32[128,1], index: 2, kind: input, shape index: {}]   ;;  %s1007_s0 = inlined_call_operand.vmem [shape: bf16[16,512], index: 0, kind: input, shape index: {}]   ;;  %s1008_s1 = inlined_call_operand.vmem [shape: bf16[128,16], index: 1, kind: input, shape index: {}]   ;;  %s1009_s4 = inlined_call_operand.vmem [shape: f32[2,1], index: 4, kind: input, shape index: {}]   ;;  %s1010_s3 = inlined_call_operand.vmem [shape: bf16[2,128], index: 3, kind: input, shape index: {}]   ;;  %s1011_s5 = inlined_call_operand.vmem [shape: f32[2,512], index: 5, kind: output, shape index: {}]  }
   0x1   :  { %685 = vset.pattern.permute.xlu0 %v688_v0  ;;  %v55_v1 = vld [vmem:[%s1006_s2 + $0x70] sm:$0xff]  ;;  %v626_v2 = vld [vmem:[%s1007_s0] sm:$0xf]  ;;  %686 = vset.pattern.permute.xlu1 %v688_v0  ;;  %v680_v5 = vld [vmem:[%s1007_s0 + $0x4] sm:$0xf]  ;;  %vm584_vm3 = vcmask 1043456  }
   0x2   :  { %v682_v3 = vld [vmem:[%s1007_s0 + $0xc] sm:$0xf0]  ;;  %129 = vperm.xlu0 %685, %v55_v1   ;;  %v628_v6 = vld [vmem:[%s1007_s0 + $0x10] sm:$0xf0]  ;;  %v634_v7 = vld [vmem:[%s1007_s0 + $0x8] sm:$0xf]  ;;  %687 = vset.pattern.permute.xlu2 %v688_v0 }
   0x3   :  { %v627_v4 = vor.u32 %v682_v3, %v626_v2  ;;  %v631_v8 = vor.u32 %v680_v5, %v628_v6  ;;  %v683_v9 = vld [vmem:[%s1007_s0 + $0x14] sm:$0xf0]  ;;  %v681_v10 = vld [vmem:[%s1007_s0 + $0xc] sm:$0xf]  ;;  %v636_v11 = vld [vmem:[%s1007_s0 + $0x18] sm:$0xf0] }
   0x4   :  { %v635_v12 = vor.u32 %v683_v9, %v634_v7  ;;  %v639_v13 = vor.u32 %v681_v10, %v636_v11  ;;  %v672_v14 = vld [vmem:[%s1008_s1] sm:$0xff]  ;;  %v51_v16 = vld [vmem:[%s1006_s2 + $0x50] sm:$0xff]  ;;  %v56_v17 = vld [vmem:[%s1006_s2 + $0x78] sm:$0xff] }
   0x5   :  { %229 = vmatpush.bf16.msra.mxu0 %v627_v4  ;;  %v53_v15 = vld [vmem:[%s1006_s2 + $0x60] sm:$0xff]  ;;  %278 = vmatpush.bf16.msra.mxu1 %v631_v8  ;;  %v54_v18 = vld [vmem:[%s1006_s2 + $0x68] sm:$0xff]  ;;  %v52_v19 = vld [vmem:[%s1006_s2 + $0x58] sm:$0xff] }
   0x6   :  { %119 = vperm.xlu1 %686, %v53_v15   ;;  %327 = vmatpush.bf16.msra.mxu2 %v635_v12  ;;  %v49_v20 = vld [vmem:[%s1006_s2 + $0x40] sm:$0xff]  ;;  %v50_v21 = vld [vmem:[%s1006_s2 + $0x48] sm:$0xff]  ;;  %v47_v23 = vld [vmem:[%s1006_s2 + $0x30] sm:$0xff] }
   0x7   :  { %376 = vmatpush.bf16.msra.mxu3 %v639_v13  ;;  %109 = vperm.xlu2 %687, %v51_v16   ;;  %v673_v22 = vld [vmem:[%s1008_s1 + $0x8] sm:$0xff]  ;;  %v48_v24 = vld [vmem:[%s1006_s2 + $0x38] sm:$0xff]  ;;  %v45_v25 = vld [vmem:[%s1006_s2 + $0x20] sm:$0xff] }
   0x8   :  { %640 = vmatmul.msk.bf16.vlgmr.msra.gmra.mxu0 %vm197_vm0, %v672_v14  ;;  %648 = vmatmul.msk.bf16.vlgmr.msra.gmra.mxu1 %vm197_vm0, %v672_v14  ;;  %v46_v26 = vld [vmem:[%s1006_s2 + $0x28] sm:$0xff]  ;;  %v43_v27 = vld [vmem:[%s1006_s2 + $0x10] sm:$0xff]  ;;  %v44_v28 = vld [vmem:[%s1006_s2 + $0x18] sm:$0xff] }
   0x9   :  { %656 = vmatmul.msk.bf16.vlgmr.msra.gmra.mxu2 %vm197_vm0, %v672_v14  ;;  %v674_v29 = vld [vmem:[%s1008_s1 + $0x10] sm:$0xff]  ;;  %v41_v30 = vld [vmem:[%s1006_s2] sm:$0xff]  ;;  %v42_v31 = vld [vmem:[%s1006_s2 + $0x8] sm:$0xff] }
   0xa   :  { %664 = vmatmul.msk.bf16.vlgmr.msra.gmra.mxu3 %vm197_vm0, %v672_v14  ;;  %134 = vperm.xlu0 %685, %v56_v17   ;;  %v675_v32 = vld [vmem:[%s1008_s1 + $0x18] sm:$0xff]  ;;  %v676_v33 = vld [vmem:[%s1008_s1 + $0x20] sm:$0xff]  ;;  %v677_v34 = vld [vmem:[%s1008_s1 + $0x28] sm:$0xff] }
   0xb   :  { %v678_v35 = vld [vmem:[%s1008_s1 + $0x30] sm:$0xff]  ;;  %v515_v36 = vld [vmem:[%s1009_s4] sm:$0x3]  ;;  %v679_v38 = vld [vmem:[%s1008_s1 + $0x38] sm:$0xff] }
   0xe   :  { %124 = vperm.xlu1 %686, %v54_v18  }
   0xf   :  { %114 = vperm.xlu2 %687, %v52_v19  }
  0x12   :  { %99 = vperm.xlu0 %685, %v49_v20  }
  0x16   :  { %104 = vperm.xlu1 %686, %v50_v21  }
  0x17   :  { %89 = vperm.xlu2 %687, %v47_v23  }
  0x18   :  { %641 = vmatmul.msk.bf16.gmra.mxu0 %vm197_vm0, %v673_v22  ;;  %649 = vmatmul.msk.bf16.gmra.mxu1 %vm197_vm0, %v673_v22 }
  0x19   :  { %657 = vmatmul.msk.bf16.gmra.mxu2 %vm197_vm0, %v673_v22 }
  0x1a   :  { %665 = vmatmul.msk.bf16.gmra.mxu3 %vm197_vm0, %v673_v22  ;;  %94 = vperm.xlu0 %685, %v48_v24  }
  0x1e   :  { %79 = vperm.xlu1 %686, %v45_v25  }
  0x1f   :  { %84 = vperm.xlu2 %687, %v46_v26  }
  0x22   :  { %69 = vperm.xlu0 %685, %v43_v27  }
  0x26   :  { %74 = vperm.xlu1 %686, %v44_v28  }
  0x27   :  { %59 = vperm.xlu2 %687, %v41_v30  }
  0x28   :  { %642 = vmatmul.msk.bf16.gmra.mxu0 %vm197_vm0, %v674_v29  ;;  %650 = vmatmul.msk.bf16.gmra.mxu1 %vm197_vm0, %v674_v29 }
  0x29   :  { %658 = vmatmul.msk.bf16.gmra.mxu2 %vm197_vm0, %v674_v29 }
  0x2a   :  { %666 = vmatmul.msk.bf16.gmra.mxu3 %vm197_vm0, %v674_v29  ;;  %64 = vperm.xlu0 %685, %v42_v31  }
  0x2e   :  { %518 = vperm.xlu1 %686, %v515_v36  }
  0x38   :  { %643 = vmatmul.msk.bf16.gmra.mxu0 %vm197_vm0, %v675_v32  ;;  %651 = vmatmul.msk.bf16.gmra.mxu1 %vm197_vm0, %v675_v32 }
  0x39   :  { %659 = vmatmul.msk.bf16.gmra.mxu2 %vm197_vm0, %v675_v32 }
  0x3a   :  { %667 = vmatmul.msk.bf16.gmra.mxu3 %vm197_vm0, %v675_v32 }
  0x48   :  { %644 = vmatmul.msk.bf16.gmra.mxu0 %vm197_vm0, %v676_v33  ;;  %652 = vmatmul.msk.bf16.gmra.mxu1 %vm197_vm0, %v676_v33 }
  0x49   :  { %660 = vmatmul.msk.bf16.gmra.mxu2 %vm197_vm0, %v676_v33 }
  0x4a   :  { %668 = vmatmul.msk.bf16.gmra.mxu3 %vm197_vm0, %v676_v33 }
  0x58   :  { %645 = vmatmul.msk.bf16.gmra.mxu0 %vm197_vm0, %v677_v34  ;;  %653 = vmatmul.msk.bf16.gmra.mxu1 %vm197_vm0, %v677_v34 }
  0x59   :  { %661 = vmatmul.msk.bf16.gmra.mxu2 %vm197_vm0, %v677_v34 }
  0x5a   :  { %669 = vmatmul.msk.bf16.gmra.mxu3 %vm197_vm0, %v677_v34 }
  0x61   :  { %v843_v37 = vpop.permute.xlu2 %109 }
  0x68   :  { %646 = vmatmul.msk.bf16.gmra.mxu0 %vm197_vm0, %v678_v35  ;;  %654 = vmatmul.msk.bf16.gmra.mxu1 %vm197_vm0, %v678_v35 }
  0x69   :  { %662 = vmatmul.msk.bf16.gmra.mxu2 %vm197_vm0, %v678_v35  ;;  %v850_v40 = vpop.permute.xlu2 %114 }
  0x6a   :  { %670 = vmatmul.msk.bf16.gmra.mxu3 %vm197_vm0, %v678_v35 }
  0x71   :  { %v862_v44 = vpop.permute.xlu2 %89 }
  0x74   :  { %v848_v39 = vpop.permute.xlu0 %129 }
  0x78   :  { %647 = vmatmul.msk.bf16.gmra.mxu0 %vm197_vm0, %v679_v38  ;;  %v853_v41 = vpop.permute.xlu1 %119  ;;  %655 = vmatmul.msk.bf16.gmra.mxu1 %vm197_vm0, %v679_v38 }
  0x79   :  { %663 = vmatmul.msk.bf16.gmra.mxu2 %vm197_vm0, %v679_v38  ;;  %v868_v49 = vpop.permute.xlu2 %84 }
  0x7a   :  { %671 = vmatmul.msk.bf16.gmra.mxu3 %vm197_vm0, %v679_v38 }
  0x7c   :  { %v858_v42 = vpop.permute.xlu0 %134 }
  0x80   :  { %v860_v43 = vpop.permute.xlu1 %124 }
  0x81   :  { %v60_v60 = vpop.permute.xlu2 %59 }
  0x84   :  { %v864_v45 = vpop.permute.xlu0 %99 }
  0x85   :  { %v231_v46 = vpop.f32.mrf.mxu0  ;;  %v280_v47 = vpop.f32.mrf.mxu1 }
  0x86   :  { %v232_v62 = vadd.f32 %v231_v46, %v60_v60  ;;  %v281_v63 = vadd.f32 %v280_v47, %v60_v60 }
  0x88   :  { %v866_v48 = vpop.permute.xlu1 %104  ;;  %v418_v11 = vmax.f32 %v232_v62, 0.0  ;;  %v419_v12 = vmax.f32 %v281_v63, 0.0 }
  0x8c   :  { %v329_v50 = vpop.f32.mrf.mxu2  ;;  %v870_v52 = vpop.permute.xlu0 %94 }
  0x8d   :  { %v378_v51 = vpop.f32.mrf.mxu3  ;;  %v233_v53 = vpop.f32.mrf.mxu0  ;;  %v330_v0 = vadd.f32 %v329_v50, %v60_v60 }
  0x8e   :  { %v282_v54 = vpop.f32.mrf.mxu1  ;;  %v379_v1 = vadd.f32 %v378_v51, %v60_v60 }
  0x8f   :  { %v420_v7 = vmax.f32 %v330_v0, 0.0 }
  0x90   :  { %v872_v55 = vpop.permute.xlu1 %79  ;;  %v421_v8 = vmax.f32 %v379_v1, 0.0 }
  0x94   :  { %v331_v56 = vpop.f32.mrf.mxu2  ;;  %v70_v58 = vpop.permute.xlu0 %69 }
  0x95   :  { %v380_v57 = vpop.f32.mrf.mxu3  ;;  %v236_v59 = vpop.f32.mrf.mxu0 }
  0x96   :  { %v285_v61 = vpop.f32.mrf.mxu1  ;;  %v237_v2 = vadd.f32 %v236_v59, %v70_v58 }
  0x97   :  { %v286_v3 = vadd.f32 %v285_v61, %v70_v58 }
  0x98   :  { %v75_v4 = vpop.permute.xlu1 %74  ;;  %v426_v18 = vmax.f32 %v237_v2, 0.0 }
  0x99   :  { %v427_v19 = vmax.f32 %v286_v3, 0.0 }
  0x9c   :  { %v334_v5 = vpop.f32.mrf.mxu2  ;;  %v65_v9 = vpop.permute.xlu0 %64 }
  0x9d   :  { %v383_v6 = vpop.f32.mrf.mxu3  ;;  %v238_v10 = vpop.f32.mrf.mxu0  ;;  %v234_v13 = vadd.f32 %v233_v53, %v65_v9  ;;  %v283_v14 = vadd.f32 %v282_v54, %v65_v9  ;;  %v332_v15 = vadd.f32 %v331_v56, %v65_v9  ;;  %v381_v16 = vadd.f32 %v380_v57, %v65_v9 }
  0x9e   :  { %v287_v17 = vpop.f32.mrf.mxu1  ;;  %v239_v20 = vadd.f32 %v238_v10, %v75_v4  ;;  %v335_v32 = vadd.f32 %v334_v5, %v70_v58  ;;  %v384_v33 = vadd.f32 %v383_v6, %v70_v58 }
  0x9f   :  { %v288_v21 = vadd.f32 %v287_v17, %v75_v4  ;;  %v422_v22 = vmax.f32 %v234_v13, 0.0  ;;  %v423_v23 = vmax.f32 %v283_v14, 0.0  ;;  %v424_v24 = vmax.f32 %v332_v15, 0.0 }
  0xa0   :  { %v425_v25 = vmax.f32 %v381_v16, 0.0  ;;  %v430_v26 = vmax.f32 %v239_v20, 0.0  ;;  %v428_v53 = vmax.f32 %v335_v32, 0.0  ;;  %v429_v54 = vmax.f32 %v384_v33, 0.0 }
  0xa1   :  { %v431_v27 = vmax.f32 %v288_v21, 0.0  ;;  %v874_v28 = vpack.c.bf16 %v422_v22, %v418_v11  ;;  %v876_v29 = vpack.c.bf16 %v423_v23, %v419_v12  ;;  %v878_v30 = vpack.c.bf16 %v424_v24, %v420_v7 }
  0xa2   :  { %v880_v31 = vpack.c.bf16 %v425_v25, %v421_v8  ;;  %v882_v34 = vpack.c.bf16 %v430_v26, %v426_v18 }
  0xa3   :  { %1012 = vst [vmem:[#allocation2_spill] sm:$0xff] %v874_v28  ;;  %v884_v35 = vpack.c.bf16 %v431_v27, %v427_v19 }
  0xa4   :  { %1013 = vst [vmem:[#allocation3_spill] sm:$0xff] %v876_v29  ;;  %v336_v36 = vpop.f32.mrf.mxu2 }
  0xa5   :  { %1014 = vst [vmem:[#allocation4_spill] sm:$0xff] %v878_v30  ;;  %v385_v38 = vpop.f32.mrf.mxu3  ;;  %v337_v46 = vadd.f32 %v336_v36, %v75_v4  ;;  %v241_v50 = vpop.f32.mrf.mxu0 }
  0xa6   :  { %1015 = vst [vmem:[#allocation5_spill] sm:$0xff] %v880_v31  ;;  %v386_v47 = vadd.f32 %v385_v38, %v75_v4  ;;  %v290_v51 = vpop.f32.mrf.mxu1  ;;  %v242_v58 = vadd.f32 %v241_v50, %v872_v55 }
  0xa7   :  { %v432_v56 = vmax.f32 %v337_v46, 0.0  ;;  %v291_v61 = vadd.f32 %v290_v51, %v872_v55 }
  0xa8   :  { %v433_v57 = vmax.f32 %v386_v47, 0.0  ;;  %v434_v1 = vmax.f32 %v242_v58, 0.0 }
  0xa9   :  { %v886_v59 = vpack.c.bf16 %v432_v56, %v428_v53  ;;  %v435_v4 = vmax.f32 %v291_v61, 0.0 }
  0xaa   :  { %v888_v60 = vpack.c.bf16 %v433_v57, %v429_v54 }
  0xab   :  { %1016 = vst [vmem:[#allocation6_spill] sm:$0xff] %v886_v59 }
  0xac   :  { %1017 = vst [vmem:[#allocation7_spill] sm:$0xff] %v888_v60  ;;  %v339_v62 = vpop.f32.mrf.mxu2 }
  0xad   :  { %v388_v63 = vpop.f32.mrf.mxu3  ;;  %v243_v0 = vpop.f32.mrf.mxu0  ;;  %v340_v9 = vadd.f32 %v339_v62, %v872_v55 }
  0xae   :  { %v244_v2 = vadd.f32 %v243_v0, %v868_v49  ;;  %v292_v3 = vpop.f32.mrf.mxu1  ;;  %v389_v10 = vadd.f32 %v388_v63, %v872_v55 }
  0xaf   :  { %v293_v5 = vadd.f32 %v292_v3, %v868_v49  ;;  %v436_v18 = vmax.f32 %v340_v9, 0.0 }
  0xb0   :  { %v438_v6 = vmax.f32 %v244_v2, 0.0  ;;  %v437_v19 = vmax.f32 %v389_v10, 0.0 }
  0xb1   :  { %v439_v7 = vmax.f32 %v293_v5, 0.0 }
  0xb2   :  { %v894_v8 = vpack.c.bf16 %v438_v6, %v434_v1 }
  0xb3   :  { %v898_v11 = vpack.c.bf16 %v439_v7, %v435_v4 }
  0xb4   :  { %v341_v12 = vpop.f32.mrf.mxu2 }
  0xb5   :  { %v390_v13 = vpop.f32.mrf.mxu3  ;;  %v342_v14 = vadd.f32 %v341_v12, %v868_v49  ;;  %v246_v16 = vpop.f32.mrf.mxu0 }
  0xb6   :  { %v391_v15 = vadd.f32 %v390_v13, %v868_v49  ;;  %v295_v17 = vpop.f32.mrf.mxu1  ;;  %v247_v55 = vadd.f32 %v246_v16, %v862_v44 }
  0xb7   :  { %v440_v20 = vmax.f32 %v342_v14, 0.0  ;;  %v296_v24 = vadd.f32 %v295_v17, %v862_v44 }
  0xb8   :  { %v441_v21 = vmax.f32 %v391_v15, 0.0  ;;  %v442_v32 = vmax.f32 %v247_v55, 0.0 }
  0xb9   :  { %v902_v22 = vpack.c.bf16 %v440_v20, %v436_v18  ;;  %v443_v36 = vmax.f32 %v296_v24, 0.0 }
  0xba   :  { %v904_v23 = vpack.c.bf16 %v441_v21, %v437_v19 }
  0xbc   :  { %1018 = vst [vmem:[#allocation8_spill] sm:$0xff] %v904_v23  ;;  %v344_v25 = vpop.f32.mrf.mxu2 }
  0xbd   :  { %v393_v26 = vpop.f32.mrf.mxu3  ;;  %v248_v27 = vpop.f32.mrf.mxu0  ;;  %v345_v51 = vadd.f32 %v344_v25, %v862_v44 }
  0xbe   :  { %v249_v49 = vadd.f32 %v248_v27, %v870_v52  ;;  %v297_v33 = vpop.f32.mrf.mxu1  ;;  %v394_v53 = vadd.f32 %v393_v26, %v862_v44 }
  0xbf   :  { %v298_v38 = vadd.f32 %v297_v33, %v870_v52  ;;  %v444_v0 = vmax.f32 %v345_v51, 0.0 }
  0xc0   :  { %v446_v46 = vmax.f32 %v249_v49, 0.0  ;;  %v445_v1 = vmax.f32 %v394_v53, 0.0 }
  0xc1   :  { %v447_v47 = vmax.f32 %v298_v38, 0.0 }
  0xc2   :  { %v910_v50 = vpack.c.bf16 %v446_v46, %v442_v32 }
  0xc3   :  { %v914_v54 = vpack.c.bf16 %v447_v47, %v443_v36 }
  0xc4   :  { %v346_v56 = vpop.f32.mrf.mxu2 }
  0xc5   :  { %v395_v57 = vpop.f32.mrf.mxu3  ;;  %v347_v58 = vadd.f32 %v346_v56, %v870_v52  ;;  %v251_v62 = vpop.f32.mrf.mxu0 }
  0xc6   :  { %v396_v61 = vadd.f32 %v395_v57, %v870_v52  ;;  %v300_v63 = vpop.f32.mrf.mxu1  ;;  %v940_v47 = vadd.f32 %v251_v62, %v864_v45 }
  0xc7   :  { %v448_v2 = vmax.f32 %v347_v58, 0.0 }
  0xc8   :  { %v449_v3 = vmax.f32 %v396_v61, 0.0 }
  0xc9   :  { %v918_v4 = vpack.c.bf16 %v448_v2, %v444_v0  ;;  %v949_v2 = vadd.f32 %v300_v63, %v864_v45 }
  0xca   :  { %v920_v5 = vpack.c.bf16 %v449_v3, %v445_v1 }
  0xcc   :  { %v922_v6 = vpop.f32.mrf.mxu2 }
  0xcd   :  { %v924_v44 = vpop.f32.mrf.mxu3  ;;  %v253_v7 = vpop.f32.mrf.mxu0 }
  0xce   :  { %v302_v9 = vpop.f32.mrf.mxu1 }
  0xd4   :  { %v926_v10 = vpop.f32.mrf.mxu2 }
  0xd5   :  { %v928_v12 = vpop.f32.mrf.mxu3  ;;  %v256_v52 = vpop.f32.mrf.mxu0 }
  0xd6   :  { %v305_v13 = vpop.f32.mrf.mxu1  ;;  %v257_v62 = vadd.f32 %v256_v52, %v843_v37  ;;  %v303_v52 = vadd.f32 %v302_v9, %v866_v48 }
  0xd7   :  { %v306_v3 = vadd.f32 %v305_v13, %v843_v37 }
  0xd8   :  { %v458_v28 = vmax.f32 %v257_v62, 0.0 }
  0xdc   :  { %v930_v14 = vpop.f32.mrf.mxu2 }
  0xdd   :  { %v932_v15 = vpop.f32.mrf.mxu3  ;;  %v258_v16 = vpop.f32.mrf.mxu0 }
  0xde   :  { %v307_v17 = vpop.f32.mrf.mxu1 }
  0xe4   :  { %v934_v18 = vpop.f32.mrf.mxu2 }
  0xe5   :  { %v936_v19 = vpop.f32.mrf.mxu3  ;;  %v261_v20 = vpop.f32.mrf.mxu0 }
  0xe6   :  { %v310_v21 = vpop.f32.mrf.mxu1  ;;  %v262_v51 = vadd.f32 %v261_v20, %v853_v41 }
  0xe7   :  { %v311_v57 = vadd.f32 %v310_v21, %v853_v41  ;;  %v308_v21 = vadd.f32 %v307_v17, %v850_v40  ;;  %v459_v17 = vmax.f32 %v306_v3, 0.0 }
  0xe8   :  { %v466_v31 = vmax.f32 %v262_v51, 0.0 }
  0xe9   :  { %v467_v60 = vmax.f32 %v311_v57, 0.0 }
  0xec   :  { %v359_v55 = vpop.f32.mrf.mxu2 }
  0xed   :  { %v408_v24 = vpop.f32.mrf.mxu3  ;;  %v263_v25 = vpop.f32.mrf.mxu0 }
  0xee   :  { %v312_v26 = vpop.f32.mrf.mxu1  ;;  %v264_v58 = vadd.f32 %v263_v25, %v860_v43 }
  0xef   :  { %v313_v61 = vadd.f32 %v312_v26, %v860_v43  ;;  %v254_v26 = vadd.f32 %v253_v7, %v866_v48 }
  0xf0   :  { %v470_v63 = vmax.f32 %v264_v58, 0.0 }
  0xf1   :  { %v471_v59 = vmax.f32 %v313_v61, 0.0 }
  0xf4   :  { %v361_v27 = vpop.f32.mrf.mxu2 }
  0xf5   :  { %v410_v32 = vpop.f32.mrf.mxu3  ;;  %v266_v49 = vpop.f32.mrf.mxu0  ;;  %v362_v51 = vadd.f32 %v361_v27, %v860_v43  ;;  %v451_v27 = vmax.f32 %v949_v2, 0.0 }
  0xf6   :  { %v315_v33 = vpop.f32.mrf.mxu1  ;;  %v267_v36 = vadd.f32 %v266_v49, %v848_v39  ;;  %v259_v49 = vadd.f32 %v258_v16, %v850_v40 }
  0xf7   :  { %v316_v53 = vadd.f32 %v315_v33, %v848_v39 }
  0xf8   :  { %v474_v33 = vmax.f32 %v267_v36, 0.0  ;;  %v462_v36 = vmax.f32 %v259_v49, 0.0 }
  0xfc   :  { %v364_v38 = vpop.f32.mrf.mxu2 }
  0xfd   :  { %v413_v46 = vpop.f32.mrf.mxu3  ;;  %v268_v56 = vpop.f32.mrf.mxu0  ;;  %v365_v13 = vadd.f32 %v364_v38, %v848_v39  ;;  %v360_v38 = vadd.f32 %v359_v55, %v853_v41 }
  0xfe   :  { %v269_v0 = vadd.f32 %v268_v56, %v858_v42  ;;  %v317_v1 = vpop.f32.mrf.mxu1  ;;  %v475_v56 = vmax.f32 %v316_v53, 0.0  ;;  %v411_v53 = vadd.f32 %v410_v32, %v860_v43  ;;  %v357_v43 = vadd.f32 %v934_v18, %v850_v40 }
  0xff   :  { %v318_v20 = vadd.f32 %v317_v1, %v858_v42  ;;  %v414_v1 = vadd.f32 %v413_v46, %v848_v39  ;;  %v409_v39 = vadd.f32 %v408_v24, %v853_v41  ;;  %v507_v46 = vpack.c.bf16 %v471_v59, %v467_v60 }
 0x100   :  { %v478_v25 = vmax.f32 %v269_v0, 0.0  ;;  %v463_v0 = vmax.f32 %v308_v21, 0.0  ;;  %v476_v58 = vmax.f32 %v365_v13, 0.0  ;;  %v473_v55 = vmax.f32 %v411_v53, 0.0 }
 0x101   :  { %v479_v30 = vmax.f32 %v318_v20, 0.0  ;;  %v477_v61 = vmax.f32 %v414_v1, 0.0  ;;  %v454_v59 = vmax.f32 %v254_v26, 0.0  ;;  %v455_v60 = vmax.f32 %v303_v52, 0.0  ;;  %v519_v1 = vpop.permute.xlu1 %518 }
 0x102   :  { %v510_v29 = vpack.c.bf16 %v478_v25, %v474_v33  ;;  %v355_v24 = vadd.f32 %v930_v14, %v843_v37  ;;  %v502_v32 = vpack.c.bf16 %v462_v36, %v458_v28  ;;  %v468_v2 = vmax.f32 %v360_v38, 0.0 }
 0x103   :  { %v511_v16 = vpack.c.bf16 %v479_v30, %v475_v56  ;;  %v506_v30 = vpack.c.bf16 %v470_v63, %v466_v31  ;;  %v469_v18 = vmax.f32 %v409_v39, 0.0  ;;  %v401_v20 = vadd.f32 %v928_v12, %v866_v48 }
 0x104   :  { %v366_v23 = vpop.f32.mrf.mxu2  ;;  %521 = vmatpush.bf16.msrb.mxu0 %v510_v29  ;;  %v450_v29 = vmax.f32 %v940_v47, 0.0  ;;  %v404_v47 = vadd.f32 %v932_v15, %v843_v37  ;;  %v464_v49 = vmax.f32 %v357_v43, 0.0  ;;  %v350_v37 = vadd.f32 %v922_v6, %v864_v45 }
 0x105   :  { %v415_v7 = vpop.f32.mrf.mxu3  ;;  %v367_v57 = vadd.f32 %v366_v23, %v858_v42  ;;  %534 = vmatpush.bf16.msrb.mxu1 %v511_v16  ;;  %v472_v23 = vmax.f32 %v362_v51, 0.0  ;;  %v509_v28 = vpack.c.bf16 %v473_v55, %v469_v18  ;;  %v399_v33 = vadd.f32 %v924_v44, %v864_v45  ;;  %v1021_v44 = vld [vmem:[#allocation3_spill] sm:$0xff] }
 0x106   :  { %v416_v9 = vadd.f32 %v415_v7, %v858_v42  ;;  %v406_v42 = vadd.f32 %v936_v19, %v850_v40  ;;  %v503_v40 = vpack.c.bf16 %v463_v0, %v459_v17  ;;  %v352_v19 = vadd.f32 %v926_v10, %v866_v48 }
 0x107   :  { %v480_v62 = vmax.f32 %v367_v57, 0.0  ;;  %v508_v14 = vpack.c.bf16 %v472_v23, %v468_v2  ;;  %v498_v15 = vpack.c.bf16 %v454_v59, %v450_v29  ;;  %v460_v25 = vmax.f32 %v355_v24, 0.0 }
 0x108   :  { %v481_v3 = vmax.f32 %v416_v9, 0.0  ;;  %522 = vmatpush.bf16.msrb.mxu0 %v506_v30  ;;  %v465_v21 = vmax.f32 %v406_v42, 0.0  ;;  %v461_v26 = vmax.f32 %v404_v47, 0.0  ;;  %v499_v10 = vpack.c.bf16 %v455_v60, %v451_v27 }
 0x109   :  { %535 = vmatpush.bf16.msrb.mxu1 %v507_v46  ;;  %v512_v41 = vpack.c.bf16 %v480_v62, %v476_v58  ;;  %v456_v48 = vmax.f32 %v352_v19, 0.0  ;;  %v457_v12 = vmax.f32 %v401_v20, 0.0  ;;  %v504_v56 = vpack.c.bf16 %v464_v49, %v460_v25 }
 0x10a   :  { %v513_v31 = vpack.c.bf16 %v481_v3, %v477_v61  ;;  %v505_v63 = vpack.c.bf16 %v465_v21, %v461_v26  ;;  %v452_v52 = vmax.f32 %v350_v37, 0.0  ;;  %v453_v13 = vmax.f32 %v399_v33, 0.0 }
 0x10b   :  { %547 = vmatpush.bf16.msrb.mxu2 %v512_v41 }
 0x10c   :  { %560 = vmatpush.bf16.msrb.mxu3 %v513_v31  ;;  %523 = vmatpush.bf16.msrb.mxu0 %v502_v32  ;;  %v500_v45 = vpack.c.bf16 %v456_v48, %v452_v52  ;;  %v501_v6 = vpack.c.bf16 %v457_v12, %v453_v13 }
 0x10d   :  { %536 = vmatpush.bf16.msrb.mxu1 %v503_v40 }
 0x10f   :  { %548 = vmatpush.bf16.msrb.mxu2 %v508_v14 }
 0x110   :  { %561 = vmatpush.bf16.msrb.mxu3 %v509_v28  ;;  %524 = vmatpush.bf16.msrb.mxu0 %v498_v15 }
 0x111   :  { %537 = vmatpush.bf16.msrb.mxu1 %v499_v10 }
 0x113   :  { %549 = vmatpush.bf16.msrb.mxu2 %v504_v56 }
 0x114   :  { %562 = vmatpush.bf16.msrb.mxu3 %v505_v63  ;;  %525 = vmatpush.bf16.msrb.mxu0 %v910_v50  ;;  %v1019_v50 = vld [vmem:[#allocation8_spill] sm:$0xff] }
 0x115   :  { %538 = vmatpush.bf16.msrb.mxu1 %v914_v54  ;;  %v1020_v54 = vld [vmem:[#allocation2_spill] sm:$0xff] }
 0x117   :  { %550 = vmatpush.bf16.msrb.mxu2 %v500_v45 }
 0x118   :  { %563 = vmatpush.bf16.msrb.mxu3 %v501_v6  ;;  %526 = vmatpush.bf16.msrb.mxu0 %v894_v8  ;;  %v514_v8 = vld [vmem:[%s1010_s3] sm:$0x1] }
 0x119   :  { %539 = vmatpush.bf16.msrb.mxu1 %v898_v11  ;;  %v1022_v11 = vld [vmem:[#allocation6_spill] sm:$0xff] }
 0x11b   :  { %551 = vmatpush.bf16.msrb.mxu2 %v918_v4  ;;  %v1023_v4 = vld [vmem:[#allocation7_spill] sm:$0xff] }
 0x11c   :  { %564 = vmatpush.bf16.msrb.mxu3 %v920_v5  ;;  %527 = vmatpush.bf16.msrb.mxu0 %v882_v34  ;;  %v1024_v34 = vld [vmem:[#allocation4_spill] sm:$0xff] }
 0x11d   :  { %540 = vmatpush.bf16.msrb.mxu1 %v884_v35  ;;  %v1025_v35 = vld [vmem:[#allocation5_spill] sm:$0xff] }
 0x11f   :  { %552 = vmatpush.bf16.msrb.mxu2 %v902_v22 }
 0x120   :  { %565 = vmatpush.bf16.msrb.mxu3 %v1019_v50  ;;  %528 = vmatpush.bf16.msrb.mxu0 %v1020_v54 }
 0x121   :  { %541 = vmatpush.bf16.msrb.mxu1 %v1021_v44 }
 0x123   :  { %553 = vmatpush.bf16.msrb.mxu2 %v1022_v11  ;;  %529 = vmatmul.bf16.vlgmr.msrb.gmra.mxu0 %v514_v8 }
 0x124   :  { %566 = vmatpush.bf16.msrb.mxu3 %v1023_v4  ;;  %542 = vmatmul.bf16.vlgmr.msrb.gmra.mxu1 %v514_v8 }
 0x127   :  { %554 = vmatpush.bf16.msrb.mxu2 %v1024_v34 }
 0x128   :  { %567 = vmatpush.bf16.msrb.mxu3 %v1025_v35 }
 0x12a   :  { %555 = vmatmul.bf16.vlgmr.msrb.gmra.mxu2 %v514_v8 }
 0x12b   :  { %568 = vmatmul.bf16.vlgmr.msrb.gmra.mxu3 %v514_v8 }
 0x1a0   :  { %v530_v22 = vpop.f32.mrf.mxu0 }
 0x1a1   :  { %v543_v5 = vpop.f32.mrf.mxu1  ;;  %v531_v9 = vadd.f32 %v530_v22, %v519_v1 }
 0x1a2   :  { %v544_v36 = vadd.f32 %v543_v5, %v519_v1 }
 0x1a4   :  { %v577_v51 = vrot.slane %v544_v36, 6 }
 0x1a6   :  { %v581_v30 = vsel %vm580_vm1, %v531_v9, %v577_v51 }
 0x1a8   :  { %v532_v16 = vpop.f32.mrf.mxu0 }
 0x1a9   :  { %v545_v17 = vpop.f32.mrf.mxu1 }
 0x1ad   :  { %v556_v0 = vpop.f32.mrf.mxu2 }
 0x1ae   :  { %v569_v7 = vpop.f32.mrf.mxu3  ;;  %v557_v53 = vadd.f32 %v556_v0, %v519_v1 }
 0x1af   :  { %v570_v57 = vadd.f32 %v569_v7, %v519_v1 }
 0x1b0   :  { %v578_v38 = vrot.slane %v557_v53, 4 }
 0x1b1   :  { %v579_v39 = vrot.slane %v570_v57, 2 }
 0x1b3   :  { %v583_v46 = vsel %vm582_vm2, %v578_v38, %v579_v39 }
 0x1b4   :  { %v585_v58 = vsel %vm584_vm3, %v581_v30, %v583_v46 }
 0x1b5   :  { %587 = vst [vmem:[%s1011_s5] sm:$0xff] %v585_v58  ;;  %v558_v61 = vpop.f32.mrf.mxu2 }
 0x1b6   :  { %v571_v62 = vpop.f32.mrf.mxu3 }

</bundles_post_ra>
